<compile_context>
chip_gen: v5e
topology: v5e:2x2
jax: 0.10.0
libtpu: 0.0.40
codegen_flags: <defaults>
</compile_context>

<pallas_src>
import math

import jax
import jax.numpy as jnp
from jax.experimental import pallas as pl
from jax.experimental.pallas import tpu as pltpu

BN_EPS = 1e-5
VMEM_LIMIT_BYTES = 32 * 1024 * 1024   # safe on v5e/v6e (128 MiB) and v7x (64 MiB phys)


def _row_tile(m, cap=1024):
    """Largest row tile <= cap that divides m (falls back to m)."""
    t = min(m, cap)
    while t > 8 and m % t != 0:
        t -= 8
    return t if (t > 0 and m % t == 0) else m


# --------------------------- BatchNorm statistics ----------------------------
# Gridded reduction over rows: per-channel sum / sumsq accumulate in VMEM scratch
# across an "arbitrary" grid axis; the last step finalizes
#   scale = gamma * rsqrt(var + eps),  shift = beta - mean * scale.

def bn_scale_shift(x, gamma, beta):
    c = x.shape[-1]
    x2d = x.reshape(-1, c)
    m_rows = x2d.shape[0]
    tm = _row_tile(m_rows)
    inv_m = 1.0 / float(m_rows)

    def kernel(x_ref, g_ref, b_ref, o_ref, sum_ref, sq_ref):
        i = pl.program_id(0)

        @pl.when(i == 0)
        def _init():
            sum_ref[...] = jnp.zeros_like(sum_ref)
            sq_ref[...] = jnp.zeros_like(sq_ref)

        xv = x_ref[...]
        sum_ref[...] += jnp.sum(xv, axis=0, keepdims=True)
        sq_ref[...] += jnp.sum(xv * xv, axis=0, keepdims=True)

        @pl.when(i == pl.num_programs(0) - 1)
        def _finalize():
            mean = sum_ref[...] * inv_m
            var = jnp.maximum(sq_ref[...] * inv_m - mean * mean, 0.0)
            scale = g_ref[...] * jax.lax.rsqrt(var + BN_EPS)
            o_ref[0:1, :] = scale
            o_ref[1:2, :] = b_ref[...] - mean * scale

    return pl.pallas_call(
        kernel,
        out_shape=jax.ShapeDtypeStruct((2, c), jnp.float32),
        grid=(m_rows // tm,),
        in_specs=[pl.BlockSpec((tm, c), lambda i: (i, 0)),
                  pl.BlockSpec((1, c), lambda i: (0, 0)),
                  pl.BlockSpec((1, c), lambda i: (0, 0))],
        out_specs=pl.BlockSpec((2, c), lambda i: (0, 0)),
        scratch_shapes=[pltpu.VMEM((1, c), jnp.float32),
                        pltpu.VMEM((1, c), jnp.float32)],
        compiler_params=pltpu.CompilerParams(
            dimension_semantics=("arbitrary",),
            vmem_limit_bytes=VMEM_LIMIT_BYTES),
    )(x2d, gamma.reshape(1, c), beta.reshape(1, c))


# ----------------- Fused (BN affine + ReLU) -> conv -> (+residual) -----------

def fused_conv(x, w_hwio, *, stride=1, affine=None, residual=None):
    """y = conv2d(act, w) [+ residual]  with act = relu(x*scale + shift) when
    `affine` (the (2, Cin) result of bn_scale_shift) is given, else act = raw x.

    x: (N, H, W, Cin) NHWC f32.  w_hwio: (k, k, Cin, Cout), bias-free ('same'
    padding for k=3, none for k=1 -- matching the PyTorch convs).  The stride is
    handled by a stride-phase decomposition in the wrapper so the kernel only
    takes contiguous (unit-stride) slices of its VMEM-resident block; the k*k
    taps are accumulated as k*k MXU matmuls in a f32 accumulator.
    """
    nb, hi, wi, cin = x.shape
    k = w_hwio.shape[0]
    cout = w_hwio.shape[3]
    pad = (k - 1) // 2
    ho = (hi + 2 * pad - k) // stride + 1
    wo = (wi + 2 * pad - k) // stride + 1

    xp = jnp.pad(x, ((0, 0), (pad, pad), (pad, pad), (0, 0))) if pad else x
    sp = min(stride, k)              # stride phases actually touched per spatial axis
    phases = [xp[:, a::stride, b::stride, :] for a in range(sp) for b in range(sp)]
    ph_r, ph_c = phases[0].shape[1], phases[0].shape[2]

    has_affine = affine is not None
    need_mask = has_affine and pad > 0      # conv pads the post-BN activation with 0
    masks = []
    if need_mask:
        mfull = jnp.pad(jnp.ones((hi, wi, 1), jnp.float32),
                        ((pad, pad), (pad, pad), (0, 0)))
        masks = [mfull[a::stride, b::stride, :] for a in range(sp) for b in range(sp)]

    w_taps = w_hwio.reshape(k * k, cin, cout)
    has_res = residual is not None
    n_phase, n_mask = len(phases), len(masks)

    def kernel(*refs):
        idx = 0
        ph_refs = refs[idx:idx + n_phase]; idx += n_phase
        mk_refs = refs[idx:idx + n_mask]; idx += n_mask
        if has_affine:
            a_ref = refs[idx]; idx += 1
            scale = a_ref[0:1, :]            # (1, Cin) broadcasts over (ho, wo, Cin)
            shift = a_ref[1:2, :]
        w_ref = refs[idx]; idx += 1
        r_ref = None
        if has_res:
            r_ref = refs[idx]; idx += 1
        o_ref = refs[idx]

        acc = jnp.zeros((ho * wo, cout), jnp.float32)
        for dy in range(k):
            for dx in range(k):
                pa, pb = dy % stride, dx % stride
                oy, ox = dy // stride, dx // stride
                pidx = pa * sp + pb
                patch = ph_refs[pidx][0, oy:oy + ho, ox:ox + wo, :]
                if has_affine:
                    patch = jnp.maximum(patch * scale + shift, 0.0)
                    if need_mask:            # re-zero the conv-padding border
                        patch = patch * mk_refs[pidx][oy:oy + ho, ox:ox + wo, :]
                acc = acc + jnp.dot(patch.reshape(ho * wo, cin),
                                    w_ref[dy * k + dx],
                                    preferred_element_type=jnp.float32)
        if has_res:
            acc = acc + r_ref[0]             # fused residual add (epilogue)
        o_ref[0] = acc

    inputs, in_specs = [], []
    for p in phases:
        inputs.append(p)
        in_specs.append(pl.BlockSpec((1, ph_r, ph_c, cin), lambda i: (i, 0, 0, 0)))
    for mk in masks:
        inputs.append(mk)
        in_specs.append(pl.BlockSpec((ph_r, ph_c, 1), lambda i: (0, 0, 0)))
    if has_affine:
        inputs.append(affine)
        in_specs.append(pl.BlockSpec((2, cin), lambda i: (0, 0)))
    inputs.append(w_taps)
    in_specs.append(pl.BlockSpec((k * k, cin, cout), lambda i: (0, 0, 0)))
    if has_res:
        inputs.append(residual.reshape(nb, ho * wo, cout))
        in_specs.append(pl.BlockSpec((1, ho * wo, cout), lambda i: (i, 0, 0)))

    out = pl.pallas_call(
        kernel,
        out_shape=jax.ShapeDtypeStruct((nb, ho * wo, cout), jnp.float32),
        grid=(nb,),
        in_specs=in_specs,
        out_specs=pl.BlockSpec((1, ho * wo, cout), lambda i: (i, 0, 0)),
        compiler_params=pltpu.CompilerParams(
            dimension_semantics=("parallel",),
            vmem_limit_bytes=VMEM_LIMIT_BYTES),
    )(*inputs)
    return out.reshape(nb, ho, wo, cout)


# -------------------- Fused BN+ReLU -> global avg-pool -> FC -----------------

def pallas_head(x, stats, fc_w, fc_b):
    """x: (N, H, W, C).  Returns (embedding (N, C), logits (N, num_classes))."""
    nb, hi, wi, c = x.shape
    nc = fc_w.shape[1]

    def kernel(x_ref, a_ref, w_ref, b_ref, emb_ref, o_ref):
        act = jnp.maximum(x_ref[...] * a_ref[0:1, :] + a_ref[1:2, :], 0.0)
        pooled = jnp.mean(act, axis=1)       # F.avg_pool2d(., 8) is global here
        emb_ref[...] = pooled
        o_ref[...] = jnp.dot(pooled, w_ref[...],
                             preferred_element_type=jnp.float32) + b_ref[...]

    return pl.pallas_call(
        kernel,
        out_shape=(jax.ShapeDtypeStruct((nb, c), jnp.float32),
                   jax.ShapeDtypeStruct((nb, nc), jnp.float32)),
        compiler_params=pltpu.CompilerParams(vmem_limit_bytes=VMEM_LIMIT_BYTES),
    )(x.reshape(nb, hi * wi, c), stats, fc_w, fc_b.reshape(1, nc))


# --------------------------- parameters / forward ----------------------------

def init_params(key, depth=10, widen_factor=1, num_classes=10):
    assert (depth - 4) % 6 == 0, "depth should be 6n+4"
    n = (depth - 4) // 6
    nC = [16, 16 * widen_factor, 32 * widen_factor, 64 * widen_factor]
    kit = iter(jax.random.split(key, 8 * depth + 8))

    def conv_w(cin, cout, k):
        std = math.sqrt(2.0 / (k * k * cout))      # matches the PyTorch init loop
        return std * jax.random.normal(next(kit), (k, k, cin, cout), jnp.float32)

    params = {"conv1": conv_w(3, nC[0], 3), "blocks": []}
    strides = [1, 2, 2]
    for stage in range(3):
        in_p, out_p, stride = nC[stage], nC[stage + 1], strides[stage]
        stage_blocks = []
        for i in range(n):
            bin_p = in_p if i == 0 else out_p
            bstride = stride if i == 0 else 1
            bp = {
                "bn1_g": jnp.ones((bin_p,), jnp.float32),
                "bn1_b": jnp.zeros((bin_p,), jnp.float32),
                "conv1_w": conv_w(bin_p, out_p, 3),
                "bn2_g": jnp.ones((out_p,), jnp.float32),
                "bn2_b": jnp.zeros((out_p,), jnp.float32),
                "conv2_w": conv_w(out_p, out_p, 3),
                "stride": bstride,
                "equal": bin_p == out_p,
            }
            if not bp["equal"]:
                bp["short_w"] = conv_w(bin_p, out_p, 1)
            stage_blocks.append(bp)
        params["blocks"].append(stage_blocks)
    params["bn_final_g"] = jnp.ones((nC[3],), jnp.float32)
    params["bn_final_b"] = jnp.zeros((nC[3],), jnp.float32)
    bound = 1.0 / math.sqrt(nC[3])                 # nn.Linear default weight init
    params["fc_w"] = jax.random.uniform(next(kit), (nC[3], num_classes),
                                        jnp.float32, -bound, bound)
    params["fc_b"] = jnp.zeros((num_classes,), jnp.float32)   # zeroed in __init__
    return params


def basic_block_fwd(x, bp):
    # relu(bn1(x)) is never materialized: its affine is fused into the conv prologues.
    st1 = bn_scale_shift(x, bp["bn1_g"], bp["bn1_b"])
    h = fused_conv(x, bp["conv1_w"], stride=bp["stride"], affine=st1)
    if bp["equal"]:
        shortcut = x                                           # raw x (torch semantics)
    else:
        # convShortcut(relu(bn1(x))): 1x1 strided conv with the same fused affine.
        shortcut = fused_conv(x, bp["short_w"], stride=bp["stride"], affine=st1)
    st2 = bn_scale_shift(h, bp["bn2_g"], bp["bn2_b"])
    # dropRate == 0.0 -> F.dropout is a no-op and is omitted.
    return fused_conv(h, bp["conv2_w"], stride=1, affine=st2, residual=shortcut)


def wide_resnet_forward(params, x_nchw):
    x = jnp.transpose(x_nchw, (0, 2, 3, 1)).astype(jnp.float32)   # NCHW -> NHWC
    feats = []
    out = fused_conv(x, params["conv1"], stride=1)                # no preceding BN
    for stage_idx, stage in enumerate(params["blocks"]):
        for bp in stage:
            out = basic_block_fwd(out, bp)
        if stage_idx in (0, 1):
            feats.append(jnp.transpose(out, (0, 3, 1, 2)))        # report NCHW like torch
    stats = bn_scale_shift(out, params["bn_final_g"], params["bn_final_b"])
    emb, logits = pallas_head(out, stats, params["fc_w"], params["fc_b"])
    feats.append(emb)
    return feats, logits


if __name__ == "__main__":
    key = jax.random.PRNGKey(0)
    pkey, xkey = jax.random.split(key)

    # Smallest valid WRN: depth=10 (n=1 block/stage), widen_factor=1.  Spatial size
    # must be 32 so avg_pool2d(., 8) after two stride-2 stages is a global pool.
    params = init_params(pkey, depth=10, widen_factor=1, num_classes=10)
    x = jax.random.normal(xkey, (2, 3, 32, 32), jnp.float32)      # NCHW like PyTorch

    feats, logits = wide_resnet_forward(params, x)
    jax.block_until_ready(logits)
    for f in feats:
        jax.block_until_ready(f)

    assert feats[0].shape == (2, 16, 32, 32)
    assert feats[1].shape == (2, 32, 16, 16)
    assert feats[2].shape == (2, 64)
    assert logits.shape == (2, 10)
    assert bool(jnp.all(jnp.isfinite(logits)))
    print("KERNEL_OK")
</pallas_src>

<mosaic_0001>
module attributes {stable_mosaic.version = 11 : i64} {
  func.func @kernel(%arg0: i32, %arg1: memref<1x34x34x3xf32, #tpu.memory_space<vmem>>, %arg2: memref<9x3x16xf32, #tpu.memory_space<vmem>>, %arg3: memref<1x1024x16xf32, #tpu.memory_space<vmem>>) attributes {dimension_semantics = [#tpu.dimension_semantics<parallel>], iteration_bounds = array<i64: 2>, scalar_prefetch = 0 : i64, scratch_operands = 0 : i64, tpu.core_type = #tpu.core_type<tc>, window_params = [{transform_indices = @transform_0, window_bounds = array<i64: 1, 34, 34, 3>}, {pipeline_mode = #tpu.pipeline_mode<synchronous>, transform_indices = @transform_1, window_bounds = array<i64: 9, 3, 16>}, {transform_indices = @transform_2, window_bounds = array<i64: 1, 1024, 16>}]} {
    %cst = arith.constant 0.000000e+00 : f32
    %0 = vector.broadcast %cst : f32 to vector<1024x16xf32>
    %c0 = arith.constant 0 : index
    %c0_0 = arith.constant 0 : index
    %c0_1 = arith.constant 0 : index
    %c0_2 = arith.constant 0 : index
    %1 = vector.load %arg1[%c0, %c0_0, %c0_1, %c0_2] : memref<1x34x34x3xf32, #tpu.memory_space<vmem>>, vector<1x32x32x3xf32>
    %2 = vector.shape_cast %1 : vector<1x32x32x3xf32> to vector<32x32x3xf32>
    %3 = vector.shape_cast %2 : vector<32x32x3xf32> to vector<1024x3xf32>
    %c0_3 = arith.constant 0 : index
    %c0_4 = arith.constant 0 : index
    %c0_5 = arith.constant 0 : index
    %4 = vector.load %arg2[%c0_3, %c0_4, %c0_5] : memref<9x3x16xf32, #tpu.memory_space<vmem>>, vector<1x3x16xf32>
    %5 = vector.shape_cast %4 : vector<1x3x16xf32> to vector<3x16xf32>
    %cst_6 = arith.constant dense<0.000000e+00> : vector<1024x16xf32>
    %6 = tpu.matmul %3, %5, %cst_6 {dimension_numbers = #tpu.dot_dimension_numbers<[1], [0], [0], [1], [0, 0, 1, 1], [], []>} : vector<1024x3xf32>, vector<3x16xf32>, vector<1024x16xf32> -> vector<1024x16xf32>
    %7 = arith.addf %0, %6 : vector<1024x16xf32>
    %c0_7 = arith.constant 0 : index
    %c0_8 = arith.constant 0 : index
    %c1 = arith.constant 1 : index
    %c0_9 = arith.constant 0 : index
    %8 = vector.load %arg1[%c0_7, %c0_8, %c1, %c0_9] : memref<1x34x34x3xf32, #tpu.memory_space<vmem>>, vector<1x32x32x3xf32>
    %9 = vector.shape_cast %8 : vector<1x32x32x3xf32> to vector<32x32x3xf32>
    %10 = vector.shape_cast %9 : vector<32x32x3xf32> to vector<1024x3xf32>
    %c1_10 = arith.constant 1 : index
    %c0_11 = arith.constant 0 : index
    %c0_12 = arith.constant 0 : index
    %11 = vector.load %arg2[%c1_10, %c0_11, %c0_12] : memref<9x3x16xf32, #tpu.memory_space<vmem>>, vector<1x3x16xf32>
    %12 = vector.shape_cast %11 : vector<1x3x16xf32> to vector<3x16xf32>
    %cst_13 = arith.constant dense<0.000000e+00> : vector<1024x16xf32>
    %13 = tpu.matmul %10, %12, %cst_13 {dimension_numbers = #tpu.dot_dimension_numbers<[1], [0], [0], [1], [0, 0, 1, 1], [], []>} : vector<1024x3xf32>, vector<3x16xf32>, vector<1024x16xf32> -> vector<1024x16xf32>
    %14 = arith.addf %7, %13 : vector<1024x16xf32>
    %c0_14 = arith.constant 0 : index
    %c0_15 = arith.constant 0 : index
    %c2 = arith.constant 2 : index
    %c0_16 = arith.constant 0 : index
    %15 = vector.load %arg1[%c0_14, %c0_15, %c2, %c0_16] : memref<1x34x34x3xf32, #tpu.memory_space<vmem>>, vector<1x32x32x3xf32>
    %16 = vector.shape_cast %15 : vector<1x32x32x3xf32> to vector<32x32x3xf32>
    %17 = vector.shape_cast %16 : vector<32x32x3xf32> to vector<1024x3xf32>
    %c2_17 = arith.constant 2 : index
    %c0_18 = arith.constant 0 : index
    %c0_19 = arith.constant 0 : index
    %18 = vector.load %arg2[%c2_17, %c0_18, %c0_19] : memref<9x3x16xf32, #tpu.memory_space<vmem>>, vector<1x3x16xf32>
    %19 = vector.shape_cast %18 : vector<1x3x16xf32> to vector<3x16xf32>
    %cst_20 = arith.constant dense<0.000000e+00> : vector<1024x16xf32>
    %20 = tpu.matmul %17, %19, %cst_20 {dimension_numbers = #tpu.dot_dimension_numbers<[1], [0], [0], [1], [0, 0, 1, 1], [], []>} : vector<1024x3xf32>, vector<3x16xf32>, vector<1024x16xf32> -> vector<1024x16xf32>
    %21 = arith.addf %14, %20 : vector<1024x16xf32>
    %c0_21 = arith.constant 0 : index
    %c1_22 = arith.constant 1 : index
    %c0_23 = arith.constant 0 : index
    %c0_24 = arith.constant 0 : index
    %22 = vector.load %arg1[%c0_21, %c1_22, %c0_23, %c0_24] : memref<1x34x34x3xf32, #tpu.memory_space<vmem>>, vector<1x32x32x3xf32>
    %23 = vector.shape_cast %22 : vector<1x32x32x3xf32> to vector<32x32x3xf32>
    %24 = vector.shape_cast %23 : vector<32x32x3xf32> to vector<1024x3xf32>
    %c3 = arith.constant 3 : index
    %c0_25 = arith.constant 0 : index
    %c0_26 = arith.constant 0 : index
    %25 = vector.load %arg2[%c3, %c0_25, %c0_26] : memref<9x3x16xf32, #tpu.memory_space<vmem>>, vector<1x3x16xf32>
    %26 = vector.shape_cast %25 : vector<1x3x16xf32> to vector<3x16xf32>
    %cst_27 = arith.constant dense<0.000000e+00> : vector<1024x16xf32>
    %27 = tpu.matmul %24, %26, %cst_27 {dimension_numbers = #tpu.dot_dimension_numbers<[1], [0], [0], [1], [0, 0, 1, 1], [], []>} : vector<1024x3xf32>, vector<3x16xf32>, vector<1024x16xf32> -> vector<1024x16xf32>
    %28 = arith.addf %21, %27 : vector<1024x16xf32>
    %c0_28 = arith.constant 0 : index
    %c1_29 = arith.constant 1 : index
    %c1_30 = arith.constant 1 : index
    %c0_31 = arith.constant 0 : index
    %29 = vector.load %arg1[%c0_28, %c1_29, %c1_30, %c0_31] : memref<1x34x34x3xf32, #tpu.memory_space<vmem>>, vector<1x32x32x3xf32>
    %30 = vector.shape_cast %29 : vector<1x32x32x3xf32> to vector<32x32x3xf32>
    %31 = vector.shape_cast %30 : vector<32x32x3xf32> to vector<1024x3xf32>
    %c4 = arith.constant 4 : index
    %c0_32 = arith.constant 0 : index
    %c0_33 = arith.constant 0 : index
    %32 = vector.load %arg2[%c4, %c0_32, %c0_33] : memref<9x3x16xf32, #tpu.memory_space<vmem>>, vector<1x3x16xf32>
    %33 = vector.shape_cast %32 : vector<1x3x16xf32> to vector<3x16xf32>
    %cst_34 = arith.constant dense<0.000000e+00> : vector<1024x16xf32>
    %34 = tpu.matmul %31, %33, %cst_34 {dimension_numbers = #tpu.dot_dimension_numbers<[1], [0], [0], [1], [0, 0, 1, 1], [], []>} : vector<1024x3xf32>, vector<3x16xf32>, vector<1024x16xf32> -> vector<1024x16xf32>
    %35 = arith.addf %28, %34 : vector<1024x16xf32>
    %c0_35 = arith.constant 0 : index
    %c1_36 = arith.constant 1 : index
    %c2_37 = arith.constant 2 : index
    %c0_38 = arith.constant 0 : index
    %36 = vector.load %arg1[%c0_35, %c1_36, %c2_37, %c0_38] : memref<1x34x34x3xf32, #tpu.memory_space<vmem>>, vector<1x32x32x3xf32>
    %37 = vector.shape_cast %36 : vector<1x32x32x3xf32> to vector<32x32x3xf32>
    %38 = vector.shape_cast %37 : vector<32x32x3xf32> to vector<1024x3xf32>
    %c5 = arith.constant 5 : index
    %c0_39 = arith.constant 0 : index
    %c0_40 = arith.constant 0 : index
    %39 = vector.load %arg2[%c5, %c0_39, %c0_40] : memref<9x3x16xf32, #tpu.memory_space<vmem>>, vector<1x3x16xf32>
    %40 = vector.shape_cast %39 : vector<1x3x16xf32> to vector<3x16xf32>
    %cst_41 = arith.constant dense<0.000000e+00> : vector<1024x16xf32>
    %41 = tpu.matmul %38, %40, %cst_41 {dimension_numbers = #tpu.dot_dimension_numbers<[1], [0], [0], [1], [0, 0, 1, 1], [], []>} : vector<1024x3xf32>, vector<3x16xf32>, vector<1024x16xf32> -> vector<1024x16xf32>
    %42 = arith.addf %35, %41 : vector<1024x16xf32>
    %c0_42 = arith.constant 0 : index
    %c2_43 = arith.constant 2 : index
    %c0_44 = arith.constant 0 : index
    %c0_45 = arith.constant 0 : index
    %43 = vector.load %arg1[%c0_42, %c2_43, %c0_44, %c0_45] : memref<1x34x34x3xf32, #tpu.memory_space<vmem>>, vector<1x32x32x3xf32>
    %44 = vector.shape_cast %43 : vector<1x32x32x3xf32> to vector<32x32x3xf32>
    %45 = vector.shape_cast %44 : vector<32x32x3xf32> to vector<1024x3xf32>
    %c6 = arith.constant 6 : index
    %c0_46 = arith.constant 0 : index
    %c0_47 = arith.constant 0 : index
    %46 = vector.load %arg2[%c6, %c0_46, %c0_47] : memref<9x3x16xf32, #tpu.memory_space<vmem>>, vector<1x3x16xf32>
    %47 = vector.shape_cast %46 : vector<1x3x16xf32> to vector<3x16xf32>
    %cst_48 = arith.constant dense<0.000000e+00> : vector<1024x16xf32>
    %48 = tpu.matmul %45, %47, %cst_48 {dimension_numbers = #tpu.dot_dimension_numbers<[1], [0], [0], [1], [0, 0, 1, 1], [], []>} : vector<1024x3xf32>, vector<3x16xf32>, vector<1024x16xf32> -> vector<1024x16xf32>
    %49 = arith.addf %42, %48 : vector<1024x16xf32>
    %c0_49 = arith.constant 0 : index
    %c2_50 = arith.constant 2 : index
    %c1_51 = arith.constant 1 : index
    %c0_52 = arith.constant 0 : index
    %50 = vector.load %arg1[%c0_49, %c2_50, %c1_51, %c0_52] : memref<1x34x34x3xf32, #tpu.memory_space<vmem>>, vector<1x32x32x3xf32>
    %51 = vector.shape_cast %50 : vector<1x32x32x3xf32> to vector<32x32x3xf32>
    %52 = vector.shape_cast %51 : vector<32x32x3xf32> to vector<1024x3xf32>
    %c7 = arith.constant 7 : index
    %c0_53 = arith.constant 0 : index
    %c0_54 = arith.constant 0 : index
    %53 = vector.load %arg2[%c7, %c0_53, %c0_54] : memref<9x3x16xf32, #tpu.memory_space<vmem>>, vector<1x3x16xf32>
    %54 = vector.shape_cast %53 : vector<1x3x16xf32> to vector<3x16xf32>
    %cst_55 = arith.constant dense<0.000000e+00> : vector<1024x16xf32>
    %55 = tpu.matmul %52, %54, %cst_55 {dimension_numbers = #tpu.dot_dimension_numbers<[1], [0], [0], [1], [0, 0, 1, 1], [], []>} : vector<1024x3xf32>, vector<3x16xf32>, vector<1024x16xf32> -> vector<1024x16xf32>
    %56 = arith.addf %49, %55 : vector<1024x16xf32>
    %c0_56 = arith.constant 0 : index
    %c2_57 = arith.constant 2 : index
    %c2_58 = arith.constant 2 : index
    %c0_59 = arith.constant 0 : index
    %57 = vector.load %arg1[%c0_56, %c2_57, %c2_58, %c0_59] : memref<1x34x34x3xf32, #tpu.memory_space<vmem>>, vector<1x32x32x3xf32>
    %58 = vector.shape_cast %57 : vector<1x32x32x3xf32> to vector<32x32x3xf32>
    %59 = vector.shape_cast %58 : vector<32x32x3xf32> to vector<1024x3xf32>
    %c8 = arith.constant 8 : index
    %c0_60 = arith.constant 0 : index
    %c0_61 = arith.constant 0 : index
    %60 = vector.load %arg2[%c8, %c0_60, %c0_61] : memref<9x3x16xf32, #tpu.memory_space<vmem>>, vector<1x3x16xf32>
    %61 = vector.shape_cast %60 : vector<1x3x16xf32> to vector<3x16xf32>
    %cst_62 = arith.constant dense<0.000000e+00> : vector<1024x16xf32>
    %62 = tpu.matmul %59, %61, %cst_62 {dimension_numbers = #tpu.dot_dimension_numbers<[1], [0], [0], [1], [0, 0, 1, 1], [], []>} : vector<1024x3xf32>, vector<3x16xf32>, vector<1024x16xf32> -> vector<1024x16xf32>
    %63 = arith.addf %56, %62 : vector<1024x16xf32>
    %c0_63 = arith.constant 0 : index
    %c0_64 = arith.constant 0 : index
    %c0_65 = arith.constant 0 : index
    %64 = vector.load %arg3[%c0_63, %c0_64, %c0_65] : memref<1x1024x16xf32, #tpu.memory_space<vmem>>, vector<1x1024x16xf32>
    %65 = vector.shape_cast %64 : vector<1x1024x16xf32> to vector<1024x16xf32>
    %66 = vector.shape_cast %63 : vector<1024x16xf32> to vector<1x1024x16xf32>
    tpu.vector_store %arg3[%c0_63, %c0_64, %c0_65], %66 {strides = array<i32>} : memref<1x1024x16xf32, #tpu.memory_space<vmem>>, vector<1x1024x16xf32>,
    return
  }
  func.func @transform_0(%arg0: i32) -> (i32, i32, i32, i32) {
    %c0_i32 = arith.constant 0 : i32
    %c0_i32_0 = arith.constant 0 : i32
    %c0_i32_1 = arith.constant 0 : i32
    %c0_i32_2 = arith.constant 0 : i32
    return %arg0, %c0_i32, %c0_i32_0, %c0_i32_1 : i32, i32, i32, i32
  }
  func.func @transform_1(%arg0: i32) -> (i32, i32, i32) {
    %c0_i32 = arith.constant 0 : i32
    %c0_i32_0 = arith.constant 0 : i32
    %c0_i32_1 = arith.constant 0 : i32
    %c0_i32_2 = arith.constant 0 : i32
    return %c0_i32, %c0_i32_0, %c0_i32_1 : i32, i32, i32
  }
  func.func @transform_2(%arg0: i32) -> (i32, i32, i32) {
    %c0_i32 = arith.constant 0 : i32
    %c0_i32_0 = arith.constant 0 : i32
    %c0_i32_1 = arith.constant 0 : i32
    return %arg0, %c0_i32, %c0_i32_0 : i32, i32, i32
  }
}

</mosaic_0001>

<bundles_post_ra>
// kernel: tpu_custom_call.1
= control target key start
LH: loop header
LB: loop body
LE: loop exit
PB: predicated region body
PF: predicated region fallthrough
CT: control target
= control target key end

     0   :  { %s11472_s9 = smov 0   ;;  %s15544_s0 = inlined_call_operand.vmem [shape: f32[2,34,34,3], index: 0, kind: input, shape index: {}]   ;;  %s15545_s1 = inlined_call_operand.vmem [shape: f32[9,3,16], index: 1, kind: input, shape index: {}]   ;;  %s15546_s2 = inlined_call_operand.vmem [shape: f32[2,1024,16], index: 2, kind: output, shape index: {}]  }
   0x1 LB: > { %s9489_s10 = sadd.s32 4294967295, %s11455_s9   ;;  %p9493_p0 = scmp.ge.s32.totalorder %s11455_s9, 1  ;;  %s11455_s9 = sphi %s11472_s9, %s12_s9  }
   0x2   : > { %p112_p1 = scmp.lt.s32.totalorder %s11455_s9, 3 }
   0x4   : > { %p113_p2 = pnand %p9493_p0, %p112_p1 }
   0x6   : > { %116 = sbr.rel (%p113_p2) target bundleno = 2454 (0x996), region = 28 }
   0xb   : > { %v9497_v0 = vld [vmem:[%s15545_s1 + $0x4] sm:$0x7]  ;;  %vm788_vm0 = vcmask 1042432   ;;  %p134_p3 = scmp.lt.s32.totalorder %s9489_s10, 1  ;;  %v9756_v1 = vld [vmem:[%s15545_s1 + $0x8] sm:$0x7] }
   0xc   : > { %11437 = vmatpush.msk.msra.mxu1 %vm788_vm0, %v9497_v0  ;;  %11438 = vmatpush.msk.msra.mxu2 %vm788_vm0, %v9497_v0  ;;  %v10014_v2 = vld [vmem:[%s15545_s1 + $0xc] sm:$0x7]  ;;  %v272_v3 = vld [vmem:[%s15545_s1] sm:$0x7]  ;;  %v10272_v4 = vld [vmem:[%s15545_s1 + $0x10] sm:$0x7] }
   0xd   : > { %s15898_s10 = smov (!%p134_p3, %s9489_s10), 1  ;;  %11439 = vmatpush.msk.msra.mxu3 %vm788_vm0, %v9497_v0  ;;  %9498 = vmatpush.msk.msra.mxu0 %vm788_vm0, %v9497_v0  ;;  %vm403_vm1 = vcmask 23552   ;;  %vm9305_vm2 = vcmask 130048  }
   0xe   : > { %9757 = vmatpush.msk.msrb.mxu2 %vm788_vm0, %v9756_v1  ;;  %9627 = vmatpush.msk.msrb.mxu1 %vm788_vm0, %v272_v3  ;;  %s11440_s21 = smul.u32 1360, %s15898_s10  ;;  %s11436_s5 = sshll.u32 %s15898_s10, 10 }
   0xf   : > { %10015 = vmatpush.msk.msrb.mxu3 %vm788_vm0, %v10014_v2  ;;  %10273 = vmatpush.msk.msrb.mxu0 %vm788_vm0, %v10272_v4  ;;  %s13952_s8 = scalar_lea.vmem %s15546_s2, %s11436_s5 }
  0x10   : > { %s11509_s24 = scalar_lea.vmem %s15544_s0, %s11440_s21 }
  0x11   : > { %v305_v5 = vld [vmem:[%s11509_s24 + $0x141] sm:$0xff]  ;;  %v306_v9 = vld [vmem:[%s11509_s24 + $0x149] sm:$0xff]  ;;  %v307_v13 = vld [vmem:[%s11509_s24 + $0x151] sm:$0xff] }
  0x12   : > { %v337_v6 = vld [vmem:[%s11509_s24 + $0x281] sm:$0xff]  ;;  %9531 = vmatmul.msk.f32.vlgmr.msra.gmra.mxu1 %vm403_vm1, %v305_v5  ;;  %v338_v10 = vld [vmem:[%s11509_s24 + $0x289] sm:$0xff]  ;;  %v339_v14 = vld [vmem:[%s11509_s24 + $0x291] sm:$0xff] }
  0x13   : > { %v369_v7 = vld [vmem:[%s11509_s24 + $0x3c1] sm:$0xff]  ;;  %9563 = vmatmul.msk.f32.vlgmr.msra.gmra.mxu2 %vm403_vm1, %v337_v6  ;;  %v370_v11 = vld [vmem:[%s11509_s24 + $0x3c9] sm:$0xff]  ;;  %v371_v15 = vld [vmem:[%s11509_s24 + $0x3d1] sm:$0xff] }
  0x14   : > { %v273_v8 = vld [vmem:[%s11509_s24 + $0x1] sm:$0xff]  ;;  %9595 = vmatmul.msk.f32.vlgmr.msra.gmra.mxu3 %vm403_vm1, %v369_v7  ;;  %v274_v12 = vld [vmem:[%s11509_s24 + $0x9] sm:$0xff]  ;;  %v275_v16 = vld [vmem:[%s11509_s24 + $0x11] sm:$0xff] }
  0x15   : > { %9499 = vmatmul.msk.f32.vlgmr.msra.gmra.mxu0 %vm403_vm1, %v273_v8  ;;  %v308_v17 = vld [vmem:[%s11509_s24 + $0x159] sm:$0xff]  ;;  %v309_v21 = vld [vmem:[%s11509_s24 + $0x169] sm:$0xff]  ;;  %v310_v25 = vld [vmem:[%s11509_s24 + $0x171] sm:$0xff] }
  0x16   : > { %v340_v18 = vld [vmem:[%s11509_s24 + $0x299] sm:$0xff]  ;;  %v341_v22 = vld [vmem:[%s11509_s24 + $0x2a9] sm:$0xff]  ;;  %v342_v26 = vld [vmem:[%s11509_s24 + $0x2b1] sm:$0xff] }
  0x17   : > { %v372_v19 = vld [vmem:[%s11509_s24 + $0x3d9] sm:$0xff]  ;;  %v373_v23 = vld [vmem:[%s11509_s24 + $0x3e9] sm:$0xff]  ;;  %v374_v27 = vld [vmem:[%s11509_s24 + $0x3f1] sm:$0xff] }
  0x18   : > { %v276_v20 = vld [vmem:[%s11509_s24 + $0x19] sm:$0xff]  ;;  %v11547_v24 = vld [vmem:[%s11509_s24 + $0x29] sm:$0xff]  ;;  %v11558_v28 = vld [vmem:[%s11509_s24 + $0x31] sm:$0xff] }
  0x19   : > { %v311_v29 = vld [vmem:[%s11509_s24 + $0x179] sm:$0xff]  ;;  %v312_v33 = vld [vmem:[%s11509_s24 + $0x181] sm:$0xff]  ;;  %v313_v37 = vld [vmem:[%s11509_s24 + $0x191] sm:$0xff] }
  0x1a   : > { %9532 = vmatmul.msk.f32.gmra.mxu1 %vm403_vm1, %v306_v9  ;;  %v343_v30 = vld [vmem:[%s11509_s24 + $0x2b9] sm:$0xff]  ;;  %v344_v34 = vld [vmem:[%s11509_s24 + $0x2c1] sm:$0xff]  ;;  %v345_v38 = vld [vmem:[%s11509_s24 + $0x2d1] sm:$0xff] }
  0x1b   : > { %9564 = vmatmul.msk.f32.gmra.mxu2 %vm403_vm1, %v338_v10  ;;  %v375_v31 = vld [vmem:[%s11509_s24 + $0x3f9] sm:$0xff]  ;;  %v376_v35 = vld [vmem:[%s11509_s24 + $0x401] sm:$0xff]  ;;  %v377_v39 = vld [vmem:[%s11509_s24 + $0x411] sm:$0xff] }
  0x1c   : > { %9596 = vmatmul.msk.f32.gmra.mxu3 %vm403_vm1, %v370_v11  ;;  %v11569_v32 = vld [vmem:[%s11509_s24 + $0x39] sm:$0xff]  ;;  %v11580_v36 = vld [vmem:[%s11509_s24 + $0x41] sm:$0xff]  ;;  %v11591_v40 = vld [vmem:[%s11509_s24 + $0x51] sm:$0xff] }
  0x1d   : > { %9500 = vmatmul.msk.f32.gmra.mxu0 %vm403_vm1, %v274_v12  ;;  %v314_v41 = vld [vmem:[%s11509_s24 + $0x199] sm:$0xff]  ;;  %v315_v45 = vld [vmem:[%s11509_s24 + $0x1a1] sm:$0xff]  ;;  %v316_v49 = vld [vmem:[%s11509_s24 + $0x1a9] sm:$0xff] }
  0x1e   : > { %v346_v42 = vld [vmem:[%s11509_s24 + $0x2d9] sm:$0xff]  ;;  %v347_v46 = vld [vmem:[%s11509_s24 + $0x2e1] sm:$0xff]  ;;  %v348_v50 = vld [vmem:[%s11509_s24 + $0x2e9] sm:$0xff] }
  0x1f   : > { %v378_v43 = vld [vmem:[%s11509_s24 + $0x419] sm:$0xff]  ;;  %v379_v47 = vld [vmem:[%s11509_s24 + $0x421] sm:$0xff]  ;;  %v380_v51 = vld [vmem:[%s11509_s24 + $0x429] sm:$0xff] }
  0x20   : > { %v11602_v44 = vld [vmem:[%s11509_s24 + $0x59] sm:$0xff]  ;;  %v11613_v48 = vld [vmem:[%s11509_s24 + $0x61] sm:$0xff]  ;;  %v11624_v52 = vld [vmem:[%s11509_s24 + $0x69] sm:$0xff] }
  0x21   : > { %v317_v53 = vld [vmem:[%s11509_s24 + $0x1b9] sm:$0xff]  ;;  %v318_v57 = vld [vmem:[%s11509_s24 + $0x1c1] sm:$0xff]  ;;  %v319_v61 = vld [vmem:[%s11509_s24 + $0x1c9] sm:$0xff] }
  0x22   : > { %9533 = vmatmul.msk.f32.gmra.mxu1 %vm403_vm1, %v307_v13  ;;  %v349_v54 = vld [vmem:[%s11509_s24 + $0x2f9] sm:$0xff]  ;;  %v350_v58 = vld [vmem:[%s11509_s24 + $0x301] sm:$0xff]  ;;  %v351_v62 = vld [vmem:[%s11509_s24 + $0x309] sm:$0xff] }
  0x23   : > { %9565 = vmatmul.msk.f32.gmra.mxu2 %vm403_vm1, %v339_v14  ;;  %v381_v55 = vld [vmem:[%s11509_s24 + $0x439] sm:$0xff]  ;;  %v382_v59 = vld [vmem:[%s11509_s24 + $0x441] sm:$0xff]  ;;  %v383_v63 = vld [vmem:[%s11509_s24 + $0x449] sm:$0xff] }
  0x24   : > { %9597 = vmatmul.msk.f32.gmra.mxu3 %vm403_vm1, %v371_v15  ;;  %v11635_v56 = vld [vmem:[%s11509_s24 + $0x79] sm:$0xff]  ;;  %v11646_v60 = vld [vmem:[%s11509_s24 + $0x81] sm:$0xff]  ;;  %v11657_v0 = vld [vmem:[%s11509_s24 + $0x89] sm:$0xff] }
  0x25   : > { %9501 = vmatmul.msk.f32.gmra.mxu0 %vm403_vm1, %v275_v16  ;;  %v320_v1 = vld [vmem:[%s11509_s24 + $0x1d1] sm:$0xff]  ;;  %v321_v6 = vld [vmem:[%s11509_s24 + $0x1e1] sm:$0xff]  ;;  %v322_v14 = vld [vmem:[%s11509_s24 + $0x1e9] sm:$0xff] }
  0x26   : > { %v352_v2 = vld [vmem:[%s11509_s24 + $0x311] sm:$0xff]  ;;  %v353_v7 = vld [vmem:[%s11509_s24 + $0x321] sm:$0xff]  ;;  %v354_v15 = vld [vmem:[%s11509_s24 + $0x329] sm:$0xff] }
  0x27   : > { %v384_v3 = vld [vmem:[%s11509_s24 + $0x451] sm:$0xff]  ;;  %v385_v8 = vld [vmem:[%s11509_s24 + $0x461] sm:$0xff]  ;;  %v386_v16 = vld [vmem:[%s11509_s24 + $0x469] sm:$0xff] }
  0x28   : > { %v11668_v4 = vld [vmem:[%s11509_s24 + $0x91] sm:$0xff]  ;;  %v11683_v10 = vld [vmem:[%s11509_s24 + $0xa1] sm:$0xff] }
  0x2a   : > { %9534 = vmatmul.msk.f32.gmra.mxu1 %vm403_vm1, %v308_v17 }
  0x2b   : > { %9566 = vmatmul.msk.f32.gmra.mxu2 %vm403_vm1, %v340_v18  ;;  %v11702_v18 = vld [vmem:[%s11509_s24 + $0xa9] sm:$0xff] }
  0x2c   : > { %9598 = vmatmul.msk.f32.gmra.mxu3 %vm403_vm1, %v372_v19 }
  0x2d   : > { %9502 = vmatmul.msk.f32.gmra.mxu0 %vm403_vm1, %v276_v20 }
  0x32   : > { %9535 = vmatmul.msk.f32.gmra.mxu1 %vm403_vm1, %v309_v21 }
  0x33   : > { %9567 = vmatmul.msk.f32.gmra.mxu2 %vm403_vm1, %v341_v22  ;;  %v323_v22 = vld [vmem:[%s11509_s24 + $0x1f1] sm:$0xff] }
  0x34   : > { %9599 = vmatmul.msk.f32.gmra.mxu3 %vm403_vm1, %v373_v23  ;;  %v355_v23 = vld [vmem:[%s11509_s24 + $0x331] sm:$0xff] }
  0x35   : > { %9503 = vmatmul.msk.f32.gmra.mxu0 %vm403_vm1, %v11547_v24 }
  0x3a   : > { %9536 = vmatmul.msk.f32.gmra.mxu1 %vm403_vm1, %v310_v25  ;;  %v387_v25 = vld [vmem:[%s11509_s24 + $0x471] sm:$0xff] }
  0x3b   : > { %9568 = vmatmul.msk.f32.gmra.mxu2 %vm403_vm1, %v342_v26 }
  0x3c   : > { %9600 = vmatmul.msk.f32.gmra.mxu3 %vm403_vm1, %v374_v27  ;;  %v11721_v27 = vld [vmem:[%s11509_s24 + $0xb1] sm:$0xff] }
  0x3d   : > { %9504 = vmatmul.msk.f32.gmra.mxu0 %vm403_vm1, %v11558_v28 }
  0x42   : > { %9537 = vmatmul.msk.f32.gmra.mxu1 %vm403_vm1, %v311_v29 }
  0x43   : > { %9569 = vmatmul.msk.f32.gmra.mxu2 %vm403_vm1, %v343_v30 }
  0x44   : > { %9601 = vmatmul.msk.f32.gmra.mxu3 %vm403_vm1, %v375_v31 }
  0x45   : > { %9505 = vmatmul.msk.f32.gmra.mxu0 %vm403_vm1, %v11569_v32 }
  0x4a   : > { %9538 = vmatmul.msk.f32.gmra.mxu1 %vm403_vm1, %v312_v33  ;;  %v324_v33 = vld [vmem:[%s11509_s24 + $0x1f9] sm:$0xff] }
  0x4b   : > { %9570 = vmatmul.msk.f32.gmra.mxu2 %vm403_vm1, %v344_v34  ;;  %v356_v34 = vld [vmem:[%s11509_s24 + $0x339] sm:$0xff] }
  0x4c   : > { %9602 = vmatmul.msk.f32.gmra.mxu3 %vm403_vm1, %v376_v35  ;;  %v388_v35 = vld [vmem:[%s11509_s24 + $0x479] sm:$0xff] }
  0x4d   : > { %9506 = vmatmul.msk.f32.gmra.mxu0 %vm403_vm1, %v11580_v36 }
  0x52   : > { %9539 = vmatmul.msk.f32.gmra.mxu1 %vm403_vm1, %v313_v37 }
  0x53   : > { %9571 = vmatmul.msk.f32.gmra.mxu2 %vm403_vm1, %v345_v38  ;;  %v11740_v38 = vld [vmem:[%s11509_s24 + $0xb9] sm:$0xff] }
  0x54   : > { %9603 = vmatmul.msk.f32.gmra.mxu3 %vm403_vm1, %v377_v39 }
  0x55   : > { %9507 = vmatmul.msk.f32.gmra.mxu0 %vm403_vm1, %v11591_v40 }
  0x5a   : > { %9540 = vmatmul.msk.f32.gmra.mxu1 %vm403_vm1, %v314_v41 }
  0x5b   : > { %9572 = vmatmul.msk.f32.gmra.mxu2 %vm403_vm1, %v346_v42 }
  0x5c   : > { %9604 = vmatmul.msk.f32.gmra.mxu3 %vm403_vm1, %v378_v43  ;;  %v325_v43 = vld [vmem:[%s11509_s24 + $0x209] sm:$0xff] }
  0x5d   : > { %9508 = vmatmul.msk.f32.gmra.mxu0 %vm403_vm1, %v11602_v44 }
  0x62   : > { %9541 = vmatmul.msk.f32.gmra.mxu1 %vm403_vm1, %v315_v45  ;;  %v357_v45 = vld [vmem:[%s11509_s24 + $0x349] sm:$0xff] }
  0x63   : > { %9573 = vmatmul.msk.f32.gmra.mxu2 %vm403_vm1, %v347_v46  ;;  %v389_v46 = vld [vmem:[%s11509_s24 + $0x489] sm:$0xff] }
  0x64   : > { %9605 = vmatmul.msk.f32.gmra.mxu3 %vm403_vm1, %v379_v47 }
  0x65   : > { %9509 = vmatmul.msk.f32.gmra.mxu0 %vm403_vm1, %v11613_v48 }
  0x6a   : > { %9542 = vmatmul.msk.f32.gmra.mxu1 %vm403_vm1, %v316_v49  ;;  %v11759_v49 = vld [vmem:[%s11509_s24 + $0xc9] sm:$0xff] }
  0x6b   : > { %9574 = vmatmul.msk.f32.gmra.mxu2 %vm403_vm1, %v348_v50 }
  0x6c   : > { %9606 = vmatmul.msk.f32.gmra.mxu3 %vm403_vm1, %v380_v51 }
  0x6d   : > { %9510 = vmatmul.msk.f32.gmra.mxu0 %vm403_vm1, %v11624_v52 }
  0x72   : > { %9543 = vmatmul.msk.f32.gmra.mxu1 %vm403_vm1, %v317_v53 }
  0x73   : > { %9575 = vmatmul.msk.f32.gmra.mxu2 %vm403_vm1, %v349_v54  ;;  %v326_v54 = vld [vmem:[%s11509_s24 + $0x211] sm:$0xff] }
  0x74   : > { %9607 = vmatmul.msk.f32.gmra.mxu3 %vm403_vm1, %v381_v55  ;;  %v358_v55 = vld [vmem:[%s11509_s24 + $0x351] sm:$0xff] }
  0x75   : > { %9511 = vmatmul.msk.f32.gmra.mxu0 %vm403_vm1, %v11635_v56 }
  0x7a   : > { %9544 = vmatmul.msk.f32.gmra.mxu1 %vm403_vm1, %v318_v57  ;;  %v390_v57 = vld [vmem:[%s11509_s24 + $0x491] sm:$0xff] }
  0x7b   : > { %9576 = vmatmul.msk.f32.gmra.mxu2 %vm403_vm1, %v350_v58 }
  0x7c   : > { %9608 = vmatmul.msk.f32.gmra.mxu3 %vm403_vm1, %v382_v59  ;;  %v11778_v59 = vld [vmem:[%s11509_s24 + $0xd1] sm:$0xff] }
  0x7d   : > { %9512 = vmatmul.msk.f32.gmra.mxu0 %vm403_vm1, %v11646_v60 }
  0x82   : > { %9545 = vmatmul.msk.f32.gmra.mxu1 %vm403_vm1, %v319_v61 }
  0x83   : > { %9577 = vmatmul.msk.f32.gmra.mxu2 %vm403_vm1, %v351_v62 }
  0x84   : > { %9609 = vmatmul.msk.f32.gmra.mxu3 %vm403_vm1, %v383_v63 }
  0x85   : > { %9513 = vmatmul.msk.f32.gmra.mxu0 %vm403_vm1, %v11657_v0 }
  0x8a   : > { %9546 = vmatmul.msk.f32.gmra.mxu1 %vm403_vm1, %v320_v1  ;;  %v327_v1 = vld [vmem:[%s11509_s24 + $0x219] sm:$0xff] }
  0x8b   : > { %9578 = vmatmul.msk.f32.gmra.mxu2 %vm403_vm1, %v352_v2  ;;  %v359_v2 = vld [vmem:[%s11509_s24 + $0x359] sm:$0xff] }
  0x8c   : > { %9610 = vmatmul.msk.f32.gmra.mxu3 %vm403_vm1, %v384_v3  ;;  %v391_v3 = vld [vmem:[%s11509_s24 + $0x499] sm:$0xff] }
  0x8d   : > { %9514 = vmatmul.msk.f32.gmra.mxu0 %vm403_vm1, %v11668_v4 }
  0x8f   : > { %v11675_v5 = vpop.f32.mrf.mxu1 }
  0x92   : > { %v11680_v9 = vpop.f32.mrf.mxu0  ;;  %9547 = vmatmul.msk.f32.gmra.mxu1 %vm403_vm1, %v321_v6 }
  0x93   : > { %9579 = vmatmul.msk.f32.gmra.mxu2 %vm403_vm1, %v353_v7  ;;  %v11797_v7 = vld [vmem:[%s11509_s24 + $0xd9] sm:$0xff] }
  0x94   : > { %9611 = vmatmul.msk.f32.gmra.mxu3 %vm403_vm1, %v385_v8 }
  0x95   : > { %9515 = vmatmul.msk.f32.gmra.mxu0 %vm403_vm1, %v11683_v10 }
  0x96   : > { %v11690_v11 = vpop.f32.mrf.mxu2 }
  0x97   : > { %15547 = vst [vmem:[#allocation2_spill] sm:$0xff] %v11690_v11  ;;  %v11692_v12 = vpop.f32.mrf.mxu3  ;;  %v11694_v13 = vpop.f32.mrf.mxu1  ;;  %v336_v11 = vld [vmem:[%s11509_s24 + $0x271] sm:$0xff] }
  0x98   : > { %15548 = vst [vmem:[#allocation3_spill] sm:$0xff] %v11692_v12 }
  0x9a   : > { %v11699_v17 = vpop.f32.mrf.mxu0  ;;  %9548 = vmatmul.msk.f32.gmra.mxu1 %vm403_vm1, %v322_v14 }
  0x9b   : > { %9580 = vmatmul.msk.f32.gmra.mxu2 %vm403_vm1, %v354_v15 }
  0x9c   : > { %9612 = vmatmul.msk.f32.gmra.mxu3 %vm403_vm1, %v386_v16  ;;  %v328_v16 = vld [vmem:[%s11509_s24 + $0x221] sm:$0xff] }
  0x9d   : > { %9516 = vmatmul.msk.f32.gmra.mxu0 %vm403_vm1, %v11702_v18 }
  0x9e   : > { %v11709_v19 = vpop.f32.mrf.mxu2 }
  0x9f   : > { %15549 = vst [vmem:[#allocation4_spill] sm:$0xff] %v11709_v19  ;;  %v11711_v20 = vpop.f32.mrf.mxu3  ;;  %v11713_v21 = vpop.f32.mrf.mxu1  ;;  %v11965_v19 = vld [vmem:[%s11509_s24 + $0x129] sm:$0xff] }
  0xa0   : > { %15550 = vst [vmem:[#allocation5_spill] sm:$0xff] %v11711_v20  ;;  %v364_v20 = vld [vmem:[%s11509_s24 + $0x389] sm:$0xff] }
  0xa2   : > { %v11718_v26 = vpop.f32.mrf.mxu0  ;;  %9549 = vmatmul.msk.f32.gmra.mxu1 %vm403_vm1, %v323_v22  ;;  %v360_v22 = vld [vmem:[%s11509_s24 + $0x361] sm:$0xff] }
  0xa3   : > { %9581 = vmatmul.msk.f32.gmra.mxu2 %vm403_vm1, %v355_v23  ;;  %v392_v23 = vld [vmem:[%s11509_s24 + $0x4a1] sm:$0xff] }
  0xa4   : > { %9613 = vmatmul.msk.f32.gmra.mxu3 %vm403_vm1, %v387_v25 }
  0xa5   : > { %9517 = vmatmul.msk.f32.gmra.mxu0 %vm403_vm1, %v11721_v27 }
  0xa6   : > { %v11728_v29 = vpop.f32.mrf.mxu2 }
  0xa7   : > { %15551 = vst [vmem:[#allocation6_spill] sm:$0xff] %v11728_v29  ;;  %v11730_v30 = vpop.f32.mrf.mxu3  ;;  %v11732_v31 = vpop.f32.mrf.mxu1 }
  0xa8   : > { %15552 = vst [vmem:[#allocation7_spill] sm:$0xff] %v11730_v30  ;;  %v332_v30 = vld [vmem:[%s11509_s24 + $0x249] sm:$0xff] }
  0xa9   : > { %15553 = vst [vmem:[#allocation8_spill] sm:$0xff] %v11732_v31 }
  0xaa   : > { %v11737_v37 = vpop.f32.mrf.mxu0  ;;  %9550 = vmatmul.msk.f32.gmra.mxu1 %vm403_vm1, %v324_v33  ;;  %v11816_v33 = vld [vmem:[%s11509_s24 + $0xe1] sm:$0xff] }
  0xab   : > { %9582 = vmatmul.msk.f32.gmra.mxu2 %vm403_vm1, %v356_v34 }
  0xac   : > { %9614 = vmatmul.msk.f32.gmra.mxu3 %vm403_vm1, %v388_v35 }
  0xad   : > { %9518 = vmatmul.msk.f32.gmra.mxu0 %vm403_vm1, %v11740_v38 }
  0xae   : > { %v11747_v39 = vpop.f32.mrf.mxu2 }
  0xaf   : > { %15554 = vst [vmem:[#allocation9_spill] sm:$0xff] %v11747_v39  ;;  %v11749_v41 = vpop.f32.mrf.mxu3  ;;  %v11751_v42 = vpop.f32.mrf.mxu1  ;;  %v399_v39 = vld [vmem:[%s11509_s24 + $0x4e9] sm:$0xff] }
  0xb0   : > { %15555 = vst [vmem:[#allocation10_spill] sm:$0xff] %v11749_v41 }
  0xb1   : > { %15556 = vst [vmem:[#allocation11_spill] sm:$0xff] %v11751_v42  ;;  %v9903_v42 = vld [vmem:[%s11509_s24 + $0xd0] sm:$0xff] }
  0xb2   : > { %v11756_v47 = vpop.f32.mrf.mxu0  ;;  %9551 = vmatmul.msk.f32.gmra.mxu1 %vm403_vm1, %v325_v43 }
  0xb3   : > { %9583 = vmatmul.msk.f32.gmra.mxu2 %vm403_vm1, %v357_v45  ;;  %v329_v45 = vld [vmem:[%s11509_s24 + $0x231] sm:$0xff] }
  0xb4   : > { %9615 = vmatmul.msk.f32.gmra.mxu3 %vm403_vm1, %v389_v46  ;;  %v361_v46 = vld [vmem:[%s11509_s24 + $0x371] sm:$0xff] }
  0xb5   : > { %9519 = vmatmul.msk.f32.gmra.mxu0 %vm403_vm1, %v11759_v49 }
  0xb6   : > { %v11766_v50 = vpop.f32.mrf.mxu2 }
  0xb7   : > { %15557 = vst [vmem:[#allocation12_spill] sm:$0xff] %v11766_v50  ;;  %v11768_v51 = vpop.f32.mrf.mxu3  ;;  %v11770_v53 = vpop.f32.mrf.mxu1 }
  0xb8   : > { %15558 = vst [vmem:[#allocation13_spill] sm:$0xff] %v11768_v51 }
  0xb9   : > { %15559 = vst [vmem:[#allocation14_spill] sm:$0xff] %v11770_v53 }
  0xba   : > { %v11775_v58 = vpop.f32.mrf.mxu0  ;;  %9552 = vmatmul.msk.f32.gmra.mxu1 %vm403_vm1, %v326_v54  ;;  %v393_v54 = vld [vmem:[%s11509_s24 + $0x4b1] sm:$0xff] }
  0xbb   : > { %9584 = vmatmul.msk.f32.gmra.mxu2 %vm403_vm1, %v358_v55 }
  0xbc   : > { %9616 = vmatmul.msk.f32.gmra.mxu3 %vm403_vm1, %v390_v57  ;;  %v11835_v57 = vld [vmem:[%s11509_s24 + $0xf1] sm:$0xff] }
  0xbd   : > { %9520 = vmatmul.msk.f32.gmra.mxu0 %vm403_vm1, %v11778_v59 }
  0xbe   : > { %v11785_v61 = vpop.f32.mrf.mxu2 }
  0xbf   : > { %15560 = vst [vmem:[#allocation15_spill] sm:$0xff] %v11785_v61  ;;  %v11787_v62 = vpop.f32.mrf.mxu3  ;;  %v11789_v63 = vpop.f32.mrf.mxu1  ;;  %v366_v61 = vld [vmem:[%s11509_s24 + $0x3a1] sm:$0xff] }
  0xc0   : > { %15561 = vst [vmem:[#allocation16_spill] sm:$0xff] %v11787_v62  ;;  %v363_v62 = vld [vmem:[%s11509_s24 + $0x381] sm:$0xff] }
  0xc1   : > { %15562 = vst [vmem:[#allocation17_spill] sm:$0xff] %v11789_v63  ;;  %v1998_v63 = vld [vmem:[%s11509_s24 + $0xaa] sm:$0xff] }
  0xc2   : > { %v11794_v6 = vpop.f32.mrf.mxu0  ;;  %9553 = vmatmul.msk.f32.gmra.mxu1 %vm403_vm1, %v327_v1 }
  0xc3   : > { %9585 = vmatmul.msk.f32.gmra.mxu2 %vm403_vm1, %v359_v2 }
  0xc4   : > { %9617 = vmatmul.msk.f32.gmra.mxu3 %vm403_vm1, %v391_v3 }
  0xc5   : > { %9521 = vmatmul.msk.f32.gmra.mxu0 %vm403_vm1, %v11797_v7 }
  0xc6   : > { %v11804_v8 = vpop.f32.mrf.mxu2 }
  0xc7   : > { %15563 = vst [vmem:[#allocation18_spill] sm:$0xff] %v11804_v8  ;;  %v11806_v14 = vpop.f32.mrf.mxu3  ;;  %v11808_v15 = vpop.f32.mrf.mxu1 }
  0xc8   : > { %15564 = vst [vmem:[#allocation19_spill] sm:$0xff] %v11806_v14  ;;  %v331_v14 = vld [vmem:[%s11509_s24 + $0x241] sm:$0xff] }
  0xc9   : > { %15565 = vst [vmem:[#allocation20_spill] sm:$0xff] %v11808_v15 }
  0xca   : > { %v11813_v25 = vpop.f32.mrf.mxu0  ;;  %9554 = vmatmul.msk.f32.gmra.mxu1 %vm403_vm1, %v328_v16  ;;  %v330_v16 = vld [vmem:[%s11509_s24 + $0x239] sm:$0xff] }
  0xcb   : > { %9586 = vmatmul.msk.f32.gmra.mxu2 %vm403_vm1, %v360_v22  ;;  %v362_v22 = vld [vmem:[%s11509_s24 + $0x379] sm:$0xff] }
  0xcc   : > { %9618 = vmatmul.msk.f32.gmra.mxu3 %vm403_vm1, %v392_v23  ;;  %v394_v23 = vld [vmem:[%s11509_s24 + $0x4b9] sm:$0xff] }
  0xcd   : > { %9522 = vmatmul.msk.f32.gmra.mxu0 %vm403_vm1, %v11816_v33 }
  0xce   : > { %v11823_v34 = vpop.f32.mrf.mxu2 }
  0xcf   : > { %15566 = vst [vmem:[#allocation21_spill] sm:$0xff] %v11823_v34  ;;  %v11825_v35 = vpop.f32.mrf.mxu3  ;;  %v11827_v43 = vpop.f32.mrf.mxu1  ;;  %v397_v34 = vld [vmem:[%s11509_s24 + $0x4d9] sm:$0xff] }
  0xd0   : > { %15567 = vst [vmem:[#allocation22_spill] sm:$0xff] %v11825_v35 }
  0xd1   : > { %15568 = vst [vmem:[#allocation23_spill] sm:$0xff] %v11827_v43  ;;  %v9889_v43 = vld [vmem:[%s11509_s24 + $0x40] sm:$0xff] }
  0xd2   : > { %v11832_v55 = vpop.f32.mrf.mxu0  ;;  %9555 = vmatmul.msk.f32.gmra.mxu1 %vm403_vm1, %v329_v45 }
  0xd3   : > { %9587 = vmatmul.msk.f32.gmra.mxu2 %vm403_vm1, %v361_v46  ;;  %v11854_v46 = vld [vmem:[%s11509_s24 + $0xf9] sm:$0xff] }
  0xd4   : > { %9619 = vmatmul.msk.f32.gmra.mxu3 %vm403_vm1, %v393_v54 }
  0xd5   : > { %9523 = vmatmul.msk.f32.gmra.mxu0 %vm403_vm1, %v11835_v57 }
  0xd6   : > { %v11842_v1 = vpop.f32.mrf.mxu2 }
  0xd7   : > { %15569 = vst [vmem:[#allocation24_spill] sm:$0xff] %v11842_v1  ;;  %v11844_v2 = vpop.f32.mrf.mxu3  ;;  %v11846_v3 = vpop.f32.mrf.mxu1  ;;  %v365_v1 = vld [vmem:[%s11509_s24 + $0x399] sm:$0xff] }
  0xd8   : > { %15570 = vst [vmem:[#allocation25_spill] sm:$0xff] %v11844_v2 }
  0xd9   : > { %15571 = vst [vmem:[#allocation26_spill] sm:$0xff] %v11846_v3  ;;  %v9888_v3 = vld [vmem:[%s11509_s24 + $0x38] sm:$0xff] }
  0xda   : > { %v11851_v45 = vpop.f32.mrf.mxu0  ;;  %9556 = vmatmul.msk.f32.gmra.mxu1 %vm403_vm1, %v330_v16  ;;  %v395_v16 = vld [vmem:[%s11509_s24 + $0x4c1] sm:$0xff] }
  0xdb   : > { %9588 = vmatmul.msk.f32.gmra.mxu2 %vm403_vm1, %v362_v22  ;;  %v11873_v22 = vld [vmem:[%s11509_s24 + $0x101] sm:$0xff] }
  0xdc   : > { %9620 = vmatmul.msk.f32.gmra.mxu3 %vm403_vm1, %v394_v23 }
  0xdd   : > { %9524 = vmatmul.msk.f32.gmra.mxu0 %vm403_vm1, %v11854_v46 }
  0xde   : > { %v11861_v54 = vpop.f32.mrf.mxu2 }
  0xdf   : > { %15572 = vst [vmem:[#allocation27_spill] sm:$0xff] %v11861_v54  ;;  %v11863_v2 = vpop.f32.mrf.mxu3  ;;  %v11865_v35 = vpop.f32.mrf.mxu1  ;;  %v333_v54 = vld [vmem:[%s11509_s24 + $0x259] sm:$0xff] }
  0xe0   : > { %15573 = vst [vmem:[#allocation28_spill] sm:$0xff] %v11863_v2 }
  0xe1   : > { %15574 = vst [vmem:[#allocation29_spill] sm:$0xff] %v11865_v35  ;;  %v9887_v35 = vld [vmem:[%s11509_s24 + $0x30] sm:$0xff] }
  0xe2   : > { %v11870_v51 = vpop.f32.mrf.mxu0  ;;  %9557 = vmatmul.msk.f32.gmra.mxu1 %vm403_vm1, %v331_v14  ;;  %v396_v14 = vld [vmem:[%s11509_s24 + $0x4c9] sm:$0xff] }
  0xe3   : > { %9589 = vmatmul.msk.f32.gmra.mxu2 %vm403_vm1, %v363_v62  ;;  %v11892_v62 = vld [vmem:[%s11509_s24 + $0x109] sm:$0xff] }
  0xe4   : > { %9621 = vmatmul.msk.f32.gmra.mxu3 %vm403_vm1, %v395_v16 }
  0xe5   : > { %9525 = vmatmul.msk.f32.gmra.mxu0 %vm403_vm1, %v11873_v22 }
  0xe6   : > { %v11880_v23 = vpop.f32.mrf.mxu2 }
  0xe7   : > { %15575 = vst [vmem:[#allocation30_spill] sm:$0xff] %v11880_v23  ;;  %v11882_v2 = vpop.f32.mrf.mxu3  ;;  %v11884_v41 = vpop.f32.mrf.mxu1 }
  0xe8   : > { %15576 = vst [vmem:[#allocation31_spill] sm:$0xff] %v11882_v2 }
  0xe9   : > { %15577 = vst [vmem:[#allocation32_spill] sm:$0xff] %v11884_v41  ;;  %v9886_v41 = vld [vmem:[%s11509_s24 + $0x28] sm:$0xff] }
  0xea   : > { %v11889_v12 = vpop.f32.mrf.mxu0  ;;  %9558 = vmatmul.msk.f32.gmra.mxu1 %vm403_vm1, %v332_v30  ;;  %v11911_v30 = vld [vmem:[%s11509_s24 + $0x119] sm:$0xff] }
  0xeb   : > { %9590 = vmatmul.msk.f32.gmra.mxu2 %vm403_vm1, %v364_v20  ;;  %v10788_v20 = vld [vmem:[%s15545_s1 + $0x18] sm:$0x7] }
  0xec   : > { %9622 = vmatmul.msk.f32.gmra.mxu3 %vm403_vm1, %v396_v14  ;;  %v11046_v14 = vld [vmem:[%s15545_s1 + $0x1c] sm:$0x7]  ;;  %10789 = vmatpush.msk.msra.mxu2 %vm788_vm0, %v10788_v20  ;;  %v398_v20 = vld [vmem:[%s11509_s24 + $0x4e1] sm:$0xff] }
  0xed   : > { %9526 = vmatmul.msk.f32.gmra.mxu0 %vm403_vm1, %v11892_v62  ;;  %11047 = vmatpush.msk.msra.mxu3 %vm788_vm0, %v11046_v14 }
  0xee   : > { %v11899_v16 = vpop.f32.mrf.mxu2 }
  0xef   : > { %15578 = vst [vmem:[#allocation33_spill] sm:$0xff] %v11899_v16  ;;  %v11901_v2 = vpop.f32.mrf.mxu3  ;;  %v11903_v23 = vpop.f32.mrf.mxu1  ;;  %v334_v16 = vld [vmem:[%s11509_s24 + $0x261] sm:$0xff] }
  0xf0   : > { %15579 = vst [vmem:[#allocation34_spill] sm:$0xff] %v11901_v2 }
  0xf1   : > { %15580 = vst [vmem:[#allocation35_spill] sm:$0xff] %v11903_v23  ;;  %v1981_v23 = vld [vmem:[%s11509_s24 + $0x2] sm:$0xff] }
  0xf2   : > { %v11908_v8 = vpop.f32.mrf.mxu0  ;;  %9559 = vmatmul.msk.f32.gmra.mxu1 %vm403_vm1, %v333_v54 }
  0xf3   : > { %9591 = vmatmul.msk.f32.gmra.mxu2 %vm403_vm1, %v365_v1  ;;  %v10530_v1 = vld [vmem:[%s15545_s1 + $0x14] sm:$0x7] }
  0xf4   : > { %9623 = vmatmul.msk.f32.gmra.mxu3 %vm403_vm1, %v397_v34  ;;  %10531 = vmatpush.msk.msra.mxu1 %vm788_vm0, %v10530_v1  ;;  %v11304_v1 = vld [vmem:[%s15545_s1 + $0x20] sm:$0x7] }
  0xf5   : > { %9527 = vmatmul.msk.f32.gmra.mxu0 %vm403_vm1, %v11911_v30 }
  0xf6   : > { %v11926_v54 = vpop.f32.mrf.mxu2  ;;  %11305 = vmatpush.msk.msra.mxu0 %vm788_vm0, %v11304_v1 }
  0xf7   : > { %15581 = vst [vmem:[#allocation36_spill] sm:$0xff] %v11926_v54  ;;  %v11931_v2 = vpop.f32.mrf.mxu3  ;;  %v11934_v34 = vpop.f32.mrf.mxu1  ;;  %v11942_v54 = vld [vmem:[%s11509_s24 + $0x121] sm:$0xff] }
  0xf8   : > { %15582 = vst [vmem:[#allocation37_spill] sm:$0xff] %v11931_v2 }
  0xf9   : > { %15583 = vst [vmem:[#allocation38_spill] sm:$0xff] %v11934_v34  ;;  %v400_v34 = vld [vmem:[%s11509_s24 + $0x4f1] sm:$0xff] }
  0xfa   : > { %v11939_v14 = vpop.f32.mrf.mxu0  ;;  %9560 = vmatmul.msk.f32.gmra.mxu1 %vm403_vm1, %v334_v16 }
  0xfb   : > { %9592 = vmatmul.msk.f32.gmra.mxu2 %vm403_vm1, %v366_v61  ;;  %v335_v61 = vld [vmem:[%s11509_s24 + $0x269] sm:$0xff] }
  0xfc   : > { %9624 = vmatmul.msk.f32.gmra.mxu3 %vm403_vm1, %v398_v20  ;;  %v367_v20 = vld [vmem:[%s11509_s24 + $0x3a9] sm:$0xff] }
  0xfd   : > { %9528 = vmatmul.msk.f32.gmra.mxu0 %vm403_vm1, %v11942_v54 }
  0xfe   : > { %v11953_v2 = vpop.f32.mrf.mxu2 }
  0xff   : > { %15584 = vst [vmem:[#allocation39_spill] sm:$0xff] %v11953_v2  ;;  %v11955_v50 = vpop.f32.mrf.mxu3  ;;  %v11957_v16 = vpop.f32.mrf.mxu1 }
 0x100   : > { %15585 = vst [vmem:[#allocation40_spill] sm:$0xff] %v11955_v50 }
 0x101   : > { %15586 = vst [vmem:[#allocation41_spill] sm:$0xff] %v11957_v16  ;;  %v368_v16 = vld [vmem:[%s11509_s24 + $0x3b1] sm:$0xff] }
 0x102   : > { %v11962_v29 = vpop.f32.mrf.mxu0  ;;  %9561 = vmatmul.msk.f32.gmra.mxu1 %vm403_vm1, %v335_v61 }
 0x103   : > { %9593 = vmatmul.msk.f32.gmra.mxu2 %vm403_vm1, %v367_v20  ;;  %v11984_v20 = vld [vmem:[%s11509_s24 + $0x131] sm:$0xff] }
 0x104   : > { %9625 = vmatmul.msk.f32.gmra.mxu3 %vm403_vm1, %v399_v39 }
 0x105   : > { %9529 = vmatmul.msk.f32.gmra.mxu0 %vm403_vm1, %v11965_v19 }
 0x106   : > { %v11972_v1 = vpop.f32.mrf.mxu2 }
 0x107   : > { %15587 = vst [vmem:[#allocation42_spill] sm:$0xff] %v11972_v1  ;;  %v11974_v50 = vpop.f32.mrf.mxu3  ;;  %v11976_v2 = vpop.f32.mrf.mxu1 }
 0x108   : > { %15588 = vst [vmem:[#allocation43_spill] sm:$0xff] %v11974_v50 }
 0x109   : > { %15589 = vst [vmem:[#allocation44_spill] sm:$0xff] %v11976_v2  ;;  %v144_v2 = vld [vmem:[%s11509_s24] sm:$0xff] }
 0x10a   : > { %v11981_v61 = vpop.f32.mrf.mxu0  ;;  %9562 = vmatmul.msk.f32.gmra.mxu1 %vm403_vm1, %v336_v11 }
 0x10b   : > { %9594 = vmatmul.msk.f32.gmra.mxu2 %vm403_vm1, %v368_v16 }
 0x10c   : > { %9626 = vmatmul.msk.f32.gmra.mxu3 %vm403_vm1, %v400_v34 }
 0x10d   : > { %9530 = vmatmul.msk.f32.gmra.mxu0 %vm403_vm1, %v11984_v20 }
 0x10e   : > { %v11991_v39 = vpop.f32.mrf.mxu2 }
 0x10f   : > { %15590 = vst [vmem:[#allocation45_spill] sm:$0xff] %v11991_v39  ;;  %v11993_v50 = vpop.f32.mrf.mxu3  ;;  %v11995_v1 = vpop.f32.mrf.mxu1  ;;  %v145_v39 = vld [vmem:[%s11509_s24 + $0x8] sm:$0xff] }
 0x110   : > { %15591 = vst [vmem:[#allocation46_spill] sm:$0xff] %v11993_v50 }
 0x111   : > { %15592 = vst [vmem:[#allocation47_spill] sm:$0xff] %v11995_v1  ;;  %v1982_v1 = vld [vmem:[%s11509_s24 + $0xa] sm:$0xff] }
 0x112   : > { %v12000_v11 = vpop.f32.mrf.mxu0  ;;  %9628 = vmatmul.msk.f32.vlgmr.msrb.gmra.mxu1 %vm403_vm1, %v144_v2 }
 0x113   : > { %9758 = vmatmul.msk.f32.vlgmr.msrb.gmra.mxu2 %vm403_vm1, %v1981_v23 }
 0x114   : > { %10016 = vmatmul.msk.f32.vlgmr.msrb.gmra.mxu3 %vm403_vm1, %v9886_v41 }
 0x115   : > { %10274 = vmatmul.msk.f32.vlgmr.msrb.gmra.mxu0 %vm403_vm1, %v11547_v24 }
 0x116   : > { %v12007_v34 = vpop.f32.mrf.mxu2 }
 0x117   : > { %15593 = vst [vmem:[#allocation48_spill] sm:$0xff] %v12007_v34  ;;  %v12009_v16 = vpop.f32.mrf.mxu3  ;;  %v12011_v50 = vpop.f32.mrf.mxu1  ;;  %v146_v34 = vld [vmem:[%s11509_s24 + $0x10] sm:$0xff] }
 0x118   : > { %15594 = vst [vmem:[#allocation49_spill] sm:$0xff] %v12009_v16 }
 0x119   : > { %15595 = vst [vmem:[#allocation50_spill] sm:$0xff] %v12011_v50  ;;  %v1983_v50 = vld [vmem:[%s11509_s24 + $0x12] sm:$0xff] }
 0x11a   : > { %v12016_v2 = vpop.f32.mrf.mxu0  ;;  %9629 = vmatmul.msk.f32.gmra.mxu1 %vm403_vm1, %v145_v39 }
 0x11b   : > { %9759 = vmatmul.msk.f32.gmra.mxu2 %vm403_vm1, %v1982_v1 }
 0x11c   : > { %10017 = vmatmul.msk.f32.gmra.mxu3 %vm403_vm1, %v9887_v35 }
 0x11d   : > { %10275 = vmatmul.msk.f32.gmra.mxu0 %vm403_vm1, %v11558_v28 }
 0x11e   : > { %v12023_v24 = vpop.f32.mrf.mxu2 }
 0x11f   : > { %15596 = vst [vmem:[#allocation51_spill] sm:$0xff] %v12023_v24  ;;  %v12025_v23 = vpop.f32.mrf.mxu3  ;;  %v12027_v16 = vpop.f32.mrf.mxu1  ;;  %v147_v24 = vld [vmem:[%s11509_s24 + $0x18] sm:$0xff] }
 0x120   : > { %15597 = vst [vmem:[#allocation52_spill] sm:$0xff] %v12025_v23 }
 0x121   : > { %15598 = vst [vmem:[#allocation53_spill] sm:$0xff] %v12027_v16  ;;  %v1984_v16 = vld [vmem:[%s11509_s24 + $0x1a] sm:$0xff] }
 0x122   : > { %v12032_v39 = vpop.f32.mrf.mxu0  ;;  %9630 = vmatmul.msk.f32.gmra.mxu1 %vm403_vm1, %v146_v34 }
 0x123   : > { %9760 = vmatmul.msk.f32.gmra.mxu2 %vm403_vm1, %v1983_v50 }
 0x124   : > { %10018 = vmatmul.msk.f32.gmra.mxu3 %vm403_vm1, %v9888_v3 }
 0x125   : > { %10276 = vmatmul.msk.f32.gmra.mxu0 %vm403_vm1, %v11569_v32 }
 0x126   : > { %v12039_v28 = vpop.f32.mrf.mxu2 }
 0x127   : > { %15599 = vst [vmem:[#allocation54_spill] sm:$0xff] %v12039_v28  ;;  %v12041_v1 = vpop.f32.mrf.mxu3  ;;  %v12043_v23 = vpop.f32.mrf.mxu1  ;;  %v9890_v28 = vld [vmem:[%s11509_s24 + $0x50] sm:$0xff] }
 0x128   : > { %15600 = vst [vmem:[#allocation55_spill] sm:$0xff] %v12041_v1  ;;  %v1985_v1 = vld [vmem:[%s11509_s24 + $0x2a] sm:$0xff] }
 0x129   : > { %15601 = vst [vmem:[#allocation56_spill] sm:$0xff] %v12043_v23 }
 0x12a   : > { %v12048_v15 = vpop.f32.mrf.mxu0  ;;  %9631 = vmatmul.msk.f32.gmra.mxu1 %vm403_vm1, %v147_v24 }
 0x12b   : > { %9761 = vmatmul.msk.f32.gmra.mxu2 %vm403_vm1, %v1984_v16 }
 0x12c   : > { %10019 = vmatmul.msk.f32.gmra.mxu3 %vm403_vm1, %v9889_v43 }
 0x12d   : > { %10277 = vmatmul.msk.f32.gmra.mxu0 %vm403_vm1, %v11580_v36 }
 0x12e   : > { %v12055_v32 = vpop.f32.mrf.mxu2 }
 0x12f   : > { %15602 = vst [vmem:[#allocation57_spill] sm:$0xff] %v12055_v32  ;;  %v12057_v50 = vpop.f32.mrf.mxu3  ;;  %v12059_v34 = vpop.f32.mrf.mxu1  ;;  %v9891_v32 = vld [vmem:[%s11509_s24 + $0x58] sm:$0xff] }
 0x130   : > { %15603 = vst [vmem:[#allocation58_spill] sm:$0xff] %v12057_v50  ;;  %v1986_v50 = vld [vmem:[%s11509_s24 + $0x32] sm:$0xff] }
 0x131   : > { %15604 = vst [vmem:[#allocation59_spill] sm:$0xff] %v12059_v34 }
 0x132   : > { %v12063_v23 = vpop.f32.mrf.mxu0  ;;  %9632 = vmatmul.msk.f32.gmra.mxu1 %vm403_vm1, %v9886_v41 }
 0x133   : > { %9762 = vmatmul.msk.f32.gmra.mxu2 %vm403_vm1, %v1985_v1 }
 0x134   : > { %10020 = vmatmul.msk.f32.gmra.mxu3 %vm403_vm1, %v9890_v28 }
 0x135   : > { %10278 = vmatmul.msk.f32.gmra.mxu0 %vm403_vm1, %v11591_v40 }
 0x136   : > { %v12070_v36 = vpop.f32.mrf.mxu2 }
 0x137   : > { %15605 = vst [vmem:[#allocation60_spill] sm:$0xff] %v12070_v36  ;;  %v12072_v16 = vpop.f32.mrf.mxu3  ;;  %v12074_v24 = vpop.f32.mrf.mxu1  ;;  %v9892_v36 = vld [vmem:[%s11509_s24 + $0x60] sm:$0xff] }
 0x138   : > { %15606 = vst [vmem:[#allocation61_spill] sm:$0xff] %v12072_v16  ;;  %v1987_v16 = vld [vmem:[%s11509_s24 + $0x3a] sm:$0xff] }
 0x139   : > { %15607 = vst [vmem:[#allocation62_spill] sm:$0xff] %v12074_v24 }
 0x13a   : > { %v12078_v34 = vpop.f32.mrf.mxu0  ;;  %9633 = vmatmul.msk.f32.gmra.mxu1 %vm403_vm1, %v9887_v35 }
 0x13b   : > { %9763 = vmatmul.msk.f32.gmra.mxu2 %vm403_vm1, %v1986_v50 }
 0x13c   : > { %10021 = vmatmul.msk.f32.gmra.mxu3 %vm403_vm1, %v9891_v32 }
 0x13d   : > { %10279 = vmatmul.msk.f32.gmra.mxu0 %vm403_vm1, %v11602_v44 }
 0x13e   : > { %v12085_v40 = vpop.f32.mrf.mxu2 }
 0x13f   : > { %15608 = vst [vmem:[#allocation63_spill] sm:$0xff] %v12085_v40  ;;  %v12087_v41 = vpop.f32.mrf.mxu3  ;;  %v12089_v1 = vpop.f32.mrf.mxu1  ;;  %v9893_v40 = vld [vmem:[%s11509_s24 + $0x68] sm:$0xff] }
 0x140   : > { %15609 = vst [vmem:[#allocation64_spill] sm:$0xff] %v12087_v41  ;;  %v1988_v41 = vld [vmem:[%s11509_s24 + $0x42] sm:$0xff] }
 0x141   : > { %15610 = vst [vmem:[#allocation65_spill] sm:$0xff] %v12089_v1 }
 0x142   : > { %v12093_v24 = vpop.f32.mrf.mxu0  ;;  %9634 = vmatmul.msk.f32.gmra.mxu1 %vm403_vm1, %v9888_v3 }
 0x143   : > { %9764 = vmatmul.msk.f32.gmra.mxu2 %vm403_vm1, %v1987_v16 }
 0x144   : > { %10022 = vmatmul.msk.f32.gmra.mxu3 %vm403_vm1, %v9892_v36 }
 0x145   : > { %10280 = vmatmul.msk.f32.gmra.mxu0 %vm403_vm1, %v11613_v48 }
 0x146   : > { %v12100_v44 = vpop.f32.mrf.mxu2 }
 0x147   : > { %15611 = vst [vmem:[#allocation66_spill] sm:$0xff] %v12100_v44  ;;  %v12102_v35 = vpop.f32.mrf.mxu3  ;;  %v12104_v50 = vpop.f32.mrf.mxu1  ;;  %v9894_v44 = vld [vmem:[%s11509_s24 + $0x78] sm:$0xff] }
 0x148   : > { %15612 = vst [vmem:[#allocation67_spill] sm:$0xff] %v12102_v35  ;;  %v1989_v35 = vld [vmem:[%s11509_s24 + $0x52] sm:$0xff] }
 0x149   : > { %15613 = vst [vmem:[#allocation68_spill] sm:$0xff] %v12104_v50 }
 0x14a   : > { %v12108_v1 = vpop.f32.mrf.mxu0  ;;  %9635 = vmatmul.msk.f32.gmra.mxu1 %vm403_vm1, %v9889_v43 }
 0x14b   : > { %9765 = vmatmul.msk.f32.gmra.mxu2 %vm403_vm1, %v1988_v41 }
 0x14c   : > { %10023 = vmatmul.msk.f32.gmra.mxu3 %vm403_vm1, %v9893_v40 }
 0x14d   : > { %10281 = vmatmul.msk.f32.gmra.mxu0 %vm403_vm1, %v11624_v52 }
 0x14e   : > { %v12115_v48 = vpop.f32.mrf.mxu2 }
 0x14f   : > { %15614 = vst [vmem:[#allocation69_spill] sm:$0xff] %v12115_v48  ;;  %v12117_v3 = vpop.f32.mrf.mxu3  ;;  %v12119_v16 = vpop.f32.mrf.mxu1  ;;  %v9895_v48 = vld [vmem:[%s11509_s24 + $0x80] sm:$0xff] }
 0x150   : > { %15615 = vst [vmem:[#allocation70_spill] sm:$0xff] %v12117_v3  ;;  %v1990_v3 = vld [vmem:[%s11509_s24 + $0x5a] sm:$0xff] }
 0x151   : > { %15616 = vst [vmem:[#allocation71_spill] sm:$0xff] %v12119_v16 }
 0x152   : > { %v12123_v50 = vpop.f32.mrf.mxu0  ;;  %9636 = vmatmul.msk.f32.gmra.mxu1 %vm403_vm1, %v9890_v28 }
 0x153   : > { %9766 = vmatmul.msk.f32.gmra.mxu2 %vm403_vm1, %v1989_v35 }
 0x154   : > { %10024 = vmatmul.msk.f32.gmra.mxu3 %vm403_vm1, %v9894_v44 }
 0x155   : > { %10282 = vmatmul.msk.f32.gmra.mxu0 %vm403_vm1, %v11635_v56 }
 0x156   : > { %v12130_v52 = vpop.f32.mrf.mxu2 }
 0x157   : > { %15617 = vst [vmem:[#allocation72_spill] sm:$0xff] %v12130_v52  ;;  %v12132_v43 = vpop.f32.mrf.mxu3  ;;  %v12134_v41 = vpop.f32.mrf.mxu1  ;;  %v9896_v52 = vld [vmem:[%s11509_s24 + $0x88] sm:$0xff] }
 0x158   : > { %15618 = vst [vmem:[#allocation73_spill] sm:$0xff] %v12132_v43  ;;  %v1991_v43 = vld [vmem:[%s11509_s24 + $0x62] sm:$0xff] }
 0x159   : > { %15619 = vst [vmem:[#allocation74_spill] sm:$0xff] %v12134_v41 }
 0x15a   : > { %v12138_v16 = vpop.f32.mrf.mxu0  ;;  %9637 = vmatmul.msk.f32.gmra.mxu1 %vm403_vm1, %v9891_v32 }
 0x15b   : > { %9767 = vmatmul.msk.f32.gmra.mxu2 %vm403_vm1, %v1990_v3 }
 0x15c   : > { %10025 = vmatmul.msk.f32.gmra.mxu3 %vm403_vm1, %v9895_v48 }
 0x15d   : > { %10283 = vmatmul.msk.f32.gmra.mxu0 %vm403_vm1, %v11646_v60 }
 0x15e   : > { %v12145_v56 = vpop.f32.mrf.mxu2 }
 0x15f   : > { %15620 = vst [vmem:[#allocation75_spill] sm:$0xff] %v12145_v56  ;;  %v12147_v28 = vpop.f32.mrf.mxu3  ;;  %v12149_v35 = vpop.f32.mrf.mxu1  ;;  %v9897_v56 = vld [vmem:[%s11509_s24 + $0x90] sm:$0xff] }
 0x160   : > { %15621 = vst [vmem:[#allocation76_spill] sm:$0xff] %v12147_v28  ;;  %v1992_v28 = vld [vmem:[%s11509_s24 + $0x6a] sm:$0xff] }
 0x161   : > { %15622 = vst [vmem:[#allocation77_spill] sm:$0xff] %v12149_v35 }
 0x162   : > { %v12153_v41 = vpop.f32.mrf.mxu0  ;;  %9638 = vmatmul.msk.f32.gmra.mxu1 %vm403_vm1, %v9892_v36 }
 0x163   : > { %9768 = vmatmul.msk.f32.gmra.mxu2 %vm403_vm1, %v1991_v43 }
 0x164   : > { %10026 = vmatmul.msk.f32.gmra.mxu3 %vm403_vm1, %v9896_v52 }
 0x165   : > { %10284 = vmatmul.msk.f32.gmra.mxu0 %vm403_vm1, %v11657_v0 }
 0x166   : > { %v12160_v60 = vpop.f32.mrf.mxu2 }
 0x167   : > { %15623 = vst [vmem:[#allocation78_spill] sm:$0xff] %v12160_v60  ;;  %v12162_v32 = vpop.f32.mrf.mxu3  ;;  %v12164_v3 = vpop.f32.mrf.mxu1  ;;  %v9898_v60 = vld [vmem:[%s11509_s24 + $0xa0] sm:$0xff] }
 0x168   : > { %15624 = vst [vmem:[#allocation79_spill] sm:$0xff] %v12162_v32  ;;  %v1993_v32 = vld [vmem:[%s11509_s24 + $0x7a] sm:$0xff] }
 0x169   : > { %15625 = vst [vmem:[#allocation80_spill] sm:$0xff] %v12164_v3 }
 0x16a   : > { %v12168_v35 = vpop.f32.mrf.mxu0  ;;  %9639 = vmatmul.msk.f32.gmra.mxu1 %vm403_vm1, %v9893_v40 }
 0x16b   : > { %9769 = vmatmul.msk.f32.gmra.mxu2 %vm403_vm1, %v1992_v28 }
 0x16c   : > { %10027 = vmatmul.msk.f32.gmra.mxu3 %vm403_vm1, %v9897_v56 }
 0x16d   : > { %10285 = vmatmul.msk.f32.gmra.mxu0 %vm403_vm1, %v11668_v4 }
 0x16e   : > { %v12175_v0 = vpop.f32.mrf.mxu2 }
 0x16f   : > { %15626 = vst [vmem:[#allocation81_spill] sm:$0xff] %v12175_v0  ;;  %v12177_v36 = vpop.f32.mrf.mxu3  ;;  %v12179_v43 = vpop.f32.mrf.mxu1  ;;  %v9899_v0 = vld [vmem:[%s11509_s24 + $0xa8] sm:$0xff] }
 0x170   : > { %15627 = vst [vmem:[#allocation82_spill] sm:$0xff] %v12177_v36  ;;  %v1994_v36 = vld [vmem:[%s11509_s24 + $0x82] sm:$0xff] }
 0x171   : > { %15628 = vst [vmem:[#allocation83_spill] sm:$0xff] %v12179_v43 }
 0x172   : > { %v12183_v3 = vpop.f32.mrf.mxu0  ;;  %9640 = vmatmul.msk.f32.gmra.mxu1 %vm403_vm1, %v9894_v44 }
 0x173   : > { %9770 = vmatmul.msk.f32.gmra.mxu2 %vm403_vm1, %v1993_v32 }
 0x174   : > { %10028 = vmatmul.msk.f32.gmra.mxu3 %vm403_vm1, %v9898_v60 }
 0x175   : > { %10286 = vmatmul.msk.f32.gmra.mxu0 %vm403_vm1, %v11683_v10 }
 0x176   : > { %v12190_v4 = vpop.f32.mrf.mxu2 }
 0x177   : > { %15629 = vst [vmem:[#allocation84_spill] sm:$0xff] %v12190_v4  ;;  %v12192_v40 = vpop.f32.mrf.mxu3  ;;  %v12194_v28 = vpop.f32.mrf.mxu1  ;;  %v9900_v4 = vld [vmem:[%s11509_s24 + $0xb0] sm:$0xff] }
 0x178   : > { %15630 = vst [vmem:[#allocation85_spill] sm:$0xff] %v12192_v40  ;;  %v1995_v40 = vld [vmem:[%s11509_s24 + $0x8a] sm:$0xff] }
 0x179   : > { %15631 = vst [vmem:[#allocation86_spill] sm:$0xff] %v12194_v28 }
 0x17a   : > { %v12198_v43 = vpop.f32.mrf.mxu0  ;;  %9641 = vmatmul.msk.f32.gmra.mxu1 %vm403_vm1, %v9895_v48 }
 0x17b   : > { %9771 = vmatmul.msk.f32.gmra.mxu2 %vm403_vm1, %v1994_v36 }
 0x17c   : > { %10029 = vmatmul.msk.f32.gmra.mxu3 %vm403_vm1, %v9899_v0 }
 0x17d   : > { %10287 = vmatmul.msk.f32.gmra.mxu0 %vm403_vm1, %v11702_v18 }
 0x17e   : > { %v12205_v10 = vpop.f32.mrf.mxu2 }
 0x17f   : > { %15632 = vst [vmem:[#allocation87_spill] sm:$0xff] %v12205_v10  ;;  %v12207_v44 = vpop.f32.mrf.mxu3  ;;  %v12209_v32 = vpop.f32.mrf.mxu1  ;;  %v9901_v10 = vld [vmem:[%s11509_s24 + $0xb8] sm:$0xff] }
 0x180   : > { %15633 = vst [vmem:[#allocation88_spill] sm:$0xff] %v12207_v44  ;;  %v1996_v44 = vld [vmem:[%s11509_s24 + $0x92] sm:$0xff] }
 0x181   : > { %15634 = vst [vmem:[#allocation89_spill] sm:$0xff] %v12209_v32 }
 0x182   : > { %v12213_v28 = vpop.f32.mrf.mxu0  ;;  %9642 = vmatmul.msk.f32.gmra.mxu1 %vm403_vm1, %v9896_v52 }
 0x183   : > { %9772 = vmatmul.msk.f32.gmra.mxu2 %vm403_vm1, %v1995_v40 }
 0x184   : > { %10030 = vmatmul.msk.f32.gmra.mxu3 %vm403_vm1, %v9900_v4 }
 0x185   : > { %10288 = vmatmul.msk.f32.gmra.mxu0 %vm403_vm1, %v11721_v27 }
 0x186   : > { %v12220_v18 = vpop.f32.mrf.mxu2 }
 0x187   : > { %15635 = vst [vmem:[#allocation90_spill] sm:$0xff] %v12220_v18  ;;  %v12222_v48 = vpop.f32.mrf.mxu3  ;;  %v12224_v36 = vpop.f32.mrf.mxu1  ;;  %v9902_v18 = vld [vmem:[%s11509_s24 + $0xc8] sm:$0xff] }
 0x188   : > { %15636 = vst [vmem:[#allocation91_spill] sm:$0xff] %v12222_v48  ;;  %v1997_v48 = vld [vmem:[%s11509_s24 + $0xa2] sm:$0xff] }
 0x189   : > { %15637 = vst [vmem:[#allocation92_spill] sm:$0xff] %v12224_v36 }
 0x18a   : > { %v12228_v32 = vpop.f32.mrf.mxu0  ;;  %9643 = vmatmul.msk.f32.gmra.mxu1 %vm403_vm1, %v9897_v56 }
 0x18b   : > { %9773 = vmatmul.msk.f32.gmra.mxu2 %vm403_vm1, %v1996_v44 }
 0x18c   : > { %10031 = vmatmul.msk.f32.gmra.mxu3 %vm403_vm1, %v9901_v10 }
 0x18d   : > { %10289 = vmatmul.msk.f32.gmra.mxu0 %vm403_vm1, %v11740_v38 }
 0x18e   : > { %v12235_v27 = vpop.f32.mrf.mxu2 }
 0x18f   : > { %15638 = vst [vmem:[#allocation93_spill] sm:$0xff] %v12235_v27  ;;  %v12237_v52 = vpop.f32.mrf.mxu3  ;;  %v1597_v40 = vpop.f32.mrf.mxu1 }
 0x190   : > { %15639 = vst [vmem:[#allocation94_spill] sm:$0xff] %v12237_v52  ;;  %v1598_v38 = vadd.f32 %v1597_v40, %v11680_v9 }
 0x192   : > { %v4608_v36 = vpop.f32.mrf.mxu0  ;;  %9644 = vmatmul.msk.f32.gmra.mxu1 %vm403_vm1, %v9898_v60 }
 0x193   : > { %9774 = vmatmul.msk.f32.gmra.mxu2 %vm403_vm1, %v1997_v48 }
 0x194   : > { %10032 = vmatmul.msk.f32.gmra.mxu3 %vm403_vm1, %v9902_v18 }
 0x195   : > { %10290 = vmatmul.msk.f32.gmra.mxu0 %vm403_vm1, %v11759_v49 }
 0x196   : > { %v2515_v56 = vpop.f32.mrf.mxu2 }
 0x197   : > { %v2899_v44 = vadd.f32 %v2515_v56, %v1598_v38  ;;  %v3562_v27 = vpop.f32.mrf.mxu3  ;;  %v1600_v52 = vpop.f32.mrf.mxu1  ;;  %v1999_v38 = vld [vmem:[%s11509_s24 + $0xb2] sm:$0xff] }
 0x198   : > { %v1601_v9 = vadd.f32 %v1600_v52, %v11699_v17 }
 0x199   : > { %v3946_v53 = vadd.f32 %v3562_v27, %v2899_v44 }
 0x19a   : > { %v4611_v31 = vpop.f32.mrf.mxu0  ;;  %9645 = vmatmul.msk.f32.gmra.mxu1 %vm403_vm1, %v9899_v0 }
 0x19b   : > { %v12249_v60 = vadd.f32 %v4608_v36, %v3946_v53  ;;  %9775 = vmatmul.msk.f32.gmra.mxu2 %vm403_vm1, %v1998_v63  ;;  %v9904_v36 = vld [vmem:[%s11509_s24 + $0xd8] sm:$0xff] }
 0x19c   : > { %10033 = vmatmul.msk.f32.gmra.mxu3 %vm403_vm1, %v9903_v42 }
 0x19d   : > { %10291 = vmatmul.msk.f32.gmra.mxu0 %vm403_vm1, %v11778_v59 }
 0x19e   : > { %v2518_v49 = vpop.f32.mrf.mxu2 }
 0x19f   : > { %v2900_v48 = vadd.f32 %v2518_v49, %v1601_v9  ;;  %v3565_v40 = vpop.f32.mrf.mxu3  ;;  %v1603_v27 = vpop.f32.mrf.mxu1  ;;  %v2000_v9 = vld [vmem:[%s11509_s24 + $0xba] sm:$0xff] }
 0x1a0   : > { %v1604_v17 = vadd.f32 %v1603_v27, %v11718_v26  ;;  %v9905_v49 = vld [vmem:[%s11509_s24 + $0xe0] sm:$0xff] }
 0x1a1   : > { %v3947_v53 = vadd.f32 %v3565_v40, %v2900_v48 }
 0x1a2   : > { %v4614_v56 = vpop.f32.mrf.mxu0  ;;  %9646 = vmatmul.msk.f32.gmra.mxu1 %vm403_vm1, %v9900_v4 }
 0x1a3   : > { %v12259_v0 = vadd.f32 %v4611_v31, %v3947_v53  ;;  %9776 = vmatmul.msk.f32.gmra.mxu2 %vm403_vm1, %v1999_v38  ;;  %v2001_v53 = vld [vmem:[%s11509_s24 + $0xca] sm:$0xff] }
 0x1a4   : > { %10034 = vmatmul.msk.f32.gmra.mxu3 %vm403_vm1, %v9904_v36 }
 0x1a5   : > { %10292 = vmatmul.msk.f32.gmra.mxu0 %vm403_vm1, %v11797_v7 }
 0x1a6   : > { %v2521_v59 = vpop.f32.mrf.mxu2 }
 0x1a7   : > { %v2901_v63 = vadd.f32 %v2521_v59, %v1604_v17  ;;  %v3568_v52 = vpop.f32.mrf.mxu3  ;;  %v1606_v44 = vpop.f32.mrf.mxu1  ;;  %v9906_v17 = vld [vmem:[%s11509_s24 + $0xf0] sm:$0xff] }
 0x1a8   : > { %v1607_v26 = vadd.f32 %v1606_v44, %v11737_v37 }
 0x1a9   : > { %v3948_v31 = vadd.f32 %v3568_v52, %v2901_v63 }
 0x1aa   : > { %v4617_v48 = vpop.f32.mrf.mxu0  ;;  %9647 = vmatmul.msk.f32.gmra.mxu1 %vm403_vm1, %v9901_v10 }
 0x1ab   : > { %v12269_v4 = vadd.f32 %v4614_v56, %v3948_v31  ;;  %9777 = vmatmul.msk.f32.gmra.mxu2 %vm403_vm1, %v2000_v9  ;;  %v2002_v9 = vld [vmem:[%s11509_s24 + $0xd2] sm:$0xff] }
 0x1ac   : > { %10035 = vmatmul.msk.f32.gmra.mxu3 %vm403_vm1, %v9905_v49 }
 0x1ad   : > { %10293 = vmatmul.msk.f32.gmra.mxu0 %vm403_vm1, %v11816_v33 }
 0x1ae   : > { %v2524_v7 = vpop.f32.mrf.mxu2 }
 0x1af   : > { %v2902_v40 = vadd.f32 %v2524_v7, %v1607_v26  ;;  %v3571_v27 = vpop.f32.mrf.mxu3  ;;  %v1609_v38 = vpop.f32.mrf.mxu1 }
 0x1b0   : > { %v1610_v37 = vadd.f32 %v1609_v38, %v11756_v47  ;;  %v2003_v38 = vld [vmem:[%s11509_s24 + $0xda] sm:$0xff] }
 0x1b1   : > { %v3949_v56 = vadd.f32 %v3571_v27, %v2902_v40 }
 0x1b2   : > { %v4620_v59 = vpop.f32.mrf.mxu0  ;;  %9648 = vmatmul.msk.f32.gmra.mxu1 %vm403_vm1, %v9902_v18 }
 0x1b3   : > { %v12279_v10 = vadd.f32 %v4617_v48, %v3949_v56  ;;  %9778 = vmatmul.msk.f32.gmra.mxu2 %vm403_vm1, %v2001_v53  ;;  %v9907_v48 = vld [vmem:[%s11509_s24 + $0xf8] sm:$0xff]  ;;  %v9908_v56 = vld [vmem:[%s11509_s24 + $0x100] sm:$0xff] }
 0x1b4   : > { %10036 = vmatmul.msk.f32.gmra.mxu3 %vm403_vm1, %v9906_v17 }
 0x1b5   : > { %10294 = vmatmul.msk.f32.gmra.mxu0 %vm403_vm1, %v11835_v57 }
 0x1b6   : > { %v2527_v33 = vpop.f32.mrf.mxu2 }
 0x1b7   : > { %v2903_v63 = vadd.f32 %v2527_v33, %v1610_v37  ;;  %v3574_v52 = vpop.f32.mrf.mxu3  ;;  %v1612_v44 = vpop.f32.mrf.mxu1 }
 0x1b8   : > { %v1613_v47 = vadd.f32 %v1612_v44, %v11775_v58 }
 0x1b9   : > { %v3950_v31 = vadd.f32 %v3574_v52, %v2903_v63  ;;  %v2004_v52 = vld [vmem:[%s11509_s24 + $0xe2] sm:$0xff] }
 0x1ba   : > { %v4623_v26 = vpop.f32.mrf.mxu0  ;;  %9649 = vmatmul.msk.f32.gmra.mxu1 %vm403_vm1, %v9903_v42 }
 0x1bb   : > { %v12289_v18 = vadd.f32 %v4620_v59, %v3950_v31  ;;  %9779 = vmatmul.msk.f32.gmra.mxu2 %vm403_vm1, %v2002_v9  ;;  %v9909_v9 = vld [vmem:[%s11509_s24 + $0x108] sm:$0xff] }
 0x1bc   : > { %10037 = vmatmul.msk.f32.gmra.mxu3 %vm403_vm1, %v9907_v48 }
 0x1bd   : > { %10295 = vmatmul.msk.f32.gmra.mxu0 %vm403_vm1, %v11854_v46 }
 0x1be   : > { %v2530_v57 = vpop.f32.mrf.mxu2 }
 0x1bf   : > { %v2904_v7 = vadd.f32 %v2530_v57, %v1613_v47  ;;  %v3577_v40 = vpop.f32.mrf.mxu3  ;;  %v1615_v27 = vpop.f32.mrf.mxu1 }
 0x1c0   : > { %v1616_v58 = vadd.f32 %v1615_v27, %v11794_v6  ;;  %v9910_v27 = vld [vmem:[%s11509_s24 + $0x118] sm:$0xff] }
 0x1c1   : > { %v3951_v53 = vadd.f32 %v3577_v40, %v2904_v7  ;;  %v2005_v7 = vld [vmem:[%s11509_s24 + $0xf2] sm:$0xff] }
 0x1c2   : > { %v4626_v59 = vpop.f32.mrf.mxu0  ;;  %9650 = vmatmul.msk.f32.gmra.mxu1 %vm403_vm1, %v9904_v36 }
 0x1c3   : > { %v12299_v42 = vadd.f32 %v4623_v26, %v3951_v53  ;;  %9780 = vmatmul.msk.f32.gmra.mxu2 %vm403_vm1, %v2003_v38 }
 0x1c4   : > { %10038 = vmatmul.msk.f32.gmra.mxu3 %vm403_vm1, %v9908_v56 }
 0x1c5   : > { %10296 = vmatmul.msk.f32.gmra.mxu0 %vm403_vm1, %v11873_v22 }
 0x1c6   : > { %v2533_v46 = vpop.f32.mrf.mxu2 }
 0x1c7   : > { %v2905_v37 = vadd.f32 %v2533_v46, %v1616_v58  ;;  %v3580_v33 = vpop.f32.mrf.mxu3  ;;  %v1618_v63 = vpop.f32.mrf.mxu1  ;;  %v2006_v46 = vld [vmem:[%s11509_s24 + $0xfa] sm:$0xff] }
 0x1c8   : > { %v1619_v6 = vadd.f32 %v1618_v63, %v11813_v25 }
 0x1c9   : > { %v3952_v44 = vadd.f32 %v3580_v33, %v2905_v37  ;;  %v9911_v33 = vld [vmem:[%s11509_s24 + $0x120] sm:$0xff] }
 0x1ca   : > { %v4629_v31 = vpop.f32.mrf.mxu0  ;;  %9651 = vmatmul.msk.f32.gmra.mxu1 %vm403_vm1, %v9905_v49 }
 0x1cb   : > { %v12309_v36 = vadd.f32 %v4626_v59, %v3952_v44  ;;  %9781 = vmatmul.msk.f32.gmra.mxu2 %vm403_vm1, %v2004_v52 }
 0x1cc   : > { %10039 = vmatmul.msk.f32.gmra.mxu3 %vm403_vm1, %v9909_v9 }
 0x1cd   : > { %10297 = vmatmul.msk.f32.gmra.mxu0 %vm403_vm1, %v11892_v62 }
 0x1ce   : > { %v2536_v22 = vpop.f32.mrf.mxu2 }
 0x1cf   : > { %v2906_v26 = vadd.f32 %v2536_v22, %v1619_v6  ;;  %v3583_v47 = vpop.f32.mrf.mxu3  ;;  %v1621_v57 = vpop.f32.mrf.mxu1  ;;  %v2007_v6 = vld [vmem:[%s11509_s24 + $0x102] sm:$0xff] }
 0x1d0   : > { %v1622_v25 = vadd.f32 %v1621_v57, %v11832_v55 }
 0x1d1   : > { %v3953_v40 = vadd.f32 %v3583_v47, %v2906_v26  ;;  %v9912_v26 = vld [vmem:[%s11509_s24 + $0x128] sm:$0xff] }
 0x1d2   : > { %v4632_v38 = vpop.f32.mrf.mxu0  ;;  %9652 = vmatmul.msk.f32.gmra.mxu1 %vm403_vm1, %v9906_v17 }
 0x1d3   : > { %v12319_v49 = vadd.f32 %v4629_v31, %v3953_v40  ;;  %9782 = vmatmul.msk.f32.gmra.mxu2 %vm403_vm1, %v2005_v7 }
 0x1d4   : > { %10040 = vmatmul.msk.f32.gmra.mxu3 %vm403_vm1, %v9910_v27 }
 0x1d5   : > { %10298 = vmatmul.msk.f32.gmra.mxu0 %vm403_vm1, %v11911_v30 }
 0x1d6   : > { %v2539_v62 = vpop.f32.mrf.mxu2 }
 0x1d7   : > { %v2907_v53 = vadd.f32 %v2539_v62, %v1622_v25  ;;  %v3586_v59 = vpop.f32.mrf.mxu3  ;;  %v1624_v58 = vpop.f32.mrf.mxu1  ;;  %v12349_v62 = vld [vmem:[%s11509_s24 + $0x130] sm:$0xff] }
 0x1d8   : > { %v1625_v55 = vadd.f32 %v1624_v58, %v11851_v45 }
 0x1d9   : > { %v3954_v37 = vadd.f32 %v3586_v59, %v2907_v53 }
 0x1da   : > { %v4635_v63 = vpop.f32.mrf.mxu0  ;;  %9653 = vmatmul.msk.f32.gmra.mxu1 %vm403_vm1, %v9907_v48 }
 0x1db   : > { %v12329_v17 = vadd.f32 %v4632_v38, %v3954_v37  ;;  %9783 = vmatmul.msk.f32.gmra.mxu2 %vm403_vm1, %v2006_v46  ;;  %v2008_v38 = vld [vmem:[%s11509_s24 + $0x10a] sm:$0xff]  ;;  %v2009_v37 = vld [vmem:[%s11509_s24 + $0x11a] sm:$0xff] }
 0x1dc   : > { %10041 = vmatmul.msk.f32.gmra.mxu3 %vm403_vm1, %v9911_v33 }
 0x1dd   : > { %10299 = vmatmul.msk.f32.gmra.mxu0 %vm403_vm1, %v11942_v54 }
 0x1de   : > { %v2542_v30 = vpop.f32.mrf.mxu2 }
 0x1df   : > { %v2908_v52 = vadd.f32 %v2542_v30, %v1625_v55  ;;  %v3589_v44 = vpop.f32.mrf.mxu3  ;;  %v1627_v31 = vpop.f32.mrf.mxu1  ;;  %v12362_v55 = vld [vmem:[%s11509_s24 + $0x140] sm:$0xff] }
 0x1e0   : > { %v1628_v45 = vadd.f32 %v1627_v31, %v11870_v51  ;;  %v10172_v30 = vld [vmem:[%s11509_s24 + $0x141] sm:$0xff] }
 0x1e1   : > { %v3955_v22 = vadd.f32 %v3589_v44, %v2908_v52 }
 0x1e2   : > { %v4638_v47 = vpop.f32.mrf.mxu0  ;;  %9654 = vmatmul.msk.f32.gmra.mxu1 %vm403_vm1, %v9908_v56 }
 0x1e3   : > { %v12339_v48 = vadd.f32 %v4635_v63, %v3955_v22  ;;  %9784 = vmatmul.msk.f32.gmra.mxu2 %vm403_vm1, %v2007_v6  ;;  %v2010_v22 = vld [vmem:[%s11509_s24 + $0x122] sm:$0xff] }
 0x1e4   : > { %10042 = vmatmul.msk.f32.gmra.mxu3 %vm403_vm1, %v9912_v26 }
 0x1e5   : > { %10300 = vmatmul.msk.f32.gmra.mxu0 %vm403_vm1, %v11965_v19 }
 0x1e6   : > { %v2545_v54 = vpop.f32.mrf.mxu2 }
 0x1e7   : > { %v2909_v57 = vadd.f32 %v2545_v54, %v1628_v45  ;;  %v3592_v7 = vpop.f32.mrf.mxu3  ;;  %v1630_v40 = vpop.f32.mrf.mxu1  ;;  %v12375_v45 = vld [vmem:[%s11509_s24 + $0x148] sm:$0xff] }
 0x1e8   : > { %v1631_v19 = vadd.f32 %v1630_v40, %v11889_v12  ;;  %v10173_v54 = vld [vmem:[%s11509_s24 + $0x149] sm:$0xff] }
 0x1e9   : > { %v3956_v25 = vadd.f32 %v3592_v7, %v2909_v57 }
 0x1ea   : > { %v4641_v56 = vpop.f32.mrf.mxu0  ;;  %9655 = vmatmul.msk.f32.gmra.mxu1 %vm403_vm1, %v9909_v9 }
 0x1eb   : > { %v12351_v53 = vadd.f32 %v4638_v47, %v3956_v25  ;;  %9785 = vmatmul.msk.f32.gmra.mxu2 %vm403_vm1, %v2008_v38 }
 0x1ec   : > { %10043 = vmatmul.msk.f32.gmra.mxu3 %vm403_vm1, %v12349_v62 }
 0x1ed   : > { %10301 = vmatmul.msk.f32.gmra.mxu0 %vm403_vm1, %v11984_v20 }
 0x1ee   : > { %v2548_v51 = vpop.f32.mrf.mxu2 }
 0x1ef   : > { %v2910_v59 = vadd.f32 %v2548_v51, %v1631_v19  ;;  %v3595_v58 = vpop.f32.mrf.mxu3  ;;  %v1633_v46 = vpop.f32.mrf.mxu1  ;;  %v12388_v51 = vld [vmem:[%s11509_s24 + $0x150] sm:$0xff] }
 0x1f0   : > { %v1634_v12 = vadd.f32 %v1633_v46, %v11908_v8 }
 0x1f1   : > { %v3957_v63 = vadd.f32 %v3595_v58, %v2910_v59  ;;  %v10174_v59 = vld [vmem:[%s11509_s24 + $0x151] sm:$0xff] }
 0x1f2   : > { %v4644_v9 = vpop.f32.mrf.mxu0  ;;  %9656 = vmatmul.msk.f32.gmra.mxu1 %vm403_vm1, %v9910_v27 }
 0x1f3   : > { %v12365_v52 = vadd.f32 %v4641_v56, %v3957_v63  ;;  %9786 = vmatmul.msk.f32.gmra.mxu2 %vm403_vm1, %v2009_v37  ;;  %v2011_v56 = vld [vmem:[%s11509_s24 + $0x12a] sm:$0xff] }
 0x1f4   : > { %10044 = vmatmul.msk.f32.gmra.mxu3 %vm403_vm1, %v12362_v55 }
 0x1f5   : > { %10302 = vmatmul.msk.f32.gmra.mxu0 %vm403_vm1, %v10172_v30  ;;  %v2012_v30 = vld [vmem:[%s11509_s24 + $0x132] sm:$0xff] }
 0x1f6   : > { %v2551_v20 = vpop.f32.mrf.mxu2 }
 0x1f7   : > { %v2911_v44 = vadd.f32 %v2551_v20, %v1634_v12  ;;  %v3598_v31 = vpop.f32.mrf.mxu3  ;;  %v1636_v6 = vpop.f32.mrf.mxu1  ;;  %v12401_v20 = vld [vmem:[%s11509_s24 + $0x158] sm:$0xff] }
 0x1f8   : > { %v1637_v8 = vadd.f32 %v1636_v6, %v11939_v14 }
 0x1f9   : > { %v3958_v47 = vadd.f32 %v3598_v31, %v2911_v44  ;;  %v10175_v44 = vld [vmem:[%s11509_s24 + $0x159] sm:$0xff] }
 0x1fa   : > { %v4647_v27 = vpop.f32.mrf.mxu0  ;;  %9657 = vmatmul.msk.f32.gmra.mxu1 %vm403_vm1, %v9911_v33 }
 0x1fb   : > { %v12378_v57 = vadd.f32 %v4644_v9, %v3958_v47  ;;  %9787 = vmatmul.msk.f32.gmra.mxu2 %vm403_vm1, %v2010_v22 }
 0x1fc   : > { %10045 = vmatmul.msk.f32.gmra.mxu3 %vm403_vm1, %v12375_v45 }
 0x1fd   : > { %10303 = vmatmul.msk.f32.gmra.mxu0 %vm403_vm1, %v10173_v54  ;;  %v2013_v54 = vld [vmem:[%s11509_s24 + $0x142] sm:$0xff] }
 0x1fe   : > { %v2554_v7 = vpop.f32.mrf.mxu2 }
 0x1ff   : > { %v2912_v40 = vadd.f32 %v2554_v7, %v1637_v8  ;;  %v3601_v38 = vpop.f32.mrf.mxu3  ;;  %v1639_v25 = vpop.f32.mrf.mxu1  ;;  %v12415_v7 = vld [vmem:[%s11509_s24 + $0x168] sm:$0xff] }
 0x200   : > { %v1640_v14 = vadd.f32 %v1639_v25, %v11962_v29 }
 0x201   : > { %v3959_v19 = vadd.f32 %v3601_v38, %v2912_v40  ;;  %v10176_v40 = vld [vmem:[%s11509_s24 + $0x169] sm:$0xff] }
 0x202   : > { %v4650_v33 = vpop.f32.mrf.mxu0  ;;  %9658 = vmatmul.msk.f32.gmra.mxu1 %vm403_vm1, %v9912_v26 }
 0x203   : > { %v12391_v58 = vadd.f32 %v4647_v27, %v3959_v19  ;;  %9788 = vmatmul.msk.f32.gmra.mxu2 %vm403_vm1, %v2011_v56 }
 0x204   : > { %10046 = vmatmul.msk.f32.gmra.mxu3 %vm403_vm1, %v12388_v51 }
 0x205   : > { %10304 = vmatmul.msk.f32.gmra.mxu0 %vm403_vm1, %v10174_v59  ;;  %v2014_v59 = vld [vmem:[%s11509_s24 + $0x14a] sm:$0xff] }
 0x206   : > { %v2557_v46 = vpop.f32.mrf.mxu2 }
 0x207   : > { %v2913_v37 = vadd.f32 %v2557_v46, %v1640_v14  ;;  %v3604_v63 = vpop.f32.mrf.mxu3  ;;  %v1642_v9 = vpop.f32.mrf.mxu1  ;;  %v12429_v46 = vld [vmem:[%s11509_s24 + $0x170] sm:$0xff] }
 0x208   : > { %v1643_v29 = vadd.f32 %v1642_v9, %v11981_v61 }
 0x209   : > { %v3960_v12 = vadd.f32 %v3604_v63, %v2913_v37  ;;  %v10177_v37 = vld [vmem:[%s11509_s24 + $0x171] sm:$0xff] }
 0x20a   : > { %v4653_v26 = vpop.f32.mrf.mxu0  ;;  %9659 = vmatmul.msk.f32.gmra.mxu1 %vm403_vm1, %v12349_v62 }
 0x20b   : > { %v12404_v31 = vadd.f32 %v4650_v33, %v3960_v12  ;;  %9789 = vmatmul.msk.f32.gmra.mxu2 %vm403_vm1, %v2012_v30 }
 0x20c   : > { %10047 = vmatmul.msk.f32.gmra.mxu3 %vm403_vm1, %v12401_v20 }
 0x20d   : > { %10305 = vmatmul.msk.f32.gmra.mxu0 %vm403_vm1, %v10175_v44  ;;  %v2015_v44 = vld [vmem:[%s11509_s24 + $0x152] sm:$0xff] }
 0x20e   : > { %v2560_v6 = vpop.f32.mrf.mxu2 }
 0x20f   : > { %v2914_v22 = vadd.f32 %v2560_v6, %v1643_v29  ;;  %v3607_v47 = vpop.f32.mrf.mxu3  ;;  %v1645_v27 = vpop.f32.mrf.mxu1  ;;  %v12443_v6 = vld [vmem:[%s11509_s24 + $0x178] sm:$0xff] }
 0x210   : > { %v1646_v61 = vadd.f32 %v1645_v27, %v12000_v11 }
 0x211   : > { %v3961_v8 = vadd.f32 %v3607_v47, %v2914_v22  ;;  %v10178_v22 = vld [vmem:[%s11509_s24 + $0x179] sm:$0xff] }
 0x212   : > { %v4656_v62 = vpop.f32.mrf.mxu0  ;;  %9660 = vmatmul.msk.f32.gmra.mxu1 %vm403_vm1, %v12362_v55 }
 0x213   : > { %v12418_v38 = vadd.f32 %v4653_v26, %v3961_v8  ;;  %9790 = vmatmul.msk.f32.gmra.mxu2 %vm403_vm1, %v2013_v54 }
 0x214   : > { %10048 = vmatmul.msk.f32.gmra.mxu3 %vm403_vm1, %v12415_v7 }
 0x215   : > { %10306 = vmatmul.msk.f32.gmra.mxu0 %vm403_vm1, %v10176_v40  ;;  %v2016_v40 = vld [vmem:[%s11509_s24 + $0x15a] sm:$0xff] }
 0x216   : > { %v2563_v25 = vpop.f32.mrf.mxu2 }
 0x217   : > { %v2915_v56 = vadd.f32 %v2563_v25, %v1646_v61  ;;  %v3610_v19 = vpop.f32.mrf.mxu3  ;;  %v1648_v33 = vpop.f32.mrf.mxu1  ;;  %v12457_v25 = vld [vmem:[%s11509_s24 + $0x180] sm:$0xff] }
 0x218   : > { %v1649_v11 = vadd.f32 %v1648_v33, %v12016_v2 }
 0x219   : > { %v3962_v14 = vadd.f32 %v3610_v19, %v2915_v56  ;;  %v10179_v56 = vld [vmem:[%s11509_s24 + $0x181] sm:$0xff] }
 0x21a   : > { %v4659_v55 = vpop.f32.mrf.mxu0  ;;  %9661 = vmatmul.msk.f32.gmra.mxu1 %vm403_vm1, %v12375_v45 }
 0x21b   : > { %v12432_v63 = vadd.f32 %v4656_v62, %v3962_v14  ;;  %9791 = vmatmul.msk.f32.gmra.mxu2 %vm403_vm1, %v2014_v59 }
 0x21c   : > { %10049 = vmatmul.msk.f32.gmra.mxu3 %vm403_vm1, %v12429_v46 }
 0x21d   : > { %10307 = vmatmul.msk.f32.gmra.mxu0 %vm403_vm1, %v10177_v37  ;;  %v2017_v37 = vld [vmem:[%s11509_s24 + $0x16a] sm:$0xff] }
 0x21e   : > { %v2566_v9 = vpop.f32.mrf.mxu2 }
 0x21f   : > { %v2916_v30 = vadd.f32 %v2566_v9, %v1649_v11  ;;  %v3613_v12 = vpop.f32.mrf.mxu3  ;;  %v1651_v26 = vpop.f32.mrf.mxu1  ;;  %v12471_v9 = vld [vmem:[%s11509_s24 + $0x190] sm:$0xff] }
 0x220   : > { %v1652_v2 = vadd.f32 %v1651_v26, %v12032_v39 }
 0x221   : > { %v3963_v29 = vadd.f32 %v3613_v12, %v2916_v30  ;;  %v10180_v30 = vld [vmem:[%s11509_s24 + $0x191] sm:$0xff] }
 0x222   : > { %v4662_v45 = vpop.f32.mrf.mxu0  ;;  %9662 = vmatmul.msk.f32.gmra.mxu1 %vm403_vm1, %v12388_v51 }
 0x223   : > { %v12446_v47 = vadd.f32 %v4659_v55, %v3963_v29  ;;  %9792 = vmatmul.msk.f32.gmra.mxu2 %vm403_vm1, %v2015_v44 }
 0x224   : > { %10050 = vmatmul.msk.f32.gmra.mxu3 %vm403_vm1, %v12443_v6 }
 0x225   : > { %10308 = vmatmul.msk.f32.gmra.mxu0 %vm403_vm1, %v10178_v22  ;;  %v2018_v22 = vld [vmem:[%s11509_s24 + $0x172] sm:$0xff] }
 0x226   : > { %v2569_v27 = vpop.f32.mrf.mxu2 }
 0x227   : > { %v2917_v54 = vadd.f32 %v2569_v27, %v1652_v2  ;;  %v3616_v8 = vpop.f32.mrf.mxu3  ;;  %v1654_v62 = vpop.f32.mrf.mxu1  ;;  %v12485_v27 = vld [vmem:[%s11509_s24 + $0x198] sm:$0xff] }
 0x228   : > { %v1655_v39 = vadd.f32 %v1654_v62, %v12048_v15 }
 0x229   : > { %v3964_v61 = vadd.f32 %v3616_v8, %v2917_v54  ;;  %v10181_v54 = vld [vmem:[%s11509_s24 + $0x199] sm:$0xff] }
 0x22a   : > { %v4665_v51 = vpop.f32.mrf.mxu0  ;;  %9663 = vmatmul.msk.f32.gmra.mxu1 %vm403_vm1, %v12401_v20 }
 0x22b   : > { %v12460_v19 = vadd.f32 %v4662_v45, %v3964_v61  ;;  %9793 = vmatmul.msk.f32.gmra.mxu2 %vm403_vm1, %v2016_v40 }
 0x22c   : > { %10051 = vmatmul.msk.f32.gmra.mxu3 %vm403_vm1, %v12457_v25 }
 0x22d   : > { %10309 = vmatmul.msk.f32.gmra.mxu0 %vm403_vm1, %v10179_v56  ;;  %v2019_v56 = vld [vmem:[%s11509_s24 + $0x17a] sm:$0xff] }
 0x22e   : > { %v2572_v33 = vpop.f32.mrf.mxu2 }
 0x22f   : > { %v2918_v59 = vadd.f32 %v2572_v33, %v1655_v39  ;;  %v3619_v14 = vpop.f32.mrf.mxu3  ;;  %v1657_v55 = vpop.f32.mrf.mxu1  ;;  %v12499_v33 = vld [vmem:[%s11509_s24 + $0x1a0] sm:$0xff] }
 0x230   : > { %v1658_v15 = vadd.f32 %v1657_v55, %v12063_v23 }
 0x231   : > { %v3965_v11 = vadd.f32 %v3619_v14, %v2918_v59  ;;  %v10182_v59 = vld [vmem:[%s11509_s24 + $0x1a1] sm:$0xff] }
 0x232   : > { %v4668_v20 = vpop.f32.mrf.mxu0  ;;  %9664 = vmatmul.msk.f32.gmra.mxu1 %vm403_vm1, %v12415_v7 }
 0x233   : > { %v12474_v12 = vadd.f32 %v4665_v51, %v3965_v11  ;;  %9794 = vmatmul.msk.f32.gmra.mxu2 %vm403_vm1, %v2017_v37 }
 0x234   : > { %10052 = vmatmul.msk.f32.gmra.mxu3 %vm403_vm1, %v12471_v9 }
 0x235   : > { %10310 = vmatmul.msk.f32.gmra.mxu0 %vm403_vm1, %v10180_v30  ;;  %v2020_v30 = vld [vmem:[%s11509_s24 + $0x182] sm:$0xff] }
 0x236   : > { %v2575_v26 = vpop.f32.mrf.mxu2 }
 0x237   : > { %v2919_v44 = vadd.f32 %v2575_v26, %v1658_v15  ;;  %v3622_v29 = vpop.f32.mrf.mxu3  ;;  %v1660_v45 = vpop.f32.mrf.mxu1  ;;  %v12513_v26 = vld [vmem:[%s11509_s24 + $0x1a8] sm:$0xff] }
 0x238   : > { %v1661_v23 = vadd.f32 %v1660_v45, %v12078_v34 }
 0x239   : > { %v3966_v2 = vadd.f32 %v3622_v29, %v2919_v44  ;;  %v10183_v44 = vld [vmem:[%s11509_s24 + $0x1a9] sm:$0xff] }
 0x23a   : > { %v4671_v7 = vpop.f32.mrf.mxu0  ;;  %9665 = vmatmul.msk.f32.gmra.mxu1 %vm403_vm1, %v12429_v46 }
 0x23b   : > { %v12488_v8 = vadd.f32 %v4668_v20, %v3966_v2  ;;  %9795 = vmatmul.msk.f32.gmra.mxu2 %vm403_vm1, %v2018_v22 }
 0x23c   : > { %10053 = vmatmul.msk.f32.gmra.mxu3 %vm403_vm1, %v12485_v27 }
 0x23d   : > { %10311 = vmatmul.msk.f32.gmra.mxu0 %vm403_vm1, %v10181_v54  ;;  %v2021_v54 = vld [vmem:[%s11509_s24 + $0x192] sm:$0xff] }
 0x23e   : > { %v2578_v62 = vpop.f32.mrf.mxu2 }
 0x23f   : > { %v2920_v40 = vadd.f32 %v2578_v62, %v1661_v23  ;;  %v3625_v61 = vpop.f32.mrf.mxu3  ;;  %v1663_v51 = vpop.f32.mrf.mxu1  ;;  %v12527_v62 = vld [vmem:[%s11509_s24 + $0x1b8] sm:$0xff] }
 0x240   : > { %v1664_v34 = vadd.f32 %v1663_v51, %v12093_v24 }
 0x241   : > { %v3967_v39 = vadd.f32 %v3625_v61, %v2920_v40  ;;  %v10184_v40 = vld [vmem:[%s11509_s24 + $0x1b9] sm:$0xff] }
 0x242   : > { %v4674_v46 = vpop.f32.mrf.mxu0  ;;  %9666 = vmatmul.msk.f32.gmra.mxu1 %vm403_vm1, %v12443_v6 }
 0x243   : > { %v12502_v14 = vadd.f32 %v4671_v7, %v3967_v39  ;;  %9796 = vmatmul.msk.f32.gmra.mxu2 %vm403_vm1, %v2019_v56 }
 0x244   : > { %10054 = vmatmul.msk.f32.gmra.mxu3 %vm403_vm1, %v12499_v33 }
 0x245   : > { %10312 = vmatmul.msk.f32.gmra.mxu0 %vm403_vm1, %v10182_v59  ;;  %v2022_v59 = vld [vmem:[%s11509_s24 + $0x19a] sm:$0xff] }
 0x246   : > { %v2581_v55 = vpop.f32.mrf.mxu2 }
 0x247   : > { %v2921_v37 = vadd.f32 %v2581_v55, %v1664_v34  ;;  %v3628_v11 = vpop.f32.mrf.mxu3  ;;  %v1666_v20 = vpop.f32.mrf.mxu1  ;;  %v12541_v55 = vld [vmem:[%s11509_s24 + $0x1c0] sm:$0xff] }
 0x248   : > { %v1667_v24 = vadd.f32 %v1666_v20, %v12108_v1 }
 0x249   : > { %v3968_v15 = vadd.f32 %v3628_v11, %v2921_v37  ;;  %v10185_v37 = vld [vmem:[%s11509_s24 + $0x1c1] sm:$0xff] }
 0x24a   : > { %v4677_v6 = vpop.f32.mrf.mxu0  ;;  %9667 = vmatmul.msk.f32.gmra.mxu1 %vm403_vm1, %v12457_v25 }
 0x24b   : > { %v12516_v29 = vadd.f32 %v4674_v46, %v3968_v15  ;;  %9797 = vmatmul.msk.f32.gmra.mxu2 %vm403_vm1, %v2020_v30 }
 0x24c   : > { %10055 = vmatmul.msk.f32.gmra.mxu3 %vm403_vm1, %v12513_v26 }
 0x24d   : > { %10313 = vmatmul.msk.f32.gmra.mxu0 %vm403_vm1, %v10183_v44  ;;  %v2023_v44 = vld [vmem:[%s11509_s24 + $0x1a2] sm:$0xff] }
 0x24e   : > { %v2584_v45 = vpop.f32.mrf.mxu2 }
 0x24f   : > { %v2922_v22 = vadd.f32 %v2584_v45, %v1667_v24  ;;  %v3631_v2 = vpop.f32.mrf.mxu3  ;;  %v1669_v7 = vpop.f32.mrf.mxu1  ;;  %v12555_v45 = vld [vmem:[%s11509_s24 + $0x1c8] sm:$0xff] }
 0x250   : > { %v1670_v1 = vadd.f32 %v1669_v7, %v12123_v50 }
 0x251   : > { %v3969_v23 = vadd.f32 %v3631_v2, %v2922_v22  ;;  %v10186_v22 = vld [vmem:[%s11509_s24 + $0x1c9] sm:$0xff] }
 0x252   : > { %v4680_v25 = vpop.f32.mrf.mxu0  ;;  %9668 = vmatmul.msk.f32.gmra.mxu1 %vm403_vm1, %v12471_v9 }
 0x253   : > { %v12530_v61 = vadd.f32 %v4677_v6, %v3969_v23  ;;  %9798 = vmatmul.msk.f32.gmra.mxu2 %vm403_vm1, %v2021_v54 }
 0x254   : > { %10056 = vmatmul.msk.f32.gmra.mxu3 %vm403_vm1, %v12527_v62 }
 0x255   : > { %10314 = vmatmul.msk.f32.gmra.mxu0 %vm403_vm1, %v10184_v40  ;;  %v2024_v40 = vld [vmem:[%s11509_s24 + $0x1aa] sm:$0xff] }
 0x256   : > { %v2587_v51 = vpop.f32.mrf.mxu2 }
 0x257   : > { %v2923_v56 = vadd.f32 %v2587_v51, %v1670_v1  ;;  %v3634_v39 = vpop.f32.mrf.mxu3  ;;  %v1672_v46 = vpop.f32.mrf.mxu1  ;;  %v12569_v51 = vld [vmem:[%s11509_s24 + $0x1d0] sm:$0xff] }
 0x258   : > { %v1673_v50 = vadd.f32 %v1672_v46, %v12138_v16 }
 0x259   : > { %v3970_v34 = vadd.f32 %v3634_v39, %v2923_v56  ;;  %v10187_v56 = vld [vmem:[%s11509_s24 + $0x1d1] sm:$0xff] }
 0x25a   : > { %v4683_v9 = vpop.f32.mrf.mxu0  ;;  %9669 = vmatmul.msk.f32.gmra.mxu1 %vm403_vm1, %v12485_v27 }
 0x25b   : > { %v12544_v11 = vadd.f32 %v4680_v25, %v3970_v34  ;;  %9799 = vmatmul.msk.f32.gmra.mxu2 %vm403_vm1, %v2022_v59 }
 0x25c   : > { %10057 = vmatmul.msk.f32.gmra.mxu3 %vm403_vm1, %v12541_v55 }
 0x25d   : > { %10315 = vmatmul.msk.f32.gmra.mxu0 %vm403_vm1, %v10185_v37  ;;  %v2025_v37 = vld [vmem:[%s11509_s24 + $0x1ba] sm:$0xff] }
 0x25e   : > { %v2590_v20 = vpop.f32.mrf.mxu2 }
 0x25f   : > { %v2924_v30 = vadd.f32 %v2590_v20, %v1673_v50  ;;  %v3637_v15 = vpop.f32.mrf.mxu3  ;;  %v1675_v6 = vpop.f32.mrf.mxu1  ;;  %v12583_v20 = vld [vmem:[%s11509_s24 + $0x1e0] sm:$0xff] }
 0x260   : > { %v1676_v16 = vadd.f32 %v1675_v6, %v12153_v41 }
 0x261   : > { %v3971_v24 = vadd.f32 %v3637_v15, %v2924_v30  ;;  %v10188_v30 = vld [vmem:[%s11509_s24 + $0x1e1] sm:$0xff] }
 0x262   : > { %v4686_v27 = vpop.f32.mrf.mxu0  ;;  %9670 = vmatmul.msk.f32.gmra.mxu1 %vm403_vm1, %v12499_v33 }
 0x263   : > { %v12558_v2 = vadd.f32 %v4683_v9, %v3971_v24  ;;  %9800 = vmatmul.msk.f32.gmra.mxu2 %vm403_vm1, %v2023_v44 }
 0x264   : > { %10058 = vmatmul.msk.f32.gmra.mxu3 %vm403_vm1, %v12555_v45 }
 0x265   : > { %10316 = vmatmul.msk.f32.gmra.mxu0 %vm403_vm1, %v10186_v22  ;;  %v2026_v22 = vld [vmem:[%s11509_s24 + $0x1c2] sm:$0xff] }
 0x266   : > { %v2593_v7 = vpop.f32.mrf.mxu2 }
 0x267   : > { %v2925_v54 = vadd.f32 %v2593_v7, %v1676_v16  ;;  %v3640_v23 = vpop.f32.mrf.mxu3  ;;  %v1678_v25 = vpop.f32.mrf.mxu1  ;;  %v12597_v7 = vld [vmem:[%s11509_s24 + $0x1e8] sm:$0xff] }
 0x268   : > { %v1679_v41 = vadd.f32 %v1678_v25, %v12168_v35 }
 0x269   : > { %v3972_v1 = vadd.f32 %v3640_v23, %v2925_v54  ;;  %v10189_v54 = vld [vmem:[%s11509_s24 + $0x1e9] sm:$0xff] }
 0x26a   : > { %v4689_v33 = vpop.f32.mrf.mxu0  ;;  %9671 = vmatmul.msk.f32.gmra.mxu1 %vm403_vm1, %v12513_v26 }
 0x26b   : > { %v12572_v39 = vadd.f32 %v4686_v27, %v3972_v1  ;;  %9801 = vmatmul.msk.f32.gmra.mxu2 %vm403_vm1, %v2024_v40 }
 0x26c   : > { %10059 = vmatmul.msk.f32.gmra.mxu3 %vm403_vm1, %v12569_v51 }
 0x26d   : > { %10317 = vmatmul.msk.f32.gmra.mxu0 %vm403_vm1, %v10187_v56  ;;  %v2027_v56 = vld [vmem:[%s11509_s24 + $0x1ca] sm:$0xff] }
 0x26e   : > { %v2596_v46 = vpop.f32.mrf.mxu2 }
 0x26f   : > { %v2926_v59 = vadd.f32 %v2596_v46, %v1679_v41  ;;  %v3643_v34 = vpop.f32.mrf.mxu3  ;;  %v1681_v9 = vpop.f32.mrf.mxu1  ;;  %v12611_v46 = vld [vmem:[%s11509_s24 + $0x1f0] sm:$0xff] }
 0x270   : > { %v1682_v35 = vadd.f32 %v1681_v9, %v12183_v3 }
 0x271   : > { %v3973_v50 = vadd.f32 %v3643_v34, %v2926_v59  ;;  %v10190_v59 = vld [vmem:[%s11509_s24 + $0x1f1] sm:$0xff] }
 0x272   : > { %v4692_v26 = vpop.f32.mrf.mxu0  ;;  %9672 = vmatmul.msk.f32.gmra.mxu1 %vm403_vm1, %v12527_v62 }
 0x273   : > { %v12586_v15 = vadd.f32 %v4689_v33, %v3973_v50  ;;  %9802 = vmatmul.msk.f32.gmra.mxu2 %vm403_vm1, %v2025_v37 }
 0x274   : > { %10060 = vmatmul.msk.f32.gmra.mxu3 %vm403_vm1, %v12583_v20 }
 0x275   : > { %10318 = vmatmul.msk.f32.gmra.mxu0 %vm403_vm1, %v10188_v30  ;;  %v2028_v30 = vld [vmem:[%s11509_s24 + $0x1d2] sm:$0xff] }
 0x276   : > { %v2599_v6 = vpop.f32.mrf.mxu2 }
 0x277   : > { %v2927_v44 = vadd.f32 %v2599_v6, %v1682_v35  ;;  %v3646_v24 = vpop.f32.mrf.mxu3  ;;  %v1684_v27 = vpop.f32.mrf.mxu1  ;;  %v12625_v6 = vld [vmem:[%s11509_s24 + $0x1f8] sm:$0xff] }
 0x278   : > { %v1685_v3 = vadd.f32 %v1684_v27, %v12198_v43 }
 0x279   : > { %v3974_v16 = vadd.f32 %v3646_v24, %v2927_v44  ;;  %v10191_v44 = vld [vmem:[%s11509_s24 + $0x1f9] sm:$0xff] }
 0x27a   : > { %v4695_v62 = vpop.f32.mrf.mxu0  ;;  %9673 = vmatmul.msk.f32.gmra.mxu1 %vm403_vm1, %v12541_v55 }
 0x27b   : > { %v12600_v23 = vadd.f32 %v4692_v26, %v3974_v16  ;;  %9803 = vmatmul.msk.f32.gmra.mxu2 %vm403_vm1, %v2026_v22 }
 0x27c   : > { %10061 = vmatmul.msk.f32.gmra.mxu3 %vm403_vm1, %v12597_v7 }
 0x27d   : > { %10319 = vmatmul.msk.f32.gmra.mxu0 %vm403_vm1, %v10189_v54  ;;  %v2029_v54 = vld [vmem:[%s11509_s24 + $0x1e2] sm:$0xff] }
 0x27e   : > { %v2602_v25 = vpop.f32.mrf.mxu2 }
 0x27f   : > { %v2928_v40 = vadd.f32 %v2602_v25, %v1685_v3  ;;  %v3649_v1 = vpop.f32.mrf.mxu3  ;;  %v1687_v33 = vpop.f32.mrf.mxu1  ;;  %v12639_v25 = vld [vmem:[%s11509_s24 + $0x208] sm:$0xff] }
 0x280   : > { %v1688_v43 = vadd.f32 %v1687_v33, %v12213_v28 }
 0x281   : > { %v3975_v41 = vadd.f32 %v3649_v1, %v2928_v40  ;;  %v10192_v40 = vld [vmem:[%s11509_s24 + $0x209] sm:$0xff] }
 0x282   : > { %v4698_v55 = vpop.f32.mrf.mxu0  ;;  %9674 = vmatmul.msk.f32.gmra.mxu1 %vm403_vm1, %v12555_v45 }
 0x283   : > { %v12614_v34 = vadd.f32 %v4695_v62, %v3975_v41  ;;  %9804 = vmatmul.msk.f32.gmra.mxu2 %vm403_vm1, %v2027_v56 }
 0x284   : > { %10062 = vmatmul.msk.f32.gmra.mxu3 %vm403_vm1, %v12611_v46 }
 0x285   : > { %10320 = vmatmul.msk.f32.gmra.mxu0 %vm403_vm1, %v10190_v59  ;;  %v2030_v59 = vld [vmem:[%s11509_s24 + $0x1ea] sm:$0xff] }
 0x286   : > { %v2605_v9 = vpop.f32.mrf.mxu2 }
 0x287   : > { %v2929_v37 = vadd.f32 %v2605_v9, %v1688_v43  ;;  %v3652_v50 = vpop.f32.mrf.mxu3  ;;  %v1690_v26 = vpop.f32.mrf.mxu1  ;;  %v12653_v9 = vld [vmem:[%s11509_s24 + $0x210] sm:$0xff] }
 0x288   : > { %v1691_v28 = vadd.f32 %v1690_v26, %v12228_v32 }
 0x289   : > { %v3976_v35 = vadd.f32 %v3652_v50, %v2929_v37  ;;  %v10193_v37 = vld [vmem:[%s11509_s24 + $0x211] sm:$0xff] }
 0x28a   : > { %v4701_v45 = vpop.f32.mrf.mxu0  ;;  %9675 = vmatmul.msk.f32.gmra.mxu1 %vm403_vm1, %v12569_v51 }
 0x28b   : > { %v12628_v24 = vadd.f32 %v4698_v55, %v3976_v35  ;;  %9805 = vmatmul.msk.f32.gmra.mxu2 %vm403_vm1, %v2028_v30 }
 0x28c   : > { %10063 = vmatmul.msk.f32.gmra.mxu3 %vm403_vm1, %v12625_v6 }
 0x28d   : > { %10321 = vmatmul.msk.f32.gmra.mxu0 %vm403_vm1, %v10191_v44  ;;  %v2031_v44 = vld [vmem:[%s11509_s24 + $0x1f2] sm:$0xff] }
 0x28e   : > { %v2608_v27 = vpop.f32.mrf.mxu2 }
 0x28f   : > { %v2930_v22 = vadd.f32 %v2608_v27, %v1691_v28  ;;  %v3655_v16 = vpop.f32.mrf.mxu3  ;;  %v1693_v62 = vpop.f32.mrf.mxu1  ;;  %v12667_v27 = vld [vmem:[%s11509_s24 + $0x218] sm:$0xff] }
 0x290   : > { %v1694_v32 = vadd.f32 %v1693_v62, %v11675_v5 }
 0x291   : > { %v3977_v3 = vadd.f32 %v3655_v16, %v2930_v22  ;;  %v10194_v22 = vld [vmem:[%s11509_s24 + $0x219] sm:$0xff] }
 0x292   : > { %v4704_v51 = vpop.f32.mrf.mxu0  ;;  %9676 = vmatmul.msk.f32.gmra.mxu1 %vm403_vm1, %v12583_v20 }
 0x293   : > { %v12642_v1 = vadd.f32 %v4701_v45, %v3977_v3  ;;  %9806 = vmatmul.msk.f32.gmra.mxu2 %vm403_vm1, %v2029_v54 }
 0x294   : > { %10064 = vmatmul.msk.f32.gmra.mxu3 %vm403_vm1, %v12639_v25 }
 0x295   : > { %10322 = vmatmul.msk.f32.gmra.mxu0 %vm403_vm1, %v10192_v40  ;;  %v2032_v40 = vld [vmem:[%s11509_s24 + $0x1fa] sm:$0xff] }
 0x296   : > { %v2611_v33 = vpop.f32.mrf.mxu2 }
 0x297   : > { %v2931_v56 = vadd.f32 %v2611_v33, %v1694_v32  ;;  %v3658_v41 = vpop.f32.mrf.mxu3  ;;  %v1696_v55 = vpop.f32.mrf.mxu1  ;;  %v12681_v33 = vld [vmem:[%s11509_s24 + $0x220] sm:$0xff] }
 0x298   : > { %v1697_v5 = vadd.f32 %v1696_v55, %v11694_v13 }
 0x299   : > { %v3978_v43 = vadd.f32 %v3658_v41, %v2931_v56  ;;  %v10195_v56 = vld [vmem:[%s11509_s24 + $0x221] sm:$0xff] }
 0x29a   : > { %v4707_v20 = vpop.f32.mrf.mxu0  ;;  %9677 = vmatmul.msk.f32.gmra.mxu1 %vm403_vm1, %v12597_v7 }
 0x29b   : > { %v12656_v50 = vadd.f32 %v4704_v51, %v3978_v43  ;;  %9807 = vmatmul.msk.f32.gmra.mxu2 %vm403_vm1, %v2030_v59 }
 0x29c   : > { %10065 = vmatmul.msk.f32.gmra.mxu3 %vm403_vm1, %v12653_v9 }
 0x29d   : > { %10323 = vmatmul.msk.f32.gmra.mxu0 %vm403_vm1, %v10193_v37 }
 0x29e   : > { %v2614_v26 = vpop.f32.mrf.mxu2 }
 0x29f   : > { %v2932_v30 = vadd.f32 %v2614_v26, %v1697_v5  ;;  %v3661_v35 = vpop.f32.mrf.mxu3  ;;  %v1699_v45 = vpop.f32.mrf.mxu1  ;;  %v2033_v5 = vld [vmem:[%s11509_s24 + $0x20a] sm:$0xff] }
 0x2a0   : > { %v1700_v13 = vadd.f32 %v1699_v45, %v11713_v21  ;;  %v15640_v21 = vld [vmem:[#allocation8_spill] sm:$0xff] }
 0x2a1   : > { %v3979_v28 = vadd.f32 %v3661_v35, %v2932_v30  ;;  %v12695_v30 = vld [vmem:[%s11509_s24 + $0x230] sm:$0xff] }
 0x2a2   : > { %v4710_v7 = vpop.f32.mrf.mxu0  ;;  %9678 = vmatmul.msk.f32.gmra.mxu1 %vm403_vm1, %v12611_v46  ;;  %v10196_v35 = vld [vmem:[%s11509_s24 + $0x231] sm:$0xff] }
 0x2a3   : > { %v12670_v16 = vadd.f32 %v4707_v20, %v3979_v28  ;;  %9808 = vmatmul.msk.f32.gmra.mxu2 %vm403_vm1, %v2031_v44  ;;  %v15641_v44 = vld [vmem:[#allocation11_spill] sm:$0xff] }
 0x2a4   : > { %10066 = vmatmul.msk.f32.gmra.mxu3 %vm403_vm1, %v12667_v27 }
 0x2a5   : > { %10324 = vmatmul.msk.f32.gmra.mxu0 %vm403_vm1, %v10194_v22 }
 0x2a6   : > { %v2617_v62 = vpop.f32.mrf.mxu2 }
 0x2a7   : > { %v2933_v54 = vadd.f32 %v2617_v62, %v1700_v13  ;;  %v3664_v3 = vpop.f32.mrf.mxu3  ;;  %v1702_v51 = vpop.f32.mrf.mxu1 }
 0x2a8   : > { %v1703_v55 = vadd.f32 %v1702_v51, %v15640_v21  ;;  %v12709_v51 = vld [vmem:[%s11509_s24 + $0x238] sm:$0xff] }
 0x2a9   : > { %v3980_v32 = vadd.f32 %v3664_v3, %v2933_v54  ;;  %v2034_v54 = vld [vmem:[%s11509_s24 + $0x212] sm:$0xff] }
 0x2aa   : > { %v4713_v46 = vpop.f32.mrf.mxu0  ;;  %9679 = vmatmul.msk.f32.gmra.mxu1 %vm403_vm1, %v12625_v6 }
 0x2ab   : > { %v12684_v41 = vadd.f32 %v4710_v7, %v3980_v32  ;;  %9809 = vmatmul.msk.f32.gmra.mxu2 %vm403_vm1, %v2032_v40  ;;  %v10197_v40 = vld [vmem:[%s11509_s24 + $0x239] sm:$0xff] }
 0x2ac   : > { %10067 = vmatmul.msk.f32.gmra.mxu3 %vm403_vm1, %v12681_v33 }
 0x2ad   : > { %10325 = vmatmul.msk.f32.gmra.mxu0 %vm403_vm1, %v10195_v56 }
 0x2ae   : > { %v2620_v59 = vpop.f32.mrf.mxu2 }
 0x2af   : > { %v2934_v43 = vadd.f32 %v2620_v59, %v1703_v55  ;;  %v3667_v20 = vpop.f32.mrf.mxu3  ;;  %v1705_v37 = vpop.f32.mrf.mxu1 }
 0x2b0   : > { %v1706_v28 = vadd.f32 %v1705_v37, %v15641_v44 }
 0x2b1   : > { %v3981_v26 = vadd.f32 %v3667_v20, %v2934_v43  ;;  %v2035_v20 = vld [vmem:[%s11509_s24 + $0x21a] sm:$0xff] }
 0x2b2   : > { %v4716_v6 = vpop.f32.mrf.mxu0  ;;  %9680 = vmatmul.msk.f32.gmra.mxu1 %vm403_vm1, %v12639_v25 }
 0x2b3   : > { %v12698_v45 = vadd.f32 %v4713_v46, %v3981_v26  ;;  %9810 = vmatmul.msk.f32.gmra.mxu2 %vm403_vm1, %v2033_v5  ;;  %v15642_v46 = vld [vmem:[#allocation14_spill] sm:$0xff] }
 0x2b4   : > { %10068 = vmatmul.msk.f32.gmra.mxu3 %vm403_vm1, %v12695_v30  ;;  %v12723_v5 = vld [vmem:[%s11509_s24 + $0x240] sm:$0xff] }
 0x2b5   : > { %10326 = vmatmul.msk.f32.gmra.mxu0 %vm403_vm1, %v10196_v35  ;;  %v10198_v26 = vld [vmem:[%s11509_s24 + $0x241] sm:$0xff]  ;;  %v15643_v35 = vld [vmem:[#allocation17_spill] sm:$0xff] }
 0x2b6   : > { %v2623_v7 = vpop.f32.mrf.mxu2 }
 0x2b7   : > { %v2935_v22 = vadd.f32 %v2623_v7, %v1706_v28  ;;  %v3670_v13 = vpop.f32.mrf.mxu3  ;;  %v1708_v62 = vpop.f32.mrf.mxu1 }
 0x2b8   : > { %v1709_v56 = vadd.f32 %v1708_v62, %v15642_v46  ;;  %v2036_v62 = vld [vmem:[%s11509_s24 + $0x222] sm:$0xff]  ;;  %v15644_v46 = vld [vmem:[#allocation20_spill] sm:$0xff] }
 0x2b9   : > { %v3982_v3 = vadd.f32 %v3670_v13, %v2935_v22 }
 0x2ba   : > { %v4719_v25 = vpop.f32.mrf.mxu0  ;;  %9681 = vmatmul.msk.f32.gmra.mxu1 %vm403_vm1, %v12653_v9 }
 0x2bb   : > { %v12712_v32 = vadd.f32 %v4716_v6, %v3982_v3  ;;  %9811 = vmatmul.msk.f32.gmra.mxu2 %vm403_vm1, %v2034_v54  ;;  %v12737_v3 = vld [vmem:[%s11509_s24 + $0x248] sm:$0xff] }
 0x2bc   : > { %10069 = vmatmul.msk.f32.gmra.mxu3 %vm403_vm1, %v12709_v51 }
 0x2bd   : > { %10327 = vmatmul.msk.f32.gmra.mxu0 %vm403_vm1, %v10197_v40 }
 0x2be   : > { %v2626_v21 = vpop.f32.mrf.mxu2 }
 0x2bf   : > { %v2936_v55 = vadd.f32 %v2626_v21, %v1709_v56  ;;  %v3673_v59 = vpop.f32.mrf.mxu3  ;;  %v1711_v43 = vpop.f32.mrf.mxu1 }
 0x2c0   : > { %v1712_v44 = vadd.f32 %v1711_v43, %v15643_v35 }
 0x2c1   : > { %v3983_v37 = vadd.f32 %v3673_v59, %v2936_v55 }
 0x2c2   : > { %v4722_v9 = vpop.f32.mrf.mxu0  ;;  %9682 = vmatmul.msk.f32.gmra.mxu1 %vm403_vm1, %v12667_v27 }
 0x2c3   : > { %v12726_v6 = vadd.f32 %v4719_v25, %v3983_v37  ;;  %9812 = vmatmul.msk.f32.gmra.mxu2 %vm403_vm1, %v2035_v20  ;;  %v10199_v25 = vld [vmem:[%s11509_s24 + $0x249] sm:$0xff]  ;;  %v2037_v20 = vld [vmem:[%s11509_s24 + $0x232] sm:$0xff] }
 0x2c4   : > { %10070 = vmatmul.msk.f32.gmra.mxu3 %vm403_vm1, %v12723_v5 }
 0x2c5   : > { %10328 = vmatmul.msk.f32.gmra.mxu0 %vm403_vm1, %v10198_v26  ;;  %v10200_v26 = vld [vmem:[%s11509_s24 + $0x259] sm:$0xff] }
 0x2c6   : > { %v2629_v28 = vpop.f32.mrf.mxu2 }
 0x2c7   : > { %v2937_v7 = vadd.f32 %v2629_v28, %v1712_v44  ;;  %v3676_v22 = vpop.f32.mrf.mxu3  ;;  %v1714_v13 = vpop.f32.mrf.mxu1  ;;  %v15645_v44 = vld [vmem:[#allocation23_spill] sm:$0xff] }
 0x2c8   : > { %v1715_v56 = vadd.f32 %v1714_v13, %v15644_v46  ;;  %v10201_v46 = vld [vmem:[%s11509_s24 + $0x261] sm:$0xff] }
 0x2c9   : > { %v3984_v54 = vadd.f32 %v3676_v22, %v2937_v7 }
 0x2ca   : > { %v4725_v27 = vpop.f32.mrf.mxu0  ;;  %9683 = vmatmul.msk.f32.gmra.mxu1 %vm403_vm1, %v12681_v33 }
 0x2cb   : > { %v12740_v40 = vadd.f32 %v4722_v9, %v3984_v54  ;;  %9813 = vmatmul.msk.f32.gmra.mxu2 %vm403_vm1, %v2036_v62  ;;  %v12751_v9 = vld [vmem:[%s11509_s24 + $0x258] sm:$0xff] }
 0x2cc   : > { %10071 = vmatmul.msk.f32.gmra.mxu3 %vm403_vm1, %v12737_v3  ;;  %v2038_v54 = vld [vmem:[%s11509_s24 + $0x23a] sm:$0xff] }
 0x2cd   : > { %10329 = vmatmul.msk.f32.gmra.mxu0 %vm403_vm1, %v10199_v25  ;;  %v12765_v25 = vld [vmem:[%s11509_s24 + $0x260] sm:$0xff] }
 0x2ce   : > { %v2632_v21 = vpop.f32.mrf.mxu2 }
 0x2cf   : > { %v2938_v55 = vadd.f32 %v2632_v21, %v1715_v56  ;;  %v3679_v59 = vpop.f32.mrf.mxu3  ;;  %v1717_v43 = vpop.f32.mrf.mxu1  ;;  %v15646_v21 = vld [vmem:[#allocation26_spill] sm:$0xff] }
 0x2d0   : > { %v1718_v28 = vadd.f32 %v1717_v43, %v15645_v44  ;;  %v12779_v44 = vld [vmem:[%s11509_s24 + $0x268] sm:$0xff] }
 0x2d1   : > { %v3985_v37 = vadd.f32 %v3679_v59, %v2938_v55 }
 0x2d2   : > { %v4728_v33 = vpop.f32.mrf.mxu0  ;;  %9684 = vmatmul.msk.f32.gmra.mxu1 %vm403_vm1, %v12695_v30 }
 0x2d3   : > { %v12754_v35 = vadd.f32 %v4725_v27, %v3985_v37  ;;  %9814 = vmatmul.msk.f32.gmra.mxu2 %vm403_vm1, %v2037_v20 }
 0x2d4   : > { %10072 = vmatmul.msk.f32.gmra.mxu3 %vm403_vm1, %v12751_v9 }
 0x2d5   : > { %10330 = vmatmul.msk.f32.gmra.mxu0 %vm403_vm1, %v10200_v26  ;;  %v2039_v26 = vld [vmem:[%s11509_s24 + $0x242] sm:$0xff] }
 0x2d6   : > { %v2635_v7 = vpop.f32.mrf.mxu2 }
 0x2d7   : > { %v2939_v22 = vadd.f32 %v2635_v7, %v1718_v28  ;;  %v3682_v13 = vpop.f32.mrf.mxu3  ;;  %v1720_v62 = vpop.f32.mrf.mxu1  ;;  %v10202_v28 = vld [vmem:[%s11509_s24 + $0x269] sm:$0xff] }
 0x2d8   : > { %v1721_v55 = vadd.f32 %v1720_v62, %v15646_v21  ;;  %v2040_v21 = vld [vmem:[%s11509_s24 + $0x24a] sm:$0xff] }
 0x2d9   : > { %v3986_v27 = vadd.f32 %v3682_v13, %v2939_v22  ;;  %v15647_v22 = vld [vmem:[#allocation29_spill] sm:$0xff] }
 0x2da   : > { %v4731_v30 = vpop.f32.mrf.mxu0  ;;  %9685 = vmatmul.msk.f32.gmra.mxu1 %vm403_vm1, %v12709_v51 }
 0x2db   : > { %v12768_v56 = vadd.f32 %v4728_v33, %v3986_v27  ;;  %9815 = vmatmul.msk.f32.gmra.mxu2 %vm403_vm1, %v2038_v54 }
 0x2dc   : > { %10073 = vmatmul.msk.f32.gmra.mxu3 %vm403_vm1, %v12765_v25 }
 0x2dd   : > { %10331 = vmatmul.msk.f32.gmra.mxu0 %vm403_vm1, %v10201_v46 }
 0x2de   : > { %v2638_v59 = vpop.f32.mrf.mxu2 }
 0x2df   : > { %v2940_v43 = vadd.f32 %v2638_v59, %v1721_v55  ;;  %v3685_v20 = vpop.f32.mrf.mxu3  ;;  %v1723_v37 = vpop.f32.mrf.mxu1  ;;  %v12793_v55 = vld [vmem:[%s11509_s24 + $0x270] sm:$0xff] }
 0x2e0   : > { %v1724_v13 = vadd.f32 %v1723_v37, %v15647_v22  ;;  %v10203_v59 = vld [vmem:[%s11509_s24 + $0x271] sm:$0xff] }
 0x2e1   : > { %v3987_v33 = vadd.f32 %v3685_v20, %v2940_v43  ;;  %v15648_v20 = vld [vmem:[#allocation32_spill] sm:$0xff] }
 0x2e2   : > { %v4734_v51 = vpop.f32.mrf.mxu0  ;;  %9686 = vmatmul.msk.f32.gmra.mxu1 %vm403_vm1, %v12723_v5 }
 0x2e3   : > { %v12782_v7 = vadd.f32 %v4731_v30, %v3987_v33  ;;  %9816 = vmatmul.msk.f32.gmra.mxu2 %vm403_vm1, %v2039_v26 }
 0x2e4   : > { %10074 = vmatmul.msk.f32.gmra.mxu3 %vm403_vm1, %v12779_v44 }
 0x2e5   : > { %10332 = vmatmul.msk.f32.gmra.mxu0 %vm403_vm1, %v10202_v28 }
 0x2e6   : > { %v2641_v62 = vpop.f32.mrf.mxu2 }
 0x2e7   : > { %v2941_v54 = vadd.f32 %v2641_v62, %v1724_v13  ;;  %v3688_v27 = vpop.f32.mrf.mxu3  ;;  %v1726_v46 = vpop.f32.mrf.mxu1  ;;  %v2041_v13 = vld [vmem:[%s11509_s24 + $0x25a] sm:$0xff] }
 0x2e8   : > { %v1727_v37 = vadd.f32 %v1726_v46, %v15648_v20  ;;  %v12807_v62 = vld [vmem:[%s11509_s24 + $0x280] sm:$0xff]  ;;  %v15649_v46 = vld [vmem:[#allocation35_spill] sm:$0xff] }
 0x2e9   : > { %v3988_v30 = vadd.f32 %v3688_v27, %v2941_v54  ;;  %v10204_v54 = vld [vmem:[%s11509_s24 + $0x281] sm:$0xff] }
 0x2ea   : > { %v4737_v5 = vpop.f32.mrf.mxu0  ;;  %9687 = vmatmul.msk.f32.gmra.mxu1 %vm403_vm1, %v12737_v3 }
 0x2eb   : > { %v12796_v43 = vadd.f32 %v4734_v51, %v3988_v30  ;;  %9817 = vmatmul.msk.f32.gmra.mxu2 %vm403_vm1, %v2040_v21 }
 0x2ec   : > { %10075 = vmatmul.msk.f32.gmra.mxu3 %vm403_vm1, %v12793_v55 }
 0x2ed   : > { %10333 = vmatmul.msk.f32.gmra.mxu0 %vm403_vm1, %v10203_v59 }
 0x2ee   : > { %v2644_v26 = vpop.f32.mrf.mxu2 }
 0x2ef   : > { %v2942_v33 = vadd.f32 %v2644_v26, %v1727_v37  ;;  %v3691_v28 = vpop.f32.mrf.mxu3  ;;  %v1729_v22 = vpop.f32.mrf.mxu1  ;;  %v2042_v26 = vld [vmem:[%s11509_s24 + $0x262] sm:$0xff] }
 0x2f0   : > { %v1730_v21 = vadd.f32 %v1729_v22, %v15649_v46  ;;  %v15651_v22 = vld [vmem:[#allocation38_spill] sm:$0xff] }
 0x2f1   : > { %v3989_v51 = vadd.f32 %v3691_v28, %v2942_v33  ;;  %v12821_v33 = vld [vmem:[%s11509_s24 + $0x288] sm:$0xff] }
 0x2f2   : > { %v4740_v3 = vpop.f32.mrf.mxu0  ;;  %9688 = vmatmul.msk.f32.gmra.mxu1 %vm403_vm1, %v12751_v9  ;;  %v10205_v28 = vld [vmem:[%s11509_s24 + $0x289] sm:$0xff] }
 0x2f3   : > { %v12810_v27 = vadd.f32 %v4737_v5, %v3989_v51  ;;  %9818 = vmatmul.msk.f32.gmra.mxu2 %vm403_vm1, %v2041_v13 }
 0x2f4   : > { %10076 = vmatmul.msk.f32.gmra.mxu3 %vm403_vm1, %v12807_v62 }
 0x2f5   : > { %10334 = vmatmul.msk.f32.gmra.mxu0 %vm403_vm1, %v10204_v54 }
 0x2f6   : > { %v2647_v30 = vpop.f32.mrf.mxu2 }
 0x2f7   : > { %v2943_v59 = vadd.f32 %v2647_v30, %v1730_v21  ;;  %v3694_v20 = vpop.f32.mrf.mxu3  ;;  %v1732_v37 = vpop.f32.mrf.mxu1 }
 0x2f8   : > { %v1733_v51 = vadd.f32 %v1732_v37, %v15651_v22  ;;  %v15653_v37 = vld [vmem:[#allocation41_spill] sm:$0xff] }
 0x2f9   : > { %v3990_v5 = vadd.f32 %v3694_v20, %v2943_v59  ;;  %v2043_v59 = vld [vmem:[%s11509_s24 + $0x26a] sm:$0xff] }
 0x2fa   : > { %v4743_v9 = vpop.f32.mrf.mxu0  ;;  %9689 = vmatmul.msk.f32.gmra.mxu1 %vm403_vm1, %v12765_v25  ;;  %v12835_v20 = vld [vmem:[%s11509_s24 + $0x290] sm:$0xff] }
 0x2fb   : > { %v12824_v13 = vadd.f32 %v4740_v3, %v3990_v5  ;;  %9819 = vmatmul.msk.f32.gmra.mxu2 %vm403_vm1, %v2042_v26  ;;  %v10206_v26 = vld [vmem:[%s11509_s24 + $0x291] sm:$0xff] }
 0x2fc   : > { %10077 = vmatmul.msk.f32.gmra.mxu3 %vm403_vm1, %v12821_v33 }
 0x2fd   : > { %15650 = vst [vmem:[#allocation8_spill] sm:$0xff] %v12824_v13  ;;  %10335 = vmatmul.msk.f32.gmra.mxu0 %vm403_vm1, %v10205_v28 }
 0x2fe   : > { %v2650_v54 = vpop.f32.mrf.mxu2 }
 0x2ff   : > { %v2944_v46 = vadd.f32 %v2650_v54, %v1733_v51  ;;  %v3697_v21 = vpop.f32.mrf.mxu3  ;;  %v1735_v30 = vpop.f32.mrf.mxu1 }
 0x300   : > { %v1736_v28 = vadd.f32 %v1735_v30, %v15653_v37  ;;  %v15655_v30 = vld [vmem:[#allocation44_spill] sm:$0xff] }
 0x301   : > { %v3991_v3 = vadd.f32 %v3697_v21, %v2944_v46  ;;  %v2044_v21 = vld [vmem:[%s11509_s24 + $0x272] sm:$0xff] }
 0x302   : > { %v4746_v25 = vpop.f32.mrf.mxu0  ;;  %9690 = vmatmul.msk.f32.gmra.mxu1 %vm403_vm1, %v12779_v44 }
 0x303   : > { %v12838_v5 = vadd.f32 %v4743_v9, %v3991_v3  ;;  %9820 = vmatmul.msk.f32.gmra.mxu2 %vm403_vm1, %v2043_v59  ;;  %v12849_v3 = vld [vmem:[%s11509_s24 + $0x298] sm:$0xff] }
 0x304   : > { %10078 = vmatmul.msk.f32.gmra.mxu3 %vm403_vm1, %v12835_v20  ;;  %v10207_v59 = vld [vmem:[%s11509_s24 + $0x299] sm:$0xff] }
 0x305   : > { %15652 = vst [vmem:[#allocation11_spill] sm:$0xff] %v12838_v5  ;;  %10336 = vmatmul.msk.f32.gmra.mxu0 %vm403_vm1, %v10206_v26 }
 0x306   : > { %v2653_v22 = vpop.f32.mrf.mxu2 }
 0x307   : > { %v2945_v51 = vadd.f32 %v2653_v22, %v1736_v28  ;;  %v3700_v54 = vpop.f32.mrf.mxu3  ;;  %v1738_v46 = vpop.f32.mrf.mxu1 }
 0x308   : > { %v1739_v26 = vadd.f32 %v1738_v46, %v15655_v30  ;;  %v15657_v46 = vld [vmem:[#allocation47_spill] sm:$0xff] }
 0x309   : > { %v3992_v9 = vadd.f32 %v3700_v54, %v2945_v51  ;;  %v2045_v54 = vld [vmem:[%s11509_s24 + $0x282] sm:$0xff] }
 0x30a   : > { %v4749_v44 = vpop.f32.mrf.mxu0  ;;  %9691 = vmatmul.msk.f32.gmra.mxu1 %vm403_vm1, %v12793_v55 }
 0x30b   : > { %v12852_v5 = vadd.f32 %v4746_v25, %v3992_v9  ;;  %9821 = vmatmul.msk.f32.gmra.mxu2 %vm403_vm1, %v2044_v21  ;;  %v12863_v9 = vld [vmem:[%s11509_s24 + $0x2a8] sm:$0xff] }
 0x30c   : > { %10079 = vmatmul.msk.f32.gmra.mxu3 %vm403_vm1, %v12849_v3  ;;  %v10208_v21 = vld [vmem:[%s11509_s24 + $0x2a9] sm:$0xff] }
 0x30d   : > { %15654 = vst [vmem:[#allocation14_spill] sm:$0xff] %v12852_v5  ;;  %10337 = vmatmul.msk.f32.gmra.mxu0 %vm403_vm1, %v10207_v59 }
 0x30e   : > { %v2656_v37 = vpop.f32.mrf.mxu2 }
 0x30f   : > { %v2946_v28 = vadd.f32 %v2656_v37, %v1739_v26  ;;  %v3703_v22 = vpop.f32.mrf.mxu3  ;;  %v1741_v51 = vpop.f32.mrf.mxu1 }
 0x310   : > { %v1742_v59 = vadd.f32 %v1741_v51, %v15657_v46  ;;  %v15659_v51 = vld [vmem:[#allocation50_spill] sm:$0xff] }
 0x311   : > { %v3993_v25 = vadd.f32 %v3703_v22, %v2946_v28  ;;  %v2046_v22 = vld [vmem:[%s11509_s24 + $0x28a] sm:$0xff] }
 0x312   : > { %v4752_v55 = vpop.f32.mrf.mxu0  ;;  %9692 = vmatmul.msk.f32.gmra.mxu1 %vm403_vm1, %v12807_v62 }
 0x313   : > { %v12866_v5 = vadd.f32 %v4749_v44, %v3993_v25  ;;  %9822 = vmatmul.msk.f32.gmra.mxu2 %vm403_vm1, %v2045_v54  ;;  %v12877_v25 = vld [vmem:[%s11509_s24 + $0x2b0] sm:$0xff] }
 0x314   : > { %10080 = vmatmul.msk.f32.gmra.mxu3 %vm403_vm1, %v12863_v9  ;;  %v10209_v54 = vld [vmem:[%s11509_s24 + $0x2b1] sm:$0xff] }
 0x315   : > { %15656 = vst [vmem:[#allocation17_spill] sm:$0xff] %v12866_v5  ;;  %10338 = vmatmul.msk.f32.gmra.mxu0 %vm403_vm1, %v10208_v21 }
 0x316   : > { %v2659_v30 = vpop.f32.mrf.mxu2 }
 0x317   : > { %v2947_v26 = vadd.f32 %v2659_v30, %v1742_v59  ;;  %v3706_v37 = vpop.f32.mrf.mxu3  ;;  %v1744_v28 = vpop.f32.mrf.mxu1 }
 0x318   : > { %v1745_v21 = vadd.f32 %v1744_v28, %v15659_v51  ;;  %v15661_v28 = vld [vmem:[#allocation53_spill] sm:$0xff] }
 0x319   : > { %v3994_v44 = vadd.f32 %v3706_v37, %v2947_v26  ;;  %v2047_v37 = vld [vmem:[%s11509_s24 + $0x292] sm:$0xff] }
 0x31a   : > { %v4755_v62 = vpop.f32.mrf.mxu0  ;;  %9693 = vmatmul.msk.f32.gmra.mxu1 %vm403_vm1, %v12821_v33 }
 0x31b   : > { %v12880_v5 = vadd.f32 %v4752_v55, %v3994_v44  ;;  %9823 = vmatmul.msk.f32.gmra.mxu2 %vm403_vm1, %v2046_v22  ;;  %v12891_v44 = vld [vmem:[%s11509_s24 + $0x2b8] sm:$0xff] }
 0x31c   : > { %10081 = vmatmul.msk.f32.gmra.mxu3 %vm403_vm1, %v12877_v25  ;;  %v10210_v22 = vld [vmem:[%s11509_s24 + $0x2b9] sm:$0xff] }
 0x31d   : > { %15658 = vst [vmem:[#allocation20_spill] sm:$0xff] %v12880_v5  ;;  %10339 = vmatmul.msk.f32.gmra.mxu0 %vm403_vm1, %v10209_v54 }
 0x31e   : > { %v2662_v46 = vpop.f32.mrf.mxu2 }
 0x31f   : > { %v2948_v59 = vadd.f32 %v2662_v46, %v1745_v21  ;;  %v3709_v30 = vpop.f32.mrf.mxu3  ;;  %v1747_v26 = vpop.f32.mrf.mxu1 }
 0x320   : > { %v1748_v54 = vadd.f32 %v1747_v26, %v15661_v28  ;;  %v15663_v26 = vld [vmem:[#allocation56_spill] sm:$0xff] }
 0x321   : > { %v3995_v55 = vadd.f32 %v3709_v30, %v2948_v59  ;;  %v2048_v30 = vld [vmem:[%s11509_s24 + $0x29a] sm:$0xff] }
 0x322   : > { %v4758_v33 = vpop.f32.mrf.mxu0  ;;  %9694 = vmatmul.msk.f32.gmra.mxu1 %vm403_vm1, %v12835_v20 }
 0x323   : > { %v12894_v5 = vadd.f32 %v4755_v62, %v3995_v55  ;;  %9824 = vmatmul.msk.f32.gmra.mxu2 %vm403_vm1, %v2047_v37  ;;  %v12905_v55 = vld [vmem:[%s11509_s24 + $0x2c0] sm:$0xff] }
 0x324   : > { %10082 = vmatmul.msk.f32.gmra.mxu3 %vm403_vm1, %v12891_v44  ;;  %v10211_v37 = vld [vmem:[%s11509_s24 + $0x2c1] sm:$0xff] }
 0x325   : > { %15660 = vst [vmem:[#allocation23_spill] sm:$0xff] %v12894_v5  ;;  %10340 = vmatmul.msk.f32.gmra.mxu0 %vm403_vm1, %v10210_v22 }
 0x326   : > { %v2665_v51 = vpop.f32.mrf.mxu2 }
 0x327   : > { %v2949_v21 = vadd.f32 %v2665_v51, %v1748_v54  ;;  %v3712_v46 = vpop.f32.mrf.mxu3  ;;  %v1750_v59 = vpop.f32.mrf.mxu1 }
 0x328   : > { %v1751_v22 = vadd.f32 %v1750_v59, %v15663_v26  ;;  %v15665_v59 = vld [vmem:[#allocation59_spill] sm:$0xff] }
 0x329   : > { %v3996_v62 = vadd.f32 %v3712_v46, %v2949_v21  ;;  %v2049_v46 = vld [vmem:[%s11509_s24 + $0x2aa] sm:$0xff] }
 0x32a   : > { %v4761_v20 = vpop.f32.mrf.mxu0  ;;  %9695 = vmatmul.msk.f32.gmra.mxu1 %vm403_vm1, %v12849_v3 }
 0x32b   : > { %v12908_v5 = vadd.f32 %v4758_v33, %v3996_v62  ;;  %9825 = vmatmul.msk.f32.gmra.mxu2 %vm403_vm1, %v2048_v30  ;;  %v12919_v62 = vld [vmem:[%s11509_s24 + $0x2d0] sm:$0xff] }
 0x32c   : > { %10083 = vmatmul.msk.f32.gmra.mxu3 %vm403_vm1, %v12905_v55  ;;  %v10212_v30 = vld [vmem:[%s11509_s24 + $0x2d1] sm:$0xff] }
 0x32d   : > { %15662 = vst [vmem:[#allocation26_spill] sm:$0xff] %v12908_v5  ;;  %10341 = vmatmul.msk.f32.gmra.mxu0 %vm403_vm1, %v10211_v37 }
 0x32e   : > { %v2668_v28 = vpop.f32.mrf.mxu2 }
 0x32f   : > { %v2950_v54 = vadd.f32 %v2668_v28, %v1751_v22  ;;  %v3715_v51 = vpop.f32.mrf.mxu3  ;;  %v1753_v21 = vpop.f32.mrf.mxu1 }
 0x330   : > { %v1754_v37 = vadd.f32 %v1753_v21, %v15665_v59  ;;  %v15667_v21 = vld [vmem:[#allocation62_spill] sm:$0xff] }
 0x331   : > { %v3997_v33 = vadd.f32 %v3715_v51, %v2950_v54  ;;  %v2050_v51 = vld [vmem:[%s11509_s24 + $0x2b2] sm:$0xff] }
 0x332   : > { %v4764_v3 = vpop.f32.mrf.mxu0  ;;  %9696 = vmatmul.msk.f32.gmra.mxu1 %vm403_vm1, %v12863_v9 }
 0x333   : > { %v12922_v5 = vadd.f32 %v4761_v20, %v3997_v33  ;;  %9826 = vmatmul.msk.f32.gmra.mxu2 %vm403_vm1, %v2049_v46  ;;  %v12933_v33 = vld [vmem:[%s11509_s24 + $0x2d8] sm:$0xff] }
 0x334   : > { %10084 = vmatmul.msk.f32.gmra.mxu3 %vm403_vm1, %v12919_v62  ;;  %v10213_v46 = vld [vmem:[%s11509_s24 + $0x2d9] sm:$0xff] }
 0x335   : > { %15664 = vst [vmem:[#allocation29_spill] sm:$0xff] %v12922_v5  ;;  %10342 = vmatmul.msk.f32.gmra.mxu0 %vm403_vm1, %v10212_v30 }
 0x336   : > { %v2671_v26 = vpop.f32.mrf.mxu2 }
 0x337   : > { %v2951_v22 = vadd.f32 %v2671_v26, %v1754_v37  ;;  %v3718_v28 = vpop.f32.mrf.mxu3  ;;  %v1756_v54 = vpop.f32.mrf.mxu1 }
 0x338   : > { %v1757_v30 = vadd.f32 %v1756_v54, %v15667_v21  ;;  %v15669_v54 = vld [vmem:[#allocation65_spill] sm:$0xff] }
 0x339   : > { %v3998_v20 = vadd.f32 %v3718_v28, %v2951_v22  ;;  %v2051_v28 = vld [vmem:[%s11509_s24 + $0x2ba] sm:$0xff] }
 0x33a   : > { %v4767_v9 = vpop.f32.mrf.mxu0  ;;  %9697 = vmatmul.msk.f32.gmra.mxu1 %vm403_vm1, %v12877_v25 }
 0x33b   : > { %v12936_v5 = vadd.f32 %v4764_v3, %v3998_v20  ;;  %9827 = vmatmul.msk.f32.gmra.mxu2 %vm403_vm1, %v2050_v51  ;;  %v12947_v20 = vld [vmem:[%s11509_s24 + $0x2e0] sm:$0xff] }
 0x33c   : > { %10085 = vmatmul.msk.f32.gmra.mxu3 %vm403_vm1, %v12933_v33  ;;  %v10214_v51 = vld [vmem:[%s11509_s24 + $0x2e1] sm:$0xff] }
 0x33d   : > { %15666 = vst [vmem:[#allocation32_spill] sm:$0xff] %v12936_v5  ;;  %10343 = vmatmul.msk.f32.gmra.mxu0 %vm403_vm1, %v10213_v46 }
 0x33e   : > { %v2674_v59 = vpop.f32.mrf.mxu2 }
 0x33f   : > { %v2952_v37 = vadd.f32 %v2674_v59, %v1757_v30  ;;  %v3721_v26 = vpop.f32.mrf.mxu3  ;;  %v1759_v22 = vpop.f32.mrf.mxu1 }
 0x340   : > { %v1760_v46 = vadd.f32 %v1759_v22, %v15669_v54  ;;  %v15671_v22 = vld [vmem:[#allocation68_spill] sm:$0xff] }
 0x341   : > { %v3999_v3 = vadd.f32 %v3721_v26, %v2952_v37  ;;  %v2052_v26 = vld [vmem:[%s11509_s24 + $0x2c2] sm:$0xff] }
 0x342   : > { %v4770_v25 = vpop.f32.mrf.mxu0  ;;  %9698 = vmatmul.msk.f32.gmra.mxu1 %vm403_vm1, %v12891_v44 }
 0x343   : > { %v12950_v5 = vadd.f32 %v4767_v9, %v3999_v3  ;;  %9828 = vmatmul.msk.f32.gmra.mxu2 %vm403_vm1, %v2051_v28  ;;  %v12961_v3 = vld [vmem:[%s11509_s24 + $0x2e8] sm:$0xff] }
 0x344   : > { %10086 = vmatmul.msk.f32.gmra.mxu3 %vm403_vm1, %v12947_v20  ;;  %v10215_v28 = vld [vmem:[%s11509_s24 + $0x2e9] sm:$0xff] }
 0x345   : > { %15668 = vst [vmem:[#allocation35_spill] sm:$0xff] %v12950_v5  ;;  %10344 = vmatmul.msk.f32.gmra.mxu0 %vm403_vm1, %v10214_v51 }
 0x346   : > { %v2677_v21 = vpop.f32.mrf.mxu2 }
 0x347   : > { %v2953_v30 = vadd.f32 %v2677_v21, %v1760_v46  ;;  %v3724_v59 = vpop.f32.mrf.mxu3  ;;  %v1762_v37 = vpop.f32.mrf.mxu1 }
 0x348   : > { %v1763_v51 = vadd.f32 %v1762_v37, %v15671_v22  ;;  %v15673_v37 = vld [vmem:[#allocation71_spill] sm:$0xff] }
 0x349   : > { %v4000_v9 = vadd.f32 %v3724_v59, %v2953_v30  ;;  %v2053_v59 = vld [vmem:[%s11509_s24 + $0x2d2] sm:$0xff] }
 0x34a   : > { %v4773_v44 = vpop.f32.mrf.mxu0  ;;  %9699 = vmatmul.msk.f32.gmra.mxu1 %vm403_vm1, %v12905_v55 }
 0x34b   : > { %v12964_v5 = vadd.f32 %v4770_v25, %v4000_v9  ;;  %9829 = vmatmul.msk.f32.gmra.mxu2 %vm403_vm1, %v2052_v26  ;;  %v12975_v9 = vld [vmem:[%s11509_s24 + $0x2f8] sm:$0xff] }
 0x34c   : > { %10087 = vmatmul.msk.f32.gmra.mxu3 %vm403_vm1, %v12961_v3  ;;  %v10216_v26 = vld [vmem:[%s11509_s24 + $0x2f9] sm:$0xff] }
 0x34d   : > { %15670 = vst [vmem:[#allocation38_spill] sm:$0xff] %v12964_v5  ;;  %10345 = vmatmul.msk.f32.gmra.mxu0 %vm403_vm1, %v10215_v28 }
 0x34e   : > { %v2680_v54 = vpop.f32.mrf.mxu2 }
 0x34f   : > { %v2954_v46 = vadd.f32 %v2680_v54, %v1763_v51  ;;  %v3727_v21 = vpop.f32.mrf.mxu3  ;;  %v1765_v30 = vpop.f32.mrf.mxu1 }
 0x350   : > { %v1766_v28 = vadd.f32 %v1765_v30, %v15673_v37  ;;  %v15675_v30 = vld [vmem:[#allocation74_spill] sm:$0xff] }
 0x351   : > { %v4001_v25 = vadd.f32 %v3727_v21, %v2954_v46  ;;  %v2054_v21 = vld [vmem:[%s11509_s24 + $0x2da] sm:$0xff] }
 0x352   : > { %v4776_v55 = vpop.f32.mrf.mxu0  ;;  %9700 = vmatmul.msk.f32.gmra.mxu1 %vm403_vm1, %v12919_v62 }
 0x353   : > { %v12978_v5 = vadd.f32 %v4773_v44, %v4001_v25  ;;  %9830 = vmatmul.msk.f32.gmra.mxu2 %vm403_vm1, %v2053_v59  ;;  %v12989_v25 = vld [vmem:[%s11509_s24 + $0x300] sm:$0xff] }
 0x354   : > { %10088 = vmatmul.msk.f32.gmra.mxu3 %vm403_vm1, %v12975_v9  ;;  %v10217_v59 = vld [vmem:[%s11509_s24 + $0x301] sm:$0xff] }
 0x355   : > { %15672 = vst [vmem:[#allocation41_spill] sm:$0xff] %v12978_v5  ;;  %10346 = vmatmul.msk.f32.gmra.mxu0 %vm403_vm1, %v10216_v26 }
 0x356   : > { %v2683_v22 = vpop.f32.mrf.mxu2 }
 0x357   : > { %v2955_v51 = vadd.f32 %v2683_v22, %v1766_v28  ;;  %v3730_v54 = vpop.f32.mrf.mxu3  ;;  %v1768_v46 = vpop.f32.mrf.mxu1 }
 0x358   : > { %v1769_v26 = vadd.f32 %v1768_v46, %v15675_v30  ;;  %v15677_v46 = vld [vmem:[#allocation77_spill] sm:$0xff] }
 0x359   : > { %v4002_v44 = vadd.f32 %v3730_v54, %v2955_v51  ;;  %v2055_v54 = vld [vmem:[%s11509_s24 + $0x2e2] sm:$0xff] }
 0x35a   : > { %v4779_v62 = vpop.f32.mrf.mxu0  ;;  %9701 = vmatmul.msk.f32.gmra.mxu1 %vm403_vm1, %v12933_v33 }
 0x35b   : > { %v12992_v5 = vadd.f32 %v4776_v55, %v4002_v44  ;;  %9831 = vmatmul.msk.f32.gmra.mxu2 %vm403_vm1, %v2054_v21  ;;  %v13003_v44 = vld [vmem:[%s11509_s24 + $0x308] sm:$0xff] }
 0x35c   : > { %10089 = vmatmul.msk.f32.gmra.mxu3 %vm403_vm1, %v12989_v25  ;;  %v10218_v21 = vld [vmem:[%s11509_s24 + $0x309] sm:$0xff] }
 0x35d   : > { %15674 = vst [vmem:[#allocation44_spill] sm:$0xff] %v12992_v5  ;;  %10347 = vmatmul.msk.f32.gmra.mxu0 %vm403_vm1, %v10217_v59 }
 0x35e   : > { %v2686_v37 = vpop.f32.mrf.mxu2 }
 0x35f   : > { %v2956_v28 = vadd.f32 %v2686_v37, %v1769_v26  ;;  %v3733_v22 = vpop.f32.mrf.mxu3  ;;  %v1771_v51 = vpop.f32.mrf.mxu1 }
 0x360   : > { %v1772_v59 = vadd.f32 %v1771_v51, %v15677_v46  ;;  %v15679_v51 = vld [vmem:[#allocation80_spill] sm:$0xff] }
 0x361   : > { %v4003_v55 = vadd.f32 %v3733_v22, %v2956_v28  ;;  %v2056_v22 = vld [vmem:[%s11509_s24 + $0x2ea] sm:$0xff] }
 0x362   : > { %v4782_v33 = vpop.f32.mrf.mxu0  ;;  %9702 = vmatmul.msk.f32.gmra.mxu1 %vm403_vm1, %v12947_v20 }
 0x363   : > { %v13006_v5 = vadd.f32 %v4779_v62, %v4003_v55  ;;  %9832 = vmatmul.msk.f32.gmra.mxu2 %vm403_vm1, %v2055_v54  ;;  %v13017_v55 = vld [vmem:[%s11509_s24 + $0x310] sm:$0xff] }
 0x364   : > { %10090 = vmatmul.msk.f32.gmra.mxu3 %vm403_vm1, %v13003_v44  ;;  %v10219_v54 = vld [vmem:[%s11509_s24 + $0x311] sm:$0xff] }
 0x365   : > { %15676 = vst [vmem:[#allocation47_spill] sm:$0xff] %v13006_v5  ;;  %10348 = vmatmul.msk.f32.gmra.mxu0 %vm403_vm1, %v10218_v21 }
 0x366   : > { %v2689_v30 = vpop.f32.mrf.mxu2 }
 0x367   : > { %v2957_v26 = vadd.f32 %v2689_v30, %v1772_v59  ;;  %v3736_v37 = vpop.f32.mrf.mxu3  ;;  %v1774_v28 = vpop.f32.mrf.mxu1 }
 0x368   : > { %v1775_v21 = vadd.f32 %v1774_v28, %v15679_v51  ;;  %v15681_v28 = vld [vmem:[#allocation83_spill] sm:$0xff] }
 0x369   : > { %v4004_v62 = vadd.f32 %v3736_v37, %v2957_v26  ;;  %v2057_v37 = vld [vmem:[%s11509_s24 + $0x2fa] sm:$0xff] }
 0x36a   : > { %v4785_v20 = vpop.f32.mrf.mxu0  ;;  %9703 = vmatmul.msk.f32.gmra.mxu1 %vm403_vm1, %v12961_v3 }
 0x36b   : > { %v13020_v5 = vadd.f32 %v4782_v33, %v4004_v62  ;;  %9833 = vmatmul.msk.f32.gmra.mxu2 %vm403_vm1, %v2056_v22  ;;  %v13031_v62 = vld [vmem:[%s11509_s24 + $0x320] sm:$0xff] }
 0x36c   : > { %10091 = vmatmul.msk.f32.gmra.mxu3 %vm403_vm1, %v13017_v55  ;;  %v10220_v22 = vld [vmem:[%s11509_s24 + $0x321] sm:$0xff] }
 0x36d   : > { %15678 = vst [vmem:[#allocation50_spill] sm:$0xff] %v13020_v5  ;;  %10349 = vmatmul.msk.f32.gmra.mxu0 %vm403_vm1, %v10219_v54 }
 0x36e   : > { %v2692_v46 = vpop.f32.mrf.mxu2 }
 0x36f   : > { %v2958_v59 = vadd.f32 %v2692_v46, %v1775_v21  ;;  %v3739_v30 = vpop.f32.mrf.mxu3  ;;  %v1777_v26 = vpop.f32.mrf.mxu1 }
 0x370   : > { %v1778_v54 = vadd.f32 %v1777_v26, %v15681_v28  ;;  %v15683_v26 = vld [vmem:[#allocation86_spill] sm:$0xff] }
 0x371   : > { %v4005_v33 = vadd.f32 %v3739_v30, %v2958_v59  ;;  %v2058_v30 = vld [vmem:[%s11509_s24 + $0x302] sm:$0xff] }
 0x372   : > { %v4788_v3 = vpop.f32.mrf.mxu0  ;;  %9704 = vmatmul.msk.f32.gmra.mxu1 %vm403_vm1, %v12975_v9 }
 0x373   : > { %v13034_v5 = vadd.f32 %v4785_v20, %v4005_v33  ;;  %9834 = vmatmul.msk.f32.gmra.mxu2 %vm403_vm1, %v2057_v37  ;;  %v13045_v33 = vld [vmem:[%s11509_s24 + $0x328] sm:$0xff] }
 0x374   : > { %10092 = vmatmul.msk.f32.gmra.mxu3 %vm403_vm1, %v13031_v62  ;;  %v10221_v37 = vld [vmem:[%s11509_s24 + $0x329] sm:$0xff] }
 0x375   : > { %15680 = vst [vmem:[#allocation53_spill] sm:$0xff] %v13034_v5  ;;  %10350 = vmatmul.msk.f32.gmra.mxu0 %vm403_vm1, %v10220_v22 }
 0x376   : > { %v2695_v51 = vpop.f32.mrf.mxu2 }
 0x377   : > { %v2959_v21 = vadd.f32 %v2695_v51, %v1778_v54  ;;  %v3742_v46 = vpop.f32.mrf.mxu3  ;;  %v1780_v59 = vpop.f32.mrf.mxu1 }
 0x378   : > { %v1781_v22 = vadd.f32 %v1780_v59, %v15683_v26  ;;  %v15685_v59 = vld [vmem:[#allocation89_spill] sm:$0xff] }
 0x379   : > { %v4006_v20 = vadd.f32 %v3742_v46, %v2959_v21  ;;  %v2059_v46 = vld [vmem:[%s11509_s24 + $0x30a] sm:$0xff] }
 0x37a   : > { %v4791_v9 = vpop.f32.mrf.mxu0  ;;  %9705 = vmatmul.msk.f32.gmra.mxu1 %vm403_vm1, %v12989_v25 }
 0x37b   : > { %v13048_v5 = vadd.f32 %v4788_v3, %v4006_v20  ;;  %9835 = vmatmul.msk.f32.gmra.mxu2 %vm403_vm1, %v2058_v30  ;;  %v13059_v20 = vld [vmem:[%s11509_s24 + $0x330] sm:$0xff] }
 0x37c   : > { %10093 = vmatmul.msk.f32.gmra.mxu3 %vm403_vm1, %v13045_v33  ;;  %v10222_v30 = vld [vmem:[%s11509_s24 + $0x331] sm:$0xff] }
 0x37d   : > { %15682 = vst [vmem:[#allocation56_spill] sm:$0xff] %v13048_v5  ;;  %10351 = vmatmul.msk.f32.gmra.mxu0 %vm403_vm1, %v10221_v37 }
 0x37e   : > { %v2698_v28 = vpop.f32.mrf.mxu2 }
 0x37f   : > { %v2960_v54 = vadd.f32 %v2698_v28, %v1781_v22  ;;  %v3745_v51 = vpop.f32.mrf.mxu3  ;;  %v1783_v21 = vpop.f32.mrf.mxu1 }
 0x380   : > { %v1784_v37 = vadd.f32 %v1783_v21, %v15685_v59  ;;  %v15687_v21 = vld [vmem:[#allocation92_spill] sm:$0xff] }
 0x381   : > { %v4007_v3 = vadd.f32 %v3745_v51, %v2960_v54  ;;  %v2060_v51 = vld [vmem:[%s11509_s24 + $0x312] sm:$0xff] }
 0x382   : > { %v4794_v25 = vpop.f32.mrf.mxu0  ;;  %9706 = vmatmul.msk.f32.gmra.mxu1 %vm403_vm1, %v13003_v44 }
 0x383   : > { %v13062_v5 = vadd.f32 %v4791_v9, %v4007_v3  ;;  %9836 = vmatmul.msk.f32.gmra.mxu2 %vm403_vm1, %v2059_v46  ;;  %v13073_v3 = vld [vmem:[%s11509_s24 + $0x338] sm:$0xff] }
 0x384   : > { %10094 = vmatmul.msk.f32.gmra.mxu3 %vm403_vm1, %v13059_v20  ;;  %v10223_v46 = vld [vmem:[%s11509_s24 + $0x339] sm:$0xff] }
 0x385   : > { %15684 = vst [vmem:[#allocation59_spill] sm:$0xff] %v13062_v5  ;;  %10352 = vmatmul.msk.f32.gmra.mxu0 %vm403_vm1, %v10222_v30 }
 0x386   : > { %v2701_v26 = vpop.f32.mrf.mxu2 }
 0x387   : > { %v2961_v22 = vadd.f32 %v2701_v26, %v1784_v37  ;;  %v3748_v28 = vpop.f32.mrf.mxu3  ;;  %v1786_v54 = vpop.f32.mrf.mxu1 }
 0x388   : > { %v1787_v30 = vadd.f32 %v1786_v54, %v15687_v21  ;;  %v15689_v54 = vld [vmem:[#allocation2_spill] sm:$0xff] }
 0x389   : > { %v4008_v9 = vadd.f32 %v3748_v28, %v2961_v22  ;;  %v2061_v28 = vld [vmem:[%s11509_s24 + $0x322] sm:$0xff] }
 0x38a   : > { %v4797_v44 = vpop.f32.mrf.mxu0  ;;  %9707 = vmatmul.msk.f32.gmra.mxu1 %vm403_vm1, %v13017_v55 }
 0x38b   : > { %v13076_v5 = vadd.f32 %v4794_v25, %v4008_v9  ;;  %9837 = vmatmul.msk.f32.gmra.mxu2 %vm403_vm1, %v2060_v51  ;;  %v13087_v9 = vld [vmem:[%s11509_s24 + $0x348] sm:$0xff] }
 0x38c   : > { %10095 = vmatmul.msk.f32.gmra.mxu3 %vm403_vm1, %v13073_v3  ;;  %v10224_v51 = vld [vmem:[%s11509_s24 + $0x349] sm:$0xff] }
 0x38d   : > { %15686 = vst [vmem:[#allocation62_spill] sm:$0xff] %v13076_v5  ;;  %10353 = vmatmul.msk.f32.gmra.mxu0 %vm403_vm1, %v10223_v46 }
 0x38e   : > { %v2704_v59 = vpop.f32.mrf.mxu2 }
 0x38f   : > { %v2962_v37 = vadd.f32 %v2704_v59, %v1787_v30  ;;  %v3751_v26 = vpop.f32.mrf.mxu3  ;;  %v1789_v22 = vpop.f32.mrf.mxu1 }
 0x390   : > { %v1790_v46 = vadd.f32 %v1789_v22, %v15689_v54  ;;  %v15691_v22 = vld [vmem:[#allocation4_spill] sm:$0xff] }
 0x391   : > { %v4009_v25 = vadd.f32 %v3751_v26, %v2962_v37  ;;  %v2062_v26 = vld [vmem:[%s11509_s24 + $0x32a] sm:$0xff] }
 0x392   : > { %v4800_v55 = vpop.f32.mrf.mxu0  ;;  %9708 = vmatmul.msk.f32.gmra.mxu1 %vm403_vm1, %v13031_v62 }
 0x393   : > { %v13090_v5 = vadd.f32 %v4797_v44, %v4009_v25  ;;  %9838 = vmatmul.msk.f32.gmra.mxu2 %vm403_vm1, %v2061_v28  ;;  %v13101_v25 = vld [vmem:[%s11509_s24 + $0x350] sm:$0xff] }
 0x394   : > { %10096 = vmatmul.msk.f32.gmra.mxu3 %vm403_vm1, %v13087_v9  ;;  %v10225_v28 = vld [vmem:[%s11509_s24 + $0x351] sm:$0xff] }
 0x395   : > { %15688 = vst [vmem:[#allocation65_spill] sm:$0xff] %v13090_v5  ;;  %10354 = vmatmul.msk.f32.gmra.mxu0 %vm403_vm1, %v10224_v51 }
 0x396   : > { %v2707_v21 = vpop.f32.mrf.mxu2 }
 0x397   : > { %v2963_v30 = vadd.f32 %v2707_v21, %v1790_v46  ;;  %v3754_v59 = vpop.f32.mrf.mxu3  ;;  %v1792_v37 = vpop.f32.mrf.mxu1 }
 0x398   : > { %v1793_v51 = vadd.f32 %v1792_v37, %v15691_v22  ;;  %v15693_v37 = vld [vmem:[#allocation6_spill] sm:$0xff] }
 0x399   : > { %v4010_v44 = vadd.f32 %v3754_v59, %v2963_v30  ;;  %v2063_v59 = vld [vmem:[%s11509_s24 + $0x332] sm:$0xff] }
 0x39a   : > { %v4803_v62 = vpop.f32.mrf.mxu0  ;;  %9709 = vmatmul.msk.f32.gmra.mxu1 %vm403_vm1, %v13045_v33 }
 0x39b   : > { %v13104_v5 = vadd.f32 %v4800_v55, %v4010_v44  ;;  %9839 = vmatmul.msk.f32.gmra.mxu2 %vm403_vm1, %v2062_v26  ;;  %v13115_v44 = vld [vmem:[%s11509_s24 + $0x358] sm:$0xff] }
 0x39c   : > { %10097 = vmatmul.msk.f32.gmra.mxu3 %vm403_vm1, %v13101_v25  ;;  %v10226_v26 = vld [vmem:[%s11509_s24 + $0x359] sm:$0xff] }
 0x39d   : > { %15690 = vst [vmem:[#allocation68_spill] sm:$0xff] %v13104_v5  ;;  %10355 = vmatmul.msk.f32.gmra.mxu0 %vm403_vm1, %v10225_v28 }
 0x39e   : > { %v2710_v54 = vpop.f32.mrf.mxu2 }
 0x39f   : > { %v2964_v46 = vadd.f32 %v2710_v54, %v1793_v51  ;;  %v3757_v21 = vpop.f32.mrf.mxu3  ;;  %v1795_v30 = vpop.f32.mrf.mxu1 }
 0x3a0   : > { %v1796_v28 = vadd.f32 %v1795_v30, %v15693_v37  ;;  %v15695_v30 = vld [vmem:[#allocation9_spill] sm:$0xff] }
 0x3a1   : > { %v4011_v55 = vadd.f32 %v3757_v21, %v2964_v46  ;;  %v2064_v21 = vld [vmem:[%s11509_s24 + $0x33a] sm:$0xff] }
 0x3a2   : > { %v4806_v33 = vpop.f32.mrf.mxu0  ;;  %9710 = vmatmul.msk.f32.gmra.mxu1 %vm403_vm1, %v13059_v20 }
 0x3a3   : > { %v13118_v5 = vadd.f32 %v4803_v62, %v4011_v55  ;;  %9840 = vmatmul.msk.f32.gmra.mxu2 %vm403_vm1, %v2063_v59  ;;  %v13129_v55 = vld [vmem:[%s11509_s24 + $0x360] sm:$0xff] }
 0x3a4   : > { %10098 = vmatmul.msk.f32.gmra.mxu3 %vm403_vm1, %v13115_v44  ;;  %v10227_v59 = vld [vmem:[%s11509_s24 + $0x361] sm:$0xff] }
 0x3a5   : > { %15692 = vst [vmem:[#allocation71_spill] sm:$0xff] %v13118_v5  ;;  %10356 = vmatmul.msk.f32.gmra.mxu0 %vm403_vm1, %v10226_v26 }
 0x3a6   : > { %v2713_v22 = vpop.f32.mrf.mxu2 }
 0x3a7   : > { %v2965_v51 = vadd.f32 %v2713_v22, %v1796_v28  ;;  %v3760_v54 = vpop.f32.mrf.mxu3  ;;  %v1798_v46 = vpop.f32.mrf.mxu1 }
 0x3a8   : > { %v1799_v26 = vadd.f32 %v1798_v46, %v15695_v30  ;;  %v15697_v46 = vld [vmem:[#allocation12_spill] sm:$0xff] }
 0x3a9   : > { %v4012_v62 = vadd.f32 %v3760_v54, %v2965_v51  ;;  %v2065_v54 = vld [vmem:[%s11509_s24 + $0x34a] sm:$0xff] }
 0x3aa   : > { %v4809_v20 = vpop.f32.mrf.mxu0  ;;  %9711 = vmatmul.msk.f32.gmra.mxu1 %vm403_vm1, %v13073_v3 }
 0x3ab   : > { %v13132_v5 = vadd.f32 %v4806_v33, %v4012_v62  ;;  %9841 = vmatmul.msk.f32.gmra.mxu2 %vm403_vm1, %v2064_v21  ;;  %v13143_v62 = vld [vmem:[%s11509_s24 + $0x370] sm:$0xff] }
 0x3ac   : > { %10099 = vmatmul.msk.f32.gmra.mxu3 %vm403_vm1, %v13129_v55  ;;  %v10228_v21 = vld [vmem:[%s11509_s24 + $0x371] sm:$0xff] }
 0x3ad   : > { %15694 = vst [vmem:[#allocation74_spill] sm:$0xff] %v13132_v5  ;;  %10357 = vmatmul.msk.f32.gmra.mxu0 %vm403_vm1, %v10227_v59 }
 0x3ae   : > { %v2716_v37 = vpop.f32.mrf.mxu2 }
 0x3af   : > { %v2966_v28 = vadd.f32 %v2716_v37, %v1799_v26  ;;  %v3763_v22 = vpop.f32.mrf.mxu3  ;;  %v1801_v51 = vpop.f32.mrf.mxu1 }
 0x3b0   : > { %v1802_v59 = vadd.f32 %v1801_v51, %v15697_v46  ;;  %v15699_v51 = vld [vmem:[#allocation15_spill] sm:$0xff] }
 0x3b1   : > { %v4013_v33 = vadd.f32 %v3763_v22, %v2966_v28  ;;  %v2066_v22 = vld [vmem:[%s11509_s24 + $0x352] sm:$0xff] }
 0x3b2   : > { %v4812_v3 = vpop.f32.mrf.mxu0  ;;  %9712 = vmatmul.msk.f32.gmra.mxu1 %vm403_vm1, %v13087_v9 }
 0x3b3   : > { %v13146_v5 = vadd.f32 %v4809_v20, %v4013_v33  ;;  %9842 = vmatmul.msk.f32.gmra.mxu2 %vm403_vm1, %v2065_v54  ;;  %v13157_v33 = vld [vmem:[%s11509_s24 + $0x378] sm:$0xff] }
 0x3b4   : > { %10100 = vmatmul.msk.f32.gmra.mxu3 %vm403_vm1, %v13143_v62  ;;  %v10229_v54 = vld [vmem:[%s11509_s24 + $0x379] sm:$0xff] }
 0x3b5   : > { %15696 = vst [vmem:[#allocation77_spill] sm:$0xff] %v13146_v5  ;;  %10358 = vmatmul.msk.f32.gmra.mxu0 %vm403_vm1, %v10228_v21 }
 0x3b6   : > { %v2719_v30 = vpop.f32.mrf.mxu2 }
 0x3b7   : > { %v2967_v26 = vadd.f32 %v2719_v30, %v1802_v59  ;;  %v3766_v37 = vpop.f32.mrf.mxu3  ;;  %v1804_v28 = vpop.f32.mrf.mxu1 }
 0x3b8   : > { %v1805_v21 = vadd.f32 %v1804_v28, %v15699_v51  ;;  %v15701_v28 = vld [vmem:[#allocation18_spill] sm:$0xff] }
 0x3b9   : > { %v4014_v20 = vadd.f32 %v3766_v37, %v2967_v26  ;;  %v2067_v37 = vld [vmem:[%s11509_s24 + $0x35a] sm:$0xff] }
 0x3ba   : > { %v4815_v9 = vpop.f32.mrf.mxu0  ;;  %9713 = vmatmul.msk.f32.gmra.mxu1 %vm403_vm1, %v13101_v25 }
 0x3bb   : > { %v13160_v5 = vadd.f32 %v4812_v3, %v4014_v20  ;;  %9843 = vmatmul.msk.f32.gmra.mxu2 %vm403_vm1, %v2066_v22  ;;  %v13171_v20 = vld [vmem:[%s11509_s24 + $0x380] sm:$0xff] }
 0x3bc   : > { %10101 = vmatmul.msk.f32.gmra.mxu3 %vm403_vm1, %v13157_v33  ;;  %v10230_v22 = vld [vmem:[%s11509_s24 + $0x381] sm:$0xff] }
 0x3bd   : > { %15698 = vst [vmem:[#allocation80_spill] sm:$0xff] %v13160_v5  ;;  %10359 = vmatmul.msk.f32.gmra.mxu0 %vm403_vm1, %v10229_v54 }
 0x3be   : > { %v2722_v46 = vpop.f32.mrf.mxu2 }
 0x3bf   : > { %v2968_v59 = vadd.f32 %v2722_v46, %v1805_v21  ;;  %v3769_v30 = vpop.f32.mrf.mxu3  ;;  %v1807_v26 = vpop.f32.mrf.mxu1 }
 0x3c0   : > { %v1808_v54 = vadd.f32 %v1807_v26, %v15701_v28  ;;  %v15703_v26 = vld [vmem:[#allocation21_spill] sm:$0xff] }
 0x3c1   : > { %v4015_v3 = vadd.f32 %v3769_v30, %v2968_v59  ;;  %v2068_v30 = vld [vmem:[%s11509_s24 + $0x362] sm:$0xff] }
 0x3c2   : > { %v4818_v25 = vpop.f32.mrf.mxu0  ;;  %9714 = vmatmul.msk.f32.gmra.mxu1 %vm403_vm1, %v13115_v44 }
 0x3c3   : > { %v13174_v5 = vadd.f32 %v4815_v9, %v4015_v3  ;;  %9844 = vmatmul.msk.f32.gmra.mxu2 %vm403_vm1, %v2067_v37  ;;  %v13185_v3 = vld [vmem:[%s11509_s24 + $0x388] sm:$0xff] }
 0x3c4   : > { %10102 = vmatmul.msk.f32.gmra.mxu3 %vm403_vm1, %v13171_v20  ;;  %v10231_v37 = vld [vmem:[%s11509_s24 + $0x389] sm:$0xff] }
 0x3c5   : > { %15700 = vst [vmem:[#allocation83_spill] sm:$0xff] %v13174_v5  ;;  %10360 = vmatmul.msk.f32.gmra.mxu0 %vm403_vm1, %v10230_v22 }
 0x3c6   : > { %v2725_v51 = vpop.f32.mrf.mxu2 }
 0x3c7   : > { %v2969_v21 = vadd.f32 %v2725_v51, %v1808_v54  ;;  %v3772_v46 = vpop.f32.mrf.mxu3  ;;  %v1810_v59 = vpop.f32.mrf.mxu1 }
 0x3c8   : > { %v1811_v22 = vadd.f32 %v1810_v59, %v15703_v26  ;;  %v15705_v59 = vld [vmem:[#allocation24_spill] sm:$0xff] }
 0x3c9   : > { %v4016_v9 = vadd.f32 %v3772_v46, %v2969_v21  ;;  %v2069_v46 = vld [vmem:[%s11509_s24 + $0x372] sm:$0xff] }
 0x3ca   : > { %v4821_v44 = vpop.f32.mrf.mxu0  ;;  %9715 = vmatmul.msk.f32.gmra.mxu1 %vm403_vm1, %v13129_v55 }
 0x3cb   : > { %v13188_v5 = vadd.f32 %v4818_v25, %v4016_v9  ;;  %9845 = vmatmul.msk.f32.gmra.mxu2 %vm403_vm1, %v2068_v30  ;;  %v13199_v9 = vld [vmem:[%s11509_s24 + $0x398] sm:$0xff] }
 0x3cc   : > { %10103 = vmatmul.msk.f32.gmra.mxu3 %vm403_vm1, %v13185_v3  ;;  %v10232_v30 = vld [vmem:[%s11509_s24 + $0x399] sm:$0xff] }
 0x3cd   : > { %15702 = vst [vmem:[#allocation86_spill] sm:$0xff] %v13188_v5  ;;  %10361 = vmatmul.msk.f32.gmra.mxu0 %vm403_vm1, %v10231_v37 }
 0x3ce   : > { %v2728_v28 = vpop.f32.mrf.mxu2 }
 0x3cf   : > { %v2970_v54 = vadd.f32 %v2728_v28, %v1811_v22  ;;  %v3775_v51 = vpop.f32.mrf.mxu3  ;;  %v1813_v21 = vpop.f32.mrf.mxu1 }
 0x3d0   : > { %v1814_v37 = vadd.f32 %v1813_v21, %v15705_v59  ;;  %v15707_v21 = vld [vmem:[#allocation27_spill] sm:$0xff] }
 0x3d1   : > { %v4017_v25 = vadd.f32 %v3775_v51, %v2970_v54  ;;  %v2070_v51 = vld [vmem:[%s11509_s24 + $0x37a] sm:$0xff] }
 0x3d2   : > { %v4824_v55 = vpop.f32.mrf.mxu0  ;;  %9716 = vmatmul.msk.f32.gmra.mxu1 %vm403_vm1, %v13143_v62 }
 0x3d3   : > { %v13202_v5 = vadd.f32 %v4821_v44, %v4017_v25  ;;  %9846 = vmatmul.msk.f32.gmra.mxu2 %vm403_vm1, %v2069_v46  ;;  %v13213_v25 = vld [vmem:[%s11509_s24 + $0x3a0] sm:$0xff] }
 0x3d4   : > { %10104 = vmatmul.msk.f32.gmra.mxu3 %vm403_vm1, %v13199_v9  ;;  %v10233_v46 = vld [vmem:[%s11509_s24 + $0x3a1] sm:$0xff] }
 0x3d5   : > { %15704 = vst [vmem:[#allocation89_spill] sm:$0xff] %v13202_v5  ;;  %10362 = vmatmul.msk.f32.gmra.mxu0 %vm403_vm1, %v10232_v30 }
 0x3d6   : > { %v2731_v26 = vpop.f32.mrf.mxu2 }
 0x3d7   : > { %v2971_v22 = vadd.f32 %v2731_v26, %v1814_v37  ;;  %v3778_v28 = vpop.f32.mrf.mxu3  ;;  %v1816_v54 = vpop.f32.mrf.mxu1 }
 0x3d8   : > { %v1817_v30 = vadd.f32 %v1816_v54, %v15707_v21  ;;  %v15709_v54 = vld [vmem:[#allocation30_spill] sm:$0xff] }
 0x3d9   : > { %v4018_v44 = vadd.f32 %v3778_v28, %v2971_v22  ;;  %v2071_v28 = vld [vmem:[%s11509_s24 + $0x382] sm:$0xff] }
 0x3da   : > { %v4827_v62 = vpop.f32.mrf.mxu0  ;;  %9717 = vmatmul.msk.f32.gmra.mxu1 %vm403_vm1, %v13157_v33 }
 0x3db   : > { %v13216_v5 = vadd.f32 %v4824_v55, %v4018_v44  ;;  %9847 = vmatmul.msk.f32.gmra.mxu2 %vm403_vm1, %v2070_v51  ;;  %v13227_v44 = vld [vmem:[%s11509_s24 + $0x3a8] sm:$0xff] }
 0x3dc   : > { %10105 = vmatmul.msk.f32.gmra.mxu3 %vm403_vm1, %v13213_v25  ;;  %v10234_v51 = vld [vmem:[%s11509_s24 + $0x3a9] sm:$0xff] }
 0x3dd   : > { %15706 = vst [vmem:[#allocation92_spill] sm:$0xff] %v13216_v5  ;;  %10363 = vmatmul.msk.f32.gmra.mxu0 %vm403_vm1, %v10233_v46 }
 0x3de   : > { %v2734_v59 = vpop.f32.mrf.mxu2 }
 0x3df   : > { %v2972_v37 = vadd.f32 %v2734_v59, %v1817_v30  ;;  %v3781_v26 = vpop.f32.mrf.mxu3  ;;  %v1819_v22 = vpop.f32.mrf.mxu1 }
 0x3e0   : > { %v1820_v46 = vadd.f32 %v1819_v22, %v15709_v54  ;;  %v15711_v22 = vld [vmem:[#allocation33_spill] sm:$0xff] }
 0x3e1   : > { %v4019_v55 = vadd.f32 %v3781_v26, %v2972_v37  ;;  %v2072_v26 = vld [vmem:[%s11509_s24 + $0x38a] sm:$0xff] }
 0x3e2   : > { %v4830_v33 = vpop.f32.mrf.mxu0  ;;  %9718 = vmatmul.msk.f32.gmra.mxu1 %vm403_vm1, %v13171_v20 }
 0x3e3   : > { %v13230_v5 = vadd.f32 %v4827_v62, %v4019_v55  ;;  %9848 = vmatmul.msk.f32.gmra.mxu2 %vm403_vm1, %v2071_v28  ;;  %v13241_v55 = vld [vmem:[%s11509_s24 + $0x3b0] sm:$0xff] }
 0x3e4   : > { %10106 = vmatmul.msk.f32.gmra.mxu3 %vm403_vm1, %v13227_v44  ;;  %v10235_v28 = vld [vmem:[%s11509_s24 + $0x3b1] sm:$0xff] }
 0x3e5   : > { %15708 = vst [vmem:[#allocation2_spill] sm:$0xff] %v13230_v5  ;;  %10364 = vmatmul.msk.f32.gmra.mxu0 %vm403_vm1, %v10234_v51 }
 0x3e6   : > { %v2737_v21 = vpop.f32.mrf.mxu2 }
 0x3e7   : > { %v2973_v30 = vadd.f32 %v2737_v21, %v1820_v46  ;;  %v3784_v59 = vpop.f32.mrf.mxu3  ;;  %v1822_v37 = vpop.f32.mrf.mxu1 }
 0x3e8   : > { %v1823_v51 = vadd.f32 %v1822_v37, %v15711_v22  ;;  %v15713_v37 = vld [vmem:[#allocation36_spill] sm:$0xff] }
 0x3e9   : > { %v4020_v62 = vadd.f32 %v3784_v59, %v2973_v30  ;;  %v2073_v59 = vld [vmem:[%s11509_s24 + $0x39a] sm:$0xff] }
 0x3ea   : > { %v4833_v20 = vpop.f32.mrf.mxu0  ;;  %9719 = vmatmul.msk.f32.gmra.mxu1 %vm403_vm1, %v13185_v3 }
 0x3eb   : > { %v13244_v5 = vadd.f32 %v4830_v33, %v4020_v62  ;;  %9849 = vmatmul.msk.f32.gmra.mxu2 %vm403_vm1, %v2072_v26  ;;  %v13255_v62 = vld [vmem:[%s11509_s24 + $0x3c0] sm:$0xff] }
 0x3ec   : > { %10107 = vmatmul.msk.f32.gmra.mxu3 %vm403_vm1, %v13241_v55  ;;  %v10236_v26 = vld [vmem:[%s11509_s24 + $0x3c1] sm:$0xff] }
 0x3ed   : > { %15710 = vst [vmem:[#allocation4_spill] sm:$0xff] %v13244_v5  ;;  %10365 = vmatmul.msk.f32.gmra.mxu0 %vm403_vm1, %v10235_v28 }
 0x3ee   : > { %v2740_v54 = vpop.f32.mrf.mxu2 }
 0x3ef   : > { %v2974_v46 = vadd.f32 %v2740_v54, %v1823_v51  ;;  %v3787_v21 = vpop.f32.mrf.mxu3  ;;  %v1825_v30 = vpop.f32.mrf.mxu1 }
 0x3f0   : > { %v1826_v28 = vadd.f32 %v1825_v30, %v15713_v37  ;;  %v15715_v30 = vld [vmem:[#allocation39_spill] sm:$0xff] }
 0x3f1   : > { %v4021_v33 = vadd.f32 %v3787_v21, %v2974_v46  ;;  %v2074_v21 = vld [vmem:[%s11509_s24 + $0x3a2] sm:$0xff] }
 0x3f2   : > { %v4836_v3 = vpop.f32.mrf.mxu0  ;;  %9720 = vmatmul.msk.f32.gmra.mxu1 %vm403_vm1, %v13199_v9 }
 0x3f3   : > { %v13258_v5 = vadd.f32 %v4833_v20, %v4021_v33  ;;  %9850 = vmatmul.msk.f32.gmra.mxu2 %vm403_vm1, %v2073_v59  ;;  %v13269_v33 = vld [vmem:[%s11509_s24 + $0x3c8] sm:$0xff] }
 0x3f4   : > { %10108 = vmatmul.msk.f32.gmra.mxu3 %vm403_vm1, %v13255_v62  ;;  %v10237_v59 = vld [vmem:[%s11509_s24 + $0x3c9] sm:$0xff] }
 0x3f5   : > { %15712 = vst [vmem:[#allocation6_spill] sm:$0xff] %v13258_v5  ;;  %10366 = vmatmul.msk.f32.gmra.mxu0 %vm403_vm1, %v10236_v26 }
 0x3f6   : > { %v2743_v22 = vpop.f32.mrf.mxu2 }
 0x3f7   : > { %v2975_v51 = vadd.f32 %v2743_v22, %v1826_v28  ;;  %v3790_v54 = vpop.f32.mrf.mxu3  ;;  %v1828_v46 = vpop.f32.mrf.mxu1 }
 0x3f8   : > { %v1829_v26 = vadd.f32 %v1828_v46, %v15715_v30  ;;  %v15717_v46 = vld [vmem:[#allocation42_spill] sm:$0xff] }
 0x3f9   : > { %v4022_v20 = vadd.f32 %v3790_v54, %v2975_v51  ;;  %v2075_v54 = vld [vmem:[%s11509_s24 + $0x3aa] sm:$0xff] }
 0x3fa   : > { %v4839_v9 = vpop.f32.mrf.mxu0  ;;  %9721 = vmatmul.msk.f32.gmra.mxu1 %vm403_vm1, %v13213_v25 }
 0x3fb   : > { %v13272_v5 = vadd.f32 %v4836_v3, %v4022_v20  ;;  %9851 = vmatmul.msk.f32.gmra.mxu2 %vm403_vm1, %v2074_v21  ;;  %v13283_v20 = vld [vmem:[%s11509_s24 + $0x3d0] sm:$0xff] }
 0x3fc   : > { %10109 = vmatmul.msk.f32.gmra.mxu3 %vm403_vm1, %v13269_v33  ;;  %v10238_v21 = vld [vmem:[%s11509_s24 + $0x3d1] sm:$0xff] }
 0x3fd   : > { %15714 = vst [vmem:[#allocation9_spill] sm:$0xff] %v13272_v5  ;;  %10367 = vmatmul.msk.f32.gmra.mxu0 %vm403_vm1, %v10237_v59 }
 0x3fe   : > { %v2746_v37 = vpop.f32.mrf.mxu2 }
 0x3ff   : > { %v2976_v28 = vadd.f32 %v2746_v37, %v1829_v26  ;;  %v3793_v22 = vpop.f32.mrf.mxu3  ;;  %v1831_v51 = vpop.f32.mrf.mxu1 }
 0x400   : > { %v1832_v59 = vadd.f32 %v1831_v51, %v15717_v46  ;;  %v15719_v51 = vld [vmem:[#allocation45_spill] sm:$0xff] }
 0x401   : > { %v4023_v3 = vadd.f32 %v3793_v22, %v2976_v28  ;;  %v2076_v22 = vld [vmem:[%s11509_s24 + $0x3b2] sm:$0xff] }
 0x402   : > { %v4842_v25 = vpop.f32.mrf.mxu0  ;;  %9722 = vmatmul.msk.f32.gmra.mxu1 %vm403_vm1, %v13227_v44 }
 0x403   : > { %v13286_v5 = vadd.f32 %v4839_v9, %v4023_v3  ;;  %9852 = vmatmul.msk.f32.gmra.mxu2 %vm403_vm1, %v2075_v54  ;;  %v13297_v3 = vld [vmem:[%s11509_s24 + $0x3d8] sm:$0xff] }
 0x404   : > { %10110 = vmatmul.msk.f32.gmra.mxu3 %vm403_vm1, %v13283_v20  ;;  %v10239_v54 = vld [vmem:[%s11509_s24 + $0x3d9] sm:$0xff] }
 0x405   : > { %15716 = vst [vmem:[#allocation12_spill] sm:$0xff] %v13286_v5  ;;  %10368 = vmatmul.msk.f32.gmra.mxu0 %vm403_vm1, %v10238_v21 }
 0x406   : > { %v2749_v30 = vpop.f32.mrf.mxu2 }
 0x407   : > { %v2977_v26 = vadd.f32 %v2749_v30, %v1832_v59  ;;  %v3796_v37 = vpop.f32.mrf.mxu3  ;;  %v1834_v28 = vpop.f32.mrf.mxu1 }
 0x408   : > { %v1835_v21 = vadd.f32 %v1834_v28, %v15719_v51  ;;  %v15721_v28 = vld [vmem:[#allocation48_spill] sm:$0xff] }
 0x409   : > { %v4024_v9 = vadd.f32 %v3796_v37, %v2977_v26  ;;  %v2077_v37 = vld [vmem:[%s11509_s24 + $0x3c2] sm:$0xff] }
 0x40a   : > { %v4845_v44 = vpop.f32.mrf.mxu0  ;;  %9723 = vmatmul.msk.f32.gmra.mxu1 %vm403_vm1, %v13241_v55 }
 0x40b   : > { %v13300_v5 = vadd.f32 %v4842_v25, %v4024_v9  ;;  %9853 = vmatmul.msk.f32.gmra.mxu2 %vm403_vm1, %v2076_v22  ;;  %v13311_v9 = vld [vmem:[%s11509_s24 + $0x3e8] sm:$0xff] }
 0x40c   : > { %10111 = vmatmul.msk.f32.gmra.mxu3 %vm403_vm1, %v13297_v3  ;;  %v10240_v22 = vld [vmem:[%s11509_s24 + $0x3e9] sm:$0xff] }
 0x40d   : > { %15718 = vst [vmem:[#allocation15_spill] sm:$0xff] %v13300_v5  ;;  %10369 = vmatmul.msk.f32.gmra.mxu0 %vm403_vm1, %v10239_v54 }
 0x40e   : > { %v2752_v46 = vpop.f32.mrf.mxu2 }
 0x40f   : > { %v2978_v59 = vadd.f32 %v2752_v46, %v1835_v21  ;;  %v3799_v30 = vpop.f32.mrf.mxu3  ;;  %v1837_v26 = vpop.f32.mrf.mxu1 }
 0x410   : > { %v1838_v54 = vadd.f32 %v1837_v26, %v15721_v28  ;;  %v15723_v26 = vld [vmem:[#allocation51_spill] sm:$0xff] }
 0x411   : > { %v4025_v25 = vadd.f32 %v3799_v30, %v2978_v59  ;;  %v2078_v30 = vld [vmem:[%s11509_s24 + $0x3ca] sm:$0xff] }
 0x412   : > { %v4848_v55 = vpop.f32.mrf.mxu0  ;;  %9724 = vmatmul.msk.f32.gmra.mxu1 %vm403_vm1, %v13255_v62 }
 0x413   : > { %v13314_v5 = vadd.f32 %v4845_v44, %v4025_v25  ;;  %9854 = vmatmul.msk.f32.gmra.mxu2 %vm403_vm1, %v2077_v37  ;;  %v13325_v25 = vld [vmem:[%s11509_s24 + $0x3f0] sm:$0xff] }
 0x414   : > { %10112 = vmatmul.msk.f32.gmra.mxu3 %vm403_vm1, %v13311_v9  ;;  %v10241_v37 = vld [vmem:[%s11509_s24 + $0x3f1] sm:$0xff] }
 0x415   : > { %15720 = vst [vmem:[#allocation18_spill] sm:$0xff] %v13314_v5  ;;  %10370 = vmatmul.msk.f32.gmra.mxu0 %vm403_vm1, %v10240_v22 }
 0x416   : > { %v2755_v51 = vpop.f32.mrf.mxu2 }
 0x417   : > { %v2979_v21 = vadd.f32 %v2755_v51, %v1838_v54  ;;  %v3802_v46 = vpop.f32.mrf.mxu3  ;;  %v1840_v59 = vpop.f32.mrf.mxu1 }
 0x418   : > { %v1841_v22 = vadd.f32 %v1840_v59, %v15723_v26  ;;  %v15725_v59 = vld [vmem:[#allocation54_spill] sm:$0xff] }
 0x419   : > { %v4026_v44 = vadd.f32 %v3802_v46, %v2979_v21  ;;  %v2079_v46 = vld [vmem:[%s11509_s24 + $0x3d2] sm:$0xff] }
 0x41a   : > { %v4851_v62 = vpop.f32.mrf.mxu0  ;;  %9725 = vmatmul.msk.f32.gmra.mxu1 %vm403_vm1, %v13269_v33 }
 0x41b   : > { %v13328_v5 = vadd.f32 %v4848_v55, %v4026_v44  ;;  %9855 = vmatmul.msk.f32.gmra.mxu2 %vm403_vm1, %v2078_v30  ;;  %v13339_v44 = vld [vmem:[%s11509_s24 + $0x3f8] sm:$0xff] }
 0x41c   : > { %10113 = vmatmul.msk.f32.gmra.mxu3 %vm403_vm1, %v13325_v25  ;;  %v10242_v30 = vld [vmem:[%s11509_s24 + $0x3f9] sm:$0xff] }
 0x41d   : > { %15722 = vst [vmem:[#allocation21_spill] sm:$0xff] %v13328_v5  ;;  %10371 = vmatmul.msk.f32.gmra.mxu0 %vm403_vm1, %v10241_v37 }
 0x41e   : > { %v2758_v28 = vpop.f32.mrf.mxu2 }
 0x41f   : > { %v2980_v54 = vadd.f32 %v2758_v28, %v1841_v22  ;;  %v3805_v51 = vpop.f32.mrf.mxu3  ;;  %v1843_v21 = vpop.f32.mrf.mxu1 }
 0x420   : > { %v1844_v37 = vadd.f32 %v1843_v21, %v15725_v59  ;;  %v15727_v21 = vld [vmem:[#allocation57_spill] sm:$0xff] }
 0x421   : > { %v4027_v55 = vadd.f32 %v3805_v51, %v2980_v54  ;;  %v2080_v51 = vld [vmem:[%s11509_s24 + $0x3da] sm:$0xff] }
 0x422   : > { %v4854_v33 = vpop.f32.mrf.mxu0  ;;  %9726 = vmatmul.msk.f32.gmra.mxu1 %vm403_vm1, %v13283_v20 }
 0x423   : > { %v13342_v5 = vadd.f32 %v4851_v62, %v4027_v55  ;;  %9856 = vmatmul.msk.f32.gmra.mxu2 %vm403_vm1, %v2079_v46  ;;  %v13353_v55 = vld [vmem:[%s11509_s24 + $0x400] sm:$0xff] }
 0x424   : > { %10114 = vmatmul.msk.f32.gmra.mxu3 %vm403_vm1, %v13339_v44  ;;  %v10243_v46 = vld [vmem:[%s11509_s24 + $0x401] sm:$0xff] }
 0x425   : > { %15724 = vst [vmem:[#allocation24_spill] sm:$0xff] %v13342_v5  ;;  %10372 = vmatmul.msk.f32.gmra.mxu0 %vm403_vm1, %v10242_v30 }
 0x426   : > { %v2761_v26 = vpop.f32.mrf.mxu2 }
 0x427   : > { %v2981_v22 = vadd.f32 %v2761_v26, %v1844_v37  ;;  %v3808_v28 = vpop.f32.mrf.mxu3  ;;  %v1846_v54 = vpop.f32.mrf.mxu1 }
 0x428   : > { %v1847_v30 = vadd.f32 %v1846_v54, %v15727_v21  ;;  %v15729_v54 = vld [vmem:[#allocation60_spill] sm:$0xff] }
 0x429   : > { %v4028_v62 = vadd.f32 %v3808_v28, %v2981_v22  ;;  %v2081_v28 = vld [vmem:[%s11509_s24 + $0x3ea] sm:$0xff] }
 0x42a   : > { %v4857_v20 = vpop.f32.mrf.mxu0  ;;  %9727 = vmatmul.msk.f32.gmra.mxu1 %vm403_vm1, %v13297_v3 }
 0x42b   : > { %v13356_v5 = vadd.f32 %v4854_v33, %v4028_v62  ;;  %9857 = vmatmul.msk.f32.gmra.mxu2 %vm403_vm1, %v2080_v51  ;;  %v13367_v62 = vld [vmem:[%s11509_s24 + $0x410] sm:$0xff] }
 0x42c   : > { %10115 = vmatmul.msk.f32.gmra.mxu3 %vm403_vm1, %v13353_v55  ;;  %v10244_v51 = vld [vmem:[%s11509_s24 + $0x411] sm:$0xff] }
 0x42d   : > { %15726 = vst [vmem:[#allocation27_spill] sm:$0xff] %v13356_v5  ;;  %10373 = vmatmul.msk.f32.gmra.mxu0 %vm403_vm1, %v10243_v46 }
 0x42e   : > { %v2764_v59 = vpop.f32.mrf.mxu2 }
 0x42f   : > { %v2982_v37 = vadd.f32 %v2764_v59, %v1847_v30  ;;  %v3811_v26 = vpop.f32.mrf.mxu3  ;;  %v1849_v22 = vpop.f32.mrf.mxu1 }
 0x430   : > { %v1850_v46 = vadd.f32 %v1849_v22, %v15729_v54  ;;  %v15731_v22 = vld [vmem:[#allocation63_spill] sm:$0xff] }
 0x431   : > { %v4029_v33 = vadd.f32 %v3811_v26, %v2982_v37  ;;  %v2082_v26 = vld [vmem:[%s11509_s24 + $0x3f2] sm:$0xff] }
 0x432   : > { %v4860_v3 = vpop.f32.mrf.mxu0  ;;  %9728 = vmatmul.msk.f32.gmra.mxu1 %vm403_vm1, %v13311_v9 }
 0x433   : > { %v13370_v5 = vadd.f32 %v4857_v20, %v4029_v33  ;;  %9858 = vmatmul.msk.f32.gmra.mxu2 %vm403_vm1, %v2081_v28  ;;  %v13381_v33 = vld [vmem:[%s11509_s24 + $0x418] sm:$0xff] }
 0x434   : > { %10116 = vmatmul.msk.f32.gmra.mxu3 %vm403_vm1, %v13367_v62  ;;  %v10245_v28 = vld [vmem:[%s11509_s24 + $0x419] sm:$0xff] }
 0x435   : > { %15728 = vst [vmem:[#allocation30_spill] sm:$0xff] %v13370_v5  ;;  %10374 = vmatmul.msk.f32.gmra.mxu0 %vm403_vm1, %v10244_v51 }
 0x436   : > { %v2767_v21 = vpop.f32.mrf.mxu2 }
 0x437   : > { %v2983_v30 = vadd.f32 %v2767_v21, %v1850_v46  ;;  %v3814_v59 = vpop.f32.mrf.mxu3  ;;  %v1852_v37 = vpop.f32.mrf.mxu1 }
 0x438   : > { %v1853_v51 = vadd.f32 %v1852_v37, %v15731_v22  ;;  %v15733_v37 = vld [vmem:[#allocation66_spill] sm:$0xff] }
 0x439   : > { %v4030_v20 = vadd.f32 %v3814_v59, %v2983_v30  ;;  %v2083_v59 = vld [vmem:[%s11509_s24 + $0x3fa] sm:$0xff] }
 0x43a   : > { %v4863_v9 = vpop.f32.mrf.mxu0  ;;  %9729 = vmatmul.msk.f32.gmra.mxu1 %vm403_vm1, %v13325_v25 }
 0x43b   : > { %v13384_v5 = vadd.f32 %v4860_v3, %v4030_v20  ;;  %9859 = vmatmul.msk.f32.gmra.mxu2 %vm403_vm1, %v2082_v26  ;;  %v13395_v20 = vld [vmem:[%s11509_s24 + $0x420] sm:$0xff] }
 0x43c   : > { %10117 = vmatmul.msk.f32.gmra.mxu3 %vm403_vm1, %v13381_v33  ;;  %v10246_v26 = vld [vmem:[%s11509_s24 + $0x421] sm:$0xff] }
 0x43d   : > { %15730 = vst [vmem:[#allocation33_spill] sm:$0xff] %v13384_v5  ;;  %10375 = vmatmul.msk.f32.gmra.mxu0 %vm403_vm1, %v10245_v28 }
 0x43e   : > { %v2770_v54 = vpop.f32.mrf.mxu2 }
 0x43f   : > { %v2984_v46 = vadd.f32 %v2770_v54, %v1853_v51  ;;  %v3817_v21 = vpop.f32.mrf.mxu3  ;;  %v1855_v30 = vpop.f32.mrf.mxu1 }
 0x440   : > { %v1856_v28 = vadd.f32 %v1855_v30, %v15733_v37  ;;  %v15735_v30 = vld [vmem:[#allocation69_spill] sm:$0xff] }
 0x441   : > { %v4031_v3 = vadd.f32 %v3817_v21, %v2984_v46  ;;  %v2084_v21 = vld [vmem:[%s11509_s24 + $0x402] sm:$0xff] }
 0x442   : > { %v4866_v25 = vpop.f32.mrf.mxu0  ;;  %9730 = vmatmul.msk.f32.gmra.mxu1 %vm403_vm1, %v13339_v44 }
 0x443   : > { %v13398_v5 = vadd.f32 %v4863_v9, %v4031_v3  ;;  %9860 = vmatmul.msk.f32.gmra.mxu2 %vm403_vm1, %v2083_v59  ;;  %v13409_v3 = vld [vmem:[%s11509_s24 + $0x428] sm:$0xff] }
 0x444   : > { %10118 = vmatmul.msk.f32.gmra.mxu3 %vm403_vm1, %v13395_v20  ;;  %v10247_v59 = vld [vmem:[%s11509_s24 + $0x429] sm:$0xff] }
 0x445   : > { %15732 = vst [vmem:[#allocation36_spill] sm:$0xff] %v13398_v5  ;;  %10376 = vmatmul.msk.f32.gmra.mxu0 %vm403_vm1, %v10246_v26 }
 0x446   : > { %v2773_v22 = vpop.f32.mrf.mxu2 }
 0x447   : > { %v2985_v51 = vadd.f32 %v2773_v22, %v1856_v28  ;;  %v3820_v54 = vpop.f32.mrf.mxu3  ;;  %v1858_v46 = vpop.f32.mrf.mxu1 }
 0x448   : > { %v1859_v26 = vadd.f32 %v1858_v46, %v15735_v30  ;;  %v15737_v46 = vld [vmem:[#allocation72_spill] sm:$0xff] }
 0x449   : > { %v4032_v9 = vadd.f32 %v3820_v54, %v2985_v51  ;;  %v2085_v54 = vld [vmem:[%s11509_s24 + $0x412] sm:$0xff] }
 0x44a   : > { %v4869_v44 = vpop.f32.mrf.mxu0  ;;  %9731 = vmatmul.msk.f32.gmra.mxu1 %vm403_vm1, %v13353_v55 }
 0x44b   : > { %v13412_v5 = vadd.f32 %v4866_v25, %v4032_v9  ;;  %9861 = vmatmul.msk.f32.gmra.mxu2 %vm403_vm1, %v2084_v21  ;;  %v13423_v9 = vld [vmem:[%s11509_s24 + $0x438] sm:$0xff] }
 0x44c   : > { %10119 = vmatmul.msk.f32.gmra.mxu3 %vm403_vm1, %v13409_v3  ;;  %v10248_v21 = vld [vmem:[%s11509_s24 + $0x439] sm:$0xff] }
 0x44d   : > { %15734 = vst [vmem:[#allocation39_spill] sm:$0xff] %v13412_v5  ;;  %10377 = vmatmul.msk.f32.gmra.mxu0 %vm403_vm1, %v10247_v59 }
 0x44e   : > { %v2776_v37 = vpop.f32.mrf.mxu2 }
 0x44f   : > { %v2986_v28 = vadd.f32 %v2776_v37, %v1859_v26  ;;  %v3823_v22 = vpop.f32.mrf.mxu3  ;;  %v1861_v51 = vpop.f32.mrf.mxu1 }
 0x450   : > { %v1862_v59 = vadd.f32 %v1861_v51, %v15737_v46  ;;  %v15739_v51 = vld [vmem:[#allocation75_spill] sm:$0xff] }
 0x451   : > { %v4033_v25 = vadd.f32 %v3823_v22, %v2986_v28  ;;  %v2086_v22 = vld [vmem:[%s11509_s24 + $0x41a] sm:$0xff] }
 0x452   : > { %v4872_v55 = vpop.f32.mrf.mxu0  ;;  %9732 = vmatmul.msk.f32.gmra.mxu1 %vm403_vm1, %v13367_v62 }
 0x453   : > { %v13426_v5 = vadd.f32 %v4869_v44, %v4033_v25  ;;  %9862 = vmatmul.msk.f32.gmra.mxu2 %vm403_vm1, %v2085_v54  ;;  %v13437_v25 = vld [vmem:[%s11509_s24 + $0x440] sm:$0xff] }
 0x454   : > { %10120 = vmatmul.msk.f32.gmra.mxu3 %vm403_vm1, %v13423_v9  ;;  %v10249_v54 = vld [vmem:[%s11509_s24 + $0x441] sm:$0xff] }
 0x455   : > { %15736 = vst [vmem:[#allocation42_spill] sm:$0xff] %v13426_v5  ;;  %10378 = vmatmul.msk.f32.gmra.mxu0 %vm403_vm1, %v10248_v21 }
 0x456   : > { %v2779_v30 = vpop.f32.mrf.mxu2 }
 0x457   : > { %v2987_v26 = vadd.f32 %v2779_v30, %v1862_v59  ;;  %v3826_v37 = vpop.f32.mrf.mxu3  ;;  %v1864_v28 = vpop.f32.mrf.mxu1 }
 0x458   : > { %v1865_v21 = vadd.f32 %v1864_v28, %v15739_v51  ;;  %v15741_v28 = vld [vmem:[#allocation78_spill] sm:$0xff] }
 0x459   : > { %v4034_v44 = vadd.f32 %v3826_v37, %v2987_v26  ;;  %v2087_v37 = vld [vmem:[%s11509_s24 + $0x422] sm:$0xff] }
 0x45a   : > { %v4875_v62 = vpop.f32.mrf.mxu0  ;;  %9733 = vmatmul.msk.f32.gmra.mxu1 %vm403_vm1, %v13381_v33 }
 0x45b   : > { %v13440_v5 = vadd.f32 %v4872_v55, %v4034_v44  ;;  %9863 = vmatmul.msk.f32.gmra.mxu2 %vm403_vm1, %v2086_v22  ;;  %v13451_v44 = vld [vmem:[%s11509_s24 + $0x448] sm:$0xff] }
 0x45c   : > { %10121 = vmatmul.msk.f32.gmra.mxu3 %vm403_vm1, %v13437_v25  ;;  %v10250_v22 = vld [vmem:[%s11509_s24 + $0x449] sm:$0xff] }
 0x45d   : > { %15738 = vst [vmem:[#allocation45_spill] sm:$0xff] %v13440_v5  ;;  %10379 = vmatmul.msk.f32.gmra.mxu0 %vm403_vm1, %v10249_v54 }
 0x45e   : > { %v2782_v46 = vpop.f32.mrf.mxu2 }
 0x45f   : > { %v2988_v59 = vadd.f32 %v2782_v46, %v1865_v21  ;;  %v3829_v30 = vpop.f32.mrf.mxu3  ;;  %v1867_v26 = vpop.f32.mrf.mxu1 }
 0x460   : > { %v1868_v54 = vadd.f32 %v1867_v26, %v15741_v28  ;;  %v15743_v26 = vld [vmem:[#allocation81_spill] sm:$0xff] }
 0x461   : > { %v4035_v55 = vadd.f32 %v3829_v30, %v2988_v59  ;;  %v2088_v30 = vld [vmem:[%s11509_s24 + $0x42a] sm:$0xff] }
 0x462   : > { %v4878_v33 = vpop.f32.mrf.mxu0  ;;  %9734 = vmatmul.msk.f32.gmra.mxu1 %vm403_vm1, %v13395_v20 }
 0x463   : > { %v13454_v5 = vadd.f32 %v4875_v62, %v4035_v55  ;;  %9864 = vmatmul.msk.f32.gmra.mxu2 %vm403_vm1, %v2087_v37  ;;  %v13465_v55 = vld [vmem:[%s11509_s24 + $0x450] sm:$0xff] }
 0x464   : > { %10122 = vmatmul.msk.f32.gmra.mxu3 %vm403_vm1, %v13451_v44  ;;  %v10251_v37 = vld [vmem:[%s11509_s24 + $0x451] sm:$0xff] }
 0x465   : > { %15740 = vst [vmem:[#allocation48_spill] sm:$0xff] %v13454_v5  ;;  %10380 = vmatmul.msk.f32.gmra.mxu0 %vm403_vm1, %v10250_v22 }
 0x466   : > { %v2785_v51 = vpop.f32.mrf.mxu2 }
 0x467   : > { %v2989_v21 = vadd.f32 %v2785_v51, %v1868_v54  ;;  %v3832_v46 = vpop.f32.mrf.mxu3  ;;  %v1870_v59 = vpop.f32.mrf.mxu1 }
 0x468   : > { %v1871_v22 = vadd.f32 %v1870_v59, %v15743_v26  ;;  %v15745_v59 = vld [vmem:[#allocation84_spill] sm:$0xff] }
 0x469   : > { %v4036_v62 = vadd.f32 %v3832_v46, %v2989_v21  ;;  %v2089_v46 = vld [vmem:[%s11509_s24 + $0x43a] sm:$0xff] }
 0x46a   : > { %v4881_v20 = vpop.f32.mrf.mxu0  ;;  %9735 = vmatmul.msk.f32.gmra.mxu1 %vm403_vm1, %v13409_v3 }
 0x46b   : > { %v13468_v5 = vadd.f32 %v4878_v33, %v4036_v62  ;;  %9865 = vmatmul.msk.f32.gmra.mxu2 %vm403_vm1, %v2088_v30  ;;  %v13479_v62 = vld [vmem:[%s11509_s24 + $0x460] sm:$0xff] }
 0x46c   : > { %10123 = vmatmul.msk.f32.gmra.mxu3 %vm403_vm1, %v13465_v55  ;;  %v10252_v30 = vld [vmem:[%s11509_s24 + $0x461] sm:$0xff] }
 0x46d   : > { %15742 = vst [vmem:[#allocation51_spill] sm:$0xff] %v13468_v5  ;;  %10381 = vmatmul.msk.f32.gmra.mxu0 %vm403_vm1, %v10251_v37 }
 0x46e   : > { %v2788_v28 = vpop.f32.mrf.mxu2 }
 0x46f   : > { %v2990_v54 = vadd.f32 %v2788_v28, %v1871_v22  ;;  %v3835_v51 = vpop.f32.mrf.mxu3  ;;  %v1873_v21 = vpop.f32.mrf.mxu1 }
 0x470   : > { %v1874_v37 = vadd.f32 %v1873_v21, %v15745_v59  ;;  %v15747_v21 = vld [vmem:[#allocation87_spill] sm:$0xff] }
 0x471   : > { %v4037_v33 = vadd.f32 %v3835_v51, %v2990_v54  ;;  %v2090_v51 = vld [vmem:[%s11509_s24 + $0x442] sm:$0xff] }
 0x472   : > { %v4884_v3 = vpop.f32.mrf.mxu0  ;;  %9736 = vmatmul.msk.f32.gmra.mxu1 %vm403_vm1, %v13423_v9 }
 0x473   : > { %v13482_v5 = vadd.f32 %v4881_v20, %v4037_v33  ;;  %9866 = vmatmul.msk.f32.gmra.mxu2 %vm403_vm1, %v2089_v46  ;;  %v13493_v33 = vld [vmem:[%s11509_s24 + $0x468] sm:$0xff] }
 0x474   : > { %10124 = vmatmul.msk.f32.gmra.mxu3 %vm403_vm1, %v13479_v62  ;;  %v10253_v46 = vld [vmem:[%s11509_s24 + $0x469] sm:$0xff] }
 0x475   : > { %15744 = vst [vmem:[#allocation54_spill] sm:$0xff] %v13482_v5  ;;  %10382 = vmatmul.msk.f32.gmra.mxu0 %vm403_vm1, %v10252_v30 }
 0x476   : > { %v2791_v26 = vpop.f32.mrf.mxu2 }
 0x477   : > { %v2991_v22 = vadd.f32 %v2791_v26, %v1874_v37  ;;  %v3838_v28 = vpop.f32.mrf.mxu3  ;;  %v1876_v54 = vpop.f32.mrf.mxu1 }
 0x478   : > { %v1877_v30 = vadd.f32 %v1876_v54, %v15747_v21  ;;  %v15749_v54 = vld [vmem:[#allocation90_spill] sm:$0xff] }
 0x479   : > { %v4038_v20 = vadd.f32 %v3838_v28, %v2991_v22  ;;  %v2091_v28 = vld [vmem:[%s11509_s24 + $0x44a] sm:$0xff] }
 0x47a   : > { %v4887_v9 = vpop.f32.mrf.mxu0  ;;  %9737 = vmatmul.msk.f32.gmra.mxu1 %vm403_vm1, %v13437_v25 }
 0x47b   : > { %v13496_v5 = vadd.f32 %v4884_v3, %v4038_v20  ;;  %9867 = vmatmul.msk.f32.gmra.mxu2 %vm403_vm1, %v2090_v51  ;;  %v13507_v20 = vld [vmem:[%s11509_s24 + $0x470] sm:$0xff] }
 0x47c   : > { %10125 = vmatmul.msk.f32.gmra.mxu3 %vm403_vm1, %v13493_v33  ;;  %v10254_v51 = vld [vmem:[%s11509_s24 + $0x471] sm:$0xff] }
 0x47d   : > { %15746 = vst [vmem:[#allocation57_spill] sm:$0xff] %v13496_v5  ;;  %10383 = vmatmul.msk.f32.gmra.mxu0 %vm403_vm1, %v10253_v46 }
 0x47e   : > { %v2794_v59 = vpop.f32.mrf.mxu2 }
 0x47f   : > { %v2992_v37 = vadd.f32 %v2794_v59, %v1877_v30  ;;  %v3841_v26 = vpop.f32.mrf.mxu3  ;;  %v1879_v22 = vpop.f32.mrf.mxu1 }
 0x480   : > { %v1880_v46 = vadd.f32 %v1879_v22, %v15749_v54  ;;  %v15751_v22 = vld [vmem:[#allocation93_spill] sm:$0xff] }
 0x481   : > { %v4039_v3 = vadd.f32 %v3841_v26, %v2992_v37  ;;  %v2092_v26 = vld [vmem:[%s11509_s24 + $0x452] sm:$0xff] }
 0x482   : > { %v4890_v25 = vpop.f32.mrf.mxu0  ;;  %9738 = vmatmul.msk.f32.gmra.mxu1 %vm403_vm1, %v13451_v44 }
 0x483   : > { %v13510_v5 = vadd.f32 %v4887_v9, %v4039_v3  ;;  %9868 = vmatmul.msk.f32.gmra.mxu2 %vm403_vm1, %v2091_v28  ;;  %v13521_v3 = vld [vmem:[%s11509_s24 + $0x478] sm:$0xff] }
 0x484   : > { %10126 = vmatmul.msk.f32.gmra.mxu3 %vm403_vm1, %v13507_v20  ;;  %v10255_v28 = vld [vmem:[%s11509_s24 + $0x479] sm:$0xff] }
 0x485   : > { %15748 = vst [vmem:[#allocation60_spill] sm:$0xff] %v13510_v5  ;;  %10384 = vmatmul.msk.f32.gmra.mxu0 %vm403_vm1, %v10254_v51 }
 0x486   : > { %v2797_v21 = vpop.f32.mrf.mxu2 }
 0x487   : > { %v2993_v30 = vadd.f32 %v2797_v21, %v1880_v46  ;;  %v3844_v59 = vpop.f32.mrf.mxu3  ;;  %v1882_v37 = vpop.f32.mrf.mxu1 }
 0x488   : > { %v1883_v51 = vadd.f32 %v1882_v37, %v15751_v22  ;;  %v15753_v37 = vld [vmem:[#allocation3_spill] sm:$0xff] }
 0x489   : > { %v4040_v9 = vadd.f32 %v3844_v59, %v2993_v30  ;;  %v2093_v59 = vld [vmem:[%s11509_s24 + $0x462] sm:$0xff] }
 0x48a   : > { %v4893_v44 = vpop.f32.mrf.mxu0  ;;  %9739 = vmatmul.msk.f32.gmra.mxu1 %vm403_vm1, %v13465_v55 }
 0x48b   : > { %v13524_v5 = vadd.f32 %v4890_v25, %v4040_v9  ;;  %9869 = vmatmul.msk.f32.gmra.mxu2 %vm403_vm1, %v2092_v26  ;;  %v13535_v9 = vld [vmem:[%s11509_s24 + $0x488] sm:$0xff] }
 0x48c   : > { %10127 = vmatmul.msk.f32.gmra.mxu3 %vm403_vm1, %v13521_v3  ;;  %v10256_v26 = vld [vmem:[%s11509_s24 + $0x489] sm:$0xff] }
 0x48d   : > { %15750 = vst [vmem:[#allocation63_spill] sm:$0xff] %v13524_v5  ;;  %10385 = vmatmul.msk.f32.gmra.mxu0 %vm403_vm1, %v10255_v28 }
 0x48e   : > { %v2800_v54 = vpop.f32.mrf.mxu2 }
 0x48f   : > { %v2994_v46 = vadd.f32 %v2800_v54, %v1883_v51  ;;  %v3847_v21 = vpop.f32.mrf.mxu3  ;;  %v1885_v30 = vpop.f32.mrf.mxu1 }
 0x490   : > { %v1886_v28 = vadd.f32 %v1885_v30, %v15753_v37  ;;  %v15755_v30 = vld [vmem:[#allocation5_spill] sm:$0xff] }
 0x491   : > { %v4041_v25 = vadd.f32 %v3847_v21, %v2994_v46  ;;  %v2094_v21 = vld [vmem:[%s11509_s24 + $0x46a] sm:$0xff] }
 0x492   : > { %v4896_v55 = vpop.f32.mrf.mxu0  ;;  %9740 = vmatmul.msk.f32.gmra.mxu1 %vm403_vm1, %v13479_v62 }
 0x493   : > { %v13538_v5 = vadd.f32 %v4893_v44, %v4041_v25  ;;  %9870 = vmatmul.msk.f32.gmra.mxu2 %vm403_vm1, %v2093_v59  ;;  %v13549_v25 = vld [vmem:[%s11509_s24 + $0x490] sm:$0xff] }
 0x494   : > { %10128 = vmatmul.msk.f32.gmra.mxu3 %vm403_vm1, %v13535_v9  ;;  %v10257_v59 = vld [vmem:[%s11509_s24 + $0x491] sm:$0xff] }
 0x495   : > { %15752 = vst [vmem:[#allocation66_spill] sm:$0xff] %v13538_v5  ;;  %10386 = vmatmul.msk.f32.gmra.mxu0 %vm403_vm1, %v10256_v26 }
 0x496   : > { %v2803_v22 = vpop.f32.mrf.mxu2 }
 0x497   : > { %v2995_v51 = vadd.f32 %v2803_v22, %v1886_v28  ;;  %v3850_v54 = vpop.f32.mrf.mxu3  ;;  %v1888_v46 = vpop.f32.mrf.mxu1 }
 0x498   : > { %v1889_v26 = vadd.f32 %v1888_v46, %v15755_v30  ;;  %v15757_v46 = vld [vmem:[#allocation7_spill] sm:$0xff] }
 0x499   : > { %v4042_v44 = vadd.f32 %v3850_v54, %v2995_v51  ;;  %v2095_v54 = vld [vmem:[%s11509_s24 + $0x472] sm:$0xff] }
 0x49a   : > { %v4899_v62 = vpop.f32.mrf.mxu0  ;;  %9741 = vmatmul.msk.f32.gmra.mxu1 %vm403_vm1, %v13493_v33 }
 0x49b   : > { %v13552_v5 = vadd.f32 %v4896_v55, %v4042_v44  ;;  %9871 = vmatmul.msk.f32.gmra.mxu2 %vm403_vm1, %v2094_v21  ;;  %v13563_v44 = vld [vmem:[%s11509_s24 + $0x498] sm:$0xff] }
 0x49c   : > { %10129 = vmatmul.msk.f32.gmra.mxu3 %vm403_vm1, %v13549_v25  ;;  %v10258_v21 = vld [vmem:[%s11509_s24 + $0x499] sm:$0xff] }
 0x49d   : > { %15754 = vst [vmem:[#allocation69_spill] sm:$0xff] %v13552_v5  ;;  %10387 = vmatmul.msk.f32.gmra.mxu0 %vm403_vm1, %v10257_v59 }
 0x49e   : > { %v2806_v37 = vpop.f32.mrf.mxu2 }
 0x49f   : > { %v2996_v28 = vadd.f32 %v2806_v37, %v1889_v26  ;;  %v3853_v22 = vpop.f32.mrf.mxu3  ;;  %v1891_v51 = vpop.f32.mrf.mxu1 }
 0x4a0   : > { %v1892_v59 = vadd.f32 %v1891_v51, %v15757_v46  ;;  %v15759_v51 = vld [vmem:[#allocation10_spill] sm:$0xff] }
 0x4a1   : > { %v4043_v55 = vadd.f32 %v3853_v22, %v2996_v28  ;;  %v2096_v22 = vld [vmem:[%s11509_s24 + $0x47a] sm:$0xff] }
 0x4a2   : > { %v4902_v33 = vpop.f32.mrf.mxu0  ;;  %9742 = vmatmul.msk.f32.gmra.mxu1 %vm403_vm1, %v13507_v20 }
 0x4a3   : > { %v13566_v5 = vadd.f32 %v4899_v62, %v4043_v55  ;;  %9872 = vmatmul.msk.f32.gmra.mxu2 %vm403_vm1, %v2095_v54  ;;  %v13577_v55 = vld [vmem:[%s11509_s24 + $0x4a0] sm:$0xff] }
 0x4a4   : > { %10130 = vmatmul.msk.f32.gmra.mxu3 %vm403_vm1, %v13563_v44  ;;  %v10259_v54 = vld [vmem:[%s11509_s24 + $0x4a1] sm:$0xff] }
 0x4a5   : > { %15756 = vst [vmem:[#allocation72_spill] sm:$0xff] %v13566_v5  ;;  %10388 = vmatmul.msk.f32.gmra.mxu0 %vm403_vm1, %v10258_v21 }
 0x4a6   : > { %v2809_v30 = vpop.f32.mrf.mxu2 }
 0x4a7   : > { %v2997_v26 = vadd.f32 %v2809_v30, %v1892_v59  ;;  %v3856_v37 = vpop.f32.mrf.mxu3  ;;  %v1894_v28 = vpop.f32.mrf.mxu1 }
 0x4a8   : > { %v1895_v21 = vadd.f32 %v1894_v28, %v15759_v51  ;;  %v15761_v28 = vld [vmem:[#allocation13_spill] sm:$0xff] }
 0x4a9   : > { %v4044_v62 = vadd.f32 %v3856_v37, %v2997_v26  ;;  %v2097_v37 = vld [vmem:[%s11509_s24 + $0x48a] sm:$0xff] }
 0x4aa   : > { %v4905_v20 = vpop.f32.mrf.mxu0  ;;  %9743 = vmatmul.msk.f32.gmra.mxu1 %vm403_vm1, %v13521_v3 }
 0x4ab   : > { %v13580_v5 = vadd.f32 %v4902_v33, %v4044_v62  ;;  %9873 = vmatmul.msk.f32.gmra.mxu2 %vm403_vm1, %v2096_v22  ;;  %v13591_v62 = vld [vmem:[%s11509_s24 + $0x4b0] sm:$0xff] }
 0x4ac   : > { %10131 = vmatmul.msk.f32.gmra.mxu3 %vm403_vm1, %v13577_v55  ;;  %v10260_v22 = vld [vmem:[%s11509_s24 + $0x4b1] sm:$0xff] }
 0x4ad   : > { %15758 = vst [vmem:[#allocation75_spill] sm:$0xff] %v13580_v5  ;;  %10389 = vmatmul.msk.f32.gmra.mxu0 %vm403_vm1, %v10259_v54 }
 0x4ae   : > { %v2812_v46 = vpop.f32.mrf.mxu2 }
 0x4af   : > { %v2998_v59 = vadd.f32 %v2812_v46, %v1895_v21  ;;  %v3859_v30 = vpop.f32.mrf.mxu3  ;;  %v1897_v26 = vpop.f32.mrf.mxu1 }
 0x4b0   : > { %v1898_v54 = vadd.f32 %v1897_v26, %v15761_v28  ;;  %v15763_v26 = vld [vmem:[#allocation16_spill] sm:$0xff] }
 0x4b1   : > { %v4045_v33 = vadd.f32 %v3859_v30, %v2998_v59  ;;  %v2098_v30 = vld [vmem:[%s11509_s24 + $0x492] sm:$0xff] }
 0x4b2   : > { %v4908_v3 = vpop.f32.mrf.mxu0  ;;  %9744 = vmatmul.msk.f32.gmra.mxu1 %vm403_vm1, %v13535_v9 }
 0x4b3   : > { %v13594_v5 = vadd.f32 %v4905_v20, %v4045_v33  ;;  %9874 = vmatmul.msk.f32.gmra.mxu2 %vm403_vm1, %v2097_v37  ;;  %v13605_v33 = vld [vmem:[%s11509_s24 + $0x4b8] sm:$0xff] }
 0x4b4   : > { %10132 = vmatmul.msk.f32.gmra.mxu3 %vm403_vm1, %v13591_v62  ;;  %v10261_v37 = vld [vmem:[%s11509_s24 + $0x4b9] sm:$0xff] }
 0x4b5   : > { %15760 = vst [vmem:[#allocation78_spill] sm:$0xff] %v13594_v5  ;;  %10390 = vmatmul.msk.f32.gmra.mxu0 %vm403_vm1, %v10260_v22 }
 0x4b6   : > { %v2815_v51 = vpop.f32.mrf.mxu2 }
 0x4b7   : > { %v2999_v21 = vadd.f32 %v2815_v51, %v1898_v54  ;;  %v3862_v46 = vpop.f32.mrf.mxu3  ;;  %v1900_v59 = vpop.f32.mrf.mxu1 }
 0x4b8   : > { %v1901_v22 = vadd.f32 %v1900_v59, %v15763_v26  ;;  %v15765_v59 = vld [vmem:[#allocation19_spill] sm:$0xff] }
 0x4b9   : > { %v4046_v20 = vadd.f32 %v3862_v46, %v2999_v21  ;;  %v2099_v46 = vld [vmem:[%s11509_s24 + $0x49a] sm:$0xff] }
 0x4ba   : > { %v4911_v9 = vpop.f32.mrf.mxu0  ;;  %9745 = vmatmul.msk.f32.gmra.mxu1 %vm403_vm1, %v13549_v25 }
 0x4bb   : > { %v13608_v5 = vadd.f32 %v4908_v3, %v4046_v20  ;;  %9875 = vmatmul.msk.f32.gmra.mxu2 %vm403_vm1, %v2098_v30  ;;  %v13619_v20 = vld [vmem:[%s11509_s24 + $0x4c0] sm:$0xff] }
 0x4bc   : > { %10133 = vmatmul.msk.f32.gmra.mxu3 %vm403_vm1, %v13605_v33  ;;  %v10262_v30 = vld [vmem:[%s11509_s24 + $0x4c1] sm:$0xff] }
 0x4bd   : > { %15762 = vst [vmem:[#allocation81_spill] sm:$0xff] %v13608_v5  ;;  %10391 = vmatmul.msk.f32.gmra.mxu0 %vm403_vm1, %v10261_v37 }
 0x4be   : > { %v2818_v28 = vpop.f32.mrf.mxu2 }
 0x4bf   : > { %v3000_v54 = vadd.f32 %v2818_v28, %v1901_v22  ;;  %v3865_v51 = vpop.f32.mrf.mxu3  ;;  %v1903_v21 = vpop.f32.mrf.mxu1 }
 0x4c0   : > { %v1904_v37 = vadd.f32 %v1903_v21, %v15765_v59  ;;  %v15767_v21 = vld [vmem:[#allocation22_spill] sm:$0xff] }
 0x4c1   : > { %v4047_v3 = vadd.f32 %v3865_v51, %v3000_v54  ;;  %v2100_v51 = vld [vmem:[%s11509_s24 + $0x4a2] sm:$0xff] }
 0x4c2   : > { %v4914_v25 = vpop.f32.mrf.mxu0  ;;  %9746 = vmatmul.msk.f32.gmra.mxu1 %vm403_vm1, %v13563_v44 }
 0x4c3   : > { %v13622_v5 = vadd.f32 %v4911_v9, %v4047_v3  ;;  %9876 = vmatmul.msk.f32.gmra.mxu2 %vm403_vm1, %v2099_v46  ;;  %v13633_v3 = vld [vmem:[%s11509_s24 + $0x4c8] sm:$0xff] }
 0x4c4   : > { %10134 = vmatmul.msk.f32.gmra.mxu3 %vm403_vm1, %v13619_v20  ;;  %v10263_v46 = vld [vmem:[%s11509_s24 + $0x4c9] sm:$0xff] }
 0x4c5   : > { %15764 = vst [vmem:[#allocation84_spill] sm:$0xff] %v13622_v5  ;;  %10392 = vmatmul.msk.f32.gmra.mxu0 %vm403_vm1, %v10262_v30 }
 0x4c6   : > { %v2821_v26 = vpop.f32.mrf.mxu2 }
 0x4c7   : > { %v3001_v22 = vadd.f32 %v2821_v26, %v1904_v37  ;;  %v3868_v28 = vpop.f32.mrf.mxu3  ;;  %v1906_v54 = vpop.f32.mrf.mxu1 }
 0x4c8   : > { %v1907_v30 = vadd.f32 %v1906_v54, %v15767_v21  ;;  %v15769_v54 = vld [vmem:[#allocation25_spill] sm:$0xff] }
 0x4c9   : > { %v4048_v9 = vadd.f32 %v3868_v28, %v3001_v22  ;;  %v2101_v28 = vld [vmem:[%s11509_s24 + $0x4b2] sm:$0xff] }
 0x4ca   : > { %v4917_v44 = vpop.f32.mrf.mxu0  ;;  %9747 = vmatmul.msk.f32.gmra.mxu1 %vm403_vm1, %v13577_v55 }
 0x4cb   : > { %v13636_v5 = vadd.f32 %v4914_v25, %v4048_v9  ;;  %9877 = vmatmul.msk.f32.gmra.mxu2 %vm403_vm1, %v2100_v51  ;;  %v13647_v9 = vld [vmem:[%s11509_s24 + $0x4d8] sm:$0xff] }
 0x4cc   : > { %10135 = vmatmul.msk.f32.gmra.mxu3 %vm403_vm1, %v13633_v3  ;;  %v10264_v51 = vld [vmem:[%s11509_s24 + $0x4d9] sm:$0xff] }
 0x4cd   : > { %15766 = vst [vmem:[#allocation87_spill] sm:$0xff] %v13636_v5  ;;  %10393 = vmatmul.msk.f32.gmra.mxu0 %vm403_vm1, %v10263_v46 }
 0x4ce   : > { %v2824_v59 = vpop.f32.mrf.mxu2 }
 0x4cf   : > { %v3002_v37 = vadd.f32 %v2824_v59, %v1907_v30  ;;  %v3871_v26 = vpop.f32.mrf.mxu3  ;;  %v1909_v22 = vpop.f32.mrf.mxu1 }
 0x4d0   : > { %v1910_v46 = vadd.f32 %v1909_v22, %v15769_v54  ;;  %v15771_v22 = vld [vmem:[#allocation28_spill] sm:$0xff] }
 0x4d1   : > { %v4049_v25 = vadd.f32 %v3871_v26, %v3002_v37  ;;  %v2102_v26 = vld [vmem:[%s11509_s24 + $0x4ba] sm:$0xff] }
 0x4d2   : > { %v4920_v55 = vpop.f32.mrf.mxu0  ;;  %9748 = vmatmul.msk.f32.gmra.mxu1 %vm403_vm1, %v13591_v62 }
 0x4d3   : > { %v13650_v5 = vadd.f32 %v4917_v44, %v4049_v25  ;;  %9878 = vmatmul.msk.f32.gmra.mxu2 %vm403_vm1, %v2101_v28  ;;  %v13661_v25 = vld [vmem:[%s11509_s24 + $0x4e0] sm:$0xff] }
 0x4d4   : > { %10136 = vmatmul.msk.f32.gmra.mxu3 %vm403_vm1, %v13647_v9  ;;  %v10265_v28 = vld [vmem:[%s11509_s24 + $0x4e1] sm:$0xff] }
 0x4d5   : > { %15768 = vst [vmem:[#allocation90_spill] sm:$0xff] %v13650_v5  ;;  %10394 = vmatmul.msk.f32.gmra.mxu0 %vm403_vm1, %v10264_v51 }
 0x4d6   : > { %v2827_v21 = vpop.f32.mrf.mxu2 }
 0x4d7   : > { %v3003_v30 = vadd.f32 %v2827_v21, %v1910_v46  ;;  %v3874_v59 = vpop.f32.mrf.mxu3  ;;  %v1912_v37 = vpop.f32.mrf.mxu1 }
 0x4d8   : > { %v1913_v51 = vadd.f32 %v1912_v37, %v15771_v22  ;;  %v15773_v37 = vld [vmem:[#allocation31_spill] sm:$0xff] }
 0x4d9   : > { %v4050_v44 = vadd.f32 %v3874_v59, %v3003_v30  ;;  %v2103_v59 = vld [vmem:[%s11509_s24 + $0x4c2] sm:$0xff] }
 0x4da   : > { %v4923_v62 = vpop.f32.mrf.mxu0  ;;  %9749 = vmatmul.msk.f32.gmra.mxu1 %vm403_vm1, %v13605_v33 }
 0x4db   : > { %v13664_v5 = vadd.f32 %v4920_v55, %v4050_v44  ;;  %9879 = vmatmul.msk.f32.gmra.mxu2 %vm403_vm1, %v2102_v26  ;;  %v13675_v44 = vld [vmem:[%s11509_s24 + $0x4e8] sm:$0xff] }
 0x4dc   : > { %10137 = vmatmul.msk.f32.gmra.mxu3 %vm403_vm1, %v13661_v25  ;;  %v10266_v26 = vld [vmem:[%s11509_s24 + $0x4e9] sm:$0xff] }
 0x4dd   : > { %15770 = vst [vmem:[#allocation93_spill] sm:$0xff] %v13664_v5  ;;  %10395 = vmatmul.msk.f32.gmra.mxu0 %vm403_vm1, %v10265_v28 }
 0x4de   : > { %v2830_v54 = vpop.f32.mrf.mxu2 }
 0x4df   : > { %v3004_v46 = vadd.f32 %v2830_v54, %v1913_v51  ;;  %v3877_v21 = vpop.f32.mrf.mxu3  ;;  %v1915_v30 = vpop.f32.mrf.mxu1 }
 0x4e0   : > { %v1916_v28 = vadd.f32 %v1915_v30, %v15773_v37  ;;  %v15775_v30 = vld [vmem:[#allocation34_spill] sm:$0xff] }
 0x4e1   : > { %v4051_v55 = vadd.f32 %v3877_v21, %v3004_v46  ;;  %v2104_v21 = vld [vmem:[%s11509_s24 + $0x4ca] sm:$0xff] }
 0x4e2   : > { %v4926_v33 = vpop.f32.mrf.mxu0  ;;  %9750 = vmatmul.msk.f32.gmra.mxu1 %vm403_vm1, %v13619_v20 }
 0x4e3   : > { %v13678_v5 = vadd.f32 %v4923_v62, %v4051_v55  ;;  %9880 = vmatmul.msk.f32.gmra.mxu2 %vm403_vm1, %v2103_v59  ;;  %v13689_v55 = vld [vmem:[%s11509_s24 + $0x4f0] sm:$0xff] }
 0x4e4   : > { %10138 = vmatmul.msk.f32.gmra.mxu3 %vm403_vm1, %v13675_v44  ;;  %v10267_v59 = vld [vmem:[%s11509_s24 + $0x4f1] sm:$0xff] }
 0x4e5   : > { %15772 = vst [vmem:[#allocation3_spill] sm:$0xff] %v13678_v5  ;;  %10396 = vmatmul.msk.f32.gmra.mxu0 %vm403_vm1, %v10266_v26 }
 0x4e6   : > { %v2833_v22 = vpop.f32.mrf.mxu2 }
 0x4e7   : > { %v3005_v51 = vadd.f32 %v2833_v22, %v1916_v28  ;;  %v3880_v54 = vpop.f32.mrf.mxu3  ;;  %v1918_v46 = vpop.f32.mrf.mxu1 }
 0x4e8   : > { %v1919_v26 = vadd.f32 %v1918_v46, %v15775_v30  ;;  %v15777_v46 = vld [vmem:[#allocation37_spill] sm:$0xff] }
 0x4e9   : > { %v4052_v62 = vadd.f32 %v3880_v54, %v3005_v51  ;;  %v2105_v54 = vld [vmem:[%s11509_s24 + $0x4da] sm:$0xff] }
 0x4ea   : > { %v4929_v20 = vpop.f32.mrf.mxu0  ;;  %9751 = vmatmul.msk.f32.gmra.mxu1 %vm403_vm1, %v13633_v3  ;;  %v10268_v3 = vld [vmem:[%s11509_s24 + $0x501] sm:$0xff] }
 0x4eb   : > { %v13692_v5 = vadd.f32 %v4926_v33, %v4052_v62  ;;  %9881 = vmatmul.msk.f32.gmra.mxu2 %vm403_vm1, %v2104_v21  ;;  %v10010_v62 = vld [vmem:[%s11509_s24 + $0x500] sm:$0xff] }
 0x4ec   : > { %10139 = vmatmul.msk.f32.gmra.mxu3 %vm403_vm1, %v13689_v55 }
 0x4ed   : > { %15774 = vst [vmem:[#allocation5_spill] sm:$0xff] %v13692_v5  ;;  %10397 = vmatmul.msk.f32.gmra.mxu0 %vm403_vm1, %v10267_v59 }
 0x4ee   : > { %v2836_v37 = vpop.f32.mrf.mxu2 }
 0x4ef   : > { %v3006_v28 = vadd.f32 %v2836_v37, %v1919_v26  ;;  %v3883_v22 = vpop.f32.mrf.mxu3  ;;  %v1921_v51 = vpop.f32.mrf.mxu1 }
 0x4f0   : > { %v1922_v59 = vadd.f32 %v1921_v51, %v15777_v46  ;;  %v15779_v51 = vld [vmem:[#allocation40_spill] sm:$0xff] }
 0x4f1   : > { %v4053_v33 = vadd.f32 %v3883_v22, %v3006_v28  ;;  %v2106_v22 = vld [vmem:[%s11509_s24 + $0x4e2] sm:$0xff] }
 0x4f2   : > { %v4932_v5 = vpop.f32.mrf.mxu0  ;;  %9752 = vmatmul.msk.f32.gmra.mxu1 %vm403_vm1, %v13647_v9  ;;  %v10269_v9 = vld [vmem:[%s11509_s24 + $0x509] sm:$0xff] }
 0x4f3   : > { %v13704_v21 = vadd.f32 %v4929_v20, %v4053_v33  ;;  %9882 = vmatmul.msk.f32.gmra.mxu2 %vm403_vm1, %v2105_v54  ;;  %v10011_v20 = vld [vmem:[%s11509_s24 + $0x508] sm:$0xff] }
 0x4f4   : > { %10140 = vmatmul.msk.f32.gmra.mxu3 %vm403_vm1, %v10010_v62 }
 0x4f5   : > { %15776 = vst [vmem:[#allocation7_spill] sm:$0xff] %v13704_v21  ;;  %10398 = vmatmul.msk.f32.gmra.mxu0 %vm403_vm1, %v10268_v3 }
 0x4f6   : > { %v2839_v30 = vpop.f32.mrf.mxu2 }
 0x4f7   : > { %v3007_v26 = vadd.f32 %v2839_v30, %v1922_v59  ;;  %v3886_v37 = vpop.f32.mrf.mxu3  ;;  %v1924_v28 = vpop.f32.mrf.mxu1  ;;  %v2107_v30 = vld [vmem:[%s11509_s24 + $0x4ea] sm:$0xff] }
 0x4f8   : > { %v1925_v54 = vadd.f32 %v1924_v28, %v15779_v51  ;;  %v15781_v28 = vld [vmem:[#allocation43_spill] sm:$0xff] }
 0x4f9   : > { %v4054_v13 = vadd.f32 %v3886_v37, %v3007_v26 }
 0x4fa   : > { %v4935_v33 = vpop.f32.mrf.mxu0  ;;  %9753 = vmatmul.msk.f32.gmra.mxu1 %vm403_vm1, %v13661_v25  ;;  %v10270_v25 = vld [vmem:[%s11509_s24 + $0x511] sm:$0xff] }
 0x4fb   : > { %v13715_v21 = vadd.f32 %v4932_v5, %v4054_v13  ;;  %9883 = vmatmul.msk.f32.gmra.mxu2 %vm403_vm1, %v2106_v22  ;;  %v10012_v13 = vld [vmem:[%s11509_s24 + $0x510] sm:$0xff] }
 0x4fc   : > { %10141 = vmatmul.msk.f32.gmra.mxu3 %vm403_vm1, %v10011_v20 }
 0x4fd   : > { %15778 = vst [vmem:[#allocation10_spill] sm:$0xff] %v13715_v21  ;;  %10399 = vmatmul.msk.f32.gmra.mxu0 %vm403_vm1, %v10269_v9 }
 0x4fe   : > { %v2842_v62 = vpop.f32.mrf.mxu2 }
 0x4ff   : > { %v3008_v3 = vadd.f32 %v2842_v62, %v1925_v54  ;;  %v3889_v46 = vpop.f32.mrf.mxu3  ;;  %v1927_v59 = vpop.f32.mrf.mxu1  ;;  %v2108_v62 = vld [vmem:[%s11509_s24 + $0x4f2] sm:$0xff] }
 0x500   : > { %v1928_v22 = vadd.f32 %v1927_v59, %v15781_v28  ;;  %v15783_v59 = vld [vmem:[#allocation46_spill] sm:$0xff] }
 0x501   : > { %v4055_v26 = vadd.f32 %v3889_v46, %v3008_v3  ;;  %v10013_v3 = vld [vmem:[%s11509_s24 + $0x518] sm:$0xff] }
 0x502   : > { %v4938_v5 = vpop.f32.mrf.mxu0  ;;  %9754 = vmatmul.msk.f32.gmra.mxu1 %vm403_vm1, %v13675_v44  ;;  %v10271_v44 = vld [vmem:[%s11509_s24 + $0x519] sm:$0xff] }
 0x503   : > { %v13726_v37 = vadd.f32 %v4935_v33, %v4055_v26  ;;  %9884 = vmatmul.msk.f32.gmra.mxu2 %vm403_vm1, %v2107_v30 }
 0x504   : > { %10142 = vmatmul.msk.f32.gmra.mxu3 %vm403_vm1, %v10012_v13 }
 0x505   : > { %15780 = vst [vmem:[#allocation13_spill] sm:$0xff] %v13726_v37  ;;  %10400 = vmatmul.msk.f32.gmra.mxu0 %vm403_vm1, %v10270_v25  ;;  %v10663_v37 = vld [vmem:[%s11509_s24 + $0x68] sm:$0xff] }
 0x506   : > { %v2845_v20 = vpop.f32.mrf.mxu2 }
 0x507   : > { %v3009_v9 = vadd.f32 %v2845_v20, %v1928_v22  ;;  %v3892_v51 = vpop.f32.mrf.mxu3  ;;  %v1930_v54 = vpop.f32.mrf.mxu1  ;;  %v10402_v20 = vld [vmem:[%s11509_s24 + $0x2a] sm:$0xff] }
 0x508   : > { %v1931_v26 = vadd.f32 %v1930_v54, %v15783_v59  ;;  %v15785_v54 = vld [vmem:[#allocation49_spill] sm:$0xff] }
 0x509   : > { %v4056_v33 = vadd.f32 %v3892_v51, %v3009_v9  ;;  %v10660_v9 = vld [vmem:[%s11509_s24 + $0x50] sm:$0xff] }
 0x50a   : > { %v4941_v46 = vpop.f32.mrf.mxu0  ;;  %9755 = vmatmul.msk.f32.gmra.mxu1 %vm403_vm1, %v13689_v55  ;;  %v10918_v51 = vld [vmem:[%s11509_s24 + $0x51] sm:$0xff] }
 0x50b   : > { %v13737_v30 = vadd.f32 %v4938_v5, %v4056_v33  ;;  %9885 = vmatmul.msk.f32.gmra.mxu2 %vm403_vm1, %v2108_v62  ;;  %v13749_v33 = vld [vmem:[%s11509_s24 + $0x52] sm:$0xff] }
 0x50c   : > { %10143 = vmatmul.msk.f32.gmra.mxu3 %vm403_vm1, %v10013_v3 }
 0x50d   : > { %15782 = vst [vmem:[#allocation16_spill] sm:$0xff] %v13737_v30  ;;  %10401 = vmatmul.msk.f32.gmra.mxu0 %vm403_vm1, %v10271_v44  ;;  %v10662_v30 = vld [vmem:[%s11509_s24 + $0x60] sm:$0xff] }
 0x50e   : > { %v2848_v13 = vpop.f32.mrf.mxu2 }
 0x50f   : > { %v3010_v25 = vadd.f32 %v2848_v13, %v1931_v26  ;;  %v3895_v28 = vpop.f32.mrf.mxu3  ;;  %v1933_v22 = vpop.f32.mrf.mxu1 }
 0x510   : > { %v1934_v3 = vadd.f32 %v1933_v22, %v15785_v54  ;;  %v15787_v22 = vld [vmem:[#allocation52_spill] sm:$0xff] }
 0x511   : > { %v4057_v5 = vadd.f32 %v3895_v28, %v3010_v25  ;;  %v10403_v25 = vld [vmem:[%s11509_s24 + $0x32] sm:$0xff] }
 0x512   : > { %v4944_v55 = vpop.f32.mrf.mxu0  ;;  %10532 = vmatmul.msk.f32.vlgmr.msra.gmra.mxu1 %vm403_vm1, %v10402_v20  ;;  %v10661_v28 = vld [vmem:[%s11509_s24 + $0x58] sm:$0xff] }
 0x513   : > { %v13751_v62 = vadd.f32 %v4941_v46, %v4057_v5  ;;  %10790 = vmatmul.msk.f32.vlgmr.msra.gmra.mxu2 %vm403_vm1, %v10660_v9  ;;  %v10919_v5 = vld [vmem:[%s11509_s24 + $0x59] sm:$0xff] }
 0x514   : > { %11048 = vmatmul.msk.f32.vlgmr.msra.gmra.mxu3 %vm403_vm1, %v10918_v51  ;;  %v13763_v9 = vld [vmem:[%s11509_s24 + $0x5a] sm:$0xff] }
 0x515   : > { %15784 = vst [vmem:[#allocation19_spill] sm:$0xff] %v13751_v62  ;;  %11306 = vmatmul.msk.f32.vlgmr.msra.gmra.mxu0 %vm403_vm1, %v13749_v33  ;;  %v10404_v62 = vld [vmem:[%s11509_s24 + $0x3a] sm:$0xff] }
 0x516   : > { %v2851_v44 = vpop.f32.mrf.mxu2 }
 0x517   : > { %v3011_v59 = vadd.f32 %v2851_v44, %v1934_v3  ;;  %v3898_v26 = vpop.f32.mrf.mxu3  ;;  %v1936_v13 = vpop.f32.mrf.mxu1 }
 0x518   : > { %v1937_v54 = vadd.f32 %v1936_v13, %v15787_v22  ;;  %v15789_v13 = vld [vmem:[#allocation55_spill] sm:$0xff] }
 0x519   : > { %v4058_v46 = vadd.f32 %v3898_v26, %v3011_v59 }
 0x51a   : > { %v4947_v20 = vpop.f32.mrf.mxu0  ;;  %10533 = vmatmul.msk.f32.gmra.mxu1 %vm403_vm1, %v10403_v25 }
 0x51b   : > { %v13765_v51 = vadd.f32 %v4944_v55, %v4058_v46  ;;  %10791 = vmatmul.msk.f32.gmra.mxu2 %vm403_vm1, %v10661_v28  ;;  %v10920_v46 = vld [vmem:[%s11509_s24 + $0x61] sm:$0xff] }
 0x51c   : > { %11049 = vmatmul.msk.f32.gmra.mxu3 %vm403_vm1, %v10919_v5  ;;  %v13777_v28 = vld [vmem:[%s11509_s24 + $0x62] sm:$0xff] }
 0x51d   : > { %15786 = vst [vmem:[#allocation22_spill] sm:$0xff] %v13765_v51  ;;  %11307 = vmatmul.msk.f32.gmra.mxu0 %vm403_vm1, %v13763_v9  ;;  %v10405_v51 = vld [vmem:[%s11509_s24 + $0x42] sm:$0xff] }
 0x51e   : > { %v2854_v3 = vpop.f32.mrf.mxu2 }
 0x51f   : > { %v3012_v44 = vadd.f32 %v2854_v3, %v1937_v54  ;;  %v3901_v59 = vpop.f32.mrf.mxu3  ;;  %v1939_v26 = vpop.f32.mrf.mxu1 }
 0x520   : > { %v1940_v22 = vadd.f32 %v1939_v26, %v15789_v13  ;;  %v15791_v26 = vld [vmem:[#allocation58_spill] sm:$0xff] }
 0x521   : > { %v4059_v55 = vadd.f32 %v3901_v59, %v3012_v44 }
 0x522   : > { %v4950_v25 = vpop.f32.mrf.mxu0  ;;  %10534 = vmatmul.msk.f32.gmra.mxu1 %vm403_vm1, %v10404_v62 }
 0x523   : > { %v13779_v5 = vadd.f32 %v4947_v20, %v4059_v55  ;;  %10792 = vmatmul.msk.f32.gmra.mxu2 %vm403_vm1, %v10662_v30  ;;  %v10921_v55 = vld [vmem:[%s11509_s24 + $0x69] sm:$0xff] }
 0x524   : > { %11050 = vmatmul.msk.f32.gmra.mxu3 %vm403_vm1, %v10920_v46  ;;  %v11179_v30 = vld [vmem:[%s11509_s24 + $0x6a] sm:$0xff] }
 0x525   : > { %15788 = vst [vmem:[#allocation25_spill] sm:$0xff] %v13779_v5  ;;  %11308 = vmatmul.msk.f32.gmra.mxu0 %vm403_vm1, %v13777_v28 }
 0x526   : > { %v2857_v54 = vpop.f32.mrf.mxu2 }
 0x527   : > { %v3013_v3 = vadd.f32 %v2857_v54, %v1940_v22  ;;  %v3904_v44 = vpop.f32.mrf.mxu3  ;;  %v1942_v59 = vpop.f32.mrf.mxu1 }
 0x528   : > { %v1943_v46 = vadd.f32 %v1942_v59, %v15791_v26 }
 0x529   : > { %v4060_v20 = vadd.f32 %v3904_v44, %v3013_v3  ;;  %v10664_v44 = vld [vmem:[%s11509_s24 + $0x78] sm:$0xff] }
 0x52a   : > { %v4953_v62 = vpop.f32.mrf.mxu0  ;;  %10535 = vmatmul.msk.f32.gmra.mxu1 %vm403_vm1, %v10405_v51  ;;  %v11180_v51 = vld [vmem:[%s11509_s24 + $0x7a] sm:$0xff] }
 0x52b   : > { %v13791_v5 = vadd.f32 %v4950_v25, %v4060_v20  ;;  %10793 = vmatmul.msk.f32.gmra.mxu2 %vm403_vm1, %v10663_v37  ;;  %v10922_v25 = vld [vmem:[%s11509_s24 + $0x79] sm:$0xff] }
 0x52c   : > { %11051 = vmatmul.msk.f32.gmra.mxu3 %vm403_vm1, %v10921_v55  ;;  %v15793_v37 = vld [vmem:[#allocation61_spill] sm:$0xff] }
 0x52d   : > { %15790 = vst [vmem:[#allocation28_spill] sm:$0xff] %v13791_v5  ;;  %11309 = vmatmul.msk.f32.gmra.mxu0 %vm403_vm1, %v11179_v30 }
 0x52e   : > { %v2860_v13 = vpop.f32.mrf.mxu2 }
 0x52f   : > { %v3014_v22 = vadd.f32 %v2860_v13, %v1943_v46  ;;  %v3907_v54 = vpop.f32.mrf.mxu3  ;;  %v1945_v3 = vpop.f32.mrf.mxu1 }
 0x530   : > { %v1946_v59 = vadd.f32 %v1945_v3, %v15793_v37  ;;  %v15795_v3 = vld [vmem:[#allocation64_spill] sm:$0xff] }
 0x531   : > { %v4061_v21 = vadd.f32 %v3907_v54, %v3014_v22  ;;  %v10665_v22 = vld [vmem:[%s11509_s24 + $0x80] sm:$0xff] }
 0x532   : > { %v4956_v20 = vpop.f32.mrf.mxu0  ;;  %10536 = vmatmul.msk.f32.gmra.mxu1 %vm403_vm1, %v13749_v33  ;;  %v11181_v33 = vld [vmem:[%s11509_s24 + $0x82] sm:$0xff] }
 0x533   : > { %v13801_v5 = vadd.f32 %v4953_v62, %v4061_v21  ;;  %10794 = vmatmul.msk.f32.gmra.mxu2 %vm403_vm1, %v10664_v44  ;;  %v10923_v21 = vld [vmem:[%s11509_s24 + $0x81] sm:$0xff] }
 0x534   : > { %11052 = vmatmul.msk.f32.gmra.mxu3 %vm403_vm1, %v10922_v25 }
 0x535   : > { %15792 = vst [vmem:[#allocation31_spill] sm:$0xff] %v13801_v5  ;;  %11310 = vmatmul.msk.f32.gmra.mxu0 %vm403_vm1, %v11180_v51 }
 0x536   : > { %v2863_v55 = vpop.f32.mrf.mxu2 }
 0x537   : > { %v3015_v26 = vadd.f32 %v2863_v55, %v1946_v59  ;;  %v3910_v46 = vpop.f32.mrf.mxu3  ;;  %v1948_v13 = vpop.f32.mrf.mxu1 }
 0x538   : > { %v1949_v44 = vadd.f32 %v1948_v13, %v15795_v3  ;;  %v15797_v13 = vld [vmem:[#allocation67_spill] sm:$0xff] }
 0x539   : > { %v4062_v54 = vadd.f32 %v3910_v46, %v3015_v26  ;;  %v10666_v26 = vld [vmem:[%s11509_s24 + $0x88] sm:$0xff] }
 0x53a   : > { %v4959_v62 = vpop.f32.mrf.mxu0  ;;  %10537 = vmatmul.msk.f32.gmra.mxu1 %vm403_vm1, %v13763_v9  ;;  %v11182_v9 = vld [vmem:[%s11509_s24 + $0x8a] sm:$0xff] }
 0x53b   : > { %v13812_v5 = vadd.f32 %v4956_v20, %v4062_v54  ;;  %10795 = vmatmul.msk.f32.gmra.mxu2 %vm403_vm1, %v10665_v22  ;;  %v10924_v20 = vld [vmem:[%s11509_s24 + $0x89] sm:$0xff] }
 0x53c   : > { %11053 = vmatmul.msk.f32.gmra.mxu3 %vm403_vm1, %v10923_v21 }
 0x53d   : > { %15794 = vst [vmem:[#allocation34_spill] sm:$0xff] %v13812_v5  ;;  %11311 = vmatmul.msk.f32.gmra.mxu0 %vm403_vm1, %v11181_v33 }
 0x53e   : > { %v2866_v25 = vpop.f32.mrf.mxu2 }
 0x53f   : > { %v3016_v37 = vadd.f32 %v2866_v25, %v1949_v44  ;;  %v3913_v59 = vpop.f32.mrf.mxu3  ;;  %v1951_v55 = vpop.f32.mrf.mxu1 }
 0x540   : > { %v1952_v22 = vadd.f32 %v1951_v55, %v15797_v13  ;;  %v15799_v55 = vld [vmem:[#allocation70_spill] sm:$0xff] }
 0x541   : > { %v4063_v46 = vadd.f32 %v3913_v59, %v3016_v37  ;;  %v10667_v37 = vld [vmem:[%s11509_s24 + $0x90] sm:$0xff] }
 0x542   : > { %v4962_v54 = vpop.f32.mrf.mxu0  ;;  %10538 = vmatmul.msk.f32.gmra.mxu1 %vm403_vm1, %v13777_v28  ;;  %v11183_v28 = vld [vmem:[%s11509_s24 + $0x92] sm:$0xff] }
 0x543   : > { %v13823_v5 = vadd.f32 %v4959_v62, %v4063_v46  ;;  %10796 = vmatmul.msk.f32.gmra.mxu2 %vm403_vm1, %v10666_v26  ;;  %v10925_v62 = vld [vmem:[%s11509_s24 + $0x91] sm:$0xff] }
 0x544   : > { %11054 = vmatmul.msk.f32.gmra.mxu3 %vm403_vm1, %v10924_v20 }
 0x545   : > { %15796 = vst [vmem:[#allocation37_spill] sm:$0xff] %v13823_v5  ;;  %11312 = vmatmul.msk.f32.gmra.mxu0 %vm403_vm1, %v11182_v9 }
 0x546   : > { %v2869_v21 = vpop.f32.mrf.mxu2 }
 0x547   : > { %v3017_v3 = vadd.f32 %v2869_v21, %v1952_v22  ;;  %v3916_v44 = vpop.f32.mrf.mxu3  ;;  %v1954_v25 = vpop.f32.mrf.mxu1 }
 0x548   : > { %v1955_v26 = vadd.f32 %v1954_v25, %v15799_v55  ;;  %v15801_v25 = vld [vmem:[#allocation73_spill] sm:$0xff] }
 0x549   : > { %v4064_v59 = vadd.f32 %v3916_v44, %v3017_v3  ;;  %v10668_v3 = vld [vmem:[%s11509_s24 + $0xa0] sm:$0xff] }
 0x54a   : > { %v4965_v46 = vpop.f32.mrf.mxu0  ;;  %10539 = vmatmul.msk.f32.gmra.mxu1 %vm403_vm1, %v11179_v30  ;;  %v11184_v30 = vld [vmem:[%s11509_s24 + $0xa2] sm:$0xff] }
 0x54b   : > { %v13834_v5 = vadd.f32 %v4962_v54, %v4064_v59  ;;  %10797 = vmatmul.msk.f32.gmra.mxu2 %vm403_vm1, %v10667_v37  ;;  %v10926_v54 = vld [vmem:[%s11509_s24 + $0xa1] sm:$0xff] }
 0x54c   : > { %11055 = vmatmul.msk.f32.gmra.mxu3 %vm403_vm1, %v10925_v62 }
 0x54d   : > { %15798 = vst [vmem:[#allocation40_spill] sm:$0xff] %v13834_v5  ;;  %11313 = vmatmul.msk.f32.gmra.mxu0 %vm403_vm1, %v11183_v28 }
 0x54e   : > { %v2872_v20 = vpop.f32.mrf.mxu2 }
 0x54f   : > { %v3018_v13 = vadd.f32 %v2872_v20, %v1955_v26  ;;  %v3919_v22 = vpop.f32.mrf.mxu3  ;;  %v1957_v21 = vpop.f32.mrf.mxu1 }
 0x550   : > { %v1958_v37 = vadd.f32 %v1957_v21, %v15801_v25  ;;  %v15803_v21 = vld [vmem:[#allocation76_spill] sm:$0xff] }
 0x551   : > { %v4065_v44 = vadd.f32 %v3919_v22, %v3018_v13  ;;  %v10669_v13 = vld [vmem:[%s11509_s24 + $0xa8] sm:$0xff] }
 0x552   : > { %v4968_v59 = vpop.f32.mrf.mxu0  ;;  %10540 = vmatmul.msk.f32.gmra.mxu1 %vm403_vm1, %v11180_v51  ;;  %v11185_v51 = vld [vmem:[%s11509_s24 + $0xaa] sm:$0xff] }
 0x553   : > { %v13844_v5 = vadd.f32 %v4965_v46, %v4065_v44  ;;  %10798 = vmatmul.msk.f32.gmra.mxu2 %vm403_vm1, %v10668_v3  ;;  %v10927_v46 = vld [vmem:[%s11509_s24 + $0xa9] sm:$0xff] }
 0x554   : > { %11056 = vmatmul.msk.f32.gmra.mxu3 %vm403_vm1, %v10926_v54 }
 0x555   : > { %15800 = vst [vmem:[#allocation43_spill] sm:$0xff] %v13844_v5  ;;  %11314 = vmatmul.msk.f32.gmra.mxu0 %vm403_vm1, %v11184_v30 }
 0x556   : > { %v2875_v62 = vpop.f32.mrf.mxu2 }
 0x557   : > { %v3019_v55 = vadd.f32 %v2875_v62, %v1958_v37  ;;  %v3922_v26 = vpop.f32.mrf.mxu3  ;;  %v1960_v20 = vpop.f32.mrf.mxu1 }
 0x558   : > { %v1961_v3 = vadd.f32 %v1960_v20, %v15803_v21  ;;  %v15805_v20 = vld [vmem:[#allocation79_spill] sm:$0xff] }
 0x559   : > { %v4066_v22 = vadd.f32 %v3922_v26, %v3019_v55  ;;  %v10670_v55 = vld [vmem:[%s11509_s24 + $0xb0] sm:$0xff] }
 0x55a   : > { %v4971_v44 = vpop.f32.mrf.mxu0  ;;  %10541 = vmatmul.msk.f32.gmra.mxu1 %vm403_vm1, %v11181_v33  ;;  %v11186_v33 = vld [vmem:[%s11509_s24 + $0xb2] sm:$0xff] }
 0x55b   : > { %v13854_v5 = vadd.f32 %v4968_v59, %v4066_v22  ;;  %10799 = vmatmul.msk.f32.gmra.mxu2 %vm403_vm1, %v10669_v13  ;;  %v10928_v59 = vld [vmem:[%s11509_s24 + $0xb1] sm:$0xff] }
 0x55c   : > { %11057 = vmatmul.msk.f32.gmra.mxu3 %vm403_vm1, %v10927_v46 }
 0x55d   : > { %15802 = vst [vmem:[#allocation46_spill] sm:$0xff] %v13854_v5  ;;  %11315 = vmatmul.msk.f32.gmra.mxu0 %vm403_vm1, %v11185_v51 }
 0x55e   : > { %v2878_v54 = vpop.f32.mrf.mxu2 }
 0x55f   : > { %v3020_v25 = vadd.f32 %v2878_v54, %v1961_v3  ;;  %v3925_v37 = vpop.f32.mrf.mxu3  ;;  %v1963_v62 = vpop.f32.mrf.mxu1 }
 0x560   : > { %v1964_v13 = vadd.f32 %v1963_v62, %v15805_v20  ;;  %v15807_v62 = vld [vmem:[#allocation82_spill] sm:$0xff] }
 0x561   : > { %v4067_v26 = vadd.f32 %v3925_v37, %v3020_v25  ;;  %v10671_v25 = vld [vmem:[%s11509_s24 + $0xb8] sm:$0xff] }
 0x562   : > { %v4974_v22 = vpop.f32.mrf.mxu0  ;;  %10542 = vmatmul.msk.f32.gmra.mxu1 %vm403_vm1, %v11182_v9  ;;  %v11187_v9 = vld [vmem:[%s11509_s24 + $0xba] sm:$0xff] }
 0x563   : > { %v13864_v5 = vadd.f32 %v4971_v44, %v4067_v26  ;;  %10800 = vmatmul.msk.f32.gmra.mxu2 %vm403_vm1, %v10670_v55  ;;  %v10929_v44 = vld [vmem:[%s11509_s24 + $0xb9] sm:$0xff] }
 0x564   : > { %11058 = vmatmul.msk.f32.gmra.mxu3 %vm403_vm1, %v10928_v59 }
 0x565   : > { %15804 = vst [vmem:[#allocation49_spill] sm:$0xff] %v13864_v5  ;;  %11316 = vmatmul.msk.f32.gmra.mxu0 %vm403_vm1, %v11186_v33 }
 0x566   : > { %v2881_v46 = vpop.f32.mrf.mxu2 }
 0x567   : > { %v3021_v21 = vadd.f32 %v2881_v46, %v1964_v13  ;;  %v3928_v3 = vpop.f32.mrf.mxu3  ;;  %v1966_v54 = vpop.f32.mrf.mxu1 }
 0x568   : > { %v1967_v55 = vadd.f32 %v1966_v54, %v15807_v62  ;;  %v15809_v54 = vld [vmem:[#allocation85_spill] sm:$0xff] }
 0x569   : > { %v4068_v37 = vadd.f32 %v3928_v3, %v3021_v21  ;;  %v10672_v21 = vld [vmem:[%s11509_s24 + $0xc8] sm:$0xff] }
 0x56a   : > { %v4977_v26 = vpop.f32.mrf.mxu0  ;;  %10543 = vmatmul.msk.f32.gmra.mxu1 %vm403_vm1, %v11183_v28  ;;  %v11188_v28 = vld [vmem:[%s11509_s24 + $0xca] sm:$0xff] }
 0x56b   : > { %v13874_v5 = vadd.f32 %v4974_v22, %v4068_v37  ;;  %10801 = vmatmul.msk.f32.gmra.mxu2 %vm403_vm1, %v10671_v25  ;;  %v10930_v22 = vld [vmem:[%s11509_s24 + $0xc9] sm:$0xff] }
 0x56c   : > { %11059 = vmatmul.msk.f32.gmra.mxu3 %vm403_vm1, %v10929_v44 }
 0x56d   : > { %15806 = vst [vmem:[#allocation52_spill] sm:$0xff] %v13874_v5  ;;  %11317 = vmatmul.msk.f32.gmra.mxu0 %vm403_vm1, %v11187_v9 }
 0x56e   : > { %v2884_v59 = vpop.f32.mrf.mxu2 }
 0x56f   : > { %v3022_v20 = vadd.f32 %v2884_v59, %v1967_v55  ;;  %v3931_v13 = vpop.f32.mrf.mxu3  ;;  %v1969_v46 = vpop.f32.mrf.mxu1 }
 0x570   : > { %v1970_v25 = vadd.f32 %v1969_v46, %v15809_v54  ;;  %v15811_v46 = vld [vmem:[#allocation88_spill] sm:$0xff] }
 0x571   : > { %v4069_v3 = vadd.f32 %v3931_v13, %v3022_v20  ;;  %v10673_v20 = vld [vmem:[%s11509_s24 + $0xd0] sm:$0xff] }
 0x572   : > { %v4980_v37 = vpop.f32.mrf.mxu0  ;;  %10544 = vmatmul.msk.f32.gmra.mxu1 %vm403_vm1, %v11184_v30  ;;  %v13894_v30 = vld [vmem:[%s11509_s24 + $0xd2] sm:$0xff] }
 0x573   : > { %v13884_v5 = vadd.f32 %v4977_v26, %v4069_v3  ;;  %10802 = vmatmul.msk.f32.gmra.mxu2 %vm403_vm1, %v10672_v21  ;;  %v10931_v26 = vld [vmem:[%s11509_s24 + $0xd1] sm:$0xff] }
 0x574   : > { %11060 = vmatmul.msk.f32.gmra.mxu3 %vm403_vm1, %v10930_v22 }
 0x575   : > { %15808 = vst [vmem:[#allocation55_spill] sm:$0xff] %v13884_v5  ;;  %11318 = vmatmul.msk.f32.gmra.mxu0 %vm403_vm1, %v11188_v28 }
 0x576   : > { %v2887_v44 = vpop.f32.mrf.mxu2 }
 0x577   : > { %v3023_v62 = vadd.f32 %v2887_v44, %v1970_v25  ;;  %v3934_v55 = vpop.f32.mrf.mxu3  ;;  %v1972_v59 = vpop.f32.mrf.mxu1 }
 0x578   : > { %v1973_v22 = vadd.f32 %v1972_v59, %v15811_v46  ;;  %v15812_v59 = vld [vmem:[#allocation91_spill] sm:$0xff] }
 0x579   : > { %v4070_v13 = vadd.f32 %v3934_v55, %v3023_v62  ;;  %v10674_v55 = vld [vmem:[%s11509_s24 + $0xd8] sm:$0xff] }
 0x57a   : > { %v4983_v3 = vpop.f32.mrf.mxu0  ;;  %10545 = vmatmul.msk.f32.gmra.mxu1 %vm403_vm1, %v11185_v51  ;;  %v13907_v51 = vld [vmem:[%s11509_s24 + $0xda] sm:$0xff] }
 0x57b   : > { %v13896_v21 = vadd.f32 %v4980_v37, %v4070_v13  ;;  %10803 = vmatmul.msk.f32.gmra.mxu2 %vm403_vm1, %v10673_v20  ;;  %v10932_v37 = vld [vmem:[%s11509_s24 + $0xd9] sm:$0xff] }
 0x57c   : > { %11061 = vmatmul.msk.f32.gmra.mxu3 %vm403_vm1, %v10931_v26 }
 0x57d   : > { %15810 = vst [vmem:[#allocation58_spill] sm:$0xff] %v13896_v21  ;;  %11319 = vmatmul.msk.f32.gmra.mxu0 %vm403_vm1, %v13894_v30 }
 0x57e   : > { %v2890_v54 = vpop.f32.mrf.mxu2 }
 0x57f   : > { %v3024_v25 = vadd.f32 %v2890_v54, %v1973_v22  ;;  %v3937_v44 = vpop.f32.mrf.mxu3  ;;  %v1975_v62 = vpop.f32.mrf.mxu1 }
 0x580   : > { %v1976_v26 = vadd.f32 %v1975_v62, %v15812_v59  ;;  %v15814_v62 = vld [vmem:[#allocation94_spill] sm:$0xff] }
 0x581   : > { %v4071_v5 = vadd.f32 %v3937_v44, %v3024_v25  ;;  %v10675_v44 = vld [vmem:[%s11509_s24 + $0xe0] sm:$0xff] }
 0x582   : > { %v4986_v13 = vpop.f32.mrf.mxu0  ;;  %10546 = vmatmul.msk.f32.gmra.mxu1 %vm403_vm1, %v11186_v33  ;;  %v13920_v33 = vld [vmem:[%s11509_s24 + $0xe2] sm:$0xff] }
 0x583   : > { %v13909_v20 = vadd.f32 %v4983_v3, %v4071_v5  ;;  %10804 = vmatmul.msk.f32.gmra.mxu2 %vm403_vm1, %v10674_v55  ;;  %v10933_v5 = vld [vmem:[%s11509_s24 + $0xe1] sm:$0xff] }
 0x584   : > { %11062 = vmatmul.msk.f32.gmra.mxu3 %vm403_vm1, %v10932_v37 }
 0x585   : > { %11320 = vmatmul.msk.f32.gmra.mxu0 %vm403_vm1, %v13907_v51 }
 0x586   : > { %v2893_v46 = vpop.f32.mrf.mxu2 }
 0x587   : > { %v3025_v22 = vadd.f32 %v2893_v46, %v1976_v26  ;;  %v3940_v54 = vpop.f32.mrf.mxu3  ;;  %v1978_v25 = vpop.f32.mrf.mxu1 }
 0x588   : > { %v1979_v37 = vadd.f32 %v1978_v25, %v15814_v62 }
 0x589   : > { %v4072_v21 = vadd.f32 %v3940_v54, %v3025_v22  ;;  %v10676_v54 = vld [vmem:[%s11509_s24 + $0xf0] sm:$0xff] }
 0x58a   : > { %v4989_v3 = vpop.f32.mrf.mxu0  ;;  %10547 = vmatmul.msk.f32.gmra.mxu1 %vm403_vm1, %v11187_v9 }
 0x58b   : > { %v13922_v55 = vadd.f32 %v4986_v13, %v4072_v21  ;;  %10805 = vmatmul.msk.f32.gmra.mxu2 %vm403_vm1, %v10675_v44  ;;  %v10934_v13 = vld [vmem:[%s11509_s24 + $0xf1] sm:$0xff] }
 0x58c   : > { %11063 = vmatmul.msk.f32.gmra.mxu3 %vm403_vm1, %v10933_v5 }
 0x58d   : > { %15813 = vst [vmem:[#allocation61_spill] sm:$0xff] %v13922_v55  ;;  %11321 = vmatmul.msk.f32.gmra.mxu0 %vm403_vm1, %v13920_v33  ;;  %v13933_v55 = vld [vmem:[%s11509_s24 + $0xf2] sm:$0xff] }
 0x58e   : > { %v2896_v59 = vpop.f32.mrf.mxu2 }
 0x58f   : > { %v3026_v26 = vadd.f32 %v2896_v59, %v1979_v37  ;;  %v3943_v46 = vpop.f32.mrf.mxu3  ;;  %v5654_v22 = vpop.f32.mrf.mxu1 }
 0x590   : > { %v6038_v25 = vadd.f32 %v5654_v22, %v12249_v60 }
 0x591   : > { %v4073_v21 = vadd.f32 %v3943_v46, %v3026_v26  ;;  %v10677_v26 = vld [vmem:[%s11509_s24 + $0xf8] sm:$0xff] }
 0x592   : > { %v8793_v9 = vpop.f32.mrf.mxu0  ;;  %10548 = vmatmul.msk.f32.gmra.mxu1 %vm403_vm1, %v11188_v28  ;;  %v13947_v28 = vld [vmem:[%s11509_s24 + $0xfa] sm:$0xff] }
 0x593   : > { %v13935_v44 = vadd.f32 %v4989_v3, %v4073_v21  ;;  %10806 = vmatmul.msk.f32.gmra.mxu2 %vm403_vm1, %v10676_v54  ;;  %v10935_v3 = vld [vmem:[%s11509_s24 + $0xf9] sm:$0xff] }
 0x594   : > { %11064 = vmatmul.msk.f32.gmra.mxu3 %vm403_vm1, %v10934_v13 }
 0x595   : > { %11322 = vmatmul.msk.f32.gmra.mxu0 %vm403_vm1, %v13933_v55 }
 0x596   : > { %v6701_v5 = vpop.f32.mrf.mxu2 }
 0x597   : > { %v7085_v62 = vadd.f32 %v6701_v5, %v6038_v25  ;;  %v7747_v37 = vpop.f32.mrf.mxu3  ;;  %v5657_v59 = vpop.f32.mrf.mxu1 }
 0x598   : > { %v6039_v22 = vadd.f32 %v5657_v59, %v12259_v0 }
 0x599   : > { %v8131_v46 = vadd.f32 %v7747_v37, %v7085_v62 }
 0x59a   : > { %v8796_v21 = vpop.f32.mrf.mxu0  ;;  %10549 = vmatmul.msk.f32.gmra.mxu1 %vm403_vm1, %v13894_v30  ;;  %v10936_v30 = vld [vmem:[%s11509_s24 + $0x101] sm:$0xff] }
 0x59b   : > { %v9177_v60 = vadd.f32 %v8793_v9, %v8131_v46  ;;  %10807 = vmatmul.msk.f32.gmra.mxu2 %vm403_vm1, %v10677_v26  ;;  %v10678_v9 = vld [vmem:[%s11509_s24 + $0x100] sm:$0xff] }
 0x59c   : > { %11065 = vmatmul.msk.f32.gmra.mxu3 %vm403_vm1, %v10935_v3  ;;  %v13966_v26 = vld [vmem:[%s11509_s24 + $0x102] sm:$0xff] }
 0x59d   : > { %11323 = vmatmul.msk.f32.gmra.mxu0 %vm403_vm1, %v13947_v28  ;;  %9306 = vst.msk [vmem:[%s13952_s8] sm:$0xff] %vm9305_vm2, %v9177_v60 }
 0x59e   : > { %v6704_v54 = vpop.f32.mrf.mxu2 }
 0x59f   : > { %v7086_v13 = vadd.f32 %v6704_v54, %v6039_v22  ;;  %v7750_v25 = vpop.f32.mrf.mxu3  ;;  %v5660_v5 = vpop.f32.mrf.mxu1 }
 0x5a0   : > { %v6040_v0 = vadd.f32 %v5660_v5, %v12269_v4 }
 0x5a1   : > { %v8132_v62 = vadd.f32 %v7750_v25, %v7086_v13  ;;  %v13980_v25 = vld [vmem:[%s11509_s24 + $0x10a] sm:$0xff] }
 0x5a2   : > { %v8799_v37 = vpop.f32.mrf.mxu0  ;;  %10550 = vmatmul.msk.f32.gmra.mxu1 %vm403_vm1, %v13907_v51  ;;  %v10937_v51 = vld [vmem:[%s11509_s24 + $0x109] sm:$0xff] }
 0x5a3   : > { %v9178_v46 = vadd.f32 %v8796_v21, %v8132_v62  ;;  %10808 = vmatmul.msk.f32.gmra.mxu2 %vm403_vm1, %v10678_v9  ;;  %v10679_v21 = vld [vmem:[%s11509_s24 + $0x108] sm:$0xff] }
 0x5a4   : > { %11066 = vmatmul.msk.f32.gmra.mxu3 %vm403_vm1, %v10936_v30 }
 0x5a5   : > { %11324 = vmatmul.msk.f32.gmra.mxu0 %vm403_vm1, %v13966_v26  ;;  %9307 = vst.msk [vmem:[%s13952_s8 + $0x8] sm:$0xff] %vm9305_vm2, %v9178_v46 }
 0x5a6   : > { %v6707_v59 = vpop.f32.mrf.mxu2 }
 0x5a7   : > { %v7087_v3 = vadd.f32 %v6707_v59, %v6040_v0  ;;  %v7753_v60 = vpop.f32.mrf.mxu3  ;;  %v5663_v22 = vpop.f32.mrf.mxu1 }
 0x5a8   : > { %v6041_v4 = vadd.f32 %v5663_v22, %v12279_v10 }
 0x5a9   : > { %v8133_v54 = vadd.f32 %v7753_v60, %v7087_v3  ;;  %v13994_v3 = vld [vmem:[%s11509_s24 + $0x11a] sm:$0xff] }
 0x5aa   : > { %v8802_v13 = vpop.f32.mrf.mxu0  ;;  %10551 = vmatmul.msk.f32.gmra.mxu1 %vm403_vm1, %v13920_v33  ;;  %v10938_v33 = vld [vmem:[%s11509_s24 + $0x119] sm:$0xff] }
 0x5ab   : > { %v9179_v9 = vadd.f32 %v8799_v37, %v8133_v54  ;;  %10809 = vmatmul.msk.f32.gmra.mxu2 %vm403_vm1, %v10679_v21  ;;  %v10680_v37 = vld [vmem:[%s11509_s24 + $0x118] sm:$0xff] }
 0x5ac   : > { %11067 = vmatmul.msk.f32.gmra.mxu3 %vm403_vm1, %v10937_v51 }
 0x5ad   : > { %11325 = vmatmul.msk.f32.gmra.mxu0 %vm403_vm1, %v13980_v25  ;;  %9308 = vst.msk [vmem:[%s13952_s8 + $0x10] sm:$0xff] %vm9305_vm2, %v9179_v9 }
 0x5ae   : > { %v6710_v5 = vpop.f32.mrf.mxu2 }
 0x5af   : > { %v7088_v62 = vadd.f32 %v6710_v5, %v6041_v4  ;;  %v7756_v30 = vpop.f32.mrf.mxu3  ;;  %v5666_v46 = vpop.f32.mrf.mxu1  ;;  %v14008_v5 = vld [vmem:[%s11509_s24 + $0x122] sm:$0xff] }
 0x5b0   : > { %v6042_v10 = vadd.f32 %v5666_v46, %v12289_v18 }
 0x5b1   : > { %v8134_v0 = vadd.f32 %v7756_v30, %v7088_v62 }
 0x5b2   : > { %v8805_v59 = vpop.f32.mrf.mxu0  ;;  %10552 = vmatmul.msk.f32.gmra.mxu1 %vm403_vm1, %v13933_v55  ;;  %v10939_v55 = vld [vmem:[%s11509_s24 + $0x121] sm:$0xff] }
 0x5b3   : > { %v9180_v60 = vadd.f32 %v8802_v13, %v8134_v0  ;;  %10810 = vmatmul.msk.f32.gmra.mxu2 %vm403_vm1, %v10680_v37  ;;  %v10681_v13 = vld [vmem:[%s11509_s24 + $0x120] sm:$0xff] }
 0x5b4   : > { %11068 = vmatmul.msk.f32.gmra.mxu3 %vm403_vm1, %v10938_v33  ;;  %v10682_v33 = vld [vmem:[%s11509_s24 + $0x128] sm:$0xff] }
 0x5b5   : > { %11326 = vmatmul.msk.f32.gmra.mxu0 %vm403_vm1, %v13994_v3  ;;  %9309 = vst.msk [vmem:[%s13952_s8 + $0x18] sm:$0xff] %vm9305_vm2, %v9180_v60 }
 0x5b6   : > { %v6713_v22 = vpop.f32.mrf.mxu2 }
 0x5b7   : > { %v7089_v21 = vadd.f32 %v6713_v22, %v6042_v10  ;;  %v7759_v54 = vpop.f32.mrf.mxu3  ;;  %v5669_v51 = vpop.f32.mrf.mxu1  ;;  %v14022_v10 = vld [vmem:[%s11509_s24 + $0x12a] sm:$0xff] }
 0x5b8   : > { %v6043_v18 = vadd.f32 %v5669_v51, %v12299_v42 }
 0x5b9   : > { %v8135_v9 = vadd.f32 %v7759_v54, %v7089_v21 }
 0x5ba   : > { %v8808_v4 = vpop.f32.mrf.mxu0  ;;  %10553 = vmatmul.msk.f32.gmra.mxu1 %vm403_vm1, %v13947_v28  ;;  %v10940_v28 = vld [vmem:[%s11509_s24 + $0x129] sm:$0xff] }
 0x5bb   : > { %v9181_v62 = vadd.f32 %v8805_v59, %v8135_v9  ;;  %10811 = vmatmul.msk.f32.gmra.mxu2 %vm403_vm1, %v10681_v13  ;;  %v10683_v9 = vld [vmem:[%s11509_s24 + $0x130] sm:$0xff] }
 0x5bc   : > { %11069 = vmatmul.msk.f32.gmra.mxu3 %vm403_vm1, %v10939_v55 }
 0x5bd   : > { %11327 = vmatmul.msk.f32.gmra.mxu0 %vm403_vm1, %v14008_v5  ;;  %9310 = vst.msk [vmem:[%s13952_s8 + $0x20] sm:$0xff] %vm9305_vm2, %v9181_v62  ;;  %v14036_v62 = vld [vmem:[%s11509_s24 + $0x132] sm:$0xff] }
 0x5be   : > { %v6716_v30 = vpop.f32.mrf.mxu2 }
 0x5bf   : > { %v7090_v46 = vadd.f32 %v6716_v30, %v6043_v18  ;;  %v7762_v37 = vpop.f32.mrf.mxu3  ;;  %v5672_v0 = vpop.f32.mrf.mxu1 }
 0x5c0   : > { %v6044_v42 = vadd.f32 %v5672_v0, %v12309_v36 }
 0x5c1   : > { %v8136_v59 = vadd.f32 %v7762_v37, %v7090_v46 }
 0x5c2   : > { %v8811_v60 = vpop.f32.mrf.mxu0  ;;  %10554 = vmatmul.msk.f32.gmra.mxu1 %vm403_vm1, %v13966_v26  ;;  %v10941_v26 = vld [vmem:[%s11509_s24 + $0x131] sm:$0xff] }
 0x5c3   : > { %v9182_v22 = vadd.f32 %v8808_v4, %v8136_v59  ;;  %10812 = vmatmul.msk.f32.gmra.mxu2 %vm403_vm1, %v10682_v33  ;;  %v10684_v33 = vld [vmem:[%s11509_s24 + $0x140] sm:$0xff] }
 0x5c4   : > { %11070 = vmatmul.msk.f32.gmra.mxu3 %vm403_vm1, %v10940_v28 }
 0x5c5   : > { %11328 = vmatmul.msk.f32.gmra.mxu0 %vm403_vm1, %v14022_v10  ;;  %9311 = vst.msk [vmem:[%s13952_s8 + $0x28] sm:$0xff] %vm9305_vm2, %v9182_v22 }
 0x5c6   : > { %v6719_v21 = vpop.f32.mrf.mxu2 }
 0x5c7   : > { %v7091_v54 = vadd.f32 %v6719_v21, %v6044_v42  ;;  %v7765_v51 = vpop.f32.mrf.mxu3  ;;  %v5675_v13 = vpop.f32.mrf.mxu1 }
 0x5c8   : > { %v6045_v36 = vadd.f32 %v5675_v13, %v12319_v49  ;;  %v10685_v13 = vld [vmem:[%s11509_s24 + $0x148] sm:$0xff] }
 0x5c9   : > { %v8137_v55 = vadd.f32 %v7765_v51, %v7091_v54 }
 0x5ca   : > { %v8814_v4 = vpop.f32.mrf.mxu0  ;;  %10555 = vmatmul.msk.f32.gmra.mxu1 %vm403_vm1, %v13980_v25  ;;  %v10942_v25 = vld [vmem:[%s11509_s24 + $0x141] sm:$0xff] }
 0x5cb   : > { %v9183_v18 = vadd.f32 %v8811_v60, %v8137_v55  ;;  %10813 = vmatmul.msk.f32.gmra.mxu2 %vm403_vm1, %v10683_v9  ;;  %v14050_v60 = vld [vmem:[%s11509_s24 + $0x142] sm:$0xff] }
 0x5cc   : > { %11071 = vmatmul.msk.f32.gmra.mxu3 %vm403_vm1, %v10941_v26  ;;  %v14064_v26 = vld [vmem:[%s11509_s24 + $0x14a] sm:$0xff] }
 0x5cd   : > { %11329 = vmatmul.msk.f32.gmra.mxu0 %vm403_vm1, %v14036_v62  ;;  %9312 = vst.msk [vmem:[%s13952_s8 + $0x30] sm:$0xff] %vm9305_vm2, %v9183_v18 }
 0x5ce   : > { %v6722_v30 = vpop.f32.mrf.mxu2 }
 0x5cf   : > { %v7092_v46 = vadd.f32 %v6722_v30, %v6045_v36  ;;  %v7768_v37 = vpop.f32.mrf.mxu3  ;;  %v5678_v0 = vpop.f32.mrf.mxu1 }
 0x5d0   : > { %v6046_v49 = vadd.f32 %v5678_v0, %v12329_v17 }
 0x5d1   : > { %v8138_v59 = vadd.f32 %v7768_v37, %v7092_v46  ;;  %v10686_v37 = vld [vmem:[%s11509_s24 + $0x150] sm:$0xff] }
 0x5d2   : > { %v8817_v28 = vpop.f32.mrf.mxu0  ;;  %10556 = vmatmul.msk.f32.gmra.mxu1 %vm403_vm1, %v13994_v3  ;;  %v10943_v3 = vld [vmem:[%s11509_s24 + $0x149] sm:$0xff] }
 0x5d3   : > { %v9184_v22 = vadd.f32 %v8814_v4, %v8138_v59  ;;  %10814 = vmatmul.msk.f32.gmra.mxu2 %vm403_vm1, %v10684_v33  ;;  %v14078_v59 = vld [vmem:[%s11509_s24 + $0x152] sm:$0xff] }
 0x5d4   : > { %11072 = vmatmul.msk.f32.gmra.mxu3 %vm403_vm1, %v10942_v25 }
 0x5d5   : > { %11330 = vmatmul.msk.f32.gmra.mxu0 %vm403_vm1, %v14050_v60  ;;  %9313 = vst.msk [vmem:[%s13952_s8 + $0x38] sm:$0xff] %vm9305_vm2, %v9184_v22 }
 0x5d6   : > { %v6725_v42 = vpop.f32.mrf.mxu2 }
 0x5d7   : > { %v7093_v21 = vadd.f32 %v6725_v42, %v6046_v49  ;;  %v7771_v54 = vpop.f32.mrf.mxu3  ;;  %v5681_v51 = vpop.f32.mrf.mxu1 }
 0x5d8   : > { %v6047_v17 = vadd.f32 %v5681_v51, %v12339_v48 }
 0x5d9   : > { %v8139_v9 = vadd.f32 %v7771_v54, %v7093_v21  ;;  %v10687_v21 = vld [vmem:[%s11509_s24 + $0x158] sm:$0xff] }
 0x5da   : > { %v8820_v55 = vpop.f32.mrf.mxu0  ;;  %10557 = vmatmul.msk.f32.gmra.mxu1 %vm403_vm1, %v14008_v5  ;;  %v10944_v5 = vld [vmem:[%s11509_s24 + $0x151] sm:$0xff] }
 0x5db   : > { %v9185_v4 = vadd.f32 %v8817_v28, %v8139_v9  ;;  %10815 = vmatmul.msk.f32.gmra.mxu2 %vm403_vm1, %v10685_v13  ;;  %v14092_v13 = vld [vmem:[%s11509_s24 + $0x15a] sm:$0xff] }
 0x5dc   : > { %11073 = vmatmul.msk.f32.gmra.mxu3 %vm403_vm1, %v10943_v3 }
 0x5dd   : > { %11331 = vmatmul.msk.f32.gmra.mxu0 %vm403_vm1, %v14064_v26  ;;  %9314 = vst.msk [vmem:[%s13952_s8 + $0x40] sm:$0xff] %vm9305_vm2, %v9185_v4 }
 0x5de   : > { %v6728_v18 = vpop.f32.mrf.mxu2 }
 0x5df   : > { %v7094_v36 = vadd.f32 %v6728_v18, %v6047_v17  ;;  %v7774_v30 = vpop.f32.mrf.mxu3  ;;  %v5684_v46 = vpop.f32.mrf.mxu1  ;;  %v10688_v18 = vld [vmem:[%s11509_s24 + $0x168] sm:$0xff] }
 0x5e0   : > { %v6048_v48 = vadd.f32 %v5684_v46, %v12351_v53  ;;  %v14106_v46 = vld [vmem:[%s11509_s24 + $0x16a] sm:$0xff] }
 0x5e1   : > { %v8140_v0 = vadd.f32 %v7774_v30, %v7094_v36 }
 0x5e2   : > { %v8823_v33 = vpop.f32.mrf.mxu0  ;;  %10558 = vmatmul.msk.f32.gmra.mxu1 %vm403_vm1, %v14022_v10  ;;  %v10945_v10 = vld [vmem:[%s11509_s24 + $0x159] sm:$0xff] }
 0x5e3   : > { %v9186_v25 = vadd.f32 %v8820_v55, %v8140_v0  ;;  %10816 = vmatmul.msk.f32.gmra.mxu2 %vm403_vm1, %v10686_v37 }
 0x5e4   : > { %11074 = vmatmul.msk.f32.gmra.mxu3 %vm403_vm1, %v10944_v5 }
 0x5e5   : > { %11332 = vmatmul.msk.f32.gmra.mxu0 %vm403_vm1, %v14078_v59  ;;  %9315 = vst.msk [vmem:[%s13952_s8 + $0x48] sm:$0xff] %vm9305_vm2, %v9186_v25 }
 0x5e6   : > { %v6731_v28 = vpop.f32.mrf.mxu2 }
 0x5e7   : > { %v7095_v22 = vadd.f32 %v6731_v28, %v6048_v48  ;;  %v7777_v49 = vpop.f32.mrf.mxu3  ;;  %v5687_v42 = vpop.f32.mrf.mxu1  ;;  %v10689_v48 = vld [vmem:[%s11509_s24 + $0x170] sm:$0xff] }
 0x5e8   : > { %v6049_v53 = vadd.f32 %v5687_v42, %v12365_v52 }
 0x5e9   : > { %v8141_v54 = vadd.f32 %v7777_v49, %v7095_v22  ;;  %v14120_v49 = vld [vmem:[%s11509_s24 + $0x172] sm:$0xff] }
 0x5ea   : > { %v8826_v51 = vpop.f32.mrf.mxu0  ;;  %10559 = vmatmul.msk.f32.gmra.mxu1 %vm403_vm1, %v14036_v62  ;;  %v10946_v62 = vld [vmem:[%s11509_s24 + $0x169] sm:$0xff] }
 0x5eb   : > { %v9187_v9 = vadd.f32 %v8823_v33, %v8141_v54  ;;  %10817 = vmatmul.msk.f32.gmra.mxu2 %vm403_vm1, %v10687_v21 }
 0x5ec   : > { %11075 = vmatmul.msk.f32.gmra.mxu3 %vm403_vm1, %v10945_v10 }
 0x5ed   : > { %11333 = vmatmul.msk.f32.gmra.mxu0 %vm403_vm1, %v14092_v13  ;;  %9316 = vst.msk [vmem:[%s13952_s8 + $0x50] sm:$0xff] %vm9305_vm2, %v9187_v9  ;;  %v10690_v9 = vld [vmem:[%s11509_s24 + $0x178] sm:$0xff] }
 0x5ee   : > { %v6734_v3 = vpop.f32.mrf.mxu2 }
 0x5ef   : > { %v7096_v55 = vadd.f32 %v6734_v3, %v6049_v53  ;;  %v7780_v4 = vpop.f32.mrf.mxu3  ;;  %v5690_v17 = vpop.f32.mrf.mxu1 }
 0x5f0   : > { %v6050_v52 = vadd.f32 %v5690_v17, %v12378_v57 }
 0x5f1   : > { %v8142_v36 = vadd.f32 %v7780_v4, %v7096_v55  ;;  %v14134_v55 = vld [vmem:[%s11509_s24 + $0x17a] sm:$0xff] }
 0x5f2   : > { %v8829_v30 = vpop.f32.mrf.mxu0  ;;  %10560 = vmatmul.msk.f32.gmra.mxu1 %vm403_vm1, %v14050_v60  ;;  %v10947_v60 = vld [vmem:[%s11509_s24 + $0x171] sm:$0xff] }
 0x5f3   : > { %v9188_v37 = vadd.f32 %v8826_v51, %v8142_v36  ;;  %10818 = vmatmul.msk.f32.gmra.mxu2 %vm403_vm1, %v10688_v18 }
 0x5f4   : > { %11076 = vmatmul.msk.f32.gmra.mxu3 %vm403_vm1, %v10946_v62 }
 0x5f5   : > { %11334 = vmatmul.msk.f32.gmra.mxu0 %vm403_vm1, %v14106_v46  ;;  %9317 = vst.msk [vmem:[%s13952_s8 + $0x58] sm:$0xff] %vm9305_vm2, %v9188_v37 }
 0x5f6   : > { %v6737_v0 = vpop.f32.mrf.mxu2 }
 0x5f7   : > { %v7097_v5 = vadd.f32 %v6737_v0, %v6050_v52  ;;  %v7783_v33 = vpop.f32.mrf.mxu3  ;;  %v5693_v25 = vpop.f32.mrf.mxu1  ;;  %v14148_v0 = vld [vmem:[%s11509_s24 + $0x182] sm:$0xff] }
 0x5f8   : > { %v6051_v57 = vadd.f32 %v5693_v25, %v12391_v58 }
 0x5f9   : > { %v8143_v28 = vadd.f32 %v7783_v33, %v7097_v5 }
 0x5fa   : > { %v8832_v22 = vpop.f32.mrf.mxu0  ;;  %10561 = vmatmul.msk.f32.gmra.mxu1 %vm403_vm1, %v14064_v26  ;;  %v10948_v26 = vld [vmem:[%s11509_s24 + $0x179] sm:$0xff] }
 0x5fb   : > { %v9189_v42 = vadd.f32 %v8829_v30, %v8143_v28  ;;  %10819 = vmatmul.msk.f32.gmra.mxu2 %vm403_vm1, %v10689_v48  ;;  %v10691_v30 = vld [vmem:[%s11509_s24 + $0x180] sm:$0xff] }
 0x5fc   : > { %11077 = vmatmul.msk.f32.gmra.mxu3 %vm403_vm1, %v10947_v60  ;;  %v10692_v60 = vld [vmem:[%s11509_s24 + $0x190] sm:$0xff] }
 0x5fd   : > { %11335 = vmatmul.msk.f32.gmra.mxu0 %vm403_vm1, %v14120_v49  ;;  %9318 = vst.msk [vmem:[%s13952_s8 + $0x60] sm:$0xff] %vm9305_vm2, %v9189_v42 }
 0x5fe   : > { %v6740_v21 = vpop.f32.mrf.mxu2 }
 0x5ff   : > { %v7098_v54 = vadd.f32 %v6740_v21, %v6051_v57  ;;  %v7786_v10 = vpop.f32.mrf.mxu3  ;;  %v5696_v51 = vpop.f32.mrf.mxu1  ;;  %v14162_v57 = vld [vmem:[%s11509_s24 + $0x192] sm:$0xff] }
 0x600   : > { %v6052_v58 = vadd.f32 %v5696_v51, %v12404_v31 }
 0x601   : > { %v8144_v53 = vadd.f32 %v7786_v10, %v7098_v54 }
 0x602   : > { %v8835_v3 = vpop.f32.mrf.mxu0  ;;  %10562 = vmatmul.msk.f32.gmra.mxu1 %vm403_vm1, %v14078_v59  ;;  %v10949_v59 = vld [vmem:[%s11509_s24 + $0x181] sm:$0xff] }
 0x603   : > { %v9190_v4 = vadd.f32 %v8832_v22, %v8144_v53  ;;  %10820 = vmatmul.msk.f32.gmra.mxu2 %vm403_vm1, %v10690_v9  ;;  %v10693_v53 = vld [vmem:[%s11509_s24 + $0x198] sm:$0xff] }
 0x604   : > { %11078 = vmatmul.msk.f32.gmra.mxu3 %vm403_vm1, %v10948_v26 }
 0x605   : > { %11336 = vmatmul.msk.f32.gmra.mxu0 %vm403_vm1, %v14134_v55  ;;  %9319 = vst.msk [vmem:[%s13952_s8 + $0x68] sm:$0xff] %vm9305_vm2, %v9190_v4  ;;  %v14176_v4 = vld [vmem:[%s11509_s24 + $0x19a] sm:$0xff] }
 0x606   : > { %v6743_v17 = vpop.f32.mrf.mxu2 }
 0x607   : > { %v7099_v18 = vadd.f32 %v6743_v17, %v6052_v58  ;;  %v7789_v36 = vpop.f32.mrf.mxu3  ;;  %v5699_v62 = vpop.f32.mrf.mxu1 }
 0x608   : > { %v6053_v31 = vadd.f32 %v5699_v62, %v12418_v38 }
 0x609   : > { %v8145_v37 = vadd.f32 %v7789_v36, %v7099_v18 }
 0x60a   : > { %v8838_v52 = vpop.f32.mrf.mxu0  ;;  %10563 = vmatmul.msk.f32.gmra.mxu1 %vm403_vm1, %v14092_v13  ;;  %v10950_v13 = vld [vmem:[%s11509_s24 + $0x191] sm:$0xff] }
 0x60b   : > { %v9191_v5 = vadd.f32 %v8835_v3, %v8145_v37  ;;  %10821 = vmatmul.msk.f32.gmra.mxu2 %vm403_vm1, %v10691_v30  ;;  %v10694_v30 = vld [vmem:[%s11509_s24 + $0x1a0] sm:$0xff] }
 0x60c   : > { %11079 = vmatmul.msk.f32.gmra.mxu3 %vm403_vm1, %v10949_v59 }
 0x60d   : > { %11337 = vmatmul.msk.f32.gmra.mxu0 %vm403_vm1, %v14148_v0  ;;  %9320 = vst.msk [vmem:[%s13952_s8 + $0x70] sm:$0xff] %vm9305_vm2, %v9191_v5 }
 0x60e   : > { %v6746_v33 = vpop.f32.mrf.mxu2 }
 0x60f   : > { %v7100_v25 = vadd.f32 %v6746_v33, %v6053_v31  ;;  %v7792_v48 = vpop.f32.mrf.mxu3  ;;  %v5702_v28 = vpop.f32.mrf.mxu1 }
 0x610   : > { %v6054_v38 = vadd.f32 %v5702_v28, %v12432_v63  ;;  %v10695_v28 = vld [vmem:[%s11509_s24 + $0x1a8] sm:$0xff] }
 0x611   : > { %v8146_v22 = vadd.f32 %v7792_v48, %v7100_v25 }
 0x612   : > { %v8841_v42 = vpop.f32.mrf.mxu0  ;;  %10564 = vmatmul.msk.f32.gmra.mxu1 %vm403_vm1, %v14106_v46  ;;  %v10951_v46 = vld [vmem:[%s11509_s24 + $0x199] sm:$0xff] }
 0x613   : > { %v9192_v21 = vadd.f32 %v8838_v52, %v8146_v22  ;;  %10822 = vmatmul.msk.f32.gmra.mxu2 %vm403_vm1, %v10692_v60  ;;  %v14190_v52 = vld [vmem:[%s11509_s24 + $0x1a2] sm:$0xff] }
 0x614   : > { %11080 = vmatmul.msk.f32.gmra.mxu3 %vm403_vm1, %v10950_v13  ;;  %v14204_v13 = vld [vmem:[%s11509_s24 + $0x1aa] sm:$0xff] }
 0x615   : > { %11338 = vmatmul.msk.f32.gmra.mxu0 %vm403_vm1, %v14162_v57  ;;  %9321 = vst.msk [vmem:[%s13952_s8 + $0x78] sm:$0xff] %vm9305_vm2, %v9192_v21 }
 0x616   : > { %v6749_v54 = vpop.f32.mrf.mxu2 }
 0x617   : > { %v7101_v10 = vadd.f32 %v6749_v54, %v6054_v38  ;;  %v7795_v51 = vpop.f32.mrf.mxu3  ;;  %v5705_v9 = vpop.f32.mrf.mxu1 }
 0x618   : > { %v6055_v63 = vadd.f32 %v5705_v9, %v12446_v47 }
 0x619   : > { %v8147_v26 = vadd.f32 %v7795_v51, %v7101_v10  ;;  %v10696_v51 = vld [vmem:[%s11509_s24 + $0x1b8] sm:$0xff] }
 0x61a   : > { %v8844_v3 = vpop.f32.mrf.mxu0  ;;  %10565 = vmatmul.msk.f32.gmra.mxu1 %vm403_vm1, %v14120_v49  ;;  %v10952_v49 = vld [vmem:[%s11509_s24 + $0x1a1] sm:$0xff] }
 0x61b   : > { %v9193_v58 = vadd.f32 %v8841_v42, %v8147_v26  ;;  %10823 = vmatmul.msk.f32.gmra.mxu2 %vm403_vm1, %v10693_v53  ;;  %v14218_v26 = vld [vmem:[%s11509_s24 + $0x1ba] sm:$0xff] }
 0x61c   : > { %11081 = vmatmul.msk.f32.gmra.mxu3 %vm403_vm1, %v10951_v46 }
 0x61d   : > { %11339 = vmatmul.msk.f32.gmra.mxu0 %vm403_vm1, %v14176_v4  ;;  %9322 = vst.msk [vmem:[%s13952_s8 + $0x80] sm:$0xff] %vm9305_vm2, %v9193_v58 }
 0x61e   : > { %v6752_v17 = vpop.f32.mrf.mxu2 }
 0x61f   : > { %v7102_v18 = vadd.f32 %v6752_v17, %v6055_v63  ;;  %v7798_v36 = vpop.f32.mrf.mxu3  ;;  %v5708_v62 = vpop.f32.mrf.mxu1 }
 0x620   : > { %v6056_v47 = vadd.f32 %v5708_v62, %v12460_v19 }
 0x621   : > { %v8148_v37 = vadd.f32 %v7798_v36, %v7102_v18  ;;  %v10697_v18 = vld [vmem:[%s11509_s24 + $0x1c0] sm:$0xff] }
 0x622   : > { %v8847_v59 = vpop.f32.mrf.mxu0  ;;  %10566 = vmatmul.msk.f32.gmra.mxu1 %vm403_vm1, %v14134_v55  ;;  %v10953_v55 = vld [vmem:[%s11509_s24 + $0x1a9] sm:$0xff] }
 0x623   : > { %v9194_v5 = vadd.f32 %v8844_v3, %v8148_v37  ;;  %10824 = vmatmul.msk.f32.gmra.mxu2 %vm403_vm1, %v10694_v30  ;;  %v14232_v30 = vld [vmem:[%s11509_s24 + $0x1c2] sm:$0xff] }
 0x624   : > { %11082 = vmatmul.msk.f32.gmra.mxu3 %vm403_vm1, %v10952_v49 }
 0x625   : > { %11340 = vmatmul.msk.f32.gmra.mxu0 %vm403_vm1, %v14190_v52  ;;  %9323 = vst.msk [vmem:[%s13952_s8 + $0x88] sm:$0xff] %vm9305_vm2, %v9194_v5 }
 0x626   : > { %v6755_v31 = vpop.f32.mrf.mxu2 }
 0x627   : > { %v7103_v33 = vadd.f32 %v6755_v31, %v6056_v47  ;;  %v7801_v25 = vpop.f32.mrf.mxu3  ;;  %v5711_v48 = vpop.f32.mrf.mxu1  ;;  %v10698_v31 = vld [vmem:[%s11509_s24 + $0x1c8] sm:$0xff] }
 0x628   : > { %v6057_v19 = vadd.f32 %v5711_v48, %v12474_v12  ;;  %v14246_v48 = vld [vmem:[%s11509_s24 + $0x1ca] sm:$0xff] }
 0x629   : > { %v8149_v60 = vadd.f32 %v7801_v25, %v7103_v33 }
 0x62a   : > { %v8850_v22 = vpop.f32.mrf.mxu0  ;;  %10567 = vmatmul.msk.f32.gmra.mxu1 %vm403_vm1, %v14148_v0  ;;  %v10954_v0 = vld [vmem:[%s11509_s24 + $0x1b9] sm:$0xff] }
 0x62b   : > { %v9195_v42 = vadd.f32 %v8847_v59, %v8149_v60  ;;  %10825 = vmatmul.msk.f32.gmra.mxu2 %vm403_vm1, %v10695_v28 }
 0x62c   : > { %11083 = vmatmul.msk.f32.gmra.mxu3 %vm403_vm1, %v10953_v55 }
 0x62d   : > { %11341 = vmatmul.msk.f32.gmra.mxu0 %vm403_vm1, %v14204_v13  ;;  %9324 = vst.msk [vmem:[%s13952_s8 + $0x90] sm:$0xff] %vm9305_vm2, %v9195_v42 }
 0x62e   : > { %v6758_v21 = vpop.f32.mrf.mxu2 }
 0x62f   : > { %v7104_v38 = vadd.f32 %v6758_v21, %v6057_v19  ;;  %v7804_v54 = vpop.f32.mrf.mxu3  ;;  %v5714_v10 = vpop.f32.mrf.mxu1  ;;  %v10699_v19 = vld [vmem:[%s11509_s24 + $0x1d0] sm:$0xff] }
 0x630   : > { %v6058_v12 = vadd.f32 %v5714_v10, %v12488_v8 }
 0x631   : > { %v8150_v9 = vadd.f32 %v7804_v54, %v7104_v38  ;;  %v14260_v54 = vld [vmem:[%s11509_s24 + $0x1d2] sm:$0xff] }
 0x632   : > { %v8853_v53 = vpop.f32.mrf.mxu0  ;;  %10568 = vmatmul.msk.f32.gmra.mxu1 %vm403_vm1, %v14162_v57  ;;  %v10955_v57 = vld [vmem:[%s11509_s24 + $0x1c1] sm:$0xff] }
 0x633   : > { %v9196_v46 = vadd.f32 %v8850_v22, %v8150_v9  ;;  %10826 = vmatmul.msk.f32.gmra.mxu2 %vm403_vm1, %v10696_v51 }
 0x634   : > { %11084 = vmatmul.msk.f32.gmra.mxu3 %vm403_vm1, %v10954_v0 }
 0x635   : > { %11342 = vmatmul.msk.f32.gmra.mxu0 %vm403_vm1, %v14218_v26  ;;  %9325 = vst.msk [vmem:[%s13952_s8 + $0x98] sm:$0xff] %vm9305_vm2, %v9196_v46  ;;  %v10700_v46 = vld [vmem:[%s11509_s24 + $0x1e0] sm:$0xff] }
 0x636   : > { %v6761_v3 = vpop.f32.mrf.mxu2 }
 0x637   : > { %v7105_v58 = vadd.f32 %v6761_v3, %v6058_v12  ;;  %v7807_v63 = vpop.f32.mrf.mxu3  ;;  %v5717_v17 = vpop.f32.mrf.mxu1 }
 0x638   : > { %v6059_v8 = vadd.f32 %v5717_v17, %v12502_v14 }
 0x639   : > { %v8151_v36 = vadd.f32 %v7807_v63, %v7105_v58  ;;  %v14274_v58 = vld [vmem:[%s11509_s24 + $0x1e2] sm:$0xff] }
 0x63a   : > { %v8856_v62 = vpop.f32.mrf.mxu0  ;;  %10569 = vmatmul.msk.f32.gmra.mxu1 %vm403_vm1, %v14176_v4  ;;  %v10956_v4 = vld [vmem:[%s11509_s24 + $0x1c9] sm:$0xff] }
 0x63b   : > { %v9197_v37 = vadd.f32 %v8853_v53, %v8151_v36  ;;  %10827 = vmatmul.msk.f32.gmra.mxu2 %vm403_vm1, %v10697_v18 }
 0x63c   : > { %11085 = vmatmul.msk.f32.gmra.mxu3 %vm403_vm1, %v10955_v57 }
 0x63d   : > { %11343 = vmatmul.msk.f32.gmra.mxu0 %vm403_vm1, %v14232_v30  ;;  %9326 = vst.msk [vmem:[%s13952_s8 + $0xa0] sm:$0xff] %vm9305_vm2, %v9197_v37 }
 0x63e   : > { %v6764_v49 = vpop.f32.mrf.mxu2 }
 0x63f   : > { %v7106_v59 = vadd.f32 %v6764_v49, %v6059_v8  ;;  %v7810_v5 = vpop.f32.mrf.mxu3  ;;  %v5720_v47 = vpop.f32.mrf.mxu1  ;;  %v14288_v49 = vld [vmem:[%s11509_s24 + $0x1ea] sm:$0xff] }
 0x640   : > { %v6060_v14 = vadd.f32 %v5720_v47, %v12516_v29 }
 0x641   : > { %v8152_v33 = vadd.f32 %v7810_v5, %v7106_v59 }
 0x642   : > { %v8859_v25 = vpop.f32.mrf.mxu0  ;;  %10570 = vmatmul.msk.f32.gmra.mxu1 %vm403_vm1, %v14190_v52  ;;  %v10957_v52 = vld [vmem:[%s11509_s24 + $0x1d1] sm:$0xff] }
 0x643   : > { %v9198_v28 = vadd.f32 %v8856_v62, %v8152_v33  ;;  %10828 = vmatmul.msk.f32.gmra.mxu2 %vm403_vm1, %v10698_v31  ;;  %v10701_v62 = vld [vmem:[%s11509_s24 + $0x1e8] sm:$0xff] }
 0x644   : > { %11086 = vmatmul.msk.f32.gmra.mxu3 %vm403_vm1, %v10956_v4  ;;  %v10702_v4 = vld [vmem:[%s11509_s24 + $0x1f0] sm:$0xff] }
 0x645   : > { %11344 = vmatmul.msk.f32.gmra.mxu0 %vm403_vm1, %v14246_v48  ;;  %9327 = vst.msk [vmem:[%s13952_s8 + $0xa8] sm:$0xff] %vm9305_vm2, %v9198_v28 }
 0x646   : > { %v6767_v60 = vpop.f32.mrf.mxu2 }
 0x647   : > { %v7107_v55 = vadd.f32 %v6767_v60, %v6060_v14  ;;  %v7813_v22 = vpop.f32.mrf.mxu3  ;;  %v5723_v42 = vpop.f32.mrf.mxu1  ;;  %v14302_v14 = vld [vmem:[%s11509_s24 + $0x1f2] sm:$0xff] }
 0x648   : > { %v6061_v29 = vadd.f32 %v5723_v42, %v12530_v61 }
 0x649   : > { %v8153_v21 = vadd.f32 %v7813_v22, %v7107_v55 }
 0x64a   : > { %v8862_v38 = vpop.f32.mrf.mxu0  ;;  %10571 = vmatmul.msk.f32.gmra.mxu1 %vm403_vm1, %v14204_v13  ;;  %v10958_v13 = vld [vmem:[%s11509_s24 + $0x1e1] sm:$0xff] }
 0x64b   : > { %v9199_v10 = vadd.f32 %v8859_v25, %v8153_v21  ;;  %10829 = vmatmul.msk.f32.gmra.mxu2 %vm403_vm1, %v10699_v19  ;;  %v10703_v21 = vld [vmem:[%s11509_s24 + $0x1f8] sm:$0xff] }
 0x64c   : > { %11087 = vmatmul.msk.f32.gmra.mxu3 %vm403_vm1, %v10957_v52 }
 0x64d   : > { %11345 = vmatmul.msk.f32.gmra.mxu0 %vm403_vm1, %v14260_v54  ;;  %9328 = vst.msk [vmem:[%s13952_s8 + $0xb0] sm:$0xff] %vm9305_vm2, %v9199_v10  ;;  %v14316_v10 = vld [vmem:[%s11509_s24 + $0x1fa] sm:$0xff] }
 0x64e   : > { %v6770_v51 = vpop.f32.mrf.mxu2 }
 0x64f   : > { %v7108_v9 = vadd.f32 %v6770_v51, %v6061_v29  ;;  %v7816_v0 = vpop.f32.mrf.mxu3  ;;  %v5726_v53 = vpop.f32.mrf.mxu1 }
 0x650   : > { %v6062_v61 = vadd.f32 %v5726_v53, %v12544_v11 }
 0x651   : > { %v8154_v12 = vadd.f32 %v7816_v0, %v7108_v9 }
 0x652   : > { %v8865_v3 = vpop.f32.mrf.mxu0  ;;  %10572 = vmatmul.msk.f32.gmra.mxu1 %vm403_vm1, %v14218_v26  ;;  %v10959_v26 = vld [vmem:[%s11509_s24 + $0x1e9] sm:$0xff] }
 0x653   : > { %v9200_v63 = vadd.f32 %v8862_v38, %v8154_v12  ;;  %10830 = vmatmul.msk.f32.gmra.mxu2 %vm403_vm1, %v10700_v46  ;;  %v10704_v46 = vld [vmem:[%s11509_s24 + $0x208] sm:$0xff] }
 0x654   : > { %11088 = vmatmul.msk.f32.gmra.mxu3 %vm403_vm1, %v10958_v13 }
 0x655   : > { %11346 = vmatmul.msk.f32.gmra.mxu0 %vm403_vm1, %v14274_v58  ;;  %9329 = vst.msk [vmem:[%s13952_s8 + $0xb8] sm:$0xff] %vm9305_vm2, %v9200_v63 }
 0x656   : > { %v6773_v17 = vpop.f32.mrf.mxu2 }
 0x657   : > { %v7109_v18 = vadd.f32 %v6773_v17, %v6062_v61  ;;  %v7819_v36 = vpop.f32.mrf.mxu3  ;;  %v5729_v57 = vpop.f32.mrf.mxu1 }
 0x658   : > { %v6063_v11 = vadd.f32 %v5729_v57, %v12558_v2  ;;  %v10705_v57 = vld [vmem:[%s11509_s24 + $0x210] sm:$0xff] }
 0x659   : > { %v8155_v37 = vadd.f32 %v7819_v36, %v7109_v18 }
 0x65a   : > { %v8868_v8 = vpop.f32.mrf.mxu0  ;;  %10573 = vmatmul.msk.f32.gmra.mxu1 %vm403_vm1, %v14232_v30  ;;  %v10960_v30 = vld [vmem:[%s11509_s24 + $0x1f1] sm:$0xff] }
 0x65b   : > { %v9201_v59 = vadd.f32 %v8865_v3, %v8155_v37  ;;  %10831 = vmatmul.msk.f32.gmra.mxu2 %vm403_vm1, %v10701_v62  ;;  %v14330_v3 = vld [vmem:[%s11509_s24 + $0x20a] sm:$0xff] }
 0x65c   : > { %11089 = vmatmul.msk.f32.gmra.mxu3 %vm403_vm1, %v10959_v26  ;;  %v14344_v26 = vld [vmem:[%s11509_s24 + $0x212] sm:$0xff] }
 0x65d   : > { %11347 = vmatmul.msk.f32.gmra.mxu0 %vm403_vm1, %v14288_v49  ;;  %9330 = vst.msk [vmem:[%s13952_s8 + $0xc0] sm:$0xff] %vm9305_vm2, %v9201_v59 }
 0x65e   : > { %v6776_v5 = vpop.f32.mrf.mxu2 }
 0x65f   : > { %v7110_v47 = vadd.f32 %v6776_v5, %v6063_v11  ;;  %v7822_v31 = vpop.f32.mrf.mxu3  ;;  %v5732_v33 = vpop.f32.mrf.mxu1 }
 0x660   : > { %v6064_v2 = vadd.f32 %v5732_v33, %v12572_v39 }
 0x661   : > { %v8156_v25 = vadd.f32 %v7822_v31, %v7110_v47  ;;  %v10706_v31 = vld [vmem:[%s11509_s24 + $0x218] sm:$0xff] }
 0x662   : > { %v8871_v28 = vpop.f32.mrf.mxu0  ;;  %10574 = vmatmul.msk.f32.gmra.mxu1 %vm403_vm1, %v14246_v48  ;;  %v10961_v48 = vld [vmem:[%s11509_s24 + $0x1f9] sm:$0xff] }
 0x663   : > { %v9202_v60 = vadd.f32 %v8868_v8, %v8156_v25  ;;  %10832 = vmatmul.msk.f32.gmra.mxu2 %vm403_vm1, %v10702_v4  ;;  %v14358_v25 = vld [vmem:[%s11509_s24 + $0x21a] sm:$0xff] }
 0x664   : > { %11090 = vmatmul.msk.f32.gmra.mxu3 %vm403_vm1, %v10960_v30 }
 0x665   : > { %11348 = vmatmul.msk.f32.gmra.mxu0 %vm403_vm1, %v14302_v14  ;;  %9331 = vst.msk [vmem:[%s13952_s8 + $0xc8] sm:$0xff] %vm9305_vm2, %v9202_v60 }
 0x666   : > { %v6779_v55 = vpop.f32.mrf.mxu2 }
 0x667   : > { %v7111_v22 = vadd.f32 %v6779_v55, %v6064_v2  ;;  %v7825_v42 = vpop.f32.mrf.mxu3  ;;  %v5735_v19 = vpop.f32.mrf.mxu1 }
 0x668   : > { %v6065_v39 = vadd.f32 %v5735_v19, %v12586_v15 }
 0x669   : > { %v8157_v52 = vadd.f32 %v7825_v42, %v7111_v22  ;;  %v10707_v22 = vld [vmem:[%s11509_s24 + $0x220] sm:$0xff] }
 0x66a   : > { %v8874_v38 = vpop.f32.mrf.mxu0  ;;  %10575 = vmatmul.msk.f32.gmra.mxu1 %vm403_vm1, %v14260_v54  ;;  %v10962_v54 = vld [vmem:[%s11509_s24 + $0x209] sm:$0xff] }
 0x66b   : > { %v9203_v29 = vadd.f32 %v8871_v28, %v8157_v52  ;;  %10833 = vmatmul.msk.f32.gmra.mxu2 %vm403_vm1, %v10703_v21  ;;  %v14372_v21 = vld [vmem:[%s11509_s24 + $0x222] sm:$0xff] }
 0x66c   : > { %11091 = vmatmul.msk.f32.gmra.mxu3 %vm403_vm1, %v10961_v48 }
 0x66d   : > { %11349 = vmatmul.msk.f32.gmra.mxu0 %vm403_vm1, %v14316_v10  ;;  %9332 = vst.msk [vmem:[%s13952_s8 + $0xd0] sm:$0xff] %vm9305_vm2, %v9203_v29 }
 0x66e   : > { %v6782_v51 = vpop.f32.mrf.mxu2 }
 0x66f   : > { %v7112_v9 = vadd.f32 %v6782_v51, %v6065_v39  ;;  %v7828_v0 = vpop.f32.mrf.mxu3  ;;  %v5738_v53 = vpop.f32.mrf.mxu1  ;;  %v10708_v51 = vld [vmem:[%s11509_s24 + $0x230] sm:$0xff] }
 0x670   : > { %v6066_v15 = vadd.f32 %v5738_v53, %v12600_v23  ;;  %v14386_v53 = vld [vmem:[%s11509_s24 + $0x232] sm:$0xff] }
 0x671   : > { %v8158_v12 = vadd.f32 %v7828_v0, %v7112_v9 }
 0x672   : > { %v8877_v13 = vpop.f32.mrf.mxu0  ;;  %10576 = vmatmul.msk.f32.gmra.mxu1 %vm403_vm1, %v14274_v58  ;;  %v10963_v58 = vld [vmem:[%s11509_s24 + $0x211] sm:$0xff] }
 0x673   : > { %v9204_v63 = vadd.f32 %v8874_v38, %v8158_v12  ;;  %10834 = vmatmul.msk.f32.gmra.mxu2 %vm403_vm1, %v10704_v46 }
 0x674   : > { %11092 = vmatmul.msk.f32.gmra.mxu3 %vm403_vm1, %v10962_v54 }
 0x675   : > { %11350 = vmatmul.msk.f32.gmra.mxu0 %vm403_vm1, %v14330_v3  ;;  %9333 = vst.msk [vmem:[%s13952_s8 + $0xd8] sm:$0xff] %vm9305_vm2, %v9204_v63 }
 0x676   : > { %v6785_v61 = vpop.f32.mrf.mxu2 }
 0x677   : > { %v7113_v17 = vadd.f32 %v6785_v61, %v6066_v15  ;;  %v7831_v18 = vpop.f32.mrf.mxu3  ;;  %v5741_v36 = vpop.f32.mrf.mxu1  ;;  %v10709_v15 = vld [vmem:[%s11509_s24 + $0x238] sm:$0xff] }
 0x678   : > { %v6067_v23 = vadd.f32 %v5741_v36, %v12614_v34 }
 0x679   : > { %v8159_v62 = vadd.f32 %v7831_v18, %v7113_v17  ;;  %v14400_v18 = vld [vmem:[%s11509_s24 + $0x23a] sm:$0xff] }
 0x67a   : > { %v8880_v37 = vpop.f32.mrf.mxu0  ;;  %10577 = vmatmul.msk.f32.gmra.mxu1 %vm403_vm1, %v14288_v49  ;;  %v10964_v49 = vld [vmem:[%s11509_s24 + $0x219] sm:$0xff] }
 0x67b   : > { %v9205_v8 = vadd.f32 %v8877_v13, %v8159_v62  ;;  %10835 = vmatmul.msk.f32.gmra.mxu2 %vm403_vm1, %v10705_v57 }
 0x67c   : > { %11093 = vmatmul.msk.f32.gmra.mxu3 %vm403_vm1, %v10963_v58 }
 0x67d   : > { %11351 = vmatmul.msk.f32.gmra.mxu0 %vm403_vm1, %v14344_v26  ;;  %9334 = vst.msk [vmem:[%s13952_s8 + $0xe0] sm:$0xff] %vm9305_vm2, %v9205_v8  ;;  %v10710_v8 = vld [vmem:[%s11509_s24 + $0x240] sm:$0xff] }
 0x67e   : > { %v6788_v59 = vpop.f32.mrf.mxu2 }
 0x67f   : > { %v7114_v11 = vadd.f32 %v6788_v59, %v6067_v23  ;;  %v7834_v5 = vpop.f32.mrf.mxu3  ;;  %v5744_v47 = vpop.f32.mrf.mxu1 }
 0x680   : > { %v6068_v34 = vadd.f32 %v5744_v47, %v12628_v24 }
 0x681   : > { %v8160_v33 = vadd.f32 %v7834_v5, %v7114_v11  ;;  %v14414_v11 = vld [vmem:[%s11509_s24 + $0x242] sm:$0xff] }
 0x682   : > { %v8883_v4 = vpop.f32.mrf.mxu0  ;;  %10578 = vmatmul.msk.f32.gmra.mxu1 %vm403_vm1, %v14302_v14  ;;  %v10965_v14 = vld [vmem:[%s11509_s24 + $0x221] sm:$0xff] }
 0x683   : > { %v9206_v30 = vadd.f32 %v8880_v37, %v8160_v33  ;;  %10836 = vmatmul.msk.f32.gmra.mxu2 %vm403_vm1, %v10706_v31 }
 0x684   : > { %11094 = vmatmul.msk.f32.gmra.mxu3 %vm403_vm1, %v10964_v49 }
 0x685   : > { %11352 = vmatmul.msk.f32.gmra.mxu0 %vm403_vm1, %v14358_v25  ;;  %9335 = vst.msk [vmem:[%s13952_s8 + $0xe8] sm:$0xff] %vm9305_vm2, %v9206_v30 }
 0x686   : > { %v6791_v28 = vpop.f32.mrf.mxu2 }
 0x687   : > { %v7115_v60 = vadd.f32 %v6791_v28, %v6068_v34  ;;  %v7837_v2 = vpop.f32.mrf.mxu3  ;;  %v5747_v55 = vpop.f32.mrf.mxu1  ;;  %v14428_v28 = vld [vmem:[%s11509_s24 + $0x24a] sm:$0xff] }
 0x688   : > { %v6069_v24 = vadd.f32 %v5747_v55, %v12642_v1 }
 0x689   : > { %v8161_v42 = vadd.f32 %v7837_v2, %v7115_v60 }
 0x68a   : > { %v8886_v19 = vpop.f32.mrf.mxu0  ;;  %10579 = vmatmul.msk.f32.gmra.mxu1 %vm403_vm1, %v14316_v10  ;;  %v10966_v10 = vld [vmem:[%s11509_s24 + $0x231] sm:$0xff] }
 0x68b   : > { %v9207_v52 = vadd.f32 %v8883_v4, %v8161_v42  ;;  %10837 = vmatmul.msk.f32.gmra.mxu2 %vm403_vm1, %v10707_v22  ;;  %v10711_v4 = vld [vmem:[%s11509_s24 + $0x248] sm:$0xff] }
 0x68c   : > { %11095 = vmatmul.msk.f32.gmra.mxu3 %vm403_vm1, %v10965_v14  ;;  %v10712_v14 = vld [vmem:[%s11509_s24 + $0x258] sm:$0xff] }
 0x68d   : > { %11353 = vmatmul.msk.f32.gmra.mxu0 %vm403_vm1, %v14372_v21  ;;  %9336 = vst.msk [vmem:[%s13952_s8 + $0xf0] sm:$0xff] %vm9305_vm2, %v9207_v52 }
 0x68e   : > { %v6794_v48 = vpop.f32.mrf.mxu2 }
 0x68f   : > { %v7116_v38 = vadd.f32 %v6794_v48, %v6069_v24  ;;  %v7840_v29 = vpop.f32.mrf.mxu3  ;;  %v5750_v39 = vpop.f32.mrf.mxu1  ;;  %v14442_v24 = vld [vmem:[%s11509_s24 + $0x25a] sm:$0xff] }
 0x690   : > { %v6070_v1 = vadd.f32 %v5750_v39, %v12656_v50 }
 0x691   : > { %v8162_v9 = vadd.f32 %v7840_v29, %v7116_v38 }
 0x692   : > { %v8889_v0 = vpop.f32.mrf.mxu0  ;;  %10580 = vmatmul.msk.f32.gmra.mxu1 %vm403_vm1, %v14330_v3  ;;  %v10967_v3 = vld [vmem:[%s11509_s24 + $0x239] sm:$0xff] }
 0x693   : > { %v9208_v46 = vadd.f32 %v8886_v19, %v8162_v9  ;;  %10838 = vmatmul.msk.f32.gmra.mxu2 %vm403_vm1, %v10708_v51  ;;  %v10713_v9 = vld [vmem:[%s11509_s24 + $0x260] sm:$0xff] }
 0x694   : > { %11096 = vmatmul.msk.f32.gmra.mxu3 %vm403_vm1, %v10966_v10 }
 0x695   : > { %11354 = vmatmul.msk.f32.gmra.mxu0 %vm403_vm1, %v14386_v53  ;;  %9337 = vst.msk [vmem:[%s13952_s8 + $0xf8] sm:$0xff] %vm9305_vm2, %v9208_v46  ;;  %v14456_v46 = vld [vmem:[%s11509_s24 + $0x262] sm:$0xff] }
 0x696   : > { %v6797_v12 = vpop.f32.mrf.mxu2 }
 0x697   : > { %v7117_v54 = vadd.f32 %v6797_v12, %v6070_v1  ;;  %v7843_v13 = vpop.f32.mrf.mxu3  ;;  %v5753_v63 = vpop.f32.mrf.mxu1 }
 0x698   : > { %v6071_v50 = vadd.f32 %v5753_v63, %v12670_v16 }
 0x699   : > { %v8163_v61 = vadd.f32 %v7843_v13, %v7117_v54 }
 0x69a   : > { %v8892_v17 = vpop.f32.mrf.mxu0  ;;  %10581 = vmatmul.msk.f32.gmra.mxu1 %vm403_vm1, %v14344_v26  ;;  %v10968_v26 = vld [vmem:[%s11509_s24 + $0x241] sm:$0xff] }
 0x69b   : > { %v9209_v36 = vadd.f32 %v8889_v0, %v8163_v61  ;;  %10839 = vmatmul.msk.f32.gmra.mxu2 %vm403_vm1, %v10709_v15  ;;  %v10971_v0 = vld [vmem:[%s11509_s24 + $0x261] sm:$0xff] }
 0x69c   : > { %11097 = vmatmul.msk.f32.gmra.mxu3 %vm403_vm1, %v10967_v3  ;;  %v10714_v15 = vld [vmem:[%s11509_s24 + $0x268] sm:$0xff] }
 0x69d   : > { %11355 = vmatmul.msk.f32.gmra.mxu0 %vm403_vm1, %v14400_v18  ;;  %9338 = vst.msk [vmem:[%s13952_s8 + $0x100] sm:$0xff] %vm9305_vm2, %v9209_v36  ;;  %v10972_v3 = vld [vmem:[%s11509_s24 + $0x269] sm:$0xff] }
 0x69e   : > { %v6800_v57 = vpop.f32.mrf.mxu2 }
 0x69f   : > { %v7118_v62 = vadd.f32 %v6800_v57, %v6071_v50  ;;  %v7846_v58 = vpop.f32.mrf.mxu3  ;;  %v5756_v37 = vpop.f32.mrf.mxu1 }
 0x6a0   : > { %v6072_v16 = vadd.f32 %v5756_v37, %v12684_v41  ;;  %v10715_v37 = vld [vmem:[%s11509_s24 + $0x270] sm:$0xff] }
 0x6a1   : > { %v8164_v23 = vadd.f32 %v7846_v58, %v7118_v62 }
 0x6a2   : > { %v8895_v59 = vpop.f32.mrf.mxu0  ;;  %10582 = vmatmul.msk.f32.gmra.mxu1 %vm403_vm1, %v14358_v25  ;;  %v10969_v25 = vld [vmem:[%s11509_s24 + $0x249] sm:$0xff] }
 0x6a3   : > { %v9210_v5 = vadd.f32 %v8892_v17, %v8164_v23  ;;  %10840 = vmatmul.msk.f32.gmra.mxu2 %vm403_vm1, %v10710_v8  ;;  %v10973_v23 = vld [vmem:[%s11509_s24 + $0x271] sm:$0xff] }
 0x6a4   : > { %11098 = vmatmul.msk.f32.gmra.mxu3 %vm403_vm1, %v10968_v26 }
 0x6a5   : > { %11356 = vmatmul.msk.f32.gmra.mxu0 %vm403_vm1, %v14414_v11  ;;  %9339 = vst.msk [vmem:[%s13952_s8 + $0x108] sm:$0xff] %vm9305_vm2, %v9210_v5 }
 0x6a6   : > { %v6803_v47 = vpop.f32.mrf.mxu2 }
 0x6a7   : > { %v7119_v31 = vadd.f32 %v6803_v47, %v6072_v16  ;;  %v7849_v33 = vpop.f32.mrf.mxu3  ;;  %v5759_v49 = vpop.f32.mrf.mxu1 }
 0x6a8   : > { %v6073_v41 = vadd.f32 %v5759_v49, %v12698_v45 }
 0x6a9   : > { %v8165_v30 = vadd.f32 %v7849_v33, %v7119_v31  ;;  %v10716_v33 = vld [vmem:[%s11509_s24 + $0x280] sm:$0xff] }
 0x6aa   : > { %v8898_v34 = vpop.f32.mrf.mxu0  ;;  %10583 = vmatmul.msk.f32.gmra.mxu1 %vm403_vm1, %v14372_v21  ;;  %v10970_v21 = vld [vmem:[%s11509_s24 + $0x259] sm:$0xff] }
 0x6ab   : > { %v9211_v60 = vadd.f32 %v8895_v59, %v8165_v30  ;;  %10841 = vmatmul.msk.f32.gmra.mxu2 %vm403_vm1, %v10711_v4  ;;  %v14484_v59 = vld [vmem:[%s11509_s24 + $0x272] sm:$0xff]  ;;  %v10974_v4 = vld [vmem:[%s11509_s24 + $0x281] sm:$0xff] }
 0x6ac   : > { %11099 = vmatmul.msk.f32.gmra.mxu3 %vm403_vm1, %v10969_v25  ;;  %v14498_v25 = vld [vmem:[%s11509_s24 + $0x282] sm:$0xff] }
 0x6ad   : > { %11357 = vmatmul.msk.f32.gmra.mxu0 %vm403_vm1, %v14428_v28  ;;  %9340 = vst.msk [vmem:[%s13952_s8 + $0x110] sm:$0xff] %vm9305_vm2, %v9211_v60 }
 0x6ae   : > { %v6806_v2 = vpop.f32.mrf.mxu2 }
 0x6af   : > { %v7120_v55 = vadd.f32 %v6806_v2, %v6073_v41  ;;  %v7852_v22 = vpop.f32.mrf.mxu3  ;;  %v5762_v42 = vpop.f32.mrf.mxu1 }
 0x6b0   : > { %v6074_v45 = vadd.f32 %v5762_v42, %v12712_v32  ;;  %v10975_v42 = vld [vmem:[%s11509_s24 + $0x289] sm:$0xff] }
 0x6b1   : > { %v8166_v19 = vadd.f32 %v7852_v22, %v7120_v55  ;;  %v10717_v55 = vld [vmem:[%s11509_s24 + $0x288] sm:$0xff] }
 0x6b2   : > { %v8901_v52 = vpop.f32.mrf.mxu0  ;;  %10584 = vmatmul.msk.f32.gmra.mxu1 %vm403_vm1, %v14386_v53 }
 0x6b3   : > { %v9212_v48 = vadd.f32 %v8898_v34, %v8166_v19  ;;  %10842 = vmatmul.msk.f32.gmra.mxu2 %vm403_vm1, %v10712_v14  ;;  %v14512_v19 = vld [vmem:[%s11509_s24 + $0x28a] sm:$0xff] }
 0x6b4   : > { %11100 = vmatmul.msk.f32.gmra.mxu3 %vm403_vm1, %v10970_v21 }
 0x6b5   : > { %11358 = vmatmul.msk.f32.gmra.mxu0 %vm403_vm1, %v14442_v24  ;;  %9341 = vst.msk [vmem:[%s13952_s8 + $0x118] sm:$0xff] %vm9305_vm2, %v9212_v48 }
 0x6b6   : > { %v6809_v38 = vpop.f32.mrf.mxu2 }
 0x6b7   : > { %v7121_v29 = vadd.f32 %v6809_v38, %v6074_v45  ;;  %v7855_v39 = vpop.f32.mrf.mxu3  ;;  %v5765_v51 = vpop.f32.mrf.mxu1  ;;  %v10718_v38 = vld [vmem:[%s11509_s24 + $0x290] sm:$0xff] }
 0x6b8   : > { %v6075_v32 = vadd.f32 %v5765_v51, %v12726_v6 }
 0x6b9   : > { %v8167_v10 = vadd.f32 %v7855_v39, %v7121_v29  ;;  %v10976_v39 = vld [vmem:[%s11509_s24 + $0x291] sm:$0xff] }
 0x6ba   : > { %v8904_v53 = vpop.f32.mrf.mxu0  ;;  %10585 = vmatmul.msk.f32.gmra.mxu1 %vm403_vm1, %v14400_v18  ;;  %v14470_v18 = vld [vmem:[%s11509_s24 + $0x26a] sm:$0xff] }
 0x6bb   : > { %v9213_v1 = vadd.f32 %v8901_v52, %v8167_v10  ;;  %10843 = vmatmul.msk.f32.gmra.mxu2 %vm403_vm1, %v10713_v9  ;;  %v14526_v9 = vld [vmem:[%s11509_s24 + $0x292] sm:$0xff] }
 0x6bc   : > { %11101 = vmatmul.msk.f32.gmra.mxu3 %vm403_vm1, %v10971_v0 }
 0x6bd   : > { %11359 = vmatmul.msk.f32.gmra.mxu0 %vm403_vm1, %v14456_v46  ;;  %9342 = vst.msk [vmem:[%s13952_s8 + $0x120] sm:$0xff] %vm9305_vm2, %v9213_v1 }
 0x6be   : > { %v6812_v12 = vpop.f32.mrf.mxu2 }
 0x6bf   : > { %v7122_v54 = vadd.f32 %v6812_v12, %v6075_v32  ;;  %v7858_v13 = vpop.f32.mrf.mxu3  ;;  %v5768_v63 = vpop.f32.mrf.mxu1  ;;  %v10719_v32 = vld [vmem:[%s11509_s24 + $0x298] sm:$0xff] }
 0x6c0   : > { %v6076_v6 = vadd.f32 %v5768_v63, %v12740_v40  ;;  %v14540_v63 = vld [vmem:[%s11509_s24 + $0x29a] sm:$0xff] }
 0x6c1   : > { %v8168_v61 = vadd.f32 %v7858_v13, %v7122_v54  ;;  %v10977_v54 = vld [vmem:[%s11509_s24 + $0x299] sm:$0xff] }
 0x6c2   : > { %v8907_v17 = vpop.f32.mrf.mxu0  ;;  %10586 = vmatmul.msk.f32.gmra.mxu1 %vm403_vm1, %v14414_v11 }
 0x6c3   : > { %v9214_v36 = vadd.f32 %v8904_v53, %v8168_v61  ;;  %10844 = vmatmul.msk.f32.gmra.mxu2 %vm403_vm1, %v10714_v15 }
 0x6c4   : > { %11102 = vmatmul.msk.f32.gmra.mxu3 %vm403_vm1, %v10972_v3 }
 0x6c5   : > { %11360 = vmatmul.msk.f32.gmra.mxu0 %vm403_vm1, %v14470_v18  ;;  %9343 = vst.msk [vmem:[%s13952_s8 + $0x128] sm:$0xff] %vm9305_vm2, %v9214_v36  ;;  %v10720_v36 = vld [vmem:[%s11509_s24 + $0x2a8] sm:$0xff] }
 0x6c6   : > { %v6815_v50 = vpop.f32.mrf.mxu2 }
 0x6c7   : > { %v7123_v57 = vadd.f32 %v6815_v50, %v6076_v6  ;;  %v7861_v62 = vpop.f32.mrf.mxu3  ;;  %v5771_v58 = vpop.f32.mrf.mxu1  ;;  %v10978_v50 = vld [vmem:[%s11509_s24 + $0x2a9] sm:$0xff] }
 0x6c8   : > { %v6077_v40 = vadd.f32 %v5771_v58, %v12754_v35 }
 0x6c9   : > { %v8169_v8 = vadd.f32 %v7861_v62, %v7123_v57  ;;  %v14554_v62 = vld [vmem:[%s11509_s24 + $0x2aa] sm:$0xff] }
 0x6ca   : > { %v8910_v26 = vpop.f32.mrf.mxu0  ;;  %10587 = vmatmul.msk.f32.gmra.mxu1 %vm403_vm1, %v14428_v28 }
 0x6cb   : > { %v9215_v11 = vadd.f32 %v8907_v17, %v8169_v8  ;;  %10845 = vmatmul.msk.f32.gmra.mxu2 %vm403_vm1, %v10715_v37 }
 0x6cc   : > { %11103 = vmatmul.msk.f32.gmra.mxu3 %vm403_vm1, %v10973_v23 }
 0x6cd   : > { %11361 = vmatmul.msk.f32.gmra.mxu0 %vm403_vm1, %v14484_v59  ;;  %9344 = vst.msk [vmem:[%s13952_s8 + $0x130] sm:$0xff] %vm9305_vm2, %v9215_v11  ;;  %v10721_v11 = vld [vmem:[%s11509_s24 + $0x2b0] sm:$0xff] }
 0x6ce   : > { %v6818_v5 = vpop.f32.mrf.mxu2 }
 0x6cf   : > { %v7124_v16 = vadd.f32 %v6818_v5, %v6077_v40  ;;  %v7864_v47 = vpop.f32.mrf.mxu3  ;;  %v5774_v31 = vpop.f32.mrf.mxu1  ;;  %v10979_v5 = vld [vmem:[%s11509_s24 + $0x2b1] sm:$0xff] }
 0x6d0   : > { %v6078_v35 = vadd.f32 %v5774_v31, %v12768_v56 }
 0x6d1   : > { %v8170_v49 = vadd.f32 %v7864_v47, %v7124_v16  ;;  %v14568_v47 = vld [vmem:[%s11509_s24 + $0x2b2] sm:$0xff] }
 0x6d2   : > { %v8913_v30 = vpop.f32.mrf.mxu0  ;;  %10588 = vmatmul.msk.f32.gmra.mxu1 %vm403_vm1, %v14442_v24 }
 0x6d3   : > { %v9216_v34 = vadd.f32 %v8910_v26, %v8170_v49  ;;  %10846 = vmatmul.msk.f32.gmra.mxu2 %vm403_vm1, %v10716_v33  ;;  %v15816_v33 = vld [vmem:[#allocation11_spill] sm:$0xff] }
 0x6d4   : > { %11104 = vmatmul.msk.f32.gmra.mxu3 %vm403_vm1, %v10974_v4 }
 0x6d5   : > { %11362 = vmatmul.msk.f32.gmra.mxu0 %vm403_vm1, %v14498_v25  ;;  %9345 = vst.msk [vmem:[%s13952_s8 + $0x138] sm:$0xff] %vm9305_vm2, %v9216_v34 }
 0x6d6   : > { %v6821_v28 = vpop.f32.mrf.mxu2 }
 0x6d7   : > { %v7125_v60 = vadd.f32 %v6821_v28, %v6078_v35  ;;  %v7867_v41 = vpop.f32.mrf.mxu3  ;;  %v5777_v2 = vpop.f32.mrf.mxu1  ;;  %v10722_v35 = vld [vmem:[%s11509_s24 + $0x2b8] sm:$0xff] }
 0x6d8   : > { %v6079_v56 = vadd.f32 %v5777_v2, %v12782_v7  ;;  %v14582_v2 = vld [vmem:[%s11509_s24 + $0x2ba] sm:$0xff] }
 0x6d9   : > { %v8171_v22 = vadd.f32 %v7867_v41, %v7125_v60  ;;  %v10980_v60 = vld [vmem:[%s11509_s24 + $0x2b9] sm:$0xff] }
 0x6da   : > { %v8916_v14 = vpop.f32.mrf.mxu0  ;;  %10589 = vmatmul.msk.f32.gmra.mxu1 %vm403_vm1, %v14456_v46 }
 0x6db   : > { %v9217_v21 = vadd.f32 %v8913_v30, %v8171_v22  ;;  %10847 = vmatmul.msk.f32.gmra.mxu2 %vm403_vm1, %v10717_v55  ;;  %v15817_v22 = vld [vmem:[#allocation14_spill] sm:$0xff] }
 0x6dc   : > { %11105 = vmatmul.msk.f32.gmra.mxu3 %vm403_vm1, %v10975_v42 }
 0x6dd   : > { %11363 = vmatmul.msk.f32.gmra.mxu0 %vm403_vm1, %v14512_v19  ;;  %9346 = vst.msk [vmem:[%s13952_s8 + $0x140] sm:$0xff] %vm9305_vm2, %v9217_v21 }
 0x6de   : > { %v6824_v52 = vpop.f32.mrf.mxu2 }
 0x6df   : > { %v7126_v24 = vadd.f32 %v6824_v52, %v6079_v56  ;;  %v7870_v48 = vpop.f32.mrf.mxu3  ;;  %v5780_v45 = vpop.f32.mrf.mxu1  ;;  %v10723_v52 = vld [vmem:[%s11509_s24 + $0x2c0] sm:$0xff] }
 0x6e0   : > { %v6080_v7 = vadd.f32 %v5780_v45, %v12796_v43 }
 0x6e1   : > { %v8172_v29 = vadd.f32 %v7870_v48, %v7126_v24  ;;  %v10981_v48 = vld [vmem:[%s11509_s24 + $0x2c1] sm:$0xff] }
 0x6e2   : > { %v8919_v51 = vpop.f32.mrf.mxu0  ;;  %10590 = vmatmul.msk.f32.gmra.mxu1 %vm403_vm1, %v14470_v18 }
 0x6e3   : > { %v9218_v10 = vadd.f32 %v8916_v14, %v8172_v29  ;;  %10848 = vmatmul.msk.f32.gmra.mxu2 %vm403_vm1, %v10718_v38  ;;  %v14596_v38 = vld [vmem:[%s11509_s24 + $0x2c2] sm:$0xff] }
 0x6e4   : > { %11106 = vmatmul.msk.f32.gmra.mxu3 %vm403_vm1, %v10976_v39  ;;  %v15818_v39 = vld [vmem:[#allocation17_spill] sm:$0xff] }
 0x6e5   : > { %11364 = vmatmul.msk.f32.gmra.mxu0 %vm403_vm1, %v14526_v9  ;;  %9347 = vst.msk [vmem:[%s13952_s8 + $0x148] sm:$0xff] %vm9305_vm2, %v9218_v10 }
 0x6e6   : > { %v6827_v0 = vpop.f32.mrf.mxu2 }
 0x6e7   : > { %v7127_v53 = vadd.f32 %v6827_v0, %v6080_v7  ;;  %v7873_v46 = vpop.f32.mrf.mxu3  ;;  %v5783_v1 = vpop.f32.mrf.mxu1 }
 0x6e8   : > { %v6081_v43 = vadd.f32 %v5783_v1, %v12810_v27  ;;  %v15815_v27 = vld [vmem:[#allocation8_spill] sm:$0xff] }
 0x6e9   : > { %v8173_v12 = vadd.f32 %v7873_v46, %v7127_v53  ;;  %v10724_v53 = vld [vmem:[%s11509_s24 + $0x2d0] sm:$0xff] }
 0x6ea   : > { %v8922_v13 = vpop.f32.mrf.mxu0  ;;  %10591 = vmatmul.msk.f32.gmra.mxu1 %vm403_vm1, %v14484_v59  ;;  %v10982_v1 = vld [vmem:[%s11509_s24 + $0x2d1] sm:$0xff] }
 0x6eb   : > { %v9219_v15 = vadd.f32 %v8919_v51, %v8173_v12  ;;  %10849 = vmatmul.msk.f32.gmra.mxu2 %vm403_vm1, %v10719_v32  ;;  %v14610_v12 = vld [vmem:[%s11509_s24 + $0x2d2] sm:$0xff] }
 0x6ec   : > { %11107 = vmatmul.msk.f32.gmra.mxu3 %vm403_vm1, %v10977_v54 }
 0x6ed   : > { %11365 = vmatmul.msk.f32.gmra.mxu0 %vm403_vm1, %v14540_v63  ;;  %9348 = vst.msk [vmem:[%s13952_s8 + $0x150] sm:$0xff] %vm9305_vm2, %v9219_v15 }
 0x6ee   : > { %v6830_v61 = vpop.f32.mrf.mxu2 }
 0x6ef   : > { %v7128_v3 = vadd.f32 %v6830_v61, %v6081_v43  ;;  %v7876_v17 = vpop.f32.mrf.mxu3  ;;  %v5786_v18 = vpop.f32.mrf.mxu1 }
 0x6f0   : > { %v6082_v37 = vadd.f32 %v5786_v18, %v15815_v27 }
 0x6f1   : > { %v8174_v6 = vadd.f32 %v7876_v17, %v7128_v3  ;;  %v10725_v17 = vld [vmem:[%s11509_s24 + $0x2d8] sm:$0xff] }
 0x6f2   : > { %v8925_v57 = vpop.f32.mrf.mxu0  ;;  %10592 = vmatmul.msk.f32.gmra.mxu1 %vm403_vm1, %v14498_v25 }
 0x6f3   : > { %v9220_v58 = vadd.f32 %v8922_v13, %v8174_v6  ;;  %10850 = vmatmul.msk.f32.gmra.mxu2 %vm403_vm1, %v10720_v36  ;;  %v15819_v13 = vld [vmem:[#allocation20_spill] sm:$0xff]  ;;  %v10983_v36 = vld [vmem:[%s11509_s24 + $0x2d9] sm:$0xff] }
 0x6f4   : > { %11108 = vmatmul.msk.f32.gmra.mxu3 %vm403_vm1, %v10978_v50  ;;  %v14624_v50 = vld [vmem:[%s11509_s24 + $0x2da] sm:$0xff] }
 0x6f5   : > { %11366 = vmatmul.msk.f32.gmra.mxu0 %vm403_vm1, %v14554_v62  ;;  %9349 = vst.msk [vmem:[%s13952_s8 + $0x158] sm:$0xff] %vm9305_vm2, %v9220_v58 }
 0x6f6   : > { %v6833_v8 = vpop.f32.mrf.mxu2 }
 0x6f7   : > { %v7129_v23 = vadd.f32 %v6833_v8, %v6082_v37  ;;  %v7879_v26 = vpop.f32.mrf.mxu3  ;;  %v5789_v59 = vpop.f32.mrf.mxu1 }
 0x6f8   : > { %v6083_v49 = vadd.f32 %v5789_v59, %v15816_v33 }
 0x6f9   : > { %v8175_v40 = vadd.f32 %v7879_v26, %v7129_v23  ;;  %v10726_v26 = vld [vmem:[%s11509_s24 + $0x2e0] sm:$0xff] }
 0x6fa   : > { %v8928_v16 = vpop.f32.mrf.mxu0  ;;  %10593 = vmatmul.msk.f32.gmra.mxu1 %vm403_vm1, %v14512_v19 }
 0x6fb   : > { %v9221_v31 = vadd.f32 %v8925_v57, %v8175_v40  ;;  %10851 = vmatmul.msk.f32.gmra.mxu2 %vm403_vm1, %v10721_v11  ;;  %v10984_v11 = vld [vmem:[%s11509_s24 + $0x2e1] sm:$0xff] }
 0x6fc   : > { %11109 = vmatmul.msk.f32.gmra.mxu3 %vm403_vm1, %v10979_v5  ;;  %v14638_v5 = vld [vmem:[%s11509_s24 + $0x2e2] sm:$0xff] }
 0x6fd   : > { %11367 = vmatmul.msk.f32.gmra.mxu0 %vm403_vm1, %v14568_v47  ;;  %9350 = vst.msk [vmem:[%s13952_s8 + $0x160] sm:$0xff] %vm9305_vm2, %v9221_v31 }
 0x6fe   : > { %v6836_v4 = vpop.f32.mrf.mxu2 }
 0x6ff   : > { %v7130_v30 = vadd.f32 %v6836_v4, %v6083_v49  ;;  %v7882_v25 = vpop.f32.mrf.mxu3  ;;  %v5792_v34 = vpop.f32.mrf.mxu1 }
 0x700   : > { %v6084_v42 = vadd.f32 %v5792_v34, %v15817_v22 }
 0x701   : > { %v8176_v28 = vadd.f32 %v7882_v25, %v7130_v30  ;;  %v10727_v25 = vld [vmem:[%s11509_s24 + $0x2e8] sm:$0xff] }
 0x702   : > { %v8931_v41 = vpop.f32.mrf.mxu0  ;;  %10594 = vmatmul.msk.f32.gmra.mxu1 %vm403_vm1, %v14526_v9 }
 0x703   : > { %v9222_v55 = vadd.f32 %v8928_v16, %v8176_v28  ;;  %10852 = vmatmul.msk.f32.gmra.mxu2 %vm403_vm1, %v10722_v35  ;;  %v10985_v35 = vld [vmem:[%s11509_s24 + $0x2e9] sm:$0xff] }
 0x704   : > { %11110 = vmatmul.msk.f32.gmra.mxu3 %vm403_vm1, %v10980_v60  ;;  %v14652_v60 = vld [vmem:[%s11509_s24 + $0x2ea] sm:$0xff] }
 0x705   : > { %11368 = vmatmul.msk.f32.gmra.mxu0 %vm403_vm1, %v14582_v2  ;;  %9351 = vst.msk [vmem:[%s13952_s8 + $0x168] sm:$0xff] %vm9305_vm2, %v9222_v55 }
 0x706   : > { %v6839_v14 = vpop.f32.mrf.mxu2 }
 0x707   : > { %v7131_v19 = vadd.f32 %v6839_v14, %v6084_v42  ;;  %v7885_v21 = vpop.f32.mrf.mxu3  ;;  %v5795_v56 = vpop.f32.mrf.mxu1 }
 0x708   : > { %v6085_v51 = vadd.f32 %v5795_v56, %v15818_v39 }
 0x709   : > { %v8177_v24 = vadd.f32 %v7885_v21, %v7131_v19  ;;  %v10728_v21 = vld [vmem:[%s11509_s24 + $0x2f8] sm:$0xff] }
 0x70a   : > { %v8934_v45 = vpop.f32.mrf.mxu0  ;;  %10595 = vmatmul.msk.f32.gmra.mxu1 %vm403_vm1, %v14540_v63 }
 0x70b   : > { %v9223_v29 = vadd.f32 %v8931_v41, %v8177_v24  ;;  %10853 = vmatmul.msk.f32.gmra.mxu2 %vm403_vm1, %v10723_v52  ;;  %v10986_v52 = vld [vmem:[%s11509_s24 + $0x2f9] sm:$0xff] }
 0x70c   : > { %11111 = vmatmul.msk.f32.gmra.mxu3 %vm403_vm1, %v10981_v48  ;;  %v14666_v48 = vld [vmem:[%s11509_s24 + $0x2fa] sm:$0xff] }
 0x70d   : > { %11369 = vmatmul.msk.f32.gmra.mxu0 %vm403_vm1, %v14596_v38  ;;  %9352 = vst.msk [vmem:[%s13952_s8 + $0x170] sm:$0xff] %vm9305_vm2, %v9223_v29 }
 0x70e   : > { %v6842_v9 = vpop.f32.mrf.mxu2 }
 0x70f   : > { %v7132_v10 = vadd.f32 %v6842_v9, %v6085_v51  ;;  %v7888_v7 = vpop.f32.mrf.mxu3  ;;  %v5798_v0 = vpop.f32.mrf.mxu1 }
 0x710   : > { %v6086_v63 = vadd.f32 %v5798_v0, %v15819_v13 }
 0x711   : > { %v8178_v46 = vadd.f32 %v7888_v7, %v7132_v10  ;;  %v10729_v7 = vld [vmem:[%s11509_s24 + $0x300] sm:$0xff] }
 0x712   : > { %v8937_v32 = vpop.f32.mrf.mxu0  ;;  %10596 = vmatmul.msk.f32.gmra.mxu1 %vm403_vm1, %v14554_v62  ;;  %v15820_v62 = vld [vmem:[#allocation23_spill] sm:$0xff] }
 0x713   : > { %v9224_v54 = vadd.f32 %v8934_v45, %v8178_v46  ;;  %10854 = vmatmul.msk.f32.gmra.mxu2 %vm403_vm1, %v10724_v53  ;;  %v10987_v53 = vld [vmem:[%s11509_s24 + $0x301] sm:$0xff] }
 0x714   : > { %11112 = vmatmul.msk.f32.gmra.mxu3 %vm403_vm1, %v10982_v1  ;;  %v14680_v1 = vld [vmem:[%s11509_s24 + $0x302] sm:$0xff] }
 0x715   : > { %11370 = vmatmul.msk.f32.gmra.mxu0 %vm403_vm1, %v14610_v12  ;;  %9353 = vst.msk [vmem:[%s13952_s8 + $0x178] sm:$0xff] %vm9305_vm2, %v9224_v54 }
 0x716   : > { %v6845_v15 = vpop.f32.mrf.mxu2 }
 0x717   : > { %v7133_v43 = vadd.f32 %v6845_v15, %v6086_v63  ;;  %v7891_v61 = vpop.f32.mrf.mxu3  ;;  %v5801_v3 = vpop.f32.mrf.mxu1 }
 0x718   : > { %v6087_v58 = vadd.f32 %v5801_v3, %v15820_v62 }
 0x719   : > { %v8179_v18 = vadd.f32 %v7891_v61, %v7133_v43  ;;  %v10730_v61 = vld [vmem:[%s11509_s24 + $0x308] sm:$0xff] }
 0x71a   : > { %v8940_v6 = vpop.f32.mrf.mxu0  ;;  %10597 = vmatmul.msk.f32.gmra.mxu1 %vm403_vm1, %v14568_v47  ;;  %v15821_v47 = vld [vmem:[#allocation26_spill] sm:$0xff] }
 0x71b   : > { %v9225_v57 = vadd.f32 %v8937_v32, %v8179_v18  ;;  %10855 = vmatmul.msk.f32.gmra.mxu2 %vm403_vm1, %v10725_v17  ;;  %v10988_v17 = vld [vmem:[%s11509_s24 + $0x309] sm:$0xff] }
 0x71c   : > { %11113 = vmatmul.msk.f32.gmra.mxu3 %vm403_vm1, %v10983_v36  ;;  %v14694_v36 = vld [vmem:[%s11509_s24 + $0x30a] sm:$0xff] }
 0x71d   : > { %11371 = vmatmul.msk.f32.gmra.mxu0 %vm403_vm1, %v14624_v50  ;;  %9354 = vst.msk [vmem:[%s13952_s8 + $0x180] sm:$0xff] %vm9305_vm2, %v9225_v57 }
 0x71e   : > { %v6848_v27 = vpop.f32.mrf.mxu2 }
 0x71f   : > { %v7134_v37 = vadd.f32 %v6848_v27, %v6087_v58  ;;  %v7894_v8 = vpop.f32.mrf.mxu3  ;;  %v5804_v23 = vpop.f32.mrf.mxu1 }
 0x720   : > { %v6088_v31 = vadd.f32 %v5804_v23, %v15821_v47 }
 0x721   : > { %v8180_v59 = vadd.f32 %v7894_v8, %v7134_v37  ;;  %v10731_v8 = vld [vmem:[%s11509_s24 + $0x310] sm:$0xff] }
 0x722   : > { %v8943_v40 = vpop.f32.mrf.mxu0  ;;  %10598 = vmatmul.msk.f32.gmra.mxu1 %vm403_vm1, %v14582_v2  ;;  %v15822_v2 = vld [vmem:[#allocation29_spill] sm:$0xff] }
 0x723   : > { %v9226_v16 = vadd.f32 %v8940_v6, %v8180_v59  ;;  %10856 = vmatmul.msk.f32.gmra.mxu2 %vm403_vm1, %v10726_v26  ;;  %v10989_v26 = vld [vmem:[%s11509_s24 + $0x311] sm:$0xff] }
 0x724   : > { %11114 = vmatmul.msk.f32.gmra.mxu3 %vm403_vm1, %v10984_v11  ;;  %v14708_v11 = vld [vmem:[%s11509_s24 + $0x312] sm:$0xff] }
 0x725   : > { %11372 = vmatmul.msk.f32.gmra.mxu0 %vm403_vm1, %v14638_v5  ;;  %9355 = vst.msk [vmem:[%s13952_s8 + $0x188] sm:$0xff] %vm9305_vm2, %v9226_v16 }
 0x726   : > { %v6851_v33 = vpop.f32.mrf.mxu2 }
 0x727   : > { %v7135_v49 = vadd.f32 %v6851_v33, %v6088_v31  ;;  %v7897_v4 = vpop.f32.mrf.mxu3  ;;  %v5807_v30 = vpop.f32.mrf.mxu1 }
 0x728   : > { %v6089_v55 = vadd.f32 %v5807_v30, %v15822_v2 }
 0x729   : > { %v8181_v34 = vadd.f32 %v7897_v4, %v7135_v49  ;;  %v10732_v4 = vld [vmem:[%s11509_s24 + $0x320] sm:$0xff] }
 0x72a   : > { %v8946_v28 = vpop.f32.mrf.mxu0  ;;  %10599 = vmatmul.msk.f32.gmra.mxu1 %vm403_vm1, %v14596_v38  ;;  %v15823_v38 = vld [vmem:[#allocation32_spill] sm:$0xff] }
 0x72b   : > { %v9227_v41 = vadd.f32 %v8943_v40, %v8181_v34  ;;  %10857 = vmatmul.msk.f32.gmra.mxu2 %vm403_vm1, %v10727_v25  ;;  %v10990_v25 = vld [vmem:[%s11509_s24 + $0x321] sm:$0xff] }
 0x72c   : > { %11115 = vmatmul.msk.f32.gmra.mxu3 %vm403_vm1, %v10985_v35  ;;  %v14722_v35 = vld [vmem:[%s11509_s24 + $0x322] sm:$0xff] }
 0x72d   : > { %11373 = vmatmul.msk.f32.gmra.mxu0 %vm403_vm1, %v14652_v60  ;;  %9356 = vst.msk [vmem:[%s13952_s8 + $0x190] sm:$0xff] %vm9305_vm2, %v9227_v41 }
 0x72e   : > { %v6854_v22 = vpop.f32.mrf.mxu2 }
 0x72f   : > { %v7136_v42 = vadd.f32 %v6854_v22, %v6089_v55  ;;  %v7900_v14 = vpop.f32.mrf.mxu3  ;;  %v5810_v19 = vpop.f32.mrf.mxu1 }
 0x730   : > { %v6090_v29 = vadd.f32 %v5810_v19, %v15823_v38 }
 0x731   : > { %v8182_v56 = vadd.f32 %v7900_v14, %v7136_v42  ;;  %v10733_v14 = vld [vmem:[%s11509_s24 + $0x328] sm:$0xff] }
 0x732   : > { %v8949_v24 = vpop.f32.mrf.mxu0  ;;  %10600 = vmatmul.msk.f32.gmra.mxu1 %vm403_vm1, %v14610_v12  ;;  %v15824_v12 = vld [vmem:[#allocation35_spill] sm:$0xff] }
 0x733   : > { %v9228_v45 = vadd.f32 %v8946_v28, %v8182_v56  ;;  %10858 = vmatmul.msk.f32.gmra.mxu2 %vm403_vm1, %v10728_v21  ;;  %v10991_v21 = vld [vmem:[%s11509_s24 + $0x329] sm:$0xff] }
 0x734   : > { %11116 = vmatmul.msk.f32.gmra.mxu3 %vm403_vm1, %v10986_v52  ;;  %v14736_v52 = vld [vmem:[%s11509_s24 + $0x32a] sm:$0xff] }
 0x735   : > { %11374 = vmatmul.msk.f32.gmra.mxu0 %vm403_vm1, %v14666_v48  ;;  %9357 = vst.msk [vmem:[%s13952_s8 + $0x198] sm:$0xff] %vm9305_vm2, %v9228_v45 }
 0x736   : > { %v6857_v39 = vpop.f32.mrf.mxu2 }
 0x737   : > { %v7137_v51 = vadd.f32 %v6857_v39, %v6090_v29  ;;  %v7903_v9 = vpop.f32.mrf.mxu3  ;;  %v5813_v10 = vpop.f32.mrf.mxu1 }
 0x738   : > { %v6091_v54 = vadd.f32 %v5813_v10, %v15824_v12 }
 0x739   : > { %v8183_v0 = vadd.f32 %v7903_v9, %v7137_v51  ;;  %v10734_v9 = vld [vmem:[%s11509_s24 + $0x330] sm:$0xff] }
 0x73a   : > { %v8952_v46 = vpop.f32.mrf.mxu0  ;;  %10601 = vmatmul.msk.f32.gmra.mxu1 %vm403_vm1, %v14624_v50  ;;  %v15825_v50 = vld [vmem:[#allocation38_spill] sm:$0xff] }
 0x73b   : > { %v9229_v32 = vadd.f32 %v8949_v24, %v8183_v0  ;;  %10859 = vmatmul.msk.f32.gmra.mxu2 %vm403_vm1, %v10729_v7  ;;  %v10992_v7 = vld [vmem:[%s11509_s24 + $0x331] sm:$0xff] }
 0x73c   : > { %11117 = vmatmul.msk.f32.gmra.mxu3 %vm403_vm1, %v10987_v53  ;;  %v14750_v53 = vld [vmem:[%s11509_s24 + $0x332] sm:$0xff] }
 0x73d   : > { %11375 = vmatmul.msk.f32.gmra.mxu0 %vm403_vm1, %v14680_v1  ;;  %9358 = vst.msk [vmem:[%s13952_s8 + $0x1a0] sm:$0xff] %vm9305_vm2, %v9229_v32 }
 0x73e   : > { %v6860_v13 = vpop.f32.mrf.mxu2 }
 0x73f   : > { %v7138_v63 = vadd.f32 %v6860_v13, %v6091_v54  ;;  %v7906_v15 = vpop.f32.mrf.mxu3  ;;  %v5816_v43 = vpop.f32.mrf.mxu1 }
 0x740   : > { %v6092_v57 = vadd.f32 %v5816_v43, %v15825_v50 }
 0x741   : > { %v8184_v3 = vadd.f32 %v7906_v15, %v7138_v63  ;;  %v10735_v15 = vld [vmem:[%s11509_s24 + $0x338] sm:$0xff] }
 0x742   : > { %v8955_v18 = vpop.f32.mrf.mxu0  ;;  %10602 = vmatmul.msk.f32.gmra.mxu1 %vm403_vm1, %v14638_v5  ;;  %v15826_v5 = vld [vmem:[#allocation41_spill] sm:$0xff] }
 0x743   : > { %v9230_v6 = vadd.f32 %v8952_v46, %v8184_v3  ;;  %10860 = vmatmul.msk.f32.gmra.mxu2 %vm403_vm1, %v10730_v61  ;;  %v10993_v61 = vld [vmem:[%s11509_s24 + $0x339] sm:$0xff] }
 0x744   : > { %11118 = vmatmul.msk.f32.gmra.mxu3 %vm403_vm1, %v10988_v17  ;;  %v14764_v17 = vld [vmem:[%s11509_s24 + $0x33a] sm:$0xff] }
 0x745   : > { %11376 = vmatmul.msk.f32.gmra.mxu0 %vm403_vm1, %v14694_v36  ;;  %9359 = vst.msk [vmem:[%s13952_s8 + $0x1a8] sm:$0xff] %vm9305_vm2, %v9230_v6 }
 0x746   : > { %v6863_v62 = vpop.f32.mrf.mxu2 }
 0x747   : > { %v7139_v58 = vadd.f32 %v6863_v62, %v6092_v57  ;;  %v7909_v27 = vpop.f32.mrf.mxu3  ;;  %v5819_v37 = vpop.f32.mrf.mxu1 }
 0x748   : > { %v6093_v16 = vadd.f32 %v5819_v37, %v15826_v5 }
 0x749   : > { %v8185_v23 = vadd.f32 %v7909_v27, %v7139_v58  ;;  %v10736_v27 = vld [vmem:[%s11509_s24 + $0x348] sm:$0xff] }
 0x74a   : > { %v8958_v59 = vpop.f32.mrf.mxu0  ;;  %10603 = vmatmul.msk.f32.gmra.mxu1 %vm403_vm1, %v14652_v60  ;;  %v15827_v60 = vld [vmem:[#allocation44_spill] sm:$0xff] }
 0x74b   : > { %v9231_v40 = vadd.f32 %v8955_v18, %v8185_v23  ;;  %10861 = vmatmul.msk.f32.gmra.mxu2 %vm403_vm1, %v10731_v8  ;;  %v10994_v8 = vld [vmem:[%s11509_s24 + $0x349] sm:$0xff] }
 0x74c   : > { %11119 = vmatmul.msk.f32.gmra.mxu3 %vm403_vm1, %v10989_v26  ;;  %v14778_v26 = vld [vmem:[%s11509_s24 + $0x34a] sm:$0xff] }
 0x74d   : > { %11377 = vmatmul.msk.f32.gmra.mxu0 %vm403_vm1, %v14708_v11  ;;  %9360 = vst.msk [vmem:[%s13952_s8 + $0x1b0] sm:$0xff] %vm9305_vm2, %v9231_v40 }
 0x74e   : > { %v6866_v47 = vpop.f32.mrf.mxu2 }
 0x74f   : > { %v7140_v31 = vadd.f32 %v6866_v47, %v6093_v16  ;;  %v7912_v33 = vpop.f32.mrf.mxu3  ;;  %v5822_v49 = vpop.f32.mrf.mxu1 }
 0x750   : > { %v6094_v41 = vadd.f32 %v5822_v49, %v15827_v60 }
 0x751   : > { %v8186_v30 = vadd.f32 %v7912_v33, %v7140_v31  ;;  %v10737_v33 = vld [vmem:[%s11509_s24 + $0x350] sm:$0xff] }
 0x752   : > { %v8961_v34 = vpop.f32.mrf.mxu0  ;;  %10604 = vmatmul.msk.f32.gmra.mxu1 %vm403_vm1, %v14666_v48  ;;  %v15828_v48 = vld [vmem:[#allocation47_spill] sm:$0xff] }
 0x753   : > { %v9232_v28 = vadd.f32 %v8958_v59, %v8186_v30  ;;  %10862 = vmatmul.msk.f32.gmra.mxu2 %vm403_vm1, %v10732_v4  ;;  %v10995_v4 = vld [vmem:[%s11509_s24 + $0x351] sm:$0xff] }
 0x754   : > { %11120 = vmatmul.msk.f32.gmra.mxu3 %vm403_vm1, %v10990_v25  ;;  %v14792_v25 = vld [vmem:[%s11509_s24 + $0x352] sm:$0xff] }
 0x755   : > { %11378 = vmatmul.msk.f32.gmra.mxu0 %vm403_vm1, %v14722_v35  ;;  %9361 = vst.msk [vmem:[%s13952_s8 + $0x1b8] sm:$0xff] %vm9305_vm2, %v9232_v28 }
 0x756   : > { %v6869_v2 = vpop.f32.mrf.mxu2 }
 0x757   : > { %v7141_v55 = vadd.f32 %v6869_v2, %v6094_v41  ;;  %v7915_v22 = vpop.f32.mrf.mxu3  ;;  %v5825_v42 = vpop.f32.mrf.mxu1 }
 0x758   : > { %v6095_v45 = vadd.f32 %v5825_v42, %v15828_v48 }
 0x759   : > { %v8187_v19 = vadd.f32 %v7915_v22, %v7141_v55  ;;  %v10738_v22 = vld [vmem:[%s11509_s24 + $0x358] sm:$0xff] }
 0x75a   : > { %v8964_v56 = vpop.f32.mrf.mxu0  ;;  %10605 = vmatmul.msk.f32.gmra.mxu1 %vm403_vm1, %v14680_v1  ;;  %v15829_v1 = vld [vmem:[#allocation50_spill] sm:$0xff] }
 0x75b   : > { %v9233_v24 = vadd.f32 %v8961_v34, %v8187_v19  ;;  %10863 = vmatmul.msk.f32.gmra.mxu2 %vm403_vm1, %v10733_v14  ;;  %v10996_v14 = vld [vmem:[%s11509_s24 + $0x359] sm:$0xff] }
 0x75c   : > { %11121 = vmatmul.msk.f32.gmra.mxu3 %vm403_vm1, %v10991_v21  ;;  %v14806_v21 = vld [vmem:[%s11509_s24 + $0x35a] sm:$0xff] }
 0x75d   : > { %11379 = vmatmul.msk.f32.gmra.mxu0 %vm403_vm1, %v14736_v52  ;;  %9362 = vst.msk [vmem:[%s13952_s8 + $0x1c0] sm:$0xff] %vm9305_vm2, %v9233_v24 }
 0x75e   : > { %v6872_v38 = vpop.f32.mrf.mxu2 }
 0x75f   : > { %v7142_v29 = vadd.f32 %v6872_v38, %v6095_v45  ;;  %v7918_v39 = vpop.f32.mrf.mxu3  ;;  %v5828_v51 = vpop.f32.mrf.mxu1 }
 0x760   : > { %v6096_v32 = vadd.f32 %v5828_v51, %v15829_v1 }
 0x761   : > { %v8188_v10 = vadd.f32 %v7918_v39, %v7142_v29  ;;  %v10739_v39 = vld [vmem:[%s11509_s24 + $0x360] sm:$0xff] }
 0x762   : > { %v8967_v0 = vpop.f32.mrf.mxu0  ;;  %10606 = vmatmul.msk.f32.gmra.mxu1 %vm403_vm1, %v14694_v36  ;;  %v15830_v36 = vld [vmem:[#allocation53_spill] sm:$0xff] }
 0x763   : > { %v9234_v46 = vadd.f32 %v8964_v56, %v8188_v10  ;;  %10864 = vmatmul.msk.f32.gmra.mxu2 %vm403_vm1, %v10734_v9  ;;  %v10997_v9 = vld [vmem:[%s11509_s24 + $0x361] sm:$0xff] }
 0x764   : > { %11122 = vmatmul.msk.f32.gmra.mxu3 %vm403_vm1, %v10992_v7  ;;  %v14820_v7 = vld [vmem:[%s11509_s24 + $0x362] sm:$0xff] }
 0x765   : > { %11380 = vmatmul.msk.f32.gmra.mxu0 %vm403_vm1, %v14750_v53  ;;  %9363 = vst.msk [vmem:[%s13952_s8 + $0x1c8] sm:$0xff] %vm9305_vm2, %v9234_v46 }
 0x766   : > { %v6875_v12 = vpop.f32.mrf.mxu2 }
 0x767   : > { %v7143_v54 = vadd.f32 %v6875_v12, %v6096_v32  ;;  %v7921_v13 = vpop.f32.mrf.mxu3  ;;  %v5831_v63 = vpop.f32.mrf.mxu1 }
 0x768   : > { %v6097_v6 = vadd.f32 %v5831_v63, %v15830_v36 }
 0x769   : > { %v8189_v43 = vadd.f32 %v7921_v13, %v7143_v54  ;;  %v10740_v13 = vld [vmem:[%s11509_s24 + $0x370] sm:$0xff] }
 0x76a   : > { %v8970_v3 = vpop.f32.mrf.mxu0  ;;  %10607 = vmatmul.msk.f32.gmra.mxu1 %vm403_vm1, %v14708_v11  ;;  %v15831_v11 = vld [vmem:[#allocation56_spill] sm:$0xff] }
 0x76b   : > { %v9235_v18 = vadd.f32 %v8967_v0, %v8189_v43  ;;  %10865 = vmatmul.msk.f32.gmra.mxu2 %vm403_vm1, %v10735_v15  ;;  %v10998_v15 = vld [vmem:[%s11509_s24 + $0x371] sm:$0xff] }
 0x76c   : > { %11123 = vmatmul.msk.f32.gmra.mxu3 %vm403_vm1, %v10993_v61  ;;  %v14834_v61 = vld [vmem:[%s11509_s24 + $0x372] sm:$0xff] }
 0x76d   : > { %11381 = vmatmul.msk.f32.gmra.mxu0 %vm403_vm1, %v14764_v17  ;;  %9364 = vst.msk [vmem:[%s13952_s8 + $0x1d0] sm:$0xff] %vm9305_vm2, %v9235_v18 }
 0x76e   : > { %v6878_v50 = vpop.f32.mrf.mxu2 }
 0x76f   : > { %v7144_v57 = vadd.f32 %v6878_v50, %v6097_v6  ;;  %v7924_v62 = vpop.f32.mrf.mxu3  ;;  %v5834_v58 = vpop.f32.mrf.mxu1 }
 0x770   : > { %v6098_v40 = vadd.f32 %v5834_v58, %v15831_v11 }
 0x771   : > { %v8190_v37 = vadd.f32 %v7924_v62, %v7144_v57  ;;  %v10741_v62 = vld [vmem:[%s11509_s24 + $0x378] sm:$0xff] }
 0x772   : > { %v8973_v23 = vpop.f32.mrf.mxu0  ;;  %10608 = vmatmul.msk.f32.gmra.mxu1 %vm403_vm1, %v14722_v35  ;;  %v15832_v35 = vld [vmem:[#allocation59_spill] sm:$0xff] }
 0x773   : > { %v9236_v59 = vadd.f32 %v8970_v3, %v8190_v37  ;;  %10866 = vmatmul.msk.f32.gmra.mxu2 %vm403_vm1, %v10736_v27  ;;  %v10999_v27 = vld [vmem:[%s11509_s24 + $0x379] sm:$0xff] }
 0x774   : > { %11124 = vmatmul.msk.f32.gmra.mxu3 %vm403_vm1, %v10994_v8  ;;  %v14848_v8 = vld [vmem:[%s11509_s24 + $0x37a] sm:$0xff] }
 0x775   : > { %11382 = vmatmul.msk.f32.gmra.mxu0 %vm403_vm1, %v14778_v26  ;;  %9365 = vst.msk [vmem:[%s13952_s8 + $0x1d8] sm:$0xff] %vm9305_vm2, %v9236_v59 }
 0x776   : > { %v6881_v5 = vpop.f32.mrf.mxu2 }
 0x777   : > { %v7145_v16 = vadd.f32 %v6881_v5, %v6098_v40  ;;  %v7927_v47 = vpop.f32.mrf.mxu3  ;;  %v5837_v31 = vpop.f32.mrf.mxu1 }
 0x778   : > { %v6099_v28 = vadd.f32 %v5837_v31, %v15832_v35 }
 0x779   : > { %v8191_v49 = vadd.f32 %v7927_v47, %v7145_v16  ;;  %v10742_v47 = vld [vmem:[%s11509_s24 + $0x380] sm:$0xff] }
 0x77a   : > { %v8976_v30 = vpop.f32.mrf.mxu0  ;;  %10609 = vmatmul.msk.f32.gmra.mxu1 %vm403_vm1, %v14736_v52  ;;  %v15833_v52 = vld [vmem:[#allocation62_spill] sm:$0xff] }
 0x77b   : > { %v9237_v34 = vadd.f32 %v8973_v23, %v8191_v49  ;;  %10867 = vmatmul.msk.f32.gmra.mxu2 %vm403_vm1, %v10737_v33  ;;  %v11000_v33 = vld [vmem:[%s11509_s24 + $0x381] sm:$0xff] }
 0x77c   : > { %11125 = vmatmul.msk.f32.gmra.mxu3 %vm403_vm1, %v10995_v4  ;;  %v14862_v4 = vld [vmem:[%s11509_s24 + $0x382] sm:$0xff] }
 0x77d   : > { %11383 = vmatmul.msk.f32.gmra.mxu0 %vm403_vm1, %v14792_v25  ;;  %9366 = vst.msk [vmem:[%s13952_s8 + $0x1e0] sm:$0xff] %vm9305_vm2, %v9237_v34 }
 0x77e   : > { %v6884_v60 = vpop.f32.mrf.mxu2 }
 0x77f   : > { %v7146_v41 = vadd.f32 %v6884_v60, %v6099_v28  ;;  %v7930_v2 = vpop.f32.mrf.mxu3  ;;  %v5840_v55 = vpop.f32.mrf.mxu1 }
 0x780   : > { %v6100_v24 = vadd.f32 %v5840_v55, %v15833_v52 }
 0x781   : > { %v8192_v42 = vadd.f32 %v7930_v2, %v7146_v41  ;;  %v10743_v2 = vld [vmem:[%s11509_s24 + $0x388] sm:$0xff] }
 0x782   : > { %v8979_v19 = vpop.f32.mrf.mxu0  ;;  %10610 = vmatmul.msk.f32.gmra.mxu1 %vm403_vm1, %v14750_v53  ;;  %v15834_v53 = vld [vmem:[#allocation65_spill] sm:$0xff] }
 0x783   : > { %v9238_v56 = vadd.f32 %v8976_v30, %v8192_v42  ;;  %10868 = vmatmul.msk.f32.gmra.mxu2 %vm403_vm1, %v10738_v22  ;;  %v11001_v22 = vld [vmem:[%s11509_s24 + $0x389] sm:$0xff] }
 0x784   : > { %11126 = vmatmul.msk.f32.gmra.mxu3 %vm403_vm1, %v10996_v14  ;;  %v14876_v14 = vld [vmem:[%s11509_s24 + $0x38a] sm:$0xff] }
 0x785   : > { %11384 = vmatmul.msk.f32.gmra.mxu0 %vm403_vm1, %v14806_v21  ;;  %9367 = vst.msk [vmem:[%s13952_s8 + $0x1e8] sm:$0xff] %vm9305_vm2, %v9238_v56 }
 0x786   : > { %v6887_v48 = vpop.f32.mrf.mxu2 }
 0x787   : > { %v7147_v45 = vadd.f32 %v6887_v48, %v6100_v24  ;;  %v7933_v38 = vpop.f32.mrf.mxu3  ;;  %v5843_v29 = vpop.f32.mrf.mxu1 }
 0x788   : > { %v6101_v46 = vadd.f32 %v5843_v29, %v15834_v53 }
 0x789   : > { %v8193_v51 = vadd.f32 %v7933_v38, %v7147_v45  ;;  %v10744_v38 = vld [vmem:[%s11509_s24 + $0x398] sm:$0xff] }
 0x78a   : > { %v8982_v10 = vpop.f32.mrf.mxu0  ;;  %10611 = vmatmul.msk.f32.gmra.mxu1 %vm403_vm1, %v14764_v17  ;;  %v15835_v17 = vld [vmem:[#allocation68_spill] sm:$0xff] }
 0x78b   : > { %v9239_v0 = vadd.f32 %v8979_v19, %v8193_v51  ;;  %10869 = vmatmul.msk.f32.gmra.mxu2 %vm403_vm1, %v10739_v39  ;;  %v11002_v39 = vld [vmem:[%s11509_s24 + $0x399] sm:$0xff] }
 0x78c   : > { %11127 = vmatmul.msk.f32.gmra.mxu3 %vm403_vm1, %v10997_v9  ;;  %v14890_v9 = vld [vmem:[%s11509_s24 + $0x39a] sm:$0xff] }
 0x78d   : > { %11385 = vmatmul.msk.f32.gmra.mxu0 %vm403_vm1, %v14820_v7  ;;  %9368 = vst.msk [vmem:[%s13952_s8 + $0x1f0] sm:$0xff] %vm9305_vm2, %v9239_v0 }
 0x78e   : > { %v6890_v1 = vpop.f32.mrf.mxu2 }
 0x78f   : > { %v7148_v32 = vadd.f32 %v6890_v1, %v6101_v46  ;;  %v7936_v12 = vpop.f32.mrf.mxu3  ;;  %v5846_v54 = vpop.f32.mrf.mxu1 }
 0x790   : > { %v6102_v18 = vadd.f32 %v5846_v54, %v15835_v17 }
 0x791   : > { %v8194_v63 = vadd.f32 %v7936_v12, %v7148_v32  ;;  %v10745_v12 = vld [vmem:[%s11509_s24 + $0x3a0] sm:$0xff] }
 0x792   : > { %v8985_v43 = vpop.f32.mrf.mxu0  ;;  %10612 = vmatmul.msk.f32.gmra.mxu1 %vm403_vm1, %v14778_v26  ;;  %v15836_v26 = vld [vmem:[#allocation71_spill] sm:$0xff] }
 0x793   : > { %v9240_v3 = vadd.f32 %v8982_v10, %v8194_v63  ;;  %10870 = vmatmul.msk.f32.gmra.mxu2 %vm403_vm1, %v10740_v13  ;;  %v11003_v13 = vld [vmem:[%s11509_s24 + $0x3a1] sm:$0xff] }
 0x794   : > { %11128 = vmatmul.msk.f32.gmra.mxu3 %vm403_vm1, %v10998_v15  ;;  %v14904_v15 = vld [vmem:[%s11509_s24 + $0x3a2] sm:$0xff] }
 0x795   : > { %11386 = vmatmul.msk.f32.gmra.mxu0 %vm403_vm1, %v14834_v61  ;;  %9369 = vst.msk [vmem:[%s13952_s8 + $0x1f8] sm:$0xff] %vm9305_vm2, %v9240_v3 }
 0x796   : > { %v6893_v36 = vpop.f32.mrf.mxu2 }
 0x797   : > { %v7149_v6 = vadd.f32 %v6893_v36, %v6102_v18  ;;  %v7939_v50 = vpop.f32.mrf.mxu3  ;;  %v5849_v57 = vpop.f32.mrf.mxu1 }
 0x798   : > { %v6103_v59 = vadd.f32 %v5849_v57, %v15836_v26 }
 0x799   : > { %v8195_v58 = vadd.f32 %v7939_v50, %v7149_v6  ;;  %v10746_v50 = vld [vmem:[%s11509_s24 + $0x3a8] sm:$0xff] }
 0x79a   : > { %v8988_v37 = vpop.f32.mrf.mxu0  ;;  %10613 = vmatmul.msk.f32.gmra.mxu1 %vm403_vm1, %v14792_v25  ;;  %v15837_v25 = vld [vmem:[#allocation74_spill] sm:$0xff] }
 0x79b   : > { %v9241_v23 = vadd.f32 %v8985_v43, %v8195_v58  ;;  %10871 = vmatmul.msk.f32.gmra.mxu2 %vm403_vm1, %v10741_v62  ;;  %v11004_v62 = vld [vmem:[%s11509_s24 + $0x3a9] sm:$0xff] }
 0x79c   : > { %11129 = vmatmul.msk.f32.gmra.mxu3 %vm403_vm1, %v10999_v27  ;;  %v14918_v27 = vld [vmem:[%s11509_s24 + $0x3aa] sm:$0xff] }
 0x79d   : > { %11387 = vmatmul.msk.f32.gmra.mxu0 %vm403_vm1, %v14848_v8  ;;  %9370 = vst.msk [vmem:[%s13952_s8 + $0x200] sm:$0xff] %vm9305_vm2, %v9241_v23 }
 0x79e   : > { %v6896_v11 = vpop.f32.mrf.mxu2 }
 0x79f   : > { %v7150_v40 = vadd.f32 %v6896_v11, %v6103_v59  ;;  %v7942_v5 = vpop.f32.mrf.mxu3  ;;  %v5852_v16 = vpop.f32.mrf.mxu1 }
 0x7a0   : > { %v6104_v34 = vadd.f32 %v5852_v16, %v15837_v25 }
 0x7a1   : > { %v8196_v31 = vadd.f32 %v7942_v5, %v7150_v40  ;;  %v10747_v5 = vld [vmem:[%s11509_s24 + $0x3b0] sm:$0xff] }
 0x7a2   : > { %v8991_v49 = vpop.f32.mrf.mxu0  ;;  %10614 = vmatmul.msk.f32.gmra.mxu1 %vm403_vm1, %v14806_v21  ;;  %v15838_v21 = vld [vmem:[#allocation77_spill] sm:$0xff] }
 0x7a3   : > { %v9242_v30 = vadd.f32 %v8988_v37, %v8196_v31  ;;  %10872 = vmatmul.msk.f32.gmra.mxu2 %vm403_vm1, %v10742_v47  ;;  %v11005_v47 = vld [vmem:[%s11509_s24 + $0x3b1] sm:$0xff] }
 0x7a4   : > { %11130 = vmatmul.msk.f32.gmra.mxu3 %vm403_vm1, %v11000_v33  ;;  %v14932_v33 = vld [vmem:[%s11509_s24 + $0x3b2] sm:$0xff] }
 0x7a5   : > { %11388 = vmatmul.msk.f32.gmra.mxu0 %vm403_vm1, %v14862_v4  ;;  %9371 = vst.msk [vmem:[%s13952_s8 + $0x208] sm:$0xff] %vm9305_vm2, %v9242_v30 }
 0x7a6   : > { %v6899_v35 = vpop.f32.mrf.mxu2 }
 0x7a7   : > { %v7151_v28 = vadd.f32 %v6899_v35, %v6104_v34  ;;  %v7945_v60 = vpop.f32.mrf.mxu3  ;;  %v5855_v41 = vpop.f32.mrf.mxu1 }
 0x7a8   : > { %v6105_v56 = vadd.f32 %v5855_v41, %v15838_v21 }
 0x7a9   : > { %v8197_v55 = vadd.f32 %v7945_v60, %v7151_v28  ;;  %v10748_v60 = vld [vmem:[%s11509_s24 + $0x3c0] sm:$0xff] }
 0x7aa   : > { %v8994_v42 = vpop.f32.mrf.mxu0  ;;  %10615 = vmatmul.msk.f32.gmra.mxu1 %vm403_vm1, %v14820_v7  ;;  %v15839_v7 = vld [vmem:[#allocation80_spill] sm:$0xff] }
 0x7ab   : > { %v9243_v19 = vadd.f32 %v8991_v49, %v8197_v55  ;;  %10873 = vmatmul.msk.f32.gmra.mxu2 %vm403_vm1, %v10743_v2  ;;  %v11006_v2 = vld [vmem:[%s11509_s24 + $0x3c1] sm:$0xff] }
 0x7ac   : > { %11131 = vmatmul.msk.f32.gmra.mxu3 %vm403_vm1, %v11001_v22  ;;  %v14946_v22 = vld [vmem:[%s11509_s24 + $0x3c2] sm:$0xff] }
 0x7ad   : > { %11389 = vmatmul.msk.f32.gmra.mxu0 %vm403_vm1, %v14876_v14  ;;  %9372 = vst.msk [vmem:[%s13952_s8 + $0x210] sm:$0xff] %vm9305_vm2, %v9243_v19 }
 0x7ae   : > { %v6902_v52 = vpop.f32.mrf.mxu2 }
 0x7af   : > { %v7152_v24 = vadd.f32 %v6902_v52, %v6105_v56  ;;  %v7948_v48 = vpop.f32.mrf.mxu3  ;;  %v5858_v45 = vpop.f32.mrf.mxu1 }
 0x7b0   : > { %v6106_v0 = vadd.f32 %v5858_v45, %v15839_v7 }
 0x7b1   : > { %v8198_v29 = vadd.f32 %v7948_v48, %v7152_v24  ;;  %v10749_v48 = vld [vmem:[%s11509_s24 + $0x3c8] sm:$0xff] }
 0x7b2   : > { %v8997_v51 = vpop.f32.mrf.mxu0  ;;  %10616 = vmatmul.msk.f32.gmra.mxu1 %vm403_vm1, %v14834_v61  ;;  %v15840_v61 = vld [vmem:[#allocation83_spill] sm:$0xff] }
 0x7b3   : > { %v9244_v10 = vadd.f32 %v8994_v42, %v8198_v29  ;;  %10874 = vmatmul.msk.f32.gmra.mxu2 %vm403_vm1, %v10744_v38  ;;  %v11007_v38 = vld [vmem:[%s11509_s24 + $0x3c9] sm:$0xff] }
 0x7b4   : > { %11132 = vmatmul.msk.f32.gmra.mxu3 %vm403_vm1, %v11002_v39  ;;  %v14960_v39 = vld [vmem:[%s11509_s24 + $0x3ca] sm:$0xff] }
 0x7b5   : > { %11390 = vmatmul.msk.f32.gmra.mxu0 %vm403_vm1, %v14890_v9  ;;  %9373 = vst.msk [vmem:[%s13952_s8 + $0x218] sm:$0xff] %vm9305_vm2, %v9244_v10 }
 0x7b6   : > { %v6905_v53 = vpop.f32.mrf.mxu2 }
 0x7b7   : > { %v7153_v46 = vadd.f32 %v6905_v53, %v6106_v0  ;;  %v7951_v1 = vpop.f32.mrf.mxu3  ;;  %v5861_v32 = vpop.f32.mrf.mxu1 }
 0x7b8   : > { %v6107_v3 = vadd.f32 %v5861_v32, %v15840_v61 }
 0x7b9   : > { %v8199_v54 = vadd.f32 %v7951_v1, %v7153_v46  ;;  %v10750_v1 = vld [vmem:[%s11509_s24 + $0x3d0] sm:$0xff] }
 0x7ba   : > { %v9000_v63 = vpop.f32.mrf.mxu0  ;;  %10617 = vmatmul.msk.f32.gmra.mxu1 %vm403_vm1, %v14848_v8  ;;  %v15841_v8 = vld [vmem:[#allocation86_spill] sm:$0xff] }
 0x7bb   : > { %v9245_v43 = vadd.f32 %v8997_v51, %v8199_v54  ;;  %10875 = vmatmul.msk.f32.gmra.mxu2 %vm403_vm1, %v10745_v12  ;;  %v11008_v12 = vld [vmem:[%s11509_s24 + $0x3d1] sm:$0xff] }
 0x7bc   : > { %11133 = vmatmul.msk.f32.gmra.mxu3 %vm403_vm1, %v11003_v13  ;;  %v14974_v13 = vld [vmem:[%s11509_s24 + $0x3d2] sm:$0xff] }
 0x7bd   : > { %11391 = vmatmul.msk.f32.gmra.mxu0 %vm403_vm1, %v14904_v15  ;;  %9374 = vst.msk [vmem:[%s13952_s8 + $0x220] sm:$0xff] %vm9305_vm2, %v9245_v43 }
 0x7be   : > { %v6908_v17 = vpop.f32.mrf.mxu2 }
 0x7bf   : > { %v7154_v18 = vadd.f32 %v6908_v17, %v6107_v3  ;;  %v7954_v36 = vpop.f32.mrf.mxu3  ;;  %v5864_v6 = vpop.f32.mrf.mxu1 }
 0x7c0   : > { %v6108_v23 = vadd.f32 %v5864_v6, %v15841_v8 }
 0x7c1   : > { %v8200_v57 = vadd.f32 %v7954_v36, %v7154_v18  ;;  %v10751_v36 = vld [vmem:[%s11509_s24 + $0x3d8] sm:$0xff] }
 0x7c2   : > { %v9003_v58 = vpop.f32.mrf.mxu0  ;;  %10618 = vmatmul.msk.f32.gmra.mxu1 %vm403_vm1, %v14862_v4  ;;  %v15842_v4 = vld [vmem:[#allocation89_spill] sm:$0xff] }
 0x7c3   : > { %v9246_v37 = vadd.f32 %v9000_v63, %v8200_v57  ;;  %10876 = vmatmul.msk.f32.gmra.mxu2 %vm403_vm1, %v10746_v50  ;;  %v11009_v50 = vld [vmem:[%s11509_s24 + $0x3d9] sm:$0xff] }
 0x7c4   : > { %11134 = vmatmul.msk.f32.gmra.mxu3 %vm403_vm1, %v11004_v62  ;;  %v14988_v62 = vld [vmem:[%s11509_s24 + $0x3da] sm:$0xff] }
 0x7c5   : > { %11392 = vmatmul.msk.f32.gmra.mxu0 %vm403_vm1, %v14918_v27  ;;  %9375 = vst.msk [vmem:[%s13952_s8 + $0x228] sm:$0xff] %vm9305_vm2, %v9246_v37 }
 0x7c6   : > { %v6911_v26 = vpop.f32.mrf.mxu2 }
 0x7c7   : > { %v7155_v59 = vadd.f32 %v6911_v26, %v6108_v23  ;;  %v7957_v11 = vpop.f32.mrf.mxu3  ;;  %v5867_v40 = vpop.f32.mrf.mxu1 }
 0x7c8   : > { %v6109_v30 = vadd.f32 %v5867_v40, %v15842_v4 }
 0x7c9   : > { %v8201_v16 = vadd.f32 %v7957_v11, %v7155_v59  ;;  %v10752_v11 = vld [vmem:[%s11509_s24 + $0x3e8] sm:$0xff] }
 0x7ca   : > { %v9006_v31 = vpop.f32.mrf.mxu0  ;;  %10619 = vmatmul.msk.f32.gmra.mxu1 %vm403_vm1, %v14876_v14  ;;  %v15843_v14 = vld [vmem:[#allocation92_spill] sm:$0xff] }
 0x7cb   : > { %v9247_v49 = vadd.f32 %v9003_v58, %v8201_v16  ;;  %10877 = vmatmul.msk.f32.gmra.mxu2 %vm403_vm1, %v10747_v5  ;;  %v11010_v5 = vld [vmem:[%s11509_s24 + $0x3e9] sm:$0xff] }
 0x7cc   : > { %11135 = vmatmul.msk.f32.gmra.mxu3 %vm403_vm1, %v11005_v47  ;;  %v15002_v47 = vld [vmem:[%s11509_s24 + $0x3ea] sm:$0xff] }
 0x7cd   : > { %11393 = vmatmul.msk.f32.gmra.mxu0 %vm403_vm1, %v14932_v33  ;;  %9376 = vst.msk [vmem:[%s13952_s8 + $0x230] sm:$0xff] %vm9305_vm2, %v9247_v49 }
 0x7ce   : > { %v6914_v25 = vpop.f32.mrf.mxu2 }
 0x7cf   : > { %v7156_v34 = vadd.f32 %v6914_v25, %v6109_v30  ;;  %v7960_v35 = vpop.f32.mrf.mxu3  ;;  %v5870_v28 = vpop.f32.mrf.mxu1 }
 0x7d0   : > { %v6110_v19 = vadd.f32 %v5870_v28, %v15843_v14 }
 0x7d1   : > { %v8202_v41 = vadd.f32 %v7960_v35, %v7156_v34  ;;  %v10753_v35 = vld [vmem:[%s11509_s24 + $0x3f0] sm:$0xff] }
 0x7d2   : > { %v9009_v55 = vpop.f32.mrf.mxu0  ;;  %10620 = vmatmul.msk.f32.gmra.mxu1 %vm403_vm1, %v14890_v9  ;;  %v15844_v9 = vld [vmem:[#allocation2_spill] sm:$0xff] }
 0x7d3   : > { %v9248_v42 = vadd.f32 %v9006_v31, %v8202_v41  ;;  %10878 = vmatmul.msk.f32.gmra.mxu2 %vm403_vm1, %v10748_v60  ;;  %v11011_v60 = vld [vmem:[%s11509_s24 + $0x3f1] sm:$0xff] }
 0x7d4   : > { %11136 = vmatmul.msk.f32.gmra.mxu3 %vm403_vm1, %v11006_v2  ;;  %v15016_v2 = vld [vmem:[%s11509_s24 + $0x3f2] sm:$0xff] }
 0x7d5   : > { %11394 = vmatmul.msk.f32.gmra.mxu0 %vm403_vm1, %v14946_v22  ;;  %9377 = vst.msk [vmem:[%s13952_s8 + $0x238] sm:$0xff] %vm9305_vm2, %v9248_v42 }
 0x7d6   : > { %v6917_v21 = vpop.f32.mrf.mxu2 }
 0x7d7   : > { %v7157_v56 = vadd.f32 %v6917_v21, %v6110_v19  ;;  %v7963_v52 = vpop.f32.mrf.mxu3  ;;  %v5873_v24 = vpop.f32.mrf.mxu1 }
 0x7d8   : > { %v6111_v10 = vadd.f32 %v5873_v24, %v15844_v9 }
 0x7d9   : > { %v8203_v45 = vadd.f32 %v7963_v52, %v7157_v56  ;;  %v10754_v52 = vld [vmem:[%s11509_s24 + $0x3f8] sm:$0xff] }
 0x7da   : > { %v9012_v29 = vpop.f32.mrf.mxu0  ;;  %10621 = vmatmul.msk.f32.gmra.mxu1 %vm403_vm1, %v14904_v15  ;;  %v15845_v15 = vld [vmem:[#allocation4_spill] sm:$0xff] }
 0x7db   : > { %v9249_v51 = vadd.f32 %v9009_v55, %v8203_v45  ;;  %10879 = vmatmul.msk.f32.gmra.mxu2 %vm403_vm1, %v10749_v48  ;;  %v11012_v48 = vld [vmem:[%s11509_s24 + $0x3f9] sm:$0xff] }
 0x7dc   : > { %11137 = vmatmul.msk.f32.gmra.mxu3 %vm403_vm1, %v11007_v38  ;;  %v15030_v38 = vld [vmem:[%s11509_s24 + $0x3fa] sm:$0xff] }
 0x7dd   : > { %11395 = vmatmul.msk.f32.gmra.mxu0 %vm403_vm1, %v14960_v39  ;;  %9378 = vst.msk [vmem:[%s13952_s8 + $0x240] sm:$0xff] %vm9305_vm2, %v9249_v51 }
 0x7de   : > { %v6920_v7 = vpop.f32.mrf.mxu2 }
 0x7df   : > { %v7158_v0 = vadd.f32 %v6920_v7, %v6111_v10  ;;  %v7966_v53 = vpop.f32.mrf.mxu3  ;;  %v5876_v46 = vpop.f32.mrf.mxu1 }
 0x7e0   : > { %v6112_v43 = vadd.f32 %v5876_v46, %v15845_v15 }
 0x7e1   : > { %v8204_v32 = vadd.f32 %v7966_v53, %v7158_v0  ;;  %v10755_v53 = vld [vmem:[%s11509_s24 + $0x400] sm:$0xff] }
 0x7e2   : > { %v9015_v54 = vpop.f32.mrf.mxu0  ;;  %10622 = vmatmul.msk.f32.gmra.mxu1 %vm403_vm1, %v14918_v27  ;;  %v15846_v27 = vld [vmem:[#allocation6_spill] sm:$0xff] }
 0x7e3   : > { %v9250_v63 = vadd.f32 %v9012_v29, %v8204_v32  ;;  %10880 = vmatmul.msk.f32.gmra.mxu2 %vm403_vm1, %v10750_v1  ;;  %v11013_v1 = vld [vmem:[%s11509_s24 + $0x401] sm:$0xff] }
 0x7e4   : > { %11138 = vmatmul.msk.f32.gmra.mxu3 %vm403_vm1, %v11008_v12  ;;  %v15044_v12 = vld [vmem:[%s11509_s24 + $0x402] sm:$0xff] }
 0x7e5   : > { %11396 = vmatmul.msk.f32.gmra.mxu0 %vm403_vm1, %v14974_v13  ;;  %9379 = vst.msk [vmem:[%s13952_s8 + $0x248] sm:$0xff] %vm9305_vm2, %v9250_v63 }
 0x7e6   : > { %v6923_v61 = vpop.f32.mrf.mxu2 }
 0x7e7   : > { %v7159_v3 = vadd.f32 %v6923_v61, %v6112_v43  ;;  %v7969_v17 = vpop.f32.mrf.mxu3  ;;  %v5879_v18 = vpop.f32.mrf.mxu1 }
 0x7e8   : > { %v6113_v37 = vadd.f32 %v5879_v18, %v15846_v27 }
 0x7e9   : > { %v8205_v6 = vadd.f32 %v7969_v17, %v7159_v3  ;;  %v10756_v17 = vld [vmem:[%s11509_s24 + $0x410] sm:$0xff] }
 0x7ea   : > { %v9018_v57 = vpop.f32.mrf.mxu0  ;;  %10623 = vmatmul.msk.f32.gmra.mxu1 %vm403_vm1, %v14932_v33  ;;  %v15847_v33 = vld [vmem:[#allocation9_spill] sm:$0xff] }
 0x7eb   : > { %v9251_v58 = vadd.f32 %v9015_v54, %v8205_v6  ;;  %10881 = vmatmul.msk.f32.gmra.mxu2 %vm403_vm1, %v10751_v36  ;;  %v11014_v36 = vld [vmem:[%s11509_s24 + $0x411] sm:$0xff] }
 0x7ec   : > { %11139 = vmatmul.msk.f32.gmra.mxu3 %vm403_vm1, %v11009_v50  ;;  %v15058_v50 = vld [vmem:[%s11509_s24 + $0x412] sm:$0xff] }
 0x7ed   : > { %11397 = vmatmul.msk.f32.gmra.mxu0 %vm403_vm1, %v14988_v62  ;;  %9380 = vst.msk [vmem:[%s13952_s8 + $0x250] sm:$0xff] %vm9305_vm2, %v9251_v58 }
 0x7ee   : > { %v6926_v8 = vpop.f32.mrf.mxu2 }
 0x7ef   : > { %v7160_v23 = vadd.f32 %v6926_v8, %v6113_v37  ;;  %v7972_v26 = vpop.f32.mrf.mxu3  ;;  %v5882_v59 = vpop.f32.mrf.mxu1 }
 0x7f0   : > { %v6114_v49 = vadd.f32 %v5882_v59, %v15847_v33 }
 0x7f1   : > { %v8206_v40 = vadd.f32 %v7972_v26, %v7160_v23  ;;  %v10757_v26 = vld [vmem:[%s11509_s24 + $0x418] sm:$0xff] }
 0x7f2   : > { %v9021_v16 = vpop.f32.mrf.mxu0  ;;  %10624 = vmatmul.msk.f32.gmra.mxu1 %vm403_vm1, %v14946_v22  ;;  %v15848_v22 = vld [vmem:[#allocation12_spill] sm:$0xff] }
 0x7f3   : > { %v9252_v31 = vadd.f32 %v9018_v57, %v8206_v40  ;;  %10882 = vmatmul.msk.f32.gmra.mxu2 %vm403_vm1, %v10752_v11  ;;  %v11015_v11 = vld [vmem:[%s11509_s24 + $0x419] sm:$0xff] }
 0x7f4   : > { %11140 = vmatmul.msk.f32.gmra.mxu3 %vm403_vm1, %v11010_v5  ;;  %v15072_v5 = vld [vmem:[%s11509_s24 + $0x41a] sm:$0xff] }
 0x7f5   : > { %11398 = vmatmul.msk.f32.gmra.mxu0 %vm403_vm1, %v15002_v47  ;;  %9381 = vst.msk [vmem:[%s13952_s8 + $0x258] sm:$0xff] %vm9305_vm2, %v9252_v31 }
 0x7f6   : > { %v6929_v4 = vpop.f32.mrf.mxu2 }
 0x7f7   : > { %v7161_v30 = vadd.f32 %v6929_v4, %v6114_v49  ;;  %v7975_v25 = vpop.f32.mrf.mxu3  ;;  %v5885_v34 = vpop.f32.mrf.mxu1 }
 0x7f8   : > { %v6115_v42 = vadd.f32 %v5885_v34, %v15848_v22 }
 0x7f9   : > { %v8207_v28 = vadd.f32 %v7975_v25, %v7161_v30  ;;  %v10758_v25 = vld [vmem:[%s11509_s24 + $0x420] sm:$0xff] }
 0x7fa   : > { %v9024_v41 = vpop.f32.mrf.mxu0  ;;  %10625 = vmatmul.msk.f32.gmra.mxu1 %vm403_vm1, %v14960_v39  ;;  %v15849_v39 = vld [vmem:[#allocation15_spill] sm:$0xff] }
 0x7fb   : > { %v9253_v55 = vadd.f32 %v9021_v16, %v8207_v28  ;;  %10883 = vmatmul.msk.f32.gmra.mxu2 %vm403_vm1, %v10753_v35  ;;  %v11016_v35 = vld [vmem:[%s11509_s24 + $0x421] sm:$0xff] }
 0x7fc   : > { %11141 = vmatmul.msk.f32.gmra.mxu3 %vm403_vm1, %v11011_v60  ;;  %v15086_v60 = vld [vmem:[%s11509_s24 + $0x422] sm:$0xff] }
 0x7fd   : > { %11399 = vmatmul.msk.f32.gmra.mxu0 %vm403_vm1, %v15016_v2  ;;  %9382 = vst.msk [vmem:[%s13952_s8 + $0x260] sm:$0xff] %vm9305_vm2, %v9253_v55 }
 0x7fe   : > { %v6932_v14 = vpop.f32.mrf.mxu2 }
 0x7ff   : > { %v7162_v19 = vadd.f32 %v6932_v14, %v6115_v42  ;;  %v7978_v21 = vpop.f32.mrf.mxu3  ;;  %v5888_v56 = vpop.f32.mrf.mxu1 }
 0x800   : > { %v6116_v51 = vadd.f32 %v5888_v56, %v15849_v39 }
 0x801   : > { %v8208_v24 = vadd.f32 %v7978_v21, %v7162_v19  ;;  %v10759_v21 = vld [vmem:[%s11509_s24 + $0x428] sm:$0xff] }
 0x802   : > { %v9027_v45 = vpop.f32.mrf.mxu0  ;;  %10626 = vmatmul.msk.f32.gmra.mxu1 %vm403_vm1, %v14974_v13  ;;  %v15850_v13 = vld [vmem:[#allocation18_spill] sm:$0xff] }
 0x803   : > { %v9254_v29 = vadd.f32 %v9024_v41, %v8208_v24  ;;  %10884 = vmatmul.msk.f32.gmra.mxu2 %vm403_vm1, %v10754_v52  ;;  %v11017_v52 = vld [vmem:[%s11509_s24 + $0x429] sm:$0xff] }
 0x804   : > { %11142 = vmatmul.msk.f32.gmra.mxu3 %vm403_vm1, %v11012_v48  ;;  %v15100_v48 = vld [vmem:[%s11509_s24 + $0x42a] sm:$0xff] }
 0x805   : > { %11400 = vmatmul.msk.f32.gmra.mxu0 %vm403_vm1, %v15030_v38  ;;  %9383 = vst.msk [vmem:[%s13952_s8 + $0x268] sm:$0xff] %vm9305_vm2, %v9254_v29 }
 0x806   : > { %v6935_v9 = vpop.f32.mrf.mxu2 }
 0x807   : > { %v7163_v10 = vadd.f32 %v6935_v9, %v6116_v51  ;;  %v7981_v7 = vpop.f32.mrf.mxu3  ;;  %v5891_v0 = vpop.f32.mrf.mxu1 }
 0x808   : > { %v6117_v63 = vadd.f32 %v5891_v0, %v15850_v13 }
 0x809   : > { %v8209_v46 = vadd.f32 %v7981_v7, %v7163_v10  ;;  %v10760_v7 = vld [vmem:[%s11509_s24 + $0x438] sm:$0xff] }
 0x80a   : > { %v9030_v32 = vpop.f32.mrf.mxu0  ;;  %10627 = vmatmul.msk.f32.gmra.mxu1 %vm403_vm1, %v14988_v62  ;;  %v15851_v62 = vld [vmem:[#allocation21_spill] sm:$0xff] }
 0x80b   : > { %v9255_v54 = vadd.f32 %v9027_v45, %v8209_v46  ;;  %10885 = vmatmul.msk.f32.gmra.mxu2 %vm403_vm1, %v10755_v53  ;;  %v11018_v53 = vld [vmem:[%s11509_s24 + $0x439] sm:$0xff] }
 0x80c   : > { %11143 = vmatmul.msk.f32.gmra.mxu3 %vm403_vm1, %v11013_v1  ;;  %v15114_v1 = vld [vmem:[%s11509_s24 + $0x43a] sm:$0xff] }
 0x80d   : > { %11401 = vmatmul.msk.f32.gmra.mxu0 %vm403_vm1, %v15044_v12  ;;  %9384 = vst.msk [vmem:[%s13952_s8 + $0x270] sm:$0xff] %vm9305_vm2, %v9255_v54 }
 0x80e   : > { %v6938_v15 = vpop.f32.mrf.mxu2 }
 0x80f   : > { %v7164_v43 = vadd.f32 %v6938_v15, %v6117_v63  ;;  %v7984_v61 = vpop.f32.mrf.mxu3  ;;  %v5894_v3 = vpop.f32.mrf.mxu1 }
 0x810   : > { %v6118_v58 = vadd.f32 %v5894_v3, %v15851_v62 }
 0x811   : > { %v8210_v18 = vadd.f32 %v7984_v61, %v7164_v43  ;;  %v10761_v61 = vld [vmem:[%s11509_s24 + $0x440] sm:$0xff] }
 0x812   : > { %v9033_v6 = vpop.f32.mrf.mxu0  ;;  %10628 = vmatmul.msk.f32.gmra.mxu1 %vm403_vm1, %v15002_v47  ;;  %v15852_v47 = vld [vmem:[#allocation24_spill] sm:$0xff] }
 0x813   : > { %v9256_v57 = vadd.f32 %v9030_v32, %v8210_v18  ;;  %10886 = vmatmul.msk.f32.gmra.mxu2 %vm403_vm1, %v10756_v17  ;;  %v11019_v17 = vld [vmem:[%s11509_s24 + $0x441] sm:$0xff] }
 0x814   : > { %11144 = vmatmul.msk.f32.gmra.mxu3 %vm403_vm1, %v11014_v36  ;;  %v15128_v36 = vld [vmem:[%s11509_s24 + $0x442] sm:$0xff] }
 0x815   : > { %11402 = vmatmul.msk.f32.gmra.mxu0 %vm403_vm1, %v15058_v50  ;;  %9385 = vst.msk [vmem:[%s13952_s8 + $0x278] sm:$0xff] %vm9305_vm2, %v9256_v57 }
 0x816   : > { %v6941_v27 = vpop.f32.mrf.mxu2 }
 0x817   : > { %v7165_v37 = vadd.f32 %v6941_v27, %v6118_v58  ;;  %v7987_v8 = vpop.f32.mrf.mxu3  ;;  %v5897_v23 = vpop.f32.mrf.mxu1 }
 0x818   : > { %v6119_v31 = vadd.f32 %v5897_v23, %v15852_v47 }
 0x819   : > { %v8211_v59 = vadd.f32 %v7987_v8, %v7165_v37  ;;  %v10762_v8 = vld [vmem:[%s11509_s24 + $0x448] sm:$0xff] }
 0x81a   : > { %v9036_v40 = vpop.f32.mrf.mxu0  ;;  %10629 = vmatmul.msk.f32.gmra.mxu1 %vm403_vm1, %v15016_v2  ;;  %v15853_v2 = vld [vmem:[#allocation27_spill] sm:$0xff] }
 0x81b   : > { %v9257_v16 = vadd.f32 %v9033_v6, %v8211_v59  ;;  %10887 = vmatmul.msk.f32.gmra.mxu2 %vm403_vm1, %v10757_v26  ;;  %v11020_v26 = vld [vmem:[%s11509_s24 + $0x449] sm:$0xff] }
 0x81c   : > { %11145 = vmatmul.msk.f32.gmra.mxu3 %vm403_vm1, %v11015_v11  ;;  %v15142_v11 = vld [vmem:[%s11509_s24 + $0x44a] sm:$0xff] }
 0x81d   : > { %11403 = vmatmul.msk.f32.gmra.mxu0 %vm403_vm1, %v15072_v5  ;;  %9386 = vst.msk [vmem:[%s13952_s8 + $0x280] sm:$0xff] %vm9305_vm2, %v9257_v16 }
 0x81e   : > { %v6944_v33 = vpop.f32.mrf.mxu2 }
 0x81f   : > { %v7166_v49 = vadd.f32 %v6944_v33, %v6119_v31  ;;  %v7990_v4 = vpop.f32.mrf.mxu3  ;;  %v5900_v30 = vpop.f32.mrf.mxu1 }
 0x820   : > { %v6120_v55 = vadd.f32 %v5900_v30, %v15853_v2 }
 0x821   : > { %v8212_v34 = vadd.f32 %v7990_v4, %v7166_v49  ;;  %v10763_v4 = vld [vmem:[%s11509_s24 + $0x450] sm:$0xff] }
 0x822   : > { %v9039_v28 = vpop.f32.mrf.mxu0  ;;  %10630 = vmatmul.msk.f32.gmra.mxu1 %vm403_vm1, %v15030_v38  ;;  %v15854_v38 = vld [vmem:[#allocation30_spill] sm:$0xff] }
 0x823   : > { %v9258_v41 = vadd.f32 %v9036_v40, %v8212_v34  ;;  %10888 = vmatmul.msk.f32.gmra.mxu2 %vm403_vm1, %v10758_v25  ;;  %v11021_v25 = vld [vmem:[%s11509_s24 + $0x451] sm:$0xff] }
 0x824   : > { %11146 = vmatmul.msk.f32.gmra.mxu3 %vm403_vm1, %v11016_v35  ;;  %v15156_v35 = vld [vmem:[%s11509_s24 + $0x452] sm:$0xff] }
 0x825   : > { %11404 = vmatmul.msk.f32.gmra.mxu0 %vm403_vm1, %v15086_v60  ;;  %9387 = vst.msk [vmem:[%s13952_s8 + $0x288] sm:$0xff] %vm9305_vm2, %v9258_v41 }
 0x826   : > { %v6947_v22 = vpop.f32.mrf.mxu2 }
 0x827   : > { %v7167_v42 = vadd.f32 %v6947_v22, %v6120_v55  ;;  %v7993_v14 = vpop.f32.mrf.mxu3  ;;  %v5903_v19 = vpop.f32.mrf.mxu1 }
 0x828   : > { %v6121_v29 = vadd.f32 %v5903_v19, %v15854_v38 }
 0x829   : > { %v8213_v56 = vadd.f32 %v7993_v14, %v7167_v42  ;;  %v10764_v14 = vld [vmem:[%s11509_s24 + $0x460] sm:$0xff] }
 0x82a   : > { %v9042_v24 = vpop.f32.mrf.mxu0  ;;  %10631 = vmatmul.msk.f32.gmra.mxu1 %vm403_vm1, %v15044_v12  ;;  %v15855_v12 = vld [vmem:[#allocation33_spill] sm:$0xff] }
 0x82b   : > { %v9259_v45 = vadd.f32 %v9039_v28, %v8213_v56  ;;  %10889 = vmatmul.msk.f32.gmra.mxu2 %vm403_vm1, %v10759_v21  ;;  %v11022_v21 = vld [vmem:[%s11509_s24 + $0x461] sm:$0xff] }
 0x82c   : > { %11147 = vmatmul.msk.f32.gmra.mxu3 %vm403_vm1, %v11017_v52  ;;  %v15170_v52 = vld [vmem:[%s11509_s24 + $0x462] sm:$0xff] }
 0x82d   : > { %11405 = vmatmul.msk.f32.gmra.mxu0 %vm403_vm1, %v15100_v48  ;;  %9388 = vst.msk [vmem:[%s13952_s8 + $0x290] sm:$0xff] %vm9305_vm2, %v9259_v45 }
 0x82e   : > { %v6950_v39 = vpop.f32.mrf.mxu2 }
 0x82f   : > { %v7168_v51 = vadd.f32 %v6950_v39, %v6121_v29  ;;  %v7996_v9 = vpop.f32.mrf.mxu3  ;;  %v5906_v10 = vpop.f32.mrf.mxu1 }
 0x830   : > { %v6122_v54 = vadd.f32 %v5906_v10, %v15855_v12 }
 0x831   : > { %v8214_v0 = vadd.f32 %v7996_v9, %v7168_v51  ;;  %v10765_v9 = vld [vmem:[%s11509_s24 + $0x468] sm:$0xff] }
 0x832   : > { %v9045_v46 = vpop.f32.mrf.mxu0  ;;  %10632 = vmatmul.msk.f32.gmra.mxu1 %vm403_vm1, %v15058_v50  ;;  %v15856_v50 = vld [vmem:[#allocation36_spill] sm:$0xff] }
 0x833   : > { %v9260_v32 = vadd.f32 %v9042_v24, %v8214_v0  ;;  %10890 = vmatmul.msk.f32.gmra.mxu2 %vm403_vm1, %v10760_v7  ;;  %v11023_v7 = vld [vmem:[%s11509_s24 + $0x469] sm:$0xff] }
 0x834   : > { %11148 = vmatmul.msk.f32.gmra.mxu3 %vm403_vm1, %v11018_v53  ;;  %v15184_v53 = vld [vmem:[%s11509_s24 + $0x46a] sm:$0xff] }
 0x835   : > { %11406 = vmatmul.msk.f32.gmra.mxu0 %vm403_vm1, %v15114_v1  ;;  %9389 = vst.msk [vmem:[%s13952_s8 + $0x298] sm:$0xff] %vm9305_vm2, %v9260_v32 }
 0x836   : > { %v6953_v13 = vpop.f32.mrf.mxu2 }
 0x837   : > { %v7169_v63 = vadd.f32 %v6953_v13, %v6122_v54  ;;  %v7999_v15 = vpop.f32.mrf.mxu3  ;;  %v5909_v43 = vpop.f32.mrf.mxu1 }
 0x838   : > { %v6123_v57 = vadd.f32 %v5909_v43, %v15856_v50 }
 0x839   : > { %v8215_v3 = vadd.f32 %v7999_v15, %v7169_v63  ;;  %v10766_v15 = vld [vmem:[%s11509_s24 + $0x470] sm:$0xff] }
 0x83a   : > { %v9048_v18 = vpop.f32.mrf.mxu0  ;;  %10633 = vmatmul.msk.f32.gmra.mxu1 %vm403_vm1, %v15072_v5  ;;  %v15857_v5 = vld [vmem:[#allocation39_spill] sm:$0xff] }
 0x83b   : > { %v9261_v6 = vadd.f32 %v9045_v46, %v8215_v3  ;;  %10891 = vmatmul.msk.f32.gmra.mxu2 %vm403_vm1, %v10761_v61  ;;  %v11024_v61 = vld [vmem:[%s11509_s24 + $0x471] sm:$0xff] }
 0x83c   : > { %11149 = vmatmul.msk.f32.gmra.mxu3 %vm403_vm1, %v11019_v17  ;;  %v15198_v17 = vld [vmem:[%s11509_s24 + $0x472] sm:$0xff] }
 0x83d   : > { %11407 = vmatmul.msk.f32.gmra.mxu0 %vm403_vm1, %v15128_v36  ;;  %9390 = vst.msk [vmem:[%s13952_s8 + $0x2a0] sm:$0xff] %vm9305_vm2, %v9261_v6 }
 0x83e   : > { %v6956_v62 = vpop.f32.mrf.mxu2 }
 0x83f   : > { %v7170_v58 = vadd.f32 %v6956_v62, %v6123_v57  ;;  %v8002_v27 = vpop.f32.mrf.mxu3  ;;  %v5912_v37 = vpop.f32.mrf.mxu1 }
 0x840   : > { %v6124_v16 = vadd.f32 %v5912_v37, %v15857_v5 }
 0x841   : > { %v8216_v23 = vadd.f32 %v8002_v27, %v7170_v58  ;;  %v10767_v27 = vld [vmem:[%s11509_s24 + $0x478] sm:$0xff] }
 0x842   : > { %v9051_v59 = vpop.f32.mrf.mxu0  ;;  %10634 = vmatmul.msk.f32.gmra.mxu1 %vm403_vm1, %v15086_v60  ;;  %v15858_v60 = vld [vmem:[#allocation42_spill] sm:$0xff] }
 0x843   : > { %v9262_v40 = vadd.f32 %v9048_v18, %v8216_v23  ;;  %10892 = vmatmul.msk.f32.gmra.mxu2 %vm403_vm1, %v10762_v8  ;;  %v11025_v8 = vld [vmem:[%s11509_s24 + $0x479] sm:$0xff] }
 0x844   : > { %11150 = vmatmul.msk.f32.gmra.mxu3 %vm403_vm1, %v11020_v26  ;;  %v15212_v26 = vld [vmem:[%s11509_s24 + $0x47a] sm:$0xff] }
 0x845   : > { %11408 = vmatmul.msk.f32.gmra.mxu0 %vm403_vm1, %v15142_v11  ;;  %9391 = vst.msk [vmem:[%s13952_s8 + $0x2a8] sm:$0xff] %vm9305_vm2, %v9262_v40 }
 0x846   : > { %v6959_v47 = vpop.f32.mrf.mxu2 }
 0x847   : > { %v7171_v31 = vadd.f32 %v6959_v47, %v6124_v16  ;;  %v8005_v33 = vpop.f32.mrf.mxu3  ;;  %v5915_v49 = vpop.f32.mrf.mxu1 }
 0x848   : > { %v6125_v41 = vadd.f32 %v5915_v49, %v15858_v60 }
 0x849   : > { %v8217_v30 = vadd.f32 %v8005_v33, %v7171_v31  ;;  %v10768_v33 = vld [vmem:[%s11509_s24 + $0x488] sm:$0xff] }
 0x84a   : > { %v9054_v34 = vpop.f32.mrf.mxu0  ;;  %10635 = vmatmul.msk.f32.gmra.mxu1 %vm403_vm1, %v15100_v48  ;;  %v15859_v48 = vld [vmem:[#allocation45_spill] sm:$0xff] }
 0x84b   : > { %v9263_v28 = vadd.f32 %v9051_v59, %v8217_v30  ;;  %10893 = vmatmul.msk.f32.gmra.mxu2 %vm403_vm1, %v10763_v4  ;;  %v11026_v4 = vld [vmem:[%s11509_s24 + $0x489] sm:$0xff] }
 0x84c   : > { %11151 = vmatmul.msk.f32.gmra.mxu3 %vm403_vm1, %v11021_v25  ;;  %v15226_v25 = vld [vmem:[%s11509_s24 + $0x48a] sm:$0xff] }
 0x84d   : > { %11409 = vmatmul.msk.f32.gmra.mxu0 %vm403_vm1, %v15156_v35  ;;  %9392 = vst.msk [vmem:[%s13952_s8 + $0x2b0] sm:$0xff] %vm9305_vm2, %v9263_v28 }
 0x84e   : > { %v6962_v2 = vpop.f32.mrf.mxu2 }
 0x84f   : > { %v7172_v55 = vadd.f32 %v6962_v2, %v6125_v41  ;;  %v8008_v22 = vpop.f32.mrf.mxu3  ;;  %v5918_v42 = vpop.f32.mrf.mxu1 }
 0x850   : > { %v6126_v45 = vadd.f32 %v5918_v42, %v15859_v48 }
 0x851   : > { %v8218_v19 = vadd.f32 %v8008_v22, %v7172_v55  ;;  %v10769_v22 = vld [vmem:[%s11509_s24 + $0x490] sm:$0xff] }
 0x852   : > { %v9057_v56 = vpop.f32.mrf.mxu0  ;;  %10636 = vmatmul.msk.f32.gmra.mxu1 %vm403_vm1, %v15114_v1  ;;  %v15860_v1 = vld [vmem:[#allocation48_spill] sm:$0xff] }
 0x853   : > { %v9264_v24 = vadd.f32 %v9054_v34, %v8218_v19  ;;  %10894 = vmatmul.msk.f32.gmra.mxu2 %vm403_vm1, %v10764_v14  ;;  %v11027_v14 = vld [vmem:[%s11509_s24 + $0x491] sm:$0xff] }
 0x854   : > { %11152 = vmatmul.msk.f32.gmra.mxu3 %vm403_vm1, %v11022_v21  ;;  %v15240_v21 = vld [vmem:[%s11509_s24 + $0x492] sm:$0xff] }
 0x855   : > { %11410 = vmatmul.msk.f32.gmra.mxu0 %vm403_vm1, %v15170_v52  ;;  %9393 = vst.msk [vmem:[%s13952_s8 + $0x2b8] sm:$0xff] %vm9305_vm2, %v9264_v24 }
 0x856   : > { %v6965_v38 = vpop.f32.mrf.mxu2 }
 0x857   : > { %v7173_v29 = vadd.f32 %v6965_v38, %v6126_v45  ;;  %v8011_v39 = vpop.f32.mrf.mxu3  ;;  %v5921_v51 = vpop.f32.mrf.mxu1 }
 0x858   : > { %v6127_v32 = vadd.f32 %v5921_v51, %v15860_v1 }
 0x859   : > { %v8219_v10 = vadd.f32 %v8011_v39, %v7173_v29  ;;  %v10770_v39 = vld [vmem:[%s11509_s24 + $0x498] sm:$0xff] }
 0x85a   : > { %v9060_v0 = vpop.f32.mrf.mxu0  ;;  %10637 = vmatmul.msk.f32.gmra.mxu1 %vm403_vm1, %v15128_v36  ;;  %v15861_v36 = vld [vmem:[#allocation51_spill] sm:$0xff] }
 0x85b   : > { %v9265_v46 = vadd.f32 %v9057_v56, %v8219_v10  ;;  %10895 = vmatmul.msk.f32.gmra.mxu2 %vm403_vm1, %v10765_v9  ;;  %v11028_v9 = vld [vmem:[%s11509_s24 + $0x499] sm:$0xff] }
 0x85c   : > { %11153 = vmatmul.msk.f32.gmra.mxu3 %vm403_vm1, %v11023_v7  ;;  %v15254_v7 = vld [vmem:[%s11509_s24 + $0x49a] sm:$0xff] }
 0x85d   : > { %11411 = vmatmul.msk.f32.gmra.mxu0 %vm403_vm1, %v15184_v53  ;;  %9394 = vst.msk [vmem:[%s13952_s8 + $0x2c0] sm:$0xff] %vm9305_vm2, %v9265_v46 }
 0x85e   : > { %v6968_v12 = vpop.f32.mrf.mxu2 }
 0x85f   : > { %v7174_v54 = vadd.f32 %v6968_v12, %v6127_v32  ;;  %v8014_v13 = vpop.f32.mrf.mxu3  ;;  %v5924_v63 = vpop.f32.mrf.mxu1 }
 0x860   : > { %v6128_v6 = vadd.f32 %v5924_v63, %v15861_v36 }
 0x861   : > { %v8220_v43 = vadd.f32 %v8014_v13, %v7174_v54  ;;  %v10771_v13 = vld [vmem:[%s11509_s24 + $0x4a0] sm:$0xff] }
 0x862   : > { %v9063_v3 = vpop.f32.mrf.mxu0  ;;  %10638 = vmatmul.msk.f32.gmra.mxu1 %vm403_vm1, %v15142_v11  ;;  %v15862_v11 = vld [vmem:[#allocation54_spill] sm:$0xff] }
 0x863   : > { %v9266_v18 = vadd.f32 %v9060_v0, %v8220_v43  ;;  %10896 = vmatmul.msk.f32.gmra.mxu2 %vm403_vm1, %v10766_v15  ;;  %v11029_v15 = vld [vmem:[%s11509_s24 + $0x4a1] sm:$0xff] }
 0x864   : > { %11154 = vmatmul.msk.f32.gmra.mxu3 %vm403_vm1, %v11024_v61  ;;  %v15268_v61 = vld [vmem:[%s11509_s24 + $0x4a2] sm:$0xff] }
 0x865   : > { %11412 = vmatmul.msk.f32.gmra.mxu0 %vm403_vm1, %v15198_v17  ;;  %9395 = vst.msk [vmem:[%s13952_s8 + $0x2c8] sm:$0xff] %vm9305_vm2, %v9266_v18 }
 0x866   : > { %v6971_v50 = vpop.f32.mrf.mxu2 }
 0x867   : > { %v7175_v57 = vadd.f32 %v6971_v50, %v6128_v6  ;;  %v8017_v62 = vpop.f32.mrf.mxu3  ;;  %v5927_v58 = vpop.f32.mrf.mxu1 }
 0x868   : > { %v6129_v40 = vadd.f32 %v5927_v58, %v15862_v11 }
 0x869   : > { %v8221_v37 = vadd.f32 %v8017_v62, %v7175_v57  ;;  %v10772_v62 = vld [vmem:[%s11509_s24 + $0x4b0] sm:$0xff] }
 0x86a   : > { %v9066_v23 = vpop.f32.mrf.mxu0  ;;  %10639 = vmatmul.msk.f32.gmra.mxu1 %vm403_vm1, %v15156_v35  ;;  %v15863_v35 = vld [vmem:[#allocation57_spill] sm:$0xff] }
 0x86b   : > { %v9267_v59 = vadd.f32 %v9063_v3, %v8221_v37  ;;  %10897 = vmatmul.msk.f32.gmra.mxu2 %vm403_vm1, %v10767_v27  ;;  %v11030_v27 = vld [vmem:[%s11509_s24 + $0x4b1] sm:$0xff] }
 0x86c   : > { %11155 = vmatmul.msk.f32.gmra.mxu3 %vm403_vm1, %v11025_v8  ;;  %v15282_v8 = vld [vmem:[%s11509_s24 + $0x4b2] sm:$0xff] }
 0x86d   : > { %11413 = vmatmul.msk.f32.gmra.mxu0 %vm403_vm1, %v15212_v26  ;;  %9396 = vst.msk [vmem:[%s13952_s8 + $0x2d0] sm:$0xff] %vm9305_vm2, %v9267_v59 }
 0x86e   : > { %v6974_v5 = vpop.f32.mrf.mxu2 }
 0x86f   : > { %v7176_v16 = vadd.f32 %v6974_v5, %v6129_v40  ;;  %v8020_v47 = vpop.f32.mrf.mxu3  ;;  %v5930_v31 = vpop.f32.mrf.mxu1 }
 0x870   : > { %v6130_v28 = vadd.f32 %v5930_v31, %v15863_v35 }
 0x871   : > { %v8222_v49 = vadd.f32 %v8020_v47, %v7176_v16  ;;  %v10773_v47 = vld [vmem:[%s11509_s24 + $0x4b8] sm:$0xff] }
 0x872   : > { %v9069_v30 = vpop.f32.mrf.mxu0  ;;  %10640 = vmatmul.msk.f32.gmra.mxu1 %vm403_vm1, %v15170_v52  ;;  %v15864_v52 = vld [vmem:[#allocation60_spill] sm:$0xff] }
 0x873   : > { %v9268_v34 = vadd.f32 %v9066_v23, %v8222_v49  ;;  %10898 = vmatmul.msk.f32.gmra.mxu2 %vm403_vm1, %v10768_v33  ;;  %v11031_v33 = vld [vmem:[%s11509_s24 + $0x4b9] sm:$0xff] }
 0x874   : > { %11156 = vmatmul.msk.f32.gmra.mxu3 %vm403_vm1, %v11026_v4  ;;  %v15296_v4 = vld [vmem:[%s11509_s24 + $0x4ba] sm:$0xff] }
 0x875   : > { %11414 = vmatmul.msk.f32.gmra.mxu0 %vm403_vm1, %v15226_v25  ;;  %9397 = vst.msk [vmem:[%s13952_s8 + $0x2d8] sm:$0xff] %vm9305_vm2, %v9268_v34 }
 0x876   : > { %v6977_v60 = vpop.f32.mrf.mxu2 }
 0x877   : > { %v7177_v41 = vadd.f32 %v6977_v60, %v6130_v28  ;;  %v8023_v2 = vpop.f32.mrf.mxu3  ;;  %v5933_v55 = vpop.f32.mrf.mxu1 }
 0x878   : > { %v6131_v24 = vadd.f32 %v5933_v55, %v15864_v52 }
 0x879   : > { %v8223_v42 = vadd.f32 %v8023_v2, %v7177_v41  ;;  %v10774_v2 = vld [vmem:[%s11509_s24 + $0x4c0] sm:$0xff] }
 0x87a   : > { %v9072_v19 = vpop.f32.mrf.mxu0  ;;  %10641 = vmatmul.msk.f32.gmra.mxu1 %vm403_vm1, %v15184_v53  ;;  %v15865_v53 = vld [vmem:[#allocation63_spill] sm:$0xff] }
 0x87b   : > { %v9269_v56 = vadd.f32 %v9069_v30, %v8223_v42  ;;  %10899 = vmatmul.msk.f32.gmra.mxu2 %vm403_vm1, %v10769_v22  ;;  %v11032_v22 = vld [vmem:[%s11509_s24 + $0x4c1] sm:$0xff] }
 0x87c   : > { %11157 = vmatmul.msk.f32.gmra.mxu3 %vm403_vm1, %v11027_v14  ;;  %v15310_v14 = vld [vmem:[%s11509_s24 + $0x4c2] sm:$0xff] }
 0x87d   : > { %11415 = vmatmul.msk.f32.gmra.mxu0 %vm403_vm1, %v15240_v21  ;;  %9398 = vst.msk [vmem:[%s13952_s8 + $0x2e0] sm:$0xff] %vm9305_vm2, %v9269_v56 }
 0x87e   : > { %v6980_v48 = vpop.f32.mrf.mxu2 }
 0x87f   : > { %v7178_v45 = vadd.f32 %v6980_v48, %v6131_v24  ;;  %v8026_v38 = vpop.f32.mrf.mxu3  ;;  %v5936_v29 = vpop.f32.mrf.mxu1 }
 0x880   : > { %v6132_v46 = vadd.f32 %v5936_v29, %v15865_v53 }
 0x881   : > { %v8224_v51 = vadd.f32 %v8026_v38, %v7178_v45  ;;  %v10775_v38 = vld [vmem:[%s11509_s24 + $0x4c8] sm:$0xff] }
 0x882   : > { %v9075_v10 = vpop.f32.mrf.mxu0  ;;  %10642 = vmatmul.msk.f32.gmra.mxu1 %vm403_vm1, %v15198_v17  ;;  %v15866_v17 = vld [vmem:[#allocation66_spill] sm:$0xff] }
 0x883   : > { %v9270_v0 = vadd.f32 %v9072_v19, %v8224_v51  ;;  %10900 = vmatmul.msk.f32.gmra.mxu2 %vm403_vm1, %v10770_v39  ;;  %v11033_v39 = vld [vmem:[%s11509_s24 + $0x4c9] sm:$0xff] }
 0x884   : > { %11158 = vmatmul.msk.f32.gmra.mxu3 %vm403_vm1, %v11028_v9  ;;  %v15324_v9 = vld [vmem:[%s11509_s24 + $0x4ca] sm:$0xff] }
 0x885   : > { %11416 = vmatmul.msk.f32.gmra.mxu0 %vm403_vm1, %v15254_v7  ;;  %9399 = vst.msk [vmem:[%s13952_s8 + $0x2e8] sm:$0xff] %vm9305_vm2, %v9270_v0 }
 0x886   : > { %v6983_v1 = vpop.f32.mrf.mxu2 }
 0x887   : > { %v7179_v32 = vadd.f32 %v6983_v1, %v6132_v46  ;;  %v8029_v12 = vpop.f32.mrf.mxu3  ;;  %v5939_v54 = vpop.f32.mrf.mxu1 }
 0x888   : > { %v6133_v18 = vadd.f32 %v5939_v54, %v15866_v17 }
 0x889   : > { %v8225_v63 = vadd.f32 %v8029_v12, %v7179_v32  ;;  %v10776_v12 = vld [vmem:[%s11509_s24 + $0x4d8] sm:$0xff] }
 0x88a   : > { %v9078_v43 = vpop.f32.mrf.mxu0  ;;  %10643 = vmatmul.msk.f32.gmra.mxu1 %vm403_vm1, %v15212_v26  ;;  %v15867_v26 = vld [vmem:[#allocation69_spill] sm:$0xff] }
 0x88b   : > { %v9271_v3 = vadd.f32 %v9075_v10, %v8225_v63  ;;  %10901 = vmatmul.msk.f32.gmra.mxu2 %vm403_vm1, %v10771_v13  ;;  %v11034_v13 = vld [vmem:[%s11509_s24 + $0x4d9] sm:$0xff] }
 0x88c   : > { %11159 = vmatmul.msk.f32.gmra.mxu3 %vm403_vm1, %v11029_v15  ;;  %v15338_v15 = vld [vmem:[%s11509_s24 + $0x4da] sm:$0xff] }
 0x88d   : > { %11417 = vmatmul.msk.f32.gmra.mxu0 %vm403_vm1, %v15268_v61  ;;  %9400 = vst.msk [vmem:[%s13952_s8 + $0x2f0] sm:$0xff] %vm9305_vm2, %v9271_v3 }
 0x88e   : > { %v6986_v36 = vpop.f32.mrf.mxu2 }
 0x88f   : > { %v7180_v6 = vadd.f32 %v6986_v36, %v6133_v18  ;;  %v8032_v50 = vpop.f32.mrf.mxu3  ;;  %v5942_v57 = vpop.f32.mrf.mxu1 }
 0x890   : > { %v6134_v59 = vadd.f32 %v5942_v57, %v15867_v26 }
 0x891   : > { %v8226_v58 = vadd.f32 %v8032_v50, %v7180_v6  ;;  %v10777_v50 = vld [vmem:[%s11509_s24 + $0x4e0] sm:$0xff] }
 0x892   : > { %v9081_v37 = vpop.f32.mrf.mxu0  ;;  %10644 = vmatmul.msk.f32.gmra.mxu1 %vm403_vm1, %v15226_v25  ;;  %v15868_v25 = vld [vmem:[#allocation72_spill] sm:$0xff] }
 0x893   : > { %v9272_v23 = vadd.f32 %v9078_v43, %v8226_v58  ;;  %10902 = vmatmul.msk.f32.gmra.mxu2 %vm403_vm1, %v10772_v62  ;;  %v11035_v62 = vld [vmem:[%s11509_s24 + $0x4e1] sm:$0xff] }
 0x894   : > { %11160 = vmatmul.msk.f32.gmra.mxu3 %vm403_vm1, %v11030_v27  ;;  %v15352_v27 = vld [vmem:[%s11509_s24 + $0x4e2] sm:$0xff] }
 0x895   : > { %11418 = vmatmul.msk.f32.gmra.mxu0 %vm403_vm1, %v15282_v8  ;;  %9401 = vst.msk [vmem:[%s13952_s8 + $0x2f8] sm:$0xff] %vm9305_vm2, %v9272_v23 }
 0x896   : > { %v6989_v11 = vpop.f32.mrf.mxu2 }
 0x897   : > { %v7181_v40 = vadd.f32 %v6989_v11, %v6134_v59  ;;  %v8035_v5 = vpop.f32.mrf.mxu3  ;;  %v5945_v16 = vpop.f32.mrf.mxu1 }
 0x898   : > { %v6135_v34 = vadd.f32 %v5945_v16, %v15868_v25 }
 0x899   : > { %v8227_v31 = vadd.f32 %v8035_v5, %v7181_v40  ;;  %v10778_v5 = vld [vmem:[%s11509_s24 + $0x4e8] sm:$0xff] }
 0x89a   : > { %v9084_v49 = vpop.f32.mrf.mxu0  ;;  %10645 = vmatmul.msk.f32.gmra.mxu1 %vm403_vm1, %v15240_v21  ;;  %v15869_v21 = vld [vmem:[#allocation75_spill] sm:$0xff] }
 0x89b   : > { %v9273_v30 = vadd.f32 %v9081_v37, %v8227_v31  ;;  %10903 = vmatmul.msk.f32.gmra.mxu2 %vm403_vm1, %v10773_v47  ;;  %v11036_v47 = vld [vmem:[%s11509_s24 + $0x4e9] sm:$0xff] }
 0x89c   : > { %11161 = vmatmul.msk.f32.gmra.mxu3 %vm403_vm1, %v11031_v33  ;;  %v15366_v33 = vld [vmem:[%s11509_s24 + $0x4ea] sm:$0xff] }
 0x89d   : > { %11419 = vmatmul.msk.f32.gmra.mxu0 %vm403_vm1, %v15296_v4  ;;  %9402 = vst.msk [vmem:[%s13952_s8 + $0x300] sm:$0xff] %vm9305_vm2, %v9273_v30 }
 0x89e   : > { %v6992_v35 = vpop.f32.mrf.mxu2 }
 0x89f   : > { %v7182_v28 = vadd.f32 %v6992_v35, %v6135_v34  ;;  %v8038_v60 = vpop.f32.mrf.mxu3  ;;  %v5948_v41 = vpop.f32.mrf.mxu1 }
 0x8a0   : > { %v6136_v56 = vadd.f32 %v5948_v41, %v15869_v21 }
 0x8a1   : > { %v8228_v55 = vadd.f32 %v8038_v60, %v7182_v28  ;;  %v10779_v60 = vld [vmem:[%s11509_s24 + $0x4f0] sm:$0xff] }
 0x8a2   : > { %v9087_v42 = vpop.f32.mrf.mxu0  ;;  %10646 = vmatmul.msk.f32.gmra.mxu1 %vm403_vm1, %v15254_v7  ;;  %v15870_v7 = vld [vmem:[#allocation78_spill] sm:$0xff] }
 0x8a3   : > { %v9274_v19 = vadd.f32 %v9084_v49, %v8228_v55  ;;  %10904 = vmatmul.msk.f32.gmra.mxu2 %vm403_vm1, %v10774_v2  ;;  %v11037_v2 = vld [vmem:[%s11509_s24 + $0x4f1] sm:$0xff] }
 0x8a4   : > { %11162 = vmatmul.msk.f32.gmra.mxu3 %vm403_vm1, %v11032_v22  ;;  %v15380_v22 = vld [vmem:[%s11509_s24 + $0x4f2] sm:$0xff] }
 0x8a5   : > { %11420 = vmatmul.msk.f32.gmra.mxu0 %vm403_vm1, %v15310_v14  ;;  %9403 = vst.msk [vmem:[%s13952_s8 + $0x308] sm:$0xff] %vm9305_vm2, %v9274_v19 }
 0x8a6   : > { %v6995_v52 = vpop.f32.mrf.mxu2 }
 0x8a7   : > { %v7183_v24 = vadd.f32 %v6995_v52, %v6136_v56  ;;  %v8041_v48 = vpop.f32.mrf.mxu3  ;;  %v5951_v45 = vpop.f32.mrf.mxu1 }
 0x8a8   : > { %v6137_v0 = vadd.f32 %v5951_v45, %v15870_v7 }
 0x8a9   : > { %v8229_v29 = vadd.f32 %v8041_v48, %v7183_v24  ;;  %v10780_v48 = vld [vmem:[%s11509_s24 + $0x500] sm:$0xff] }
 0x8aa   : > { %v9090_v51 = vpop.f32.mrf.mxu0  ;;  %10647 = vmatmul.msk.f32.gmra.mxu1 %vm403_vm1, %v15268_v61  ;;  %v15871_v61 = vld [vmem:[#allocation81_spill] sm:$0xff] }
 0x8ab   : > { %v9275_v10 = vadd.f32 %v9087_v42, %v8229_v29  ;;  %10905 = vmatmul.msk.f32.gmra.mxu2 %vm403_vm1, %v10775_v38  ;;  %v11038_v38 = vld [vmem:[%s11509_s24 + $0x501] sm:$0xff] }
 0x8ac   : > { %11163 = vmatmul.msk.f32.gmra.mxu3 %vm403_vm1, %v11033_v39  ;;  %v15394_v39 = vld [vmem:[%s11509_s24 + $0x502] sm:$0xff] }
 0x8ad   : > { %11421 = vmatmul.msk.f32.gmra.mxu0 %vm403_vm1, %v15324_v9  ;;  %9404 = vst.msk [vmem:[%s13952_s8 + $0x310] sm:$0xff] %vm9305_vm2, %v9275_v10 }
 0x8ae   : > { %v6998_v53 = vpop.f32.mrf.mxu2 }
 0x8af   : > { %v7184_v46 = vadd.f32 %v6998_v53, %v6137_v0  ;;  %v8044_v1 = vpop.f32.mrf.mxu3  ;;  %v5954_v32 = vpop.f32.mrf.mxu1 }
 0x8b0   : > { %v6138_v3 = vadd.f32 %v5954_v32, %v15871_v61 }
 0x8b1   : > { %v8230_v54 = vadd.f32 %v8044_v1, %v7184_v46  ;;  %v10781_v1 = vld [vmem:[%s11509_s24 + $0x508] sm:$0xff] }
 0x8b2   : > { %v9093_v63 = vpop.f32.mrf.mxu0  ;;  %10648 = vmatmul.msk.f32.gmra.mxu1 %vm403_vm1, %v15282_v8  ;;  %v15872_v8 = vld [vmem:[#allocation84_spill] sm:$0xff] }
 0x8b3   : > { %v9276_v43 = vadd.f32 %v9090_v51, %v8230_v54  ;;  %10906 = vmatmul.msk.f32.gmra.mxu2 %vm403_vm1, %v10776_v12  ;;  %v11039_v12 = vld [vmem:[%s11509_s24 + $0x509] sm:$0xff] }
 0x8b4   : > { %11164 = vmatmul.msk.f32.gmra.mxu3 %vm403_vm1, %v11034_v13  ;;  %v15408_v13 = vld [vmem:[%s11509_s24 + $0x50a] sm:$0xff] }
 0x8b5   : > { %11422 = vmatmul.msk.f32.gmra.mxu0 %vm403_vm1, %v15338_v15  ;;  %9405 = vst.msk [vmem:[%s13952_s8 + $0x318] sm:$0xff] %vm9305_vm2, %v9276_v43 }
 0x8b6   : > { %v7001_v17 = vpop.f32.mrf.mxu2 }
 0x8b7   : > { %v7185_v18 = vadd.f32 %v7001_v17, %v6138_v3  ;;  %v8047_v36 = vpop.f32.mrf.mxu3  ;;  %v5957_v6 = vpop.f32.mrf.mxu1 }
 0x8b8   : > { %v6139_v23 = vadd.f32 %v5957_v6, %v15872_v8 }
 0x8b9   : > { %v8231_v57 = vadd.f32 %v8047_v36, %v7185_v18  ;;  %v10782_v36 = vld [vmem:[%s11509_s24 + $0x510] sm:$0xff] }
 0x8ba   : > { %v9096_v58 = vpop.f32.mrf.mxu0  ;;  %10649 = vmatmul.msk.f32.gmra.mxu1 %vm403_vm1, %v15296_v4  ;;  %v15873_v4 = vld [vmem:[#allocation87_spill] sm:$0xff] }
 0x8bb   : > { %v9277_v37 = vadd.f32 %v9093_v63, %v8231_v57  ;;  %10907 = vmatmul.msk.f32.gmra.mxu2 %vm403_vm1, %v10777_v50  ;;  %v11040_v50 = vld [vmem:[%s11509_s24 + $0x511] sm:$0xff] }
 0x8bc   : > { %11165 = vmatmul.msk.f32.gmra.mxu3 %vm403_vm1, %v11035_v62  ;;  %v15422_v62 = vld [vmem:[%s11509_s24 + $0x512] sm:$0xff] }
 0x8bd   : > { %11423 = vmatmul.msk.f32.gmra.mxu0 %vm403_vm1, %v15352_v27  ;;  %9406 = vst.msk [vmem:[%s13952_s8 + $0x320] sm:$0xff] %vm9305_vm2, %v9277_v37 }
 0x8be   : > { %v7004_v26 = vpop.f32.mrf.mxu2 }
 0x8bf   : > { %v7186_v59 = vadd.f32 %v7004_v26, %v6139_v23  ;;  %v8050_v11 = vpop.f32.mrf.mxu3  ;;  %v5960_v40 = vpop.f32.mrf.mxu1 }
 0x8c0   : > { %v6140_v30 = vadd.f32 %v5960_v40, %v15873_v4 }
 0x8c1   : > { %v8232_v16 = vadd.f32 %v8050_v11, %v7186_v59  ;;  %v10783_v11 = vld [vmem:[%s11509_s24 + $0x518] sm:$0xff] }
 0x8c2   : > { %v9099_v31 = vpop.f32.mrf.mxu0  ;;  %10650 = vmatmul.msk.f32.gmra.mxu1 %vm403_vm1, %v15310_v14  ;;  %v15874_v14 = vld [vmem:[#allocation90_spill] sm:$0xff] }
 0x8c3   : > { %v9278_v49 = vadd.f32 %v9096_v58, %v8232_v16  ;;  %10908 = vmatmul.msk.f32.gmra.mxu2 %vm403_vm1, %v10778_v5  ;;  %v11041_v5 = vld [vmem:[%s11509_s24 + $0x519] sm:$0xff] }
 0x8c4   : > { %11166 = vmatmul.msk.f32.gmra.mxu3 %vm403_vm1, %v11036_v47  ;;  %v15436_v47 = vld [vmem:[%s11509_s24 + $0x51a] sm:$0xff] }
 0x8c5   : > { %11424 = vmatmul.msk.f32.gmra.mxu0 %vm403_vm1, %v15366_v33  ;;  %9407 = vst.msk [vmem:[%s13952_s8 + $0x328] sm:$0xff] %vm9305_vm2, %v9278_v49 }
 0x8c6   : > { %v7007_v25 = vpop.f32.mrf.mxu2 }
 0x8c7   : > { %v7187_v34 = vadd.f32 %v7007_v25, %v6140_v30  ;;  %v8053_v35 = vpop.f32.mrf.mxu3  ;;  %v5963_v28 = vpop.f32.mrf.mxu1 }
 0x8c8   : > { %v6141_v19 = vadd.f32 %v5963_v28, %v15874_v14 }
 0x8c9   : > { %v8233_v41 = vadd.f32 %v8053_v35, %v7187_v34  ;;  %v10784_v35 = vld [vmem:[%s11509_s24 + $0x528] sm:$0xff] }
 0x8ca   : > { %v9102_v55 = vpop.f32.mrf.mxu0  ;;  %10651 = vmatmul.msk.f32.gmra.mxu1 %vm403_vm1, %v15324_v9  ;;  %v15875_v9 = vld [vmem:[#allocation93_spill] sm:$0xff] }
 0x8cb   : > { %v9279_v42 = vadd.f32 %v9099_v31, %v8233_v41  ;;  %10909 = vmatmul.msk.f32.gmra.mxu2 %vm403_vm1, %v10779_v60  ;;  %v11042_v60 = vld [vmem:[%s11509_s24 + $0x529] sm:$0xff] }
 0x8cc   : > { %11167 = vmatmul.msk.f32.gmra.mxu3 %vm403_vm1, %v11037_v2  ;;  %v11300_v2 = vld [vmem:[%s11509_s24 + $0x52a] sm:$0xff] }
 0x8cd   : > { %11425 = vmatmul.msk.f32.gmra.mxu0 %vm403_vm1, %v15380_v22  ;;  %9408 = vst.msk [vmem:[%s13952_s8 + $0x330] sm:$0xff] %vm9305_vm2, %v9279_v42 }
 0x8ce   : > { %v7010_v21 = vpop.f32.mrf.mxu2 }
 0x8cf   : > { %v7188_v56 = vadd.f32 %v7010_v21, %v6141_v19  ;;  %v8056_v52 = vpop.f32.mrf.mxu3  ;;  %v5966_v24 = vpop.f32.mrf.mxu1 }
 0x8d0   : > { %v6142_v10 = vadd.f32 %v5966_v24, %v15875_v9 }
 0x8d1   : > { %v8234_v45 = vadd.f32 %v8056_v52, %v7188_v56  ;;  %v10785_v52 = vld [vmem:[%s11509_s24 + $0x530] sm:$0xff] }
 0x8d2   : > { %v9105_v29 = vpop.f32.mrf.mxu0  ;;  %10652 = vmatmul.msk.f32.gmra.mxu1 %vm403_vm1, %v15338_v15  ;;  %v15876_v15 = vld [vmem:[#allocation3_spill] sm:$0xff] }
 0x8d3   : > { %v9280_v51 = vadd.f32 %v9102_v55, %v8234_v45  ;;  %10910 = vmatmul.msk.f32.gmra.mxu2 %vm403_vm1, %v10780_v48  ;;  %v11043_v48 = vld [vmem:[%s11509_s24 + $0x531] sm:$0xff] }
 0x8d4   : > { %11168 = vmatmul.msk.f32.gmra.mxu3 %vm403_vm1, %v11038_v38  ;;  %v11301_v38 = vld [vmem:[%s11509_s24 + $0x532] sm:$0xff] }
 0x8d5   : > { %11426 = vmatmul.msk.f32.gmra.mxu0 %vm403_vm1, %v15394_v39  ;;  %9409 = vst.msk [vmem:[%s13952_s8 + $0x338] sm:$0xff] %vm9305_vm2, %v9280_v51 }
 0x8d6   : > { %v7013_v7 = vpop.f32.mrf.mxu2 }
 0x8d7   : > { %v7189_v0 = vadd.f32 %v7013_v7, %v6142_v10  ;;  %v8059_v53 = vpop.f32.mrf.mxu3  ;;  %v5969_v46 = vpop.f32.mrf.mxu1 }
 0x8d8   : > { %v6143_v43 = vadd.f32 %v5969_v46, %v15876_v15 }
 0x8d9   : > { %v8235_v32 = vadd.f32 %v8059_v53, %v7189_v0  ;;  %v10786_v53 = vld [vmem:[%s11509_s24 + $0x538] sm:$0xff] }
 0x8da   : > { %v9108_v54 = vpop.f32.mrf.mxu0  ;;  %10653 = vmatmul.msk.f32.gmra.mxu1 %vm403_vm1, %v15352_v27  ;;  %v15877_v27 = vld [vmem:[#allocation5_spill] sm:$0xff] }
 0x8db   : > { %v9281_v63 = vadd.f32 %v9105_v29, %v8235_v32  ;;  %10911 = vmatmul.msk.f32.gmra.mxu2 %vm403_vm1, %v10781_v1  ;;  %v11044_v1 = vld [vmem:[%s11509_s24 + $0x539] sm:$0xff] }
 0x8dc   : > { %11169 = vmatmul.msk.f32.gmra.mxu3 %vm403_vm1, %v11039_v12  ;;  %v11302_v12 = vld [vmem:[%s11509_s24 + $0x53a] sm:$0xff] }
 0x8dd   : > { %11427 = vmatmul.msk.f32.gmra.mxu0 %vm403_vm1, %v15408_v13  ;;  %9410 = vst.msk [vmem:[%s13952_s8 + $0x340] sm:$0xff] %vm9305_vm2, %v9281_v63 }
 0x8de   : > { %v7016_v61 = vpop.f32.mrf.mxu2 }
 0x8df   : > { %v7190_v3 = vadd.f32 %v7016_v61, %v6143_v43  ;;  %v8062_v17 = vpop.f32.mrf.mxu3  ;;  %v5972_v18 = vpop.f32.mrf.mxu1 }
 0x8e0   : > { %v6144_v37 = vadd.f32 %v5972_v18, %v15877_v27 }
 0x8e1   : > { %v8236_v6 = vadd.f32 %v8062_v17, %v7190_v3  ;;  %v10787_v17 = vld [vmem:[%s11509_s24 + $0x540] sm:$0xff] }
 0x8e2   : > { %v9111_v57 = vpop.f32.mrf.mxu0  ;;  %10654 = vmatmul.msk.f32.gmra.mxu1 %vm403_vm1, %v15366_v33  ;;  %v15878_v33 = vld [vmem:[#allocation7_spill] sm:$0xff] }
 0x8e3   : > { %v9282_v58 = vadd.f32 %v9108_v54, %v8236_v6  ;;  %10912 = vmatmul.msk.f32.gmra.mxu2 %vm403_vm1, %v10782_v36  ;;  %v11045_v36 = vld [vmem:[%s11509_s24 + $0x541] sm:$0xff] }
 0x8e4   : > { %11170 = vmatmul.msk.f32.gmra.mxu3 %vm403_vm1, %v11040_v50  ;;  %v11303_v50 = vld [vmem:[%s11509_s24 + $0x542] sm:$0xff] }
 0x8e5   : > { %11428 = vmatmul.msk.f32.gmra.mxu0 %vm403_vm1, %v15422_v62  ;;  %9411 = vst.msk [vmem:[%s13952_s8 + $0x348] sm:$0xff] %vm9305_vm2, %v9282_v58 }
 0x8e6   : > { %v7019_v8 = vpop.f32.mrf.mxu2 }
 0x8e7   : > { %v7191_v23 = vadd.f32 %v7019_v8, %v6144_v37  ;;  %v8065_v26 = vpop.f32.mrf.mxu3  ;;  %v5975_v59 = vpop.f32.mrf.mxu1 }
 0x8e8   : > { %v6145_v49 = vadd.f32 %v5975_v59, %v15878_v33 }
 0x8e9   : > { %v8237_v40 = vadd.f32 %v8065_v26, %v7191_v23 }
 0x8ea   : > { %v9114_v16 = vpop.f32.mrf.mxu0  ;;  %10655 = vmatmul.msk.f32.gmra.mxu1 %vm403_vm1, %v15380_v22  ;;  %v15879_v22 = vld [vmem:[#allocation10_spill] sm:$0xff] }
 0x8eb   : > { %v9283_v31 = vadd.f32 %v9111_v57, %v8237_v40  ;;  %10913 = vmatmul.msk.f32.gmra.mxu2 %vm403_vm1, %v10783_v11  ;;  %v15883_v40 = vld [vmem:[#allocation22_spill] sm:$0xff] }
 0x8ec   : > { %11171 = vmatmul.msk.f32.gmra.mxu3 %vm403_vm1, %v11041_v5 }
 0x8ed   : > { %11429 = vmatmul.msk.f32.gmra.mxu0 %vm403_vm1, %v15436_v47  ;;  %9412 = vst.msk [vmem:[%s13952_s8 + $0x350] sm:$0xff] %vm9305_vm2, %v9283_v31 }
 0x8ee   : > { %v7022_v4 = vpop.f32.mrf.mxu2 }
 0x8ef   : > { %v7192_v30 = vadd.f32 %v7022_v4, %v6145_v49  ;;  %v8068_v25 = vpop.f32.mrf.mxu3  ;;  %v5978_v34 = vpop.f32.mrf.mxu1 }
 0x8f0   : > { %v6146_v42 = vadd.f32 %v5978_v34, %v15879_v22 }
 0x8f1   : > { %v8238_v28 = vadd.f32 %v8068_v25, %v7192_v30  ;;  %v15884_v25 = vld [vmem:[#allocation25_spill] sm:$0xff] }
 0x8f2   : > { %v9117_v41 = vpop.f32.mrf.mxu0  ;;  %10656 = vmatmul.msk.f32.gmra.mxu1 %vm403_vm1, %v15394_v39  ;;  %v15880_v39 = vld [vmem:[#allocation13_spill] sm:$0xff] }
 0x8f3   : > { %v9284_v55 = vadd.f32 %v9114_v16, %v8238_v28  ;;  %10914 = vmatmul.msk.f32.gmra.mxu2 %vm403_vm1, %v10784_v35 }
 0x8f4   : > { %11172 = vmatmul.msk.f32.gmra.mxu3 %vm403_vm1, %v11042_v60 }
 0x8f5   : > { %11430 = vmatmul.msk.f32.gmra.mxu0 %vm403_vm1, %v11300_v2  ;;  %9413 = vst.msk [vmem:[%s13952_s8 + $0x358] sm:$0xff] %vm9305_vm2, %v9284_v55 }
 0x8f6   : > { %v7025_v14 = vpop.f32.mrf.mxu2 }
 0x8f7   : > { %v7193_v19 = vadd.f32 %v7025_v14, %v6146_v42  ;;  %v8071_v21 = vpop.f32.mrf.mxu3  ;;  %v5981_v56 = vpop.f32.mrf.mxu1  ;;  %v15885_v42 = vld [vmem:[#allocation28_spill] sm:$0xff] }
 0x8f8   : > { %v6147_v51 = vadd.f32 %v5981_v56, %v15880_v39 }
 0x8f9   : > { %v8239_v24 = vadd.f32 %v8071_v21, %v7193_v19 }
 0x8fa   : > { %v9120_v45 = vpop.f32.mrf.mxu0  ;;  %10657 = vmatmul.msk.f32.gmra.mxu1 %vm403_vm1, %v15408_v13  ;;  %v15881_v13 = vld [vmem:[#allocation16_spill] sm:$0xff] }
 0x8fb   : > { %v9285_v29 = vadd.f32 %v9117_v41, %v8239_v24  ;;  %10915 = vmatmul.msk.f32.gmra.mxu2 %vm403_vm1, %v10785_v52 }
 0x8fc   : > { %11173 = vmatmul.msk.f32.gmra.mxu3 %vm403_vm1, %v11043_v48 }
 0x8fd   : > { %11431 = vmatmul.msk.f32.gmra.mxu0 %vm403_vm1, %v11301_v38  ;;  %9414 = vst.msk [vmem:[%s13952_s8 + $0x360] sm:$0xff] %vm9305_vm2, %v9285_v29  ;;  %v15886_v38 = vld [vmem:[#allocation31_spill] sm:$0xff] }
 0x8fe   : > { %v7028_v9 = vpop.f32.mrf.mxu2 }
 0x8ff   : > { %v7194_v10 = vadd.f32 %v7028_v9, %v6147_v51  ;;  %v8074_v7 = vpop.f32.mrf.mxu3  ;;  %v5984_v0 = vpop.f32.mrf.mxu1 }
 0x900   : > { %v6148_v63 = vadd.f32 %v5984_v0, %v15881_v13 }
 0x901   : > { %v8240_v46 = vadd.f32 %v8074_v7, %v7194_v10 }
 0x902   : > { %v9123_v32 = vpop.f32.mrf.mxu0  ;;  %10658 = vmatmul.msk.f32.gmra.mxu1 %vm403_vm1, %v15422_v62  ;;  %v15882_v62 = vld [vmem:[#allocation19_spill] sm:$0xff] }
 0x903   : > { %v9286_v54 = vadd.f32 %v9120_v45, %v8240_v46  ;;  %10916 = vmatmul.msk.f32.gmra.mxu2 %vm403_vm1, %v10786_v53  ;;  %v15887_v46 = vld [vmem:[#allocation34_spill] sm:$0xff] }
 0x904   : > { %11174 = vmatmul.msk.f32.gmra.mxu3 %vm403_vm1, %v11044_v1 }
 0x905   : > { %11432 = vmatmul.msk.f32.gmra.mxu0 %vm403_vm1, %v11302_v12  ;;  %9415 = vst.msk [vmem:[%s13952_s8 + $0x368] sm:$0xff] %vm9305_vm2, %v9286_v54 }
 0x906   : > { %v7031_v15 = vpop.f32.mrf.mxu2 }
 0x907   : > { %v7195_v43 = vadd.f32 %v7031_v15, %v6148_v63  ;;  %v8077_v61 = vpop.f32.mrf.mxu3  ;;  %v5987_v3 = vpop.f32.mrf.mxu1 }
 0x908   : > { %v6149_v58 = vadd.f32 %v5987_v3, %v15882_v62 }
 0x909   : > { %v8241_v18 = vadd.f32 %v8077_v61, %v7195_v43  ;;  %v15888_v61 = vld [vmem:[#allocation37_spill] sm:$0xff] }
 0x90a   : > { %v9126_v6 = vpop.f32.mrf.mxu0  ;;  %10659 = vmatmul.msk.f32.gmra.mxu1 %vm403_vm1, %v15436_v47 }
 0x90b   : > { %v9287_v57 = vadd.f32 %v9123_v32, %v8241_v18  ;;  %10917 = vmatmul.msk.f32.gmra.mxu2 %vm403_vm1, %v10787_v17 }
 0x90c   : > { %11175 = vmatmul.msk.f32.gmra.mxu3 %vm403_vm1, %v11045_v36 }
 0x90d   : > { %11433 = vmatmul.msk.f32.gmra.mxu0 %vm403_vm1, %v11303_v50  ;;  %9416 = vst.msk [vmem:[%s13952_s8 + $0x370] sm:$0xff] %vm9305_vm2, %v9287_v57 }
 0x90e   : > { %v7034_v27 = vpop.f32.mrf.mxu2 }
 0x90f   : > { %v7196_v37 = vadd.f32 %v7034_v27, %v6149_v58  ;;  %v8080_v8 = vpop.f32.mrf.mxu3  ;;  %v5990_v23 = vpop.f32.mrf.mxu1  ;;  %v15889_v58 = vld [vmem:[#allocation40_spill] sm:$0xff] }
 0x910   : > { %v6150_v5 = vadd.f32 %v5990_v23, %v15883_v40 }
 0x911   : > { %v8242_v26 = vadd.f32 %v8080_v8, %v7196_v37 }
 0x912   : > { %v9129_v59 = vpop.f32.mrf.mxu0 }
 0x913   : > { %v9288_v11 = vadd.f32 %v9126_v6, %v8242_v26 }
 0x915   : > { %9417 = vst.msk [vmem:[%s13952_s8 + $0x378] sm:$0xff] %vm9305_vm2, %v9288_v11 }
 0x916   : > { %v7037_v16 = vpop.f32.mrf.mxu2 }
 0x917   : > { %v7197_v47 = vadd.f32 %v7037_v16, %v6150_v5  ;;  %v8083_v31 = vpop.f32.mrf.mxu3  ;;  %v5993_v33 = vpop.f32.mrf.mxu1  ;;  %v15890_v5 = vld [vmem:[#allocation43_spill] sm:$0xff] }
 0x918   : > { %v6151_v34 = vadd.f32 %v5993_v33, %v15884_v25 }
 0x919   : > { %v8243_v49 = vadd.f32 %v8083_v31, %v7197_v47 }
 0x91a   : > { %v9132_v4 = vpop.f32.mrf.mxu0 }
 0x91b   : > { %v9289_v30 = vadd.f32 %v9129_v59, %v8243_v49 }
 0x91d   : > { %9418 = vst.msk [vmem:[%s13952_s8 + $0x380] sm:$0xff] %vm9305_vm2, %v9289_v30 }
 0x91e   : > { %v7040_v35 = vpop.f32.mrf.mxu2 }
 0x91f   : > { %v7198_v28 = vadd.f32 %v7040_v35, %v6151_v34  ;;  %v8086_v60 = vpop.f32.mrf.mxu3  ;;  %v5996_v41 = vpop.f32.mrf.mxu1  ;;  %v15891_v34 = vld [vmem:[#allocation46_spill] sm:$0xff] }
 0x920   : > { %v6152_v14 = vadd.f32 %v5996_v41, %v15885_v42 }
 0x921   : > { %v8244_v2 = vadd.f32 %v8086_v60, %v7198_v28 }
 0x922   : > { %v9135_v55 = vpop.f32.mrf.mxu0 }
 0x923   : > { %v9290_v22 = vadd.f32 %v9132_v4, %v8244_v2 }
 0x925   : > { %9419 = vst.msk [vmem:[%s13952_s8 + $0x388] sm:$0xff] %vm9305_vm2, %v9290_v22 }
 0x926   : > { %v7043_v19 = vpop.f32.mrf.mxu2 }
 0x927   : > { %v7199_v21 = vadd.f32 %v7043_v19, %v6152_v14  ;;  %v8089_v56 = vpop.f32.mrf.mxu3  ;;  %v5999_v52 = vpop.f32.mrf.mxu1  ;;  %v15892_v14 = vld [vmem:[#allocation49_spill] sm:$0xff] }
 0x928   : > { %v6153_v29 = vadd.f32 %v5999_v52, %v15886_v38 }
 0x929   : > { %v8245_v24 = vadd.f32 %v8089_v56, %v7199_v21 }
 0x92a   : > { %v9138_v48 = vpop.f32.mrf.mxu0 }
 0x92b   : > { %v9291_v45 = vadd.f32 %v9135_v55, %v8245_v24 }
 0x92d   : > { %9420 = vst.msk [vmem:[%s13952_s8 + $0x390] sm:$0xff] %vm9305_vm2, %v9291_v45 }
 0x92e   : > { %v7046_v39 = vpop.f32.mrf.mxu2 }
 0x92f   : > { %v7200_v51 = vadd.f32 %v7046_v39, %v6153_v29  ;;  %v8092_v9 = vpop.f32.mrf.mxu3  ;;  %v6002_v10 = vpop.f32.mrf.mxu1  ;;  %v15893_v29 = vld [vmem:[#allocation52_spill] sm:$0xff] }
 0x930   : > { %v6154_v1 = vadd.f32 %v6002_v10, %v15887_v46 }
 0x931   : > { %v8246_v7 = vadd.f32 %v8092_v9, %v7200_v51 }
 0x932   : > { %v9141_v0 = vpop.f32.mrf.mxu0 }
 0x933   : > { %v9292_v53 = vadd.f32 %v9138_v48, %v8246_v7 }
 0x935   : > { %9421 = vst.msk [vmem:[%s13952_s8 + $0x398] sm:$0xff] %vm9305_vm2, %v9292_v53 }
 0x936   : > { %v7049_v32 = vpop.f32.mrf.mxu2 }
 0x937   : > { %v7201_v12 = vadd.f32 %v7049_v32, %v6154_v1  ;;  %v8095_v54 = vpop.f32.mrf.mxu3  ;;  %v6005_v13 = vpop.f32.mrf.mxu1  ;;  %v15894_v1 = vld [vmem:[#allocation55_spill] sm:$0xff] }
 0x938   : > { %v6155_v3 = vadd.f32 %v6005_v13, %v15888_v61 }
 0x939   : > { %v8247_v63 = vadd.f32 %v8095_v54, %v7201_v12 }
 0x93a   : > { %v9144_v15 = vpop.f32.mrf.mxu0 }
 0x93b   : > { %v9293_v43 = vadd.f32 %v9141_v0, %v8247_v63 }
 0x93d   : > { %9422 = vst.msk [vmem:[%s13952_s8 + $0x3a0] sm:$0xff] %vm9305_vm2, %v9293_v43 }
 0x93e   : > { %v7052_v17 = vpop.f32.mrf.mxu2 }
 0x93f   : > { %v7202_v18 = vadd.f32 %v7052_v17, %v6155_v3  ;;  %v8098_v36 = vpop.f32.mrf.mxu3  ;;  %v6008_v6 = vpop.f32.mrf.mxu1  ;;  %v15895_v3 = vld [vmem:[#allocation58_spill] sm:$0xff] }
 0x940   : > { %v6156_v27 = vadd.f32 %v6008_v6, %v15889_v58 }
 0x941   : > { %v8248_v50 = vadd.f32 %v8098_v36, %v7202_v18 }
 0x942   : > { %v9147_v57 = vpop.f32.mrf.mxu0 }
 0x943   : > { %v9294_v62 = vadd.f32 %v9144_v15, %v8248_v50 }
 0x945   : > { %9423 = vst.msk [vmem:[%s13952_s8 + $0x3a8] sm:$0xff] %vm9305_vm2, %v9294_v62 }
 0x946   : > { %v7055_v37 = vpop.f32.mrf.mxu2 }
 0x947   : > { %v7203_v8 = vadd.f32 %v7055_v37, %v6156_v27  ;;  %v8101_v23 = vpop.f32.mrf.mxu3  ;;  %v6011_v26 = vpop.f32.mrf.mxu1 }
 0x948   : > { %v6157_v16 = vadd.f32 %v6011_v26, %v15890_v5 }
 0x949   : > { %v8249_v59 = vadd.f32 %v8101_v23, %v7203_v8 }
 0x94a   : > { %v9150_v11 = vpop.f32.mrf.mxu0 }
 0x94b   : > { %v9295_v40 = vadd.f32 %v9147_v57, %v8249_v59 }
 0x94d   : > { %9424 = vst.msk [vmem:[%s13952_s8 + $0x3b0] sm:$0xff] %vm9305_vm2, %v9295_v40  ;;  %v15896_v40 = vld [vmem:[#allocation61_spill] sm:$0xff] }
 0x94e   : > { %v7058_v47 = vpop.f32.mrf.mxu2 }
 0x94f   : > { %v7204_v31 = vadd.f32 %v7058_v47, %v6157_v16  ;;  %v8104_v33 = vpop.f32.mrf.mxu3  ;;  %v6014_v49 = vpop.f32.mrf.mxu1 }
 0x950   : > { %v6158_v35 = vadd.f32 %v6014_v49, %v15891_v34 }
 0x951   : > { %v8250_v4 = vadd.f32 %v8104_v33, %v7204_v31 }
 0x952   : > { %v9153_v30 = vpop.f32.mrf.mxu0 }
 0x953   : > { %v9296_v25 = vadd.f32 %v9150_v11, %v8250_v4 }
 0x955   : > { %9425 = vst.msk [vmem:[%s13952_s8 + $0x3b8] sm:$0xff] %vm9305_vm2, %v9296_v25 }
 0x956   : > { %v7061_v28 = vpop.f32.mrf.mxu2 }
 0x957   : > { %v7205_v60 = vadd.f32 %v7061_v28, %v6158_v35  ;;  %v8107_v41 = vpop.f32.mrf.mxu3  ;;  %v6017_v2 = vpop.f32.mrf.mxu1 }
 0x958   : > { %v6159_v19 = vadd.f32 %v6017_v2, %v15892_v14 }
 0x959   : > { %v8251_v55 = vadd.f32 %v8107_v41, %v7205_v60 }
 0x95a   : > { %v9156_v22 = vpop.f32.mrf.mxu0 }
 0x95b   : > { %v9297_v42 = vadd.f32 %v9153_v30, %v8251_v55 }
 0x95d   : > { %9426 = vst.msk [vmem:[%s13952_s8 + $0x3c0] sm:$0xff] %vm9305_vm2, %v9297_v42 }
 0x95e   : > { %v7064_v21 = vpop.f32.mrf.mxu2 }
 0x95f   : > { %v7206_v56 = vadd.f32 %v7064_v21, %v6159_v19  ;;  %v8110_v52 = vpop.f32.mrf.mxu3  ;;  %v6020_v24 = vpop.f32.mrf.mxu1 }
 0x960   : > { %v6160_v39 = vadd.f32 %v6020_v24, %v15893_v29 }
 0x961   : > { %v8252_v48 = vadd.f32 %v8110_v52, %v7206_v56 }
 0x962   : > { %v9159_v45 = vpop.f32.mrf.mxu0 }
 0x963   : > { %v9298_v38 = vadd.f32 %v9156_v22, %v8252_v48 }
 0x965   : > { %9427 = vst.msk [vmem:[%s13952_s8 + $0x3c8] sm:$0xff] %vm9305_vm2, %v9298_v38 }
 0x966   : > { %v7067_v51 = vpop.f32.mrf.mxu2 }
 0x967   : > { %v7207_v9 = vadd.f32 %v7067_v51, %v6160_v39  ;;  %v8113_v10 = vpop.f32.mrf.mxu3  ;;  %v6023_v7 = vpop.f32.mrf.mxu1 }
 0x968   : > { %v6161_v32 = vadd.f32 %v6023_v7, %v15894_v1 }
 0x969   : > { %v8253_v0 = vadd.f32 %v8113_v10, %v7207_v9 }
 0x96a   : > { %v9162_v53 = vpop.f32.mrf.mxu0 }
 0x96b   : > { %v9299_v46 = vadd.f32 %v9159_v45, %v8253_v0 }
 0x96d   : > { %9428 = vst.msk [vmem:[%s13952_s8 + $0x3d0] sm:$0xff] %vm9305_vm2, %v9299_v46 }
 0x96e   : > { %v7070_v12 = vpop.f32.mrf.mxu2 }
 0x96f   : > { %v7208_v54 = vadd.f32 %v7070_v12, %v6161_v32  ;;  %v8116_v13 = vpop.f32.mrf.mxu3  ;;  %v6026_v63 = vpop.f32.mrf.mxu1 }
 0x970   : > { %v6162_v17 = vadd.f32 %v6026_v63, %v15895_v3 }
 0x971   : > { %v8254_v15 = vadd.f32 %v8116_v13, %v7208_v54 }
 0x972   : > { %v9165_v43 = vpop.f32.mrf.mxu0 }
 0x973   : > { %v9300_v61 = vadd.f32 %v9162_v53, %v8254_v15 }
 0x975   : > { %9429 = vst.msk [vmem:[%s13952_s8 + $0x3d8] sm:$0xff] %vm9305_vm2, %v9300_v61 }
 0x976   : > { %v7073_v18 = vpop.f32.mrf.mxu2 }
 0x977   : > { %v7209_v36 = vadd.f32 %v7073_v18, %v6162_v17  ;;  %v8119_v6 = vpop.f32.mrf.mxu3  ;;  %v6029_v50 = vpop.f32.mrf.mxu1 }
 0x978   : > { %v6163_v27 = vadd.f32 %v6029_v50, %v13909_v20 }
 0x979   : > { %v8255_v57 = vadd.f32 %v8119_v6, %v7209_v36 }
 0x97a   : > { %v9168_v58 = vpop.f32.mrf.mxu0 }
 0x97b   : > { %v9301_v62 = vadd.f32 %v9165_v43, %v8255_v57 }
 0x97d   : > { %9430 = vst.msk [vmem:[%s13952_s8 + $0x3e0] sm:$0xff] %vm9305_vm2, %v9301_v62 }
 0x97e   : > { %v7076_v37 = vpop.f32.mrf.mxu2 }
 0x97f   : > { %v7210_v8 = vadd.f32 %v7076_v37, %v6163_v27  ;;  %v8122_v23 = vpop.f32.mrf.mxu3  ;;  %v6032_v26 = vpop.f32.mrf.mxu1 }
 0x980   : > { %v6164_v5 = vadd.f32 %v6032_v26, %v15896_v40 }
 0x981   : > { %v8256_v59 = vadd.f32 %v8122_v23, %v7210_v8 }
 0x982   : > { %v9171_v47 = vpop.f32.mrf.mxu0 }
 0x983   : > { %v9302_v11 = vadd.f32 %v9168_v58, %v8256_v59 }
 0x985   : > { %9431 = vst.msk [vmem:[%s13952_s8 + $0x3e8] sm:$0xff] %vm9305_vm2, %v9302_v11 }
 0x986   : > { %v7079_v16 = vpop.f32.mrf.mxu2 }
 0x987   : > { %v7211_v31 = vadd.f32 %v7079_v16, %v6164_v5  ;;  %v8125_v33 = vpop.f32.mrf.mxu3  ;;  %v6035_v20 = vpop.f32.mrf.mxu1 }
 0x988   : > { %v6165_v30 = vadd.f32 %v6035_v20, %v13935_v44 }
 0x989   : > { %v8257_v49 = vadd.f32 %v8125_v33, %v7211_v31 }
 0x98a   : > { %v9174_v28 = vpop.f32.mrf.mxu0 }
 0x98b   : > { %v9303_v4 = vadd.f32 %v9171_v47, %v8257_v49 }
 0x98d   : > { %9432 = vst.msk [vmem:[%s13952_s8 + $0x3f0] sm:$0xff] %vm9305_vm2, %v9303_v4 }
 0x98e   : > { %v7082_v25 = vpop.f32.mrf.mxu2 }
 0x98f   : > { %v7212_v34 = vadd.f32 %v7082_v25, %v6165_v30  ;;  %v8128_v35 = vpop.f32.mrf.mxu3 }
 0x991   : > { %v8258_v60 = vadd.f32 %v8128_v35, %v7212_v34 }
 0x993   : > { %v9304_v41 = vadd.f32 %v9174_v28, %v8258_v60 }
 0x995   : > { %9433 = vst.msk [vmem:[%s13952_s8 + $0x3f8] sm:$0xff] %vm9305_vm2, %v9304_v41 }
 0x996 PF: > { %s12_s9 = sadd.s32 1, %s11455_s9  }
 0x997   : > { %p9_p4 = scmp.ge.s32.totalorder %s12_s9, 4  }
 0x999   :  { %11 = sbr.rel (!%p9_p4) target bundleno = 1 (0x1), region = 68 }

</bundles_post_ra>
